<compile_context>
chip_gen: v7x
topology: tpu7x:2x2x1
jax: 0.10.0
libtpu: 0.0.40
codegen_flags: <defaults>
</compile_context>

<pallas_src>
import functools

import jax
import jax.numpy as jnp
from jax import lax
from jax.experimental import pallas as pl
from jax.experimental.pallas import tpu as pltpu


# ----------------------------------------------------------------------------
# helpers
# ----------------------------------------------------------------------------
def _round_up(x, m):
    return (x + m - 1) // m * m


def _largest_divisor_leq(n, target):
    for d in range(min(n, max(1, target)), 0, -1):
        if n % d == 0:
            return d
    return 1


def _tpu_vmem_cap_bytes():
    try:
        return int(pltpu.get_tpu_info().vmem_capacity_bytes)
    except Exception:
        return 64 << 20          # conservative fallback (v7x per-core VMEM)


def _vmem_limit_bytes(estimate_bytes):
    """Generation-aware scoped-VMEM limit: generous, but below physical."""
    cap = int(_tpu_vmem_cap_bytes() * 0.85)      # ~108 MiB v5e/v6e, ~54 MiB v7x
    want = int(2 * estimate_bytes + (4 << 20))
    return int(max(min(want, cap), min(32 << 20, cap)))


# ----------------------------------------------------------------------------
# Fused per-layer kernel: streamed input projection + bidirectional recurrence
# ----------------------------------------------------------------------------
def _bilstm_layer_kernel(slab_offs, hidden, t_chunk, b_blk, unroll, *refs):
    """Grid = (batch_blocks ["parallel"], t_chunks ["arbitrary"]).

    refs (in order):
      inputs : xf_0..xf_{n-1}   forward-ordered T-chunk of each input slab
               xb_0..xb_{n-1}   reverse-ordered  T-chunk of each input slab
               wih (Din, 8H) bf16   columns [fwd i,f,g,o | bwd i,f,g,o]
               b   (1,   8H) f32
               whh (2H,  8H) bf16   block-diagonal, rows [h_f | h_b]
      outputs: out_f (tc, b_blk, H) bf16  (natural time order)
               out_b (tc, b_blk, H) bf16  (block index reversed over T-chunks)
      scratch: gxf (tc*b_blk, 4H) f32, gxb (tc*b_blk, 4H) f32,
               h (b_blk, 2H) bf16, c (b_blk, 2H) f32
    """
    n = len(slab_offs)
    xf_refs = refs[:n]
    xb_refs = refs[n:2 * n]
    wih_ref, b_ref, whh_ref = refs[2 * n:2 * n + 3]
    out_f_ref, out_b_ref = refs[2 * n + 3:2 * n + 5]
    gxf_sc, gxb_sc, h_sc, c_sc = refs[2 * n + 5:2 * n + 9]

    h = hidden
    h4 = 4 * h
    tc = t_chunk
    rows = tc * b_blk

    # Reset the recurrent carries at the first time chunk of every batch block.
    @pl.when(pl.program_id(1) == 0)
    def _():
        h_sc[...] = jnp.zeros_like(h_sc)
        c_sc[...] = jnp.zeros_like(c_sc)

    # ---- Input projection for this chunk (both directions), hoisted out of
    # the recurrence: one MXU matmul per slab per direction, bias folded in.
    def proj(x_refs, col0):
        acc = None
        for (off, width), xr in zip(slab_offs, x_refs):
            xv = xr[...].reshape(rows, width)                    # bf16
            d = jnp.dot(xv, wih_ref[off:off + width, col0:col0 + h4],
                        preferred_element_type=jnp.float32)
            acc = d if acc is None else acc + d
        return acc + b_ref[:, col0:col0 + h4]

    gxf_sc[...] = proj(xf_refs, 0)       # forward chain gates_x (time order)
    gxb_sc[...] = proj(xb_refs, h4)      # backward chain gates_x (chunk is the
                                         # reverse-ordered time chunk)

    # ---- Recurrence over the chunk: one block-diagonal (B,2H)x(2H,8H) matmul
    # per step feeds both chains; bf16 h carry, f32 c carry.
    def step(t, carry):
        r = jnp.dot(h_sc[...], whh_ref[...],
                    preferred_element_type=jnp.float32)          # (b_blk, 8H)
        row_f = pl.multiple_of(t * b_blk, b_blk)
        row_b = pl.multiple_of((tc - 1 - t) * b_blk, b_blk)
        gates_f = gxf_sc[pl.ds(row_f, b_blk), :] + r[:, :h4]
        gates_b = gxb_sc[pl.ds(row_b, b_blk), :] + r[:, h4:]
        cv = c_sc[...]

        def cell(g, c_prev):
            # PyTorch gate order [i, f, g, o]
            i_g = jax.nn.sigmoid(g[:, 0:h])
            f_g = jax.nn.sigmoid(g[:, h:2 * h])
            g_g = jnp.tanh(g[:, 2 * h:3 * h])
            o_g = jax.nn.sigmoid(g[:, 3 * h:4 * h])
            c_new = f_g * c_prev + i_g * g_g
            return o_g * jnp.tanh(c_new), c_new

        hf, cf = cell(gates_f, cv[:, :h])
        hb, cb = cell(gates_b, cv[:, h:])
        c_sc[...] = jnp.concatenate([cf, cb], axis=-1)
        hf16 = hf.astype(out_f_ref.dtype)
        hb16 = hb.astype(out_b_ref.dtype)
        h_sc[...] = jnp.concatenate([hf16, hb16], axis=-1)
        # Full-width stores; backward half lands at local index tc-1-t of the
        # reversed output block, i.e. at its natural global time position.
        out_f_ref[t] = hf16
        out_b_ref[tc - 1 - t] = hb16
        return carry

    lax.fori_loop(0, tc, step, 0, unroll=unroll)


def run_bilstm_layer(x_slabs, wih, bias, whh, hidden):
    """x_slabs: list of (T, B_pad, Din_s) bf16 arrays whose feature concat is
    the layer input.  Returns (out_f, out_b), each (T, B_pad, H) bf16."""
    t_len, b_pad = x_slabs[0].shape[:2]
    h = hidden

    # Streaming window over T (carries cross chunks via scratch).
    t_chunk = _largest_divisor_leq(t_len, 32)
    num_chunks = t_len // t_chunk
    # Split the batch across two blocks when it is big enough so v7x's two
    # TensorCores each run an independent half-batch recurrence.
    num_b_blocks = 2 if b_pad >= 32 else 1
    b_blk = b_pad // num_b_blocks
    unroll = True if t_chunk <= 16 else 8

    slab_offs, off = [], 0
    for s in x_slabs:
        slab_offs.append((off, int(s.shape[-1])))
        off += int(s.shape[-1])

    fwd_map = lambda b, c: (c, b, 0)
    bwd_map = lambda b, c: (num_chunks - 1 - c, b, 0)
    full2d = lambda arr: pl.BlockSpec(arr.shape, lambda b, c: (0, 0))

    in_specs = (
        [pl.BlockSpec((t_chunk, b_blk, s.shape[-1]), fwd_map) for s in x_slabs]
        + [pl.BlockSpec((t_chunk, b_blk, s.shape[-1]), bwd_map) for s in x_slabs]
        + [full2d(wih), full2d(bias), full2d(whh)])
    out_specs = (pl.BlockSpec((t_chunk, b_blk, h), fwd_map),
                 pl.BlockSpec((t_chunk, b_blk, h), bwd_map))
    out_shape = (jax.ShapeDtypeStruct((t_len, b_pad, h), jnp.bfloat16),
                 jax.ShapeDtypeStruct((t_len, b_pad, h), jnp.bfloat16))
    scratch = [pltpu.VMEM((t_chunk * b_blk, 4 * h), jnp.float32),
               pltpu.VMEM((t_chunk * b_blk, 4 * h), jnp.float32),
               pltpu.VMEM((b_blk, 2 * h), jnp.bfloat16),
               pltpu.VMEM((b_blk, 2 * h), jnp.float32)]

    est = 0
    for s in x_slabs:                                   # 2 streams x 2 buffers
        est += 4 * t_chunk * b_blk * s.shape[-1] * s.dtype.itemsize
    est += 4 * t_chunk * b_blk * h * 2                  # 2 outputs x 2 buffers
    est += wih.size * 2 + bias.size * 4 + whh.size * 2  # weights
    est += 2 * t_chunk * b_blk * 4 * h * 4              # gx scratch
    est += b_blk * 2 * h * 6                            # carries

    kernel = functools.partial(_bilstm_layer_kernel, tuple(slab_offs), h,
                               t_chunk, b_blk, unroll)
    return pl.pallas_call(
        kernel,
        out_shape=out_shape,
        grid=(num_b_blocks, num_chunks),
        in_specs=in_specs,
        out_specs=out_specs,
        scratch_shapes=scratch,
        compiler_params=pltpu.CompilerParams(
            dimension_semantics=("parallel", "arbitrary"),
            vmem_limit_bytes=_vmem_limit_bytes(est)),
    )(*x_slabs, *x_slabs, wih, bias, whh)


# ----------------------------------------------------------------------------
# Fused LayerNorm + classifier (consumes the fwd/bwd slabs directly, gridded
# over T-chunks, lane-dense padded logits)
# ----------------------------------------------------------------------------
def _ln_cls_kernel(hidden, xf_ref, xb_ref, g_ref, bta_ref, w_ref, b_ref, o_ref):
    h = hidden
    tr, bp, _ = xf_ref.shape
    rows = tr * bp
    xf = xf_ref[...].astype(jnp.float32).reshape(rows, h)
    xb = xb_ref[...].astype(jnp.float32).reshape(rows, h)
    inv_n = 1.0 / (2 * h)
    mean = (jnp.sum(xf, -1, keepdims=True) + jnp.sum(xb, -1, keepdims=True)) * inv_n
    df, db = xf - mean, xb - mean
    var = (jnp.sum(df * df, -1, keepdims=True)
           + jnp.sum(db * db, -1, keepdims=True)) * inv_n
    rstd = lax.rsqrt(var + 1e-5)
    gam, bet = g_ref[...], bta_ref[...]
    yf = df * rstd * gam[:, :h] + bet[:, :h]
    yb = db * rstd * gam[:, h:] + bet[:, h:]
    logits = (jnp.dot(yf.astype(jnp.bfloat16), w_ref[:h, :],
                      preferred_element_type=jnp.float32)
              + jnp.dot(yb.astype(jnp.bfloat16), w_ref[h:, :],
                        preferred_element_type=jnp.float32)
              + b_ref[...])
    o_ref[...] = logits.reshape(tr, bp, -1)


def run_ln_classifier(out_f, out_b, gamma, beta, w_pad, b_pad_arr, hidden):
    t_len, bp, _ = out_f.shape
    lp = w_pad.shape[1]
    tr = _largest_divisor_leq(t_len, max(1, 1024 // bp))   # ~1024-row tiles
    grid = (t_len // tr,)
    spec_x = pl.BlockSpec((tr, bp, hidden), lambda i: (i, 0, 0))
    const = lambda arr: pl.BlockSpec(arr.shape, lambda i: (0, 0))

    est = (4 * tr * bp * hidden * 2 * 2 + 2 * tr * bp * lp * 4
           + w_pad.size * 2 + b_pad_arr.size * 4 + gamma.size * 8)
    return pl.pallas_call(
        functools.partial(_ln_cls_kernel, hidden),
        out_shape=jax.ShapeDtypeStruct((t_len, bp, lp), jnp.float32),
        grid=grid,
        in_specs=[spec_x, spec_x, const(gamma), const(beta),
                  const(w_pad), const(b_pad_arr)],
        out_specs=pl.BlockSpec((tr, bp, lp), lambda i: (i, 0, 0)),
        compiler_params=pltpu.CompilerParams(
            dimension_semantics=("parallel",),
            vmem_limit_bytes=_vmem_limit_bytes(est)),
    )(out_f, out_b, gamma, beta, w_pad, b_pad_arr)


# ----------------------------------------------------------------------------
# Parameter construction (deterministic, synthetic) + packing to fused layout
# ----------------------------------------------------------------------------
def _pack_bilstm_layer(wih_f, whh_f, b_f, wih_b, whh_b, b_b, hidden):
    """Kernel layout:
       wih : (Din, 8H) bf16, columns [ fwd i,f,g,o | bwd i,f,g,o ]
       b   : (1, 8H)  f32,  same column order (b_ih + b_hh folded together)
       whh : (2H, 8H) bf16, block-diagonal: h_f rows -> fwd gate columns,
                                            h_b rows -> bwd gate columns."""
    h = hidden
    wih = jnp.concatenate([wih_f, wih_b], axis=1).astype(jnp.bfloat16)
    bias = jnp.concatenate([b_f, b_b], axis=1).astype(jnp.float32)
    whh = jnp.zeros((2 * h, 8 * h), jnp.float32)
    whh = whh.at[:h, :4 * h].set(whh_f).at[h:, 4 * h:].set(whh_b)
    return {"wih": wih, "b": bias, "whh": whh.astype(jnp.bfloat16)}


def init_params(key, vocab_size, embedding_size, hidden_size, num_labels):
    keys = jax.random.split(key, 32)
    k = iter(keys)
    h = hidden_size

    def unif(rng, shape, scale):
        return jax.random.uniform(rng, shape, jnp.float32, -scale, scale)

    s = 1.0 / h ** 0.5
    cls_s = 1.0 / (2 * h) ** 0.5
    cls_w = unif(next(k), (2 * h, num_labels), cls_s)
    cls_b = unif(next(k), (1, num_labels), cls_s)
    lp = _round_up(num_labels, 128)          # lane-dense classifier output

    params = {
        "embedding": jax.random.normal(next(k), (vocab_size, embedding_size),
                                       jnp.float32),
        "lstm": [],
        "ln_gamma": jnp.ones((1, 2 * h), jnp.float32),
        "ln_beta": jnp.zeros((1, 2 * h), jnp.float32),
        "cls_w_pad": jnp.zeros((2 * h, lp), jnp.bfloat16)
                        .at[:, :num_labels].set(cls_w.astype(jnp.bfloat16)),
        "cls_b_pad": jnp.zeros((1, lp), jnp.float32)
                        .at[:, :num_labels].set(cls_b),
    }
    for layer in range(2):
        din = embedding_size if layer == 0 else 2 * h
        # PyTorch nn.LSTM has bias_ih + bias_hh per direction; fold both.
        wih_f = unif(next(k), (din, 4 * h), s)
        whh_f = unif(next(k), (h, 4 * h), s)
        b_f = unif(next(k), (1, 4 * h), s) + unif(next(k), (1, 4 * h), s)
        wih_b = unif(next(k), (din, 4 * h), s)
        whh_b = unif(next(k), (h, 4 * h), s)
        b_b = unif(next(k), (1, 4 * h), s) + unif(next(k), (1, 4 * h), s)
        params["lstm"].append(
            _pack_bilstm_layer(wih_f, whh_f, b_f, wih_b, whh_b, b_b, h))
    return params


# ----------------------------------------------------------------------------
# Forward pass
# ----------------------------------------------------------------------------
@functools.partial(jax.jit, static_argnames=("num_labels",))
def ner_forward(params, input_ids, input_mask, *, num_labels):
    # Embedding gather (plain JAX glue).
    embs = jnp.take(params["embedding"], input_ids, axis=0)       # (B, T, E)
    # SpatialDropout(p=0.1) and inter-layer LSTM dropout are identity in eval.
    # TODO(synk): training-mode SpatialDropout (channel Bernoulli) not implemented.
    embs = embs * input_mask.astype(jnp.float32)[..., None]

    # Time-major bf16 activations; pad batch to a multiple of 16 (bf16 tile
    # alignment + sublane occupancy); padded rows are sliced away at the end.
    x = jnp.transpose(embs, (1, 0, 2)).astype(jnp.bfloat16)       # (T, B, E)
    t_len, batch, _ = x.shape
    b_pad = _round_up(max(batch, 16), 16)
    if b_pad != batch:
        x = jnp.pad(x, ((0, 0), (0, b_pad - batch), (0, 0)))

    hidden = params["lstm"][0]["whh"].shape[0] // 2
    slabs = [x]
    for layer_p in params["lstm"]:
        out_f, out_b = run_bilstm_layer(slabs, layer_p["wih"], layer_p["b"],
                                        layer_p["whh"], hidden)
        slabs = [out_f, out_b]          # next layer consumes both slabs (no
                                        # HBM concat); PyTorch row order f|b.

    feats = run_ln_classifier(slabs[0], slabs[1],
                              params["ln_gamma"], params["ln_beta"],
                              params["cls_w_pad"], params["cls_b_pad"], hidden)
    feats = feats[:, :batch, :num_labels]                         # (T, B, L)
    return jnp.transpose(feats, (1, 0, 2))                        # (B, T, L)


if __name__ == "__main__":
    VOCAB, EMB, HID, LABELS = 50, 16, 32, 9
    B, T = 2, 8

    key = jax.random.PRNGKey(0)
    pkey, ikey = jax.random.split(key)
    params = init_params(pkey, VOCAB, EMB, HID, LABELS)

    input_ids = jax.random.randint(ikey, (B, T), 0, VOCAB, dtype=jnp.int32)
    input_mask = jnp.ones((B, T), dtype=jnp.int32).at[1, 6:].set(0)

    features = ner_forward(params, input_ids, input_mask, num_labels=LABELS)
    features = jax.block_until_ready(features)

    assert features.shape == (B, T, LABELS), features.shape
    assert bool(jnp.all(jnp.isfinite(features)))
    print("KERNEL_OK")
</pallas_src>

<mosaic_0001>
module attributes {stable_mosaic.version = 11 : i64} {
  func.func @_ln_cls_kernel(%arg0: i32, %arg1: memref<8x16x32xbf16, #tpu.memory_space<vmem>>, %arg2: memref<8x16x32xbf16, #tpu.memory_space<vmem>>, %arg3: memref<1x64xf32, #tpu.memory_space<vmem>>, %arg4: memref<1x64xf32, #tpu.memory_space<vmem>>, %arg5: memref<64x128xbf16, #tpu.memory_space<vmem>>, %arg6: memref<1x128xf32, #tpu.memory_space<vmem>>, %arg7: memref<8x16x128xf32, #tpu.memory_space<vmem>>) attributes {dimension_semantics = [#tpu.dimension_semantics<parallel>], iteration_bounds = array<i64: 1>, scalar_prefetch = 0 : i64, scratch_operands = 0 : i64, tpu.core_type = #tpu.core_type<tc>, window_params = [{transform_indices = @transform_0, window_bounds = array<i64: 8, 16, 32>}, {transform_indices = @transform_1, window_bounds = array<i64: 8, 16, 32>}, {pipeline_mode = #tpu.pipeline_mode<synchronous>, transform_indices = @transform_2, window_bounds = array<i64: 1, 64>}, {pipeline_mode = #tpu.pipeline_mode<synchronous>, transform_indices = @transform_3, window_bounds = array<i64: 1, 64>}, {pipeline_mode = #tpu.pipeline_mode<synchronous>, transform_indices = @transform_4, window_bounds = array<i64: 64, 128>}, {pipeline_mode = #tpu.pipeline_mode<synchronous>, transform_indices = @transform_5, window_bounds = array<i64: 1, 128>}, {transform_indices = @transform_6, window_bounds = array<i64: 8, 16, 128>}]} {
    %c0 = arith.constant 0 : index
    %c0_0 = arith.constant 0 : index
    %c0_1 = arith.constant 0 : index
    %0 = vector.load %arg1[%c0, %c0_0, %c0_1] : memref<8x16x32xbf16, #tpu.memory_space<vmem>>, vector<8x16x32xbf16>
    %1 = arith.extf %0 : vector<8x16x32xbf16> to vector<8x16x32xf32>
    %2 = vector.shape_cast %1 : vector<8x16x32xf32> to vector<128x32xf32>
    %c0_2 = arith.constant 0 : index
    %c0_3 = arith.constant 0 : index
    %c0_4 = arith.constant 0 : index
    %3 = vector.load %arg2[%c0_2, %c0_3, %c0_4] : memref<8x16x32xbf16, #tpu.memory_space<vmem>>, vector<8x16x32xbf16>
    %4 = arith.extf %3 : vector<8x16x32xbf16> to vector<8x16x32xf32>
    %5 = vector.shape_cast %4 : vector<8x16x32xf32> to vector<128x32xf32>
    %cst = arith.constant dense<0.000000e+00> : vector<128xf32>
    %6 = vector.multi_reduction <add>, %2, %cst [1] : vector<128x32xf32> to vector<128xf32>
    %7 = vector.shape_cast %6 : vector<128xf32> to vector<128x1xf32>
    %cst_5 = arith.constant dense<0.000000e+00> : vector<128xf32>
    %8 = vector.multi_reduction <add>, %5, %cst_5 [1] : vector<128x32xf32> to vector<128xf32>
    %9 = vector.shape_cast %8 : vector<128xf32> to vector<128x1xf32>
    %10 = arith.addf %7, %9 : vector<128x1xf32>
    %cst_6 = arith.constant 1.562500e-02 : f32
    %11 = vector.broadcast %cst_6 : f32 to vector<128x1xf32>
    %12 = arith.mulf %10, %11 : vector<128x1xf32>
    %13 = vector.broadcast %12 : vector<128x1xf32> to vector<128x32xf32>
    %14 = arith.subf %2, %13 : vector<128x32xf32>
    %15 = vector.broadcast %12 : vector<128x1xf32> to vector<128x32xf32>
    %16 = arith.subf %5, %15 : vector<128x32xf32>
    %17 = arith.mulf %14, %14 : vector<128x32xf32>
    %cst_7 = arith.constant dense<0.000000e+00> : vector<128xf32>
    %18 = vector.multi_reduction <add>, %17, %cst_7 [1] : vector<128x32xf32> to vector<128xf32>
    %19 = vector.shape_cast %18 : vector<128xf32> to vector<128x1xf32>
    %20 = arith.mulf %16, %16 : vector<128x32xf32>
    %cst_8 = arith.constant dense<0.000000e+00> : vector<128xf32>
    %21 = vector.multi_reduction <add>, %20, %cst_8 [1] : vector<128x32xf32> to vector<128xf32>
    %22 = vector.shape_cast %21 : vector<128xf32> to vector<128x1xf32>
    %23 = arith.addf %19, %22 : vector<128x1xf32>
    %cst_9 = arith.constant 1.562500e-02 : f32
    %24 = vector.broadcast %cst_9 : f32 to vector<128x1xf32>
    %25 = arith.mulf %23, %24 : vector<128x1xf32>
    %cst_10 = arith.constant 9.99999974E-6 : f32
    %26 = vector.broadcast %cst_10 : f32 to vector<128x1xf32>
    %27 = arith.addf %25, %26 : vector<128x1xf32>
    %28 = math.rsqrt %27 : vector<128x1xf32>
    %c0_11 = arith.constant 0 : index
    %c0_12 = arith.constant 0 : index
    %29 = vector.load %arg3[%c0_11, %c0_12] : memref<1x64xf32, #tpu.memory_space<vmem>>, vector<1x64xf32>
    %c0_13 = arith.constant 0 : index
    %c0_14 = arith.constant 0 : index
    %30 = vector.load %arg4[%c0_13, %c0_14] : memref<1x64xf32, #tpu.memory_space<vmem>>, vector<1x64xf32>
    %31 = vector.broadcast %28 : vector<128x1xf32> to vector<128x32xf32>
    %32 = arith.mulf %14, %31 : vector<128x32xf32>
    %33 = vector.extract_strided_slice %29 {offsets = [0, 0], sizes = [1, 32], strides = [1, 1]} : vector<1x64xf32> to vector<1x32xf32>
    %34 = vector.broadcast %33 : vector<1x32xf32> to vector<128x32xf32>
    %35 = arith.mulf %32, %34 : vector<128x32xf32>
    %36 = vector.extract_strided_slice %30 {offsets = [0, 0], sizes = [1, 32], strides = [1, 1]} : vector<1x64xf32> to vector<1x32xf32>
    %37 = vector.broadcast %36 : vector<1x32xf32> to vector<128x32xf32>
    %38 = arith.addf %35, %37 : vector<128x32xf32>
    %39 = vector.broadcast %28 : vector<128x1xf32> to vector<128x32xf32>
    %40 = arith.mulf %16, %39 : vector<128x32xf32>
    %41 = vector.extract_strided_slice %29 {offsets = [0, 32], sizes = [1, 32], strides = [1, 1]} : vector<1x64xf32> to vector<1x32xf32>
    %42 = vector.broadcast %41 : vector<1x32xf32> to vector<128x32xf32>
    %43 = arith.mulf %40, %42 : vector<128x32xf32>
    %44 = vector.extract_strided_slice %30 {offsets = [0, 32], sizes = [1, 32], strides = [1, 1]} : vector<1x64xf32> to vector<1x32xf32>
    %45 = vector.broadcast %44 : vector<1x32xf32> to vector<128x32xf32>
    %46 = arith.addf %43, %45 : vector<128x32xf32>
    %47 = arith.truncf %38 : vector<128x32xf32> to vector<128x32xbf16>
    %c0_15 = arith.constant 0 : index
    %c0_16 = arith.constant 0 : index
    %48 = vector.load %arg5[%c0_15, %c0_16] : memref<64x128xbf16, #tpu.memory_space<vmem>>, vector<32x128xbf16>
    %cst_17 = arith.constant dense<0.000000e+00> : vector<128x128xf32>
    %49 = tpu.matmul %47, %48, %cst_17 {dimension_numbers = #tpu.dot_dimension_numbers<[1], [0], [0], [1], [0, 0, 1, 1], [], []>} : vector<128x32xbf16>, vector<32x128xbf16>, vector<128x128xf32> -> vector<128x128xf32>
    %50 = arith.truncf %46 : vector<128x32xf32> to vector<128x32xbf16>
    %c32 = arith.constant 32 : index
    %c0_18 = arith.constant 0 : index
    %51 = vector.load %arg5[%c32, %c0_18] : memref<64x128xbf16, #tpu.memory_space<vmem>>, vector<32x128xbf16>
    %cst_19 = arith.constant dense<0.000000e+00> : vector<128x128xf32>
    %52 = tpu.matmul %50, %51, %cst_19 {dimension_numbers = #tpu.dot_dimension_numbers<[1], [0], [0], [1], [0, 0, 1, 1], [], []>} : vector<128x32xbf16>, vector<32x128xbf16>, vector<128x128xf32> -> vector<128x128xf32>
    %53 = arith.addf %49, %52 : vector<128x128xf32>
    %c0_20 = arith.constant 0 : index
    %c0_21 = arith.constant 0 : index
    %54 = vector.load %arg6[%c0_20, %c0_21] : memref<1x128xf32, #tpu.memory_space<vmem>>, vector<1x128xf32>
    %55 = vector.broadcast %54 : vector<1x128xf32> to vector<128x128xf32>
    %56 = arith.addf %53, %55 : vector<128x128xf32>
    %57 = vector.shape_cast %56 : vector<128x128xf32> to vector<8x16x128xf32>
    %c0_22 = arith.constant 0 : index
    %c0_23 = arith.constant 0 : index
    %c0_24 = arith.constant 0 : index
    %58 = vector.load %arg7[%c0_22, %c0_23, %c0_24] : memref<8x16x128xf32, #tpu.memory_space<vmem>>, vector<8x16x128xf32>
    tpu.vector_store %arg7[%c0_22, %c0_23, %c0_24], %57 {strides = array<i32>} : memref<8x16x128xf32, #tpu.memory_space<vmem>>, vector<8x16x128xf32>,
    return
  }
  func.func @transform_0(%arg0: i32) -> (i32, i32, i32) {
    %c0_i32 = arith.constant 0 : i32
    %c0_i32_0 = arith.constant 0 : i32
    %c0_i32_1 = arith.constant 0 : i32
    return %arg0, %c0_i32, %c0_i32_0 : i32, i32, i32
  }
  func.func @transform_1(%arg0: i32) -> (i32, i32, i32) {
    %c0_i32 = arith.constant 0 : i32
    %c0_i32_0 = arith.constant 0 : i32
    %c0_i32_1 = arith.constant 0 : i32
    return %arg0, %c0_i32, %c0_i32_0 : i32, i32, i32
  }
  func.func @transform_2(%arg0: i32) -> (i32, i32) {
    %c0_i32 = arith.constant 0 : i32
    %c0_i32_0 = arith.constant 0 : i32
    %c0_i32_1 = arith.constant 0 : i32
    return %c0_i32, %c0_i32_0 : i32, i32
  }
  func.func @transform_3(%arg0: i32) -> (i32, i32) {
    %c0_i32 = arith.constant 0 : i32
    %c0_i32_0 = arith.constant 0 : i32
    %c0_i32_1 = arith.constant 0 : i32
    return %c0_i32, %c0_i32_0 : i32, i32
  }
  func.func @transform_4(%arg0: i32) -> (i32, i32) {
    %c0_i32 = arith.constant 0 : i32
    %c0_i32_0 = arith.constant 0 : i32
    %c0_i32_1 = arith.constant 0 : i32
    return %c0_i32, %c0_i32_0 : i32, i32
  }
  func.func @transform_5(%arg0: i32) -> (i32, i32) {
    %c0_i32 = arith.constant 0 : i32
    %c0_i32_0 = arith.constant 0 : i32
    %c0_i32_1 = arith.constant 0 : i32
    return %c0_i32, %c0_i32_0 : i32, i32
  }
  func.func @transform_6(%arg0: i32) -> (i32, i32, i32) {
    %c0_i32 = arith.constant 0 : i32
    %c0_i32_0 = arith.constant 0 : i32
    %c0_i32_1 = arith.constant 0 : i32
    return %arg0, %c0_i32, %c0_i32_0 : i32, i32, i32
  }
}

module attributes {stable_mosaic.version = 11 : i64} {
  func.func @_bilstm_layer_kernel(%arg0: i32, %arg1: i32, %arg2: memref<8x16x32xbf16, #tpu.memory_space<vmem>>, %arg3: memref<8x16x32xbf16, #tpu.memory_space<vmem>>, %arg4: memref<8x16x32xbf16, #tpu.memory_space<vmem>>, %arg5: memref<8x16x32xbf16, #tpu.memory_space<vmem>>, %arg6: memref<64x256xbf16, #tpu.memory_space<vmem>>, %arg7: memref<1x256xf32, #tpu.memory_space<vmem>>, %arg8: memref<64x256xbf16, #tpu.memory_space<vmem>>, %arg9: memref<8x16x32xbf16, #tpu.memory_space<vmem>>, %arg10: memref<8x16x32xbf16, #tpu.memory_space<vmem>>, %arg11: memref<128x128xf32, #tpu.memory_space<vmem>>, %arg12: memref<128x128xf32, #tpu.memory_space<vmem>>, %arg13: memref<16x64xbf16, #tpu.memory_space<vmem>>, %arg14: memref<16x64xf32, #tpu.memory_space<vmem>>) attributes {dimension_semantics = [#tpu.dimension_semantics<parallel>, #tpu.dimension_semantics<arbitrary>], iteration_bounds = array<i64: 1, 1>, scalar_prefetch = 0 : i64, scratch_operands = 4 : i64, tpu.core_type = #tpu.core_type<tc>, window_params = [{transform_indices = @transform_0, window_bounds = array<i64: 8, 16, 32>}, {transform_indices = @transform_1, window_bounds = array<i64: 8, 16, 32>}, {transform_indices = @transform_2, window_bounds = array<i64: 8, 16, 32>}, {transform_indices = @transform_3, window_bounds = array<i64: 8, 16, 32>}, {pipeline_mode = #tpu.pipeline_mode<synchronous>, transform_indices = @transform_4, window_bounds = array<i64: 64, 256>}, {pipeline_mode = #tpu.pipeline_mode<synchronous>, transform_indices = @transform_5, window_bounds = array<i64: 1, 256>}, {pipeline_mode = #tpu.pipeline_mode<synchronous>, transform_indices = @transform_6, window_bounds = array<i64: 64, 256>}, {transform_indices = @transform_7, window_bounds = array<i64: 8, 16, 32>}, {transform_indices = @transform_8, window_bounds = array<i64: 8, 16, 32>}]} {
    %c0_i32 = arith.constant 0 : i32
    %0 = arith.cmpi eq, %arg1, %c0_i32 : i32
    %1 = arith.extui %0 : i1 to i32
    %c0_i32_0 = arith.constant 0 : i32
    %2 = arith.cmpi ne, %1, %c0_i32_0 : i32
    scf.if %2 {
      %cst_245 = arith.constant 0.000000e+00 : bf16
      %701 = vector.broadcast %cst_245 : bf16 to vector<16x64xbf16>
      %c0_246 = arith.constant 0 : index
      %c0_247 = arith.constant 0 : index
      %702 = vector.load %arg13[%c0_246, %c0_247] : memref<16x64xbf16, #tpu.memory_space<vmem>>, vector<16x64xbf16>
      tpu.vector_store %arg13[%c0_246, %c0_247], %701 {strides = array<i32>} : memref<16x64xbf16, #tpu.memory_space<vmem>>, vector<16x64xbf16>,
      %cst_248 = arith.constant 0.000000e+00 : f32
      %703 = vector.broadcast %cst_248 : f32 to vector<16x64xf32>
      %c0_249 = arith.constant 0 : index
      %c0_250 = arith.constant 0 : index
      %704 = vector.load %arg14[%c0_249, %c0_250] : memref<16x64xf32, #tpu.memory_space<vmem>>, vector<16x64xf32>
      tpu.vector_store %arg14[%c0_249, %c0_250], %703 {strides = array<i32>} : memref<16x64xf32, #tpu.memory_space<vmem>>, vector<16x64xf32>,
    } else {
    }
    %c0 = arith.constant 0 : index
    %c0_1 = arith.constant 0 : index
    %c0_2 = arith.constant 0 : index
    %3 = vector.load %arg2[%c0, %c0_1, %c0_2] : memref<8x16x32xbf16, #tpu.memory_space<vmem>>, vector<8x16x32xbf16>
    %4 = vector.shape_cast %3 : vector<8x16x32xbf16> to vector<128x32xbf16>
    %c0_3 = arith.constant 0 : index
    %c0_4 = arith.constant 0 : index
    %5 = vector.load %arg6[%c0_3, %c0_4] : memref<64x256xbf16, #tpu.memory_space<vmem>>, vector<32x128xbf16>
    %cst = arith.constant dense<0.000000e+00> : vector<128x128xf32>
    %6 = tpu.matmul %4, %5, %cst {dimension_numbers = #tpu.dot_dimension_numbers<[1], [0], [0], [1], [0, 0, 1, 1], [], []>} : vector<128x32xbf16>, vector<32x128xbf16>, vector<128x128xf32> -> vector<128x128xf32>
    %c0_5 = arith.constant 0 : index
    %c0_6 = arith.constant 0 : index
    %c0_7 = arith.constant 0 : index
    %7 = vector.load %arg3[%c0_5, %c0_6, %c0_7] : memref<8x16x32xbf16, #tpu.memory_space<vmem>>, vector<8x16x32xbf16>
    %8 = vector.shape_cast %7 : vector<8x16x32xbf16> to vector<128x32xbf16>
    %c32 = arith.constant 32 : index
    %c0_8 = arith.constant 0 : index
    %9 = vector.load %arg6[%c32, %c0_8] : memref<64x256xbf16, #tpu.memory_space<vmem>>, vector<32x128xbf16>
    %cst_9 = arith.constant dense<0.000000e+00> : vector<128x128xf32>
    %10 = tpu.matmul %8, %9, %cst_9 {dimension_numbers = #tpu.dot_dimension_numbers<[1], [0], [0], [1], [0, 0, 1, 1], [], []>} : vector<128x32xbf16>, vector<32x128xbf16>, vector<128x128xf32> -> vector<128x128xf32>
    %11 = arith.addf %6, %10 : vector<128x128xf32>
    %c0_10 = arith.constant 0 : index
    %c0_11 = arith.constant 0 : index
    %12 = vector.load %arg7[%c0_10, %c0_11] : memref<1x256xf32, #tpu.memory_space<vmem>>, vector<1x128xf32>
    %13 = vector.broadcast %12 : vector<1x128xf32> to vector<128x128xf32>
    %14 = arith.addf %11, %13 : vector<128x128xf32>
    %c0_12 = arith.constant 0 : index
    %c0_13 = arith.constant 0 : index
    %15 = vector.load %arg11[%c0_12, %c0_13] : memref<128x128xf32, #tpu.memory_space<vmem>>, vector<128x128xf32>
    tpu.vector_store %arg11[%c0_12, %c0_13], %14 {strides = array<i32>} : memref<128x128xf32, #tpu.memory_space<vmem>>, vector<128x128xf32>,
    %c0_14 = arith.constant 0 : index
    %c0_15 = arith.constant 0 : index
    %c0_16 = arith.constant 0 : index
    %16 = vector.load %arg4[%c0_14, %c0_15, %c0_16] : memref<8x16x32xbf16, #tpu.memory_space<vmem>>, vector<8x16x32xbf16>
    %17 = vector.shape_cast %16 : vector<8x16x32xbf16> to vector<128x32xbf16>
    %c0_17 = arith.constant 0 : index
    %c128 = arith.constant 128 : index
    %18 = vector.load %arg6[%c0_17, %c128] : memref<64x256xbf16, #tpu.memory_space<vmem>>, vector<32x128xbf16>
    %cst_18 = arith.constant dense<0.000000e+00> : vector<128x128xf32>
    %19 = tpu.matmul %17, %18, %cst_18 {dimension_numbers = #tpu.dot_dimension_numbers<[1], [0], [0], [1], [0, 0, 1, 1], [], []>} : vector<128x32xbf16>, vector<32x128xbf16>, vector<128x128xf32> -> vector<128x128xf32>
    %c0_19 = arith.constant 0 : index
    %c0_20 = arith.constant 0 : index
    %c0_21 = arith.constant 0 : index
    %20 = vector.load %arg5[%c0_19, %c0_20, %c0_21] : memref<8x16x32xbf16, #tpu.memory_space<vmem>>, vector<8x16x32xbf16>
    %21 = vector.shape_cast %20 : vector<8x16x32xbf16> to vector<128x32xbf16>
    %c32_22 = arith.constant 32 : index
    %c128_23 = arith.constant 128 : index
    %22 = vector.load %arg6[%c32_22, %c128_23] : memref<64x256xbf16, #tpu.memory_space<vmem>>, vector<32x128xbf16>
    %cst_24 = arith.constant dense<0.000000e+00> : vector<128x128xf32>
    %23 = tpu.matmul %21, %22, %cst_24 {dimension_numbers = #tpu.dot_dimension_numbers<[1], [0], [0], [1], [0, 0, 1, 1], [], []>} : vector<128x32xbf16>, vector<32x128xbf16>, vector<128x128xf32> -> vector<128x128xf32>
    %24 = arith.addf %19, %23 : vector<128x128xf32>
    %c0_25 = arith.constant 0 : index
    %c128_26 = arith.constant 128 : index
    %25 = vector.load %arg7[%c0_25, %c128_26] : memref<1x256xf32, #tpu.memory_space<vmem>>, vector<1x128xf32>
    %26 = vector.broadcast %25 : vector<1x128xf32> to vector<128x128xf32>
    %27 = arith.addf %24, %26 : vector<128x128xf32>
    %c0_27 = arith.constant 0 : index
    %c0_28 = arith.constant 0 : index
    %28 = vector.load %arg12[%c0_27, %c0_28] : memref<128x128xf32, #tpu.memory_space<vmem>>, vector<128x128xf32>
    tpu.vector_store %arg12[%c0_27, %c0_28], %27 {strides = array<i32>} : memref<128x128xf32, #tpu.memory_space<vmem>>, vector<128x128xf32>,
    %c0_i32_29 = arith.constant 0 : i32
    %c0_30 = arith.constant 0 : index
    %c0_31 = arith.constant 0 : index
    %29 = vector.load %arg13[%c0_30, %c0_31] : memref<16x64xbf16, #tpu.memory_space<vmem>>, vector<16x64xbf16>
    %c0_32 = arith.constant 0 : index
    %c0_33 = arith.constant 0 : index
    %30 = vector.load %arg8[%c0_32, %c0_33] : memref<64x256xbf16, #tpu.memory_space<vmem>>, vector<64x256xbf16>
    %cst_34 = arith.constant dense<0.000000e+00> : vector<16x256xf32>
    %31 = tpu.matmul %29, %30, %cst_34 {dimension_numbers = #tpu.dot_dimension_numbers<[1], [0], [0], [1], [0, 0, 1, 1], [], []>} : vector<16x64xbf16>, vector<64x256xbf16>, vector<16x256xf32> -> vector<16x256xf32>
    %c16_i32 = arith.constant 16 : i32
    %32 = arith.muli %c0_i32_29, %c16_i32 : i32
    %33 = tpu.assume_multiple %32, 16 : i32
    %c7_i32 = arith.constant 7 : i32
    %34 = arith.subi %c7_i32, %c0_i32_29 : i32
    %c16_i32_35 = arith.constant 16 : i32
    %35 = arith.muli %34, %c16_i32_35 : i32
    %36 = tpu.assume_multiple %35, 16 : i32
    %37 = arith.index_cast %33 : i32 to index
    %c0_36 = arith.constant 0 : index
    %38 = vector.load %arg11[%37, %c0_36] : memref<128x128xf32, #tpu.memory_space<vmem>>, vector<16x128xf32>
    %39 = vector.extract_strided_slice %31 {offsets = [0, 0], sizes = [16, 128], strides = [1, 1]} : vector<16x256xf32> to vector<16x128xf32>
    %40 = arith.addf %38, %39 : vector<16x128xf32>
    %41 = arith.index_cast %36 : i32 to index
    %c0_37 = arith.constant 0 : index
    %42 = vector.load %arg12[%41, %c0_37] : memref<128x128xf32, #tpu.memory_space<vmem>>, vector<16x128xf32>
    %43 = vector.extract_strided_slice %31 {offsets = [0, 128], sizes = [16, 128], strides = [1, 1]} : vector<16x256xf32> to vector<16x128xf32>
    %44 = arith.addf %42, %43 : vector<16x128xf32>
    %c0_38 = arith.constant 0 : index
    %c0_39 = arith.constant 0 : index
    %45 = vector.load %arg14[%c0_38, %c0_39] : memref<16x64xf32, #tpu.memory_space<vmem>>, vector<16x64xf32>
    %46 = vector.extract_strided_slice %45 {offsets = [0, 0], sizes = [16, 32], strides = [1, 1]} : vector<16x64xf32> to vector<16x32xf32>
    %47 = vector.extract_strided_slice %40 {offsets = [0, 0], sizes = [16, 32], strides = [1, 1]} : vector<16x128xf32> to vector<16x32xf32>
    %48 = arith.negf %47 : vector<16x32xf32>
    %49 = math.exp %48 : vector<16x32xf32>
    %cst_40 = arith.constant 1.000000e+00 : f32
    %50 = vector.broadcast %cst_40 : f32 to vector<16x32xf32>
    %51 = arith.addf %50, %49 : vector<16x32xf32>
    %52 = arith.divf %50, %51 : vector<16x32xf32>
    %53 = vector.extract_strided_slice %40 {offsets = [0, 32], sizes = [16, 32], strides = [1, 1]} : vector<16x128xf32> to vector<16x32xf32>
    %54 = arith.negf %53 : vector<16x32xf32>
    %55 = math.exp %54 : vector<16x32xf32>
    %cst_41 = arith.constant 1.000000e+00 : f32
    %56 = vector.broadcast %cst_41 : f32 to vector<16x32xf32>
    %57 = arith.addf %56, %55 : vector<16x32xf32>
    %58 = arith.divf %56, %57 : vector<16x32xf32>
    %59 = vector.extract_strided_slice %40 {offsets = [0, 64], sizes = [16, 32], strides = [1, 1]} : vector<16x128xf32> to vector<16x32xf32>
    %60 = math.tanh %59 : vector<16x32xf32>
    %61 = vector.extract_strided_slice %40 {offsets = [0, 96], sizes = [16, 32], strides = [1, 1]} : vector<16x128xf32> to vector<16x32xf32>
    %62 = arith.negf %61 : vector<16x32xf32>
    %63 = math.exp %62 : vector<16x32xf32>
    %cst_42 = arith.constant 1.000000e+00 : f32
    %64 = vector.broadcast %cst_42 : f32 to vector<16x32xf32>
    %65 = arith.addf %64, %63 : vector<16x32xf32>
    %66 = arith.divf %64, %65 : vector<16x32xf32>
    %67 = arith.mulf %58, %46 : vector<16x32xf32>
    %68 = arith.mulf %52, %60 : vector<16x32xf32>
    %69 = arith.addf %67, %68 : vector<16x32xf32>
    %70 = math.tanh %69 : vector<16x32xf32>
    %71 = arith.mulf %66, %70 : vector<16x32xf32>
    %72 = vector.extract_strided_slice %45 {offsets = [0, 32], sizes = [16, 32], strides = [1, 1]} : vector<16x64xf32> to vector<16x32xf32>
    %73 = vector.extract_strided_slice %44 {offsets = [0, 0], sizes = [16, 32], strides = [1, 1]} : vector<16x128xf32> to vector<16x32xf32>
    %74 = arith.negf %73 : vector<16x32xf32>
    %75 = math.exp %74 : vector<16x32xf32>
    %cst_43 = arith.constant 1.000000e+00 : f32
    %76 = vector.broadcast %cst_43 : f32 to vector<16x32xf32>
    %77 = arith.addf %76, %75 : vector<16x32xf32>
    %78 = arith.divf %76, %77 : vector<16x32xf32>
    %79 = vector.extract_strided_slice %44 {offsets = [0, 32], sizes = [16, 32], strides = [1, 1]} : vector<16x128xf32> to vector<16x32xf32>
    %80 = arith.negf %79 : vector<16x32xf32>
    %81 = math.exp %80 : vector<16x32xf32>
    %cst_44 = arith.constant 1.000000e+00 : f32
    %82 = vector.broadcast %cst_44 : f32 to vector<16x32xf32>
    %83 = arith.addf %82, %81 : vector<16x32xf32>
    %84 = arith.divf %82, %83 : vector<16x32xf32>
    %85 = vector.extract_strided_slice %44 {offsets = [0, 64], sizes = [16, 32], strides = [1, 1]} : vector<16x128xf32> to vector<16x32xf32>
    %86 = math.tanh %85 : vector<16x32xf32>
    %87 = vector.extract_strided_slice %44 {offsets = [0, 96], sizes = [16, 32], strides = [1, 1]} : vector<16x128xf32> to vector<16x32xf32>
    %88 = arith.negf %87 : vector<16x32xf32>
    %89 = math.exp %88 : vector<16x32xf32>
    %cst_45 = arith.constant 1.000000e+00 : f32
    %90 = vector.broadcast %cst_45 : f32 to vector<16x32xf32>
    %91 = arith.addf %90, %89 : vector<16x32xf32>
    %92 = arith.divf %90, %91 : vector<16x32xf32>
    %93 = arith.mulf %84, %72 : vector<16x32xf32>
    %94 = arith.mulf %78, %86 : vector<16x32xf32>
    %95 = arith.addf %93, %94 : vector<16x32xf32>
    %96 = math.tanh %95 : vector<16x32xf32>
    %97 = arith.mulf %92, %96 : vector<16x32xf32>
    %98 = tpu.concatenate %69, %95 in 1 : vector<16x32xf32>, vector<16x32xf32> -> vector<16x64xf32>
    %c0_46 = arith.constant 0 : index
    %c0_47 = arith.constant 0 : index
    %99 = vector.load %arg14[%c0_46, %c0_47] : memref<16x64xf32, #tpu.memory_space<vmem>>, vector<16x64xf32>
    tpu.vector_store %arg14[%c0_46, %c0_47], %98 {strides = array<i32>} : memref<16x64xf32, #tpu.memory_space<vmem>>, vector<16x64xf32>,
    %100 = arith.truncf %71 : vector<16x32xf32> to vector<16x32xbf16>
    %101 = arith.truncf %97 : vector<16x32xf32> to vector<16x32xbf16>
    %102 = tpu.concatenate %100, %101 in 1 : vector<16x32xbf16>, vector<16x32xbf16> -> vector<16x64xbf16>
    %c0_48 = arith.constant 0 : index
    %c0_49 = arith.constant 0 : index
    %103 = vector.load %arg13[%c0_48, %c0_49] : memref<16x64xbf16, #tpu.memory_space<vmem>>, vector<16x64xbf16>
    tpu.vector_store %arg13[%c0_48, %c0_49], %102 {strides = array<i32>} : memref<16x64xbf16, #tpu.memory_space<vmem>>, vector<16x64xbf16>,
    %104 = arith.index_cast %c0_i32_29 : i32 to index
    %c0_50 = arith.constant 0 : index
    %c0_51 = arith.constant 0 : index
    %105 = vector.load %arg9[%104, %c0_50, %c0_51] : memref<8x16x32xbf16, #tpu.memory_space<vmem>>, vector<1x16x32xbf16>
    %106 = vector.shape_cast %105 : vector<1x16x32xbf16> to vector<16x32xbf16>
    %107 = vector.shape_cast %100 : vector<16x32xbf16> to vector<1x16x32xbf16>
    tpu.vector_store %arg9[%104, %c0_50, %c0_51], %107 {strides = array<i32>} : memref<8x16x32xbf16, #tpu.memory_space<vmem>>, vector<1x16x32xbf16>,
    %c7_i32_52 = arith.constant 7 : i32
    %108 = arith.subi %c7_i32_52, %c0_i32_29 : i32
    %109 = arith.index_cast %108 : i32 to index
    %c0_53 = arith.constant 0 : index
    %c0_54 = arith.constant 0 : index
    %110 = vector.load %arg10[%109, %c0_53, %c0_54] : memref<8x16x32xbf16, #tpu.memory_space<vmem>>, vector<1x16x32xbf16>
    %111 = vector.shape_cast %110 : vector<1x16x32xbf16> to vector<16x32xbf16>
    %112 = vector.shape_cast %101 : vector<16x32xbf16> to vector<1x16x32xbf16>
    tpu.vector_store %arg10[%109, %c0_53, %c0_54], %112 {strides = array<i32>} : memref<8x16x32xbf16, #tpu.memory_space<vmem>>, vector<1x16x32xbf16>,
    %c1_i32 = arith.constant 1 : i32
    %c0_55 = arith.constant 0 : index
    %c0_56 = arith.constant 0 : index
    %113 = vector.load %arg13[%c0_55, %c0_56] : memref<16x64xbf16, #tpu.memory_space<vmem>>, vector<16x64xbf16>
    %c0_57 = arith.constant 0 : index
    %c0_58 = arith.constant 0 : index
    %114 = vector.load %arg8[%c0_57, %c0_58] : memref<64x256xbf16, #tpu.memory_space<vmem>>, vector<64x256xbf16>
    %cst_59 = arith.constant dense<0.000000e+00> : vector<16x256xf32>
    %115 = tpu.matmul %113, %114, %cst_59 {dimension_numbers = #tpu.dot_dimension_numbers<[1], [0], [0], [1], [0, 0, 1, 1], [], []>} : vector<16x64xbf16>, vector<64x256xbf16>, vector<16x256xf32> -> vector<16x256xf32>
    %c16_i32_60 = arith.constant 16 : i32
    %116 = arith.muli %c1_i32, %c16_i32_60 : i32
    %117 = tpu.assume_multiple %116, 16 : i32
    %c7_i32_61 = arith.constant 7 : i32
    %118 = arith.subi %c7_i32_61, %c1_i32 : i32
    %c16_i32_62 = arith.constant 16 : i32
    %119 = arith.muli %118, %c16_i32_62 : i32
    %120 = tpu.assume_multiple %119, 16 : i32
    %121 = arith.index_cast %117 : i32 to index
    %c0_63 = arith.constant 0 : index
    %122 = vector.load %arg11[%121, %c0_63] : memref<128x128xf32, #tpu.memory_space<vmem>>, vector<16x128xf32>
    %123 = vector.extract_strided_slice %115 {offsets = [0, 0], sizes = [16, 128], strides = [1, 1]} : vector<16x256xf32> to vector<16x128xf32>
    %124 = arith.addf %122, %123 : vector<16x128xf32>
    %125 = arith.index_cast %120 : i32 to index
    %c0_64 = arith.constant 0 : index
    %126 = vector.load %arg12[%125, %c0_64] : memref<128x128xf32, #tpu.memory_space<vmem>>, vector<16x128xf32>
    %127 = vector.extract_strided_slice %115 {offsets = [0, 128], sizes = [16, 128], strides = [1, 1]} : vector<16x256xf32> to vector<16x128xf32>
    %128 = arith.addf %126, %127 : vector<16x128xf32>
    %c0_65 = arith.constant 0 : index
    %c0_66 = arith.constant 0 : index
    %129 = vector.load %arg14[%c0_65, %c0_66] : memref<16x64xf32, #tpu.memory_space<vmem>>, vector<16x64xf32>
    %130 = vector.extract_strided_slice %129 {offsets = [0, 0], sizes = [16, 32], strides = [1, 1]} : vector<16x64xf32> to vector<16x32xf32>
    %131 = vector.extract_strided_slice %124 {offsets = [0, 0], sizes = [16, 32], strides = [1, 1]} : vector<16x128xf32> to vector<16x32xf32>
    %132 = arith.negf %131 : vector<16x32xf32>
    %133 = math.exp %132 : vector<16x32xf32>
    %cst_67 = arith.constant 1.000000e+00 : f32
    %134 = vector.broadcast %cst_67 : f32 to vector<16x32xf32>
    %135 = arith.addf %134, %133 : vector<16x32xf32>
    %136 = arith.divf %134, %135 : vector<16x32xf32>
    %137 = vector.extract_strided_slice %124 {offsets = [0, 32], sizes = [16, 32], strides = [1, 1]} : vector<16x128xf32> to vector<16x32xf32>
    %138 = arith.negf %137 : vector<16x32xf32>
    %139 = math.exp %138 : vector<16x32xf32>
    %cst_68 = arith.constant 1.000000e+00 : f32
    %140 = vector.broadcast %cst_68 : f32 to vector<16x32xf32>
    %141 = arith.addf %140, %139 : vector<16x32xf32>
    %142 = arith.divf %140, %141 : vector<16x32xf32>
    %143 = vector.extract_strided_slice %124 {offsets = [0, 64], sizes = [16, 32], strides = [1, 1]} : vector<16x128xf32> to vector<16x32xf32>
    %144 = math.tanh %143 : vector<16x32xf32>
    %145 = vector.extract_strided_slice %124 {offsets = [0, 96], sizes = [16, 32], strides = [1, 1]} : vector<16x128xf32> to vector<16x32xf32>
    %146 = arith.negf %145 : vector<16x32xf32>
    %147 = math.exp %146 : vector<16x32xf32>
    %cst_69 = arith.constant 1.000000e+00 : f32
    %148 = vector.broadcast %cst_69 : f32 to vector<16x32xf32>
    %149 = arith.addf %148, %147 : vector<16x32xf32>
    %150 = arith.divf %148, %149 : vector<16x32xf32>
    %151 = arith.mulf %142, %130 : vector<16x32xf32>
    %152 = arith.mulf %136, %144 : vector<16x32xf32>
    %153 = arith.addf %151, %152 : vector<16x32xf32>
    %154 = math.tanh %153 : vector<16x32xf32>
    %155 = arith.mulf %150, %154 : vector<16x32xf32>
    %156 = vector.extract_strided_slice %129 {offsets = [0, 32], sizes = [16, 32], strides = [1, 1]} : vector<16x64xf32> to vector<16x32xf32>
    %157 = vector.extract_strided_slice %128 {offsets = [0, 0], sizes = [16, 32], strides = [1, 1]} : vector<16x128xf32> to vector<16x32xf32>
    %158 = arith.negf %157 : vector<16x32xf32>
    %159 = math.exp %158 : vector<16x32xf32>
    %cst_70 = arith.constant 1.000000e+00 : f32
    %160 = vector.broadcast %cst_70 : f32 to vector<16x32xf32>
    %161 = arith.addf %160, %159 : vector<16x32xf32>
    %162 = arith.divf %160, %161 : vector<16x32xf32>
    %163 = vector.extract_strided_slice %128 {offsets = [0, 32], sizes = [16, 32], strides = [1, 1]} : vector<16x128xf32> to vector<16x32xf32>
    %164 = arith.negf %163 : vector<16x32xf32>
    %165 = math.exp %164 : vector<16x32xf32>
    %cst_71 = arith.constant 1.000000e+00 : f32
    %166 = vector.broadcast %cst_71 : f32 to vector<16x32xf32>
    %167 = arith.addf %166, %165 : vector<16x32xf32>
    %168 = arith.divf %166, %167 : vector<16x32xf32>
    %169 = vector.extract_strided_slice %128 {offsets = [0, 64], sizes = [16, 32], strides = [1, 1]} : vector<16x128xf32> to vector<16x32xf32>
    %170 = math.tanh %169 : vector<16x32xf32>
    %171 = vector.extract_strided_slice %128 {offsets = [0, 96], sizes = [16, 32], strides = [1, 1]} : vector<16x128xf32> to vector<16x32xf32>
    %172 = arith.negf %171 : vector<16x32xf32>
    %173 = math.exp %172 : vector<16x32xf32>
    %cst_72 = arith.constant 1.000000e+00 : f32
    %174 = vector.broadcast %cst_72 : f32 to vector<16x32xf32>
    %175 = arith.addf %174, %173 : vector<16x32xf32>
    %176 = arith.divf %174, %175 : vector<16x32xf32>
    %177 = arith.mulf %168, %156 : vector<16x32xf32>
    %178 = arith.mulf %162, %170 : vector<16x32xf32>
    %179 = arith.addf %177, %178 : vector<16x32xf32>
    %180 = math.tanh %179 : vector<16x32xf32>
    %181 = arith.mulf %176, %180 : vector<16x32xf32>
    %182 = tpu.concatenate %153, %179 in 1 : vector<16x32xf32>, vector<16x32xf32> -> vector<16x64xf32>
    %c0_73 = arith.constant 0 : index
    %c0_74 = arith.constant 0 : index
    %183 = vector.load %arg14[%c0_73, %c0_74] : memref<16x64xf32, #tpu.memory_space<vmem>>, vector<16x64xf32>
    tpu.vector_store %arg14[%c0_73, %c0_74], %182 {strides = array<i32>} : memref<16x64xf32, #tpu.memory_space<vmem>>, vector<16x64xf32>,
    %184 = arith.truncf %155 : vector<16x32xf32> to vector<16x32xbf16>
    %185 = arith.truncf %181 : vector<16x32xf32> to vector<16x32xbf16>
    %186 = tpu.concatenate %184, %185 in 1 : vector<16x32xbf16>, vector<16x32xbf16> -> vector<16x64xbf16>
    %c0_75 = arith.constant 0 : index
    %c0_76 = arith.constant 0 : index
    %187 = vector.load %arg13[%c0_75, %c0_76] : memref<16x64xbf16, #tpu.memory_space<vmem>>, vector<16x64xbf16>
    tpu.vector_store %arg13[%c0_75, %c0_76], %186 {strides = array<i32>} : memref<16x64xbf16, #tpu.memory_space<vmem>>, vector<16x64xbf16>,
    %188 = arith.index_cast %c1_i32 : i32 to index
    %c0_77 = arith.constant 0 : index
    %c0_78 = arith.constant 0 : index
    %189 = vector.load %arg9[%188, %c0_77, %c0_78] : memref<8x16x32xbf16, #tpu.memory_space<vmem>>, vector<1x16x32xbf16>
    %190 = vector.shape_cast %189 : vector<1x16x32xbf16> to vector<16x32xbf16>
    %191 = vector.shape_cast %184 : vector<16x32xbf16> to vector<1x16x32xbf16>
    tpu.vector_store %arg9[%188, %c0_77, %c0_78], %191 {strides = array<i32>} : memref<8x16x32xbf16, #tpu.memory_space<vmem>>, vector<1x16x32xbf16>,
    %c7_i32_79 = arith.constant 7 : i32
    %192 = arith.subi %c7_i32_79, %c1_i32 : i32
    %193 = arith.index_cast %192 : i32 to index
    %c0_80 = arith.constant 0 : index
    %c0_81 = arith.constant 0 : index
    %194 = vector.load %arg10[%193, %c0_80, %c0_81] : memref<8x16x32xbf16, #tpu.memory_space<vmem>>, vector<1x16x32xbf16>
    %195 = vector.shape_cast %194 : vector<1x16x32xbf16> to vector<16x32xbf16>
    %196 = vector.shape_cast %185 : vector<16x32xbf16> to vector<1x16x32xbf16>
    tpu.vector_store %arg10[%193, %c0_80, %c0_81], %196 {strides = array<i32>} : memref<8x16x32xbf16, #tpu.memory_space<vmem>>, vector<1x16x32xbf16>,
    %c2_i32 = arith.constant 2 : i32
    %c0_82 = arith.constant 0 : index
    %c0_83 = arith.constant 0 : index
    %197 = vector.load %arg13[%c0_82, %c0_83] : memref<16x64xbf16, #tpu.memory_space<vmem>>, vector<16x64xbf16>
    %c0_84 = arith.constant 0 : index
    %c0_85 = arith.constant 0 : index
    %198 = vector.load %arg8[%c0_84, %c0_85] : memref<64x256xbf16, #tpu.memory_space<vmem>>, vector<64x256xbf16>
    %cst_86 = arith.constant dense<0.000000e+00> : vector<16x256xf32>
    %199 = tpu.matmul %197, %198, %cst_86 {dimension_numbers = #tpu.dot_dimension_numbers<[1], [0], [0], [1], [0, 0, 1, 1], [], []>} : vector<16x64xbf16>, vector<64x256xbf16>, vector<16x256xf32> -> vector<16x256xf32>
    %c16_i32_87 = arith.constant 16 : i32
    %200 = arith.muli %c2_i32, %c16_i32_87 : i32
    %201 = tpu.assume_multiple %200, 16 : i32
    %c7_i32_88 = arith.constant 7 : i32
    %202 = arith.subi %c7_i32_88, %c2_i32 : i32
    %c16_i32_89 = arith.constant 16 : i32
    %203 = arith.muli %202, %c16_i32_89 : i32
    %204 = tpu.assume_multiple %203, 16 : i32
    %205 = arith.index_cast %201 : i32 to index
    %c0_90 = arith.constant 0 : index
    %206 = vector.load %arg11[%205, %c0_90] : memref<128x128xf32, #tpu.memory_space<vmem>>, vector<16x128xf32>
    %207 = vector.extract_strided_slice %199 {offsets = [0, 0], sizes = [16, 128], strides = [1, 1]} : vector<16x256xf32> to vector<16x128xf32>
    %208 = arith.addf %206, %207 : vector<16x128xf32>
    %209 = arith.index_cast %204 : i32 to index
    %c0_91 = arith.constant 0 : index
    %210 = vector.load %arg12[%209, %c0_91] : memref<128x128xf32, #tpu.memory_space<vmem>>, vector<16x128xf32>
    %211 = vector.extract_strided_slice %199 {offsets = [0, 128], sizes = [16, 128], strides = [1, 1]} : vector<16x256xf32> to vector<16x128xf32>
    %212 = arith.addf %210, %211 : vector<16x128xf32>
    %c0_92 = arith.constant 0 : index
    %c0_93 = arith.constant 0 : index
    %213 = vector.load %arg14[%c0_92, %c0_93] : memref<16x64xf32, #tpu.memory_space<vmem>>, vector<16x64xf32>
    %214 = vector.extract_strided_slice %213 {offsets = [0, 0], sizes = [16, 32], strides = [1, 1]} : vector<16x64xf32> to vector<16x32xf32>
    %215 = vector.extract_strided_slice %208 {offsets = [0, 0], sizes = [16, 32], strides = [1, 1]} : vector<16x128xf32> to vector<16x32xf32>
    %216 = arith.negf %215 : vector<16x32xf32>
    %217 = math.exp %216 : vector<16x32xf32>
    %cst_94 = arith.constant 1.000000e+00 : f32
    %218 = vector.broadcast %cst_94 : f32 to vector<16x32xf32>
    %219 = arith.addf %218, %217 : vector<16x32xf32>
    %220 = arith.divf %218, %219 : vector<16x32xf32>
    %221 = vector.extract_strided_slice %208 {offsets = [0, 32], sizes = [16, 32], strides = [1, 1]} : vector<16x128xf32> to vector<16x32xf32>
    %222 = arith.negf %221 : vector<16x32xf32>
    %223 = math.exp %222 : vector<16x32xf32>
    %cst_95 = arith.constant 1.000000e+00 : f32
    %224 = vector.broadcast %cst_95 : f32 to vector<16x32xf32>
    %225 = arith.addf %224, %223 : vector<16x32xf32>
    %226 = arith.divf %224, %225 : vector<16x32xf32>
    %227 = vector.extract_strided_slice %208 {offsets = [0, 64], sizes = [16, 32], strides = [1, 1]} : vector<16x128xf32> to vector<16x32xf32>
    %228 = math.tanh %227 : vector<16x32xf32>
    %229 = vector.extract_strided_slice %208 {offsets = [0, 96], sizes = [16, 32], strides = [1, 1]} : vector<16x128xf32> to vector<16x32xf32>
    %230 = arith.negf %229 : vector<16x32xf32>
    %231 = math.exp %230 : vector<16x32xf32>
    %cst_96 = arith.constant 1.000000e+00 : f32
    %232 = vector.broadcast %cst_96 : f32 to vector<16x32xf32>
    %233 = arith.addf %232, %231 : vector<16x32xf32>
    %234 = arith.divf %232, %233 : vector<16x32xf32>
    %235 = arith.mulf %226, %214 : vector<16x32xf32>
    %236 = arith.mulf %220, %228 : vector<16x32xf32>
    %237 = arith.addf %235, %236 : vector<16x32xf32>
    %238 = math.tanh %237 : vector<16x32xf32>
    %239 = arith.mulf %234, %238 : vector<16x32xf32>
    %240 = vector.extract_strided_slice %213 {offsets = [0, 32], sizes = [16, 32], strides = [1, 1]} : vector<16x64xf32> to vector<16x32xf32>
    %241 = vector.extract_strided_slice %212 {offsets = [0, 0], sizes = [16, 32], strides = [1, 1]} : vector<16x128xf32> to vector<16x32xf32>
    %242 = arith.negf %241 : vector<16x32xf32>
    %243 = math.exp %242 : vector<16x32xf32>
    %cst_97 = arith.constant 1.000000e+00 : f32
    %244 = vector.broadcast %cst_97 : f32 to vector<16x32xf32>
    %245 = arith.addf %244, %243 : vector<16x32xf32>
    %246 = arith.divf %244, %245 : vector<16x32xf32>
    %247 = vector.extract_strided_slice %212 {offsets = [0, 32], sizes = [16, 32], strides = [1, 1]} : vector<16x128xf32> to vector<16x32xf32>
    %248 = arith.negf %247 : vector<16x32xf32>
    %249 = math.exp %248 : vector<16x32xf32>
    %cst_98 = arith.constant 1.000000e+00 : f32
    %250 = vector.broadcast %cst_98 : f32 to vector<16x32xf32>
    %251 = arith.addf %250, %249 : vector<16x32xf32>
    %252 = arith.divf %250, %251 : vector<16x32xf32>
    %253 = vector.extract_strided_slice %212 {offsets = [0, 64], sizes = [16, 32], strides = [1, 1]} : vector<16x128xf32> to vector<16x32xf32>
    %254 = math.tanh %253 : vector<16x32xf32>
    %255 = vector.extract_strided_slice %212 {offsets = [0, 96], sizes = [16, 32], strides = [1, 1]} : vector<16x128xf32> to vector<16x32xf32>
    %256 = arith.negf %255 : vector<16x32xf32>
    %257 = math.exp %256 : vector<16x32xf32>
    %cst_99 = arith.constant 1.000000e+00 : f32
    %258 = vector.broadcast %cst_99 : f32 to vector<16x32xf32>
    %259 = arith.addf %258, %257 : vector<16x32xf32>
    %260 = arith.divf %258, %259 : vector<16x32xf32>
    %261 = arith.mulf %252, %240 : vector<16x32xf32>
    %262 = arith.mulf %246, %254 : vector<16x32xf32>
    %263 = arith.addf %261, %262 : vector<16x32xf32>
    %264 = math.tanh %263 : vector<16x32xf32>
    %265 = arith.mulf %260, %264 : vector<16x32xf32>
    %266 = tpu.concatenate %237, %263 in 1 : vector<16x32xf32>, vector<16x32xf32> -> vector<16x64xf32>
    %c0_100 = arith.constant 0 : index
    %c0_101 = arith.constant 0 : index
    %267 = vector.load %arg14[%c0_100, %c0_101] : memref<16x64xf32, #tpu.memory_space<vmem>>, vector<16x64xf32>
    tpu.vector_store %arg14[%c0_100, %c0_101], %266 {strides = array<i32>} : memref<16x64xf32, #tpu.memory_space<vmem>>, vector<16x64xf32>,
    %268 = arith.truncf %239 : vector<16x32xf32> to vector<16x32xbf16>
    %269 = arith.truncf %265 : vector<16x32xf32> to vector<16x32xbf16>
    %270 = tpu.concatenate %268, %269 in 1 : vector<16x32xbf16>, vector<16x32xbf16> -> vector<16x64xbf16>
    %c0_102 = arith.constant 0 : index
    %c0_103 = arith.constant 0 : index
    %271 = vector.load %arg13[%c0_102, %c0_103] : memref<16x64xbf16, #tpu.memory_space<vmem>>, vector<16x64xbf16>
    tpu.vector_store %arg13[%c0_102, %c0_103], %270 {strides = array<i32>} : memref<16x64xbf16, #tpu.memory_space<vmem>>, vector<16x64xbf16>,
    %272 = arith.index_cast %c2_i32 : i32 to index
    %c0_104 = arith.constant 0 : index
    %c0_105 = arith.constant 0 : index
    %273 = vector.load %arg9[%272, %c0_104, %c0_105] : memref<8x16x32xbf16, #tpu.memory_space<vmem>>, vector<1x16x32xbf16>
    %274 = vector.shape_cast %273 : vector<1x16x32xbf16> to vector<16x32xbf16>
    %275 = vector.shape_cast %268 : vector<16x32xbf16> to vector<1x16x32xbf16>
    tpu.vector_store %arg9[%272, %c0_104, %c0_105], %275 {strides = array<i32>} : memref<8x16x32xbf16, #tpu.memory_space<vmem>>, vector<1x16x32xbf16>,
    %c7_i32_106 = arith.constant 7 : i32
    %276 = arith.subi %c7_i32_106, %c2_i32 : i32
    %277 = arith.index_cast %276 : i32 to index
    %c0_107 = arith.constant 0 : index
    %c0_108 = arith.constant 0 : index
    %278 = vector.load %arg10[%277, %c0_107, %c0_108] : memref<8x16x32xbf16, #tpu.memory_space<vmem>>, vector<1x16x32xbf16>
    %279 = vector.shape_cast %278 : vector<1x16x32xbf16> to vector<16x32xbf16>
    %280 = vector.shape_cast %269 : vector<16x32xbf16> to vector<1x16x32xbf16>
    tpu.vector_store %arg10[%277, %c0_107, %c0_108], %280 {strides = array<i32>} : memref<8x16x32xbf16, #tpu.memory_space<vmem>>, vector<1x16x32xbf16>,
    %c3_i32 = arith.constant 3 : i32
    %c0_109 = arith.constant 0 : index
    %c0_110 = arith.constant 0 : index
    %281 = vector.load %arg13[%c0_109, %c0_110] : memref<16x64xbf16, #tpu.memory_space<vmem>>, vector<16x64xbf16>
    %c0_111 = arith.constant 0 : index
    %c0_112 = arith.constant 0 : index
    %282 = vector.load %arg8[%c0_111, %c0_112] : memref<64x256xbf16, #tpu.memory_space<vmem>>, vector<64x256xbf16>
    %cst_113 = arith.constant dense<0.000000e+00> : vector<16x256xf32>
    %283 = tpu.matmul %281, %282, %cst_113 {dimension_numbers = #tpu.dot_dimension_numbers<[1], [0], [0], [1], [0, 0, 1, 1], [], []>} : vector<16x64xbf16>, vector<64x256xbf16>, vector<16x256xf32> -> vector<16x256xf32>
    %c16_i32_114 = arith.constant 16 : i32
    %284 = arith.muli %c3_i32, %c16_i32_114 : i32
    %285 = tpu.assume_multiple %284, 16 : i32
    %c7_i32_115 = arith.constant 7 : i32
    %286 = arith.subi %c7_i32_115, %c3_i32 : i32
    %c16_i32_116 = arith.constant 16 : i32
    %287 = arith.muli %286, %c16_i32_116 : i32
    %288 = tpu.assume_multiple %287, 16 : i32
    %289 = arith.index_cast %285 : i32 to index
    %c0_117 = arith.constant 0 : index
    %290 = vector.load %arg11[%289, %c0_117] : memref<128x128xf32, #tpu.memory_space<vmem>>, vector<16x128xf32>
    %291 = vector.extract_strided_slice %283 {offsets = [0, 0], sizes = [16, 128], strides = [1, 1]} : vector<16x256xf32> to vector<16x128xf32>
    %292 = arith.addf %290, %291 : vector<16x128xf32>
    %293 = arith.index_cast %288 : i32 to index
    %c0_118 = arith.constant 0 : index
    %294 = vector.load %arg12[%293, %c0_118] : memref<128x128xf32, #tpu.memory_space<vmem>>, vector<16x128xf32>
    %295 = vector.extract_strided_slice %283 {offsets = [0, 128], sizes = [16, 128], strides = [1, 1]} : vector<16x256xf32> to vector<16x128xf32>
    %296 = arith.addf %294, %295 : vector<16x128xf32>
    %c0_119 = arith.constant 0 : index
    %c0_120 = arith.constant 0 : index
    %297 = vector.load %arg14[%c0_119, %c0_120] : memref<16x64xf32, #tpu.memory_space<vmem>>, vector<16x64xf32>
    %298 = vector.extract_strided_slice %297 {offsets = [0, 0], sizes = [16, 32], strides = [1, 1]} : vector<16x64xf32> to vector<16x32xf32>
    %299 = vector.extract_strided_slice %292 {offsets = [0, 0], sizes = [16, 32], strides = [1, 1]} : vector<16x128xf32> to vector<16x32xf32>
    %300 = arith.negf %299 : vector<16x32xf32>
    %301 = math.exp %300 : vector<16x32xf32>
    %cst_121 = arith.constant 1.000000e+00 : f32
    %302 = vector.broadcast %cst_121 : f32 to vector<16x32xf32>
    %303 = arith.addf %302, %301 : vector<16x32xf32>
    %304 = arith.divf %302, %303 : vector<16x32xf32>
    %305 = vector.extract_strided_slice %292 {offsets = [0, 32], sizes = [16, 32], strides = [1, 1]} : vector<16x128xf32> to vector<16x32xf32>
    %306 = arith.negf %305 : vector<16x32xf32>
    %307 = math.exp %306 : vector<16x32xf32>
    %cst_122 = arith.constant 1.000000e+00 : f32
    %308 = vector.broadcast %cst_122 : f32 to vector<16x32xf32>
    %309 = arith.addf %308, %307 : vector<16x32xf32>
    %310 = arith.divf %308, %309 : vector<16x32xf32>
    %311 = vector.extract_strided_slice %292 {offsets = [0, 64], sizes = [16, 32], strides = [1, 1]} : vector<16x128xf32> to vector<16x32xf32>
    %312 = math.tanh %311 : vector<16x32xf32>
    %313 = vector.extract_strided_slice %292 {offsets = [0, 96], sizes = [16, 32], strides = [1, 1]} : vector<16x128xf32> to vector<16x32xf32>
    %314 = arith.negf %313 : vector<16x32xf32>
    %315 = math.exp %314 : vector<16x32xf32>
    %cst_123 = arith.constant 1.000000e+00 : f32
    %316 = vector.broadcast %cst_123 : f32 to vector<16x32xf32>
    %317 = arith.addf %316, %315 : vector<16x32xf32>
    %318 = arith.divf %316, %317 : vector<16x32xf32>
    %319 = arith.mulf %310, %298 : vector<16x32xf32>
    %320 = arith.mulf %304, %312 : vector<16x32xf32>
    %321 = arith.addf %319, %320 : vector<16x32xf32>
    %322 = math.tanh %321 : vector<16x32xf32>
    %323 = arith.mulf %318, %322 : vector<16x32xf32>
    %324 = vector.extract_strided_slice %297 {offsets = [0, 32], sizes = [16, 32], strides = [1, 1]} : vector<16x64xf32> to vector<16x32xf32>
    %325 = vector.extract_strided_slice %296 {offsets = [0, 0], sizes = [16, 32], strides = [1, 1]} : vector<16x128xf32> to vector<16x32xf32>
    %326 = arith.negf %325 : vector<16x32xf32>
    %327 = math.exp %326 : vector<16x32xf32>
    %cst_124 = arith.constant 1.000000e+00 : f32
    %328 = vector.broadcast %cst_124 : f32 to vector<16x32xf32>
    %329 = arith.addf %328, %327 : vector<16x32xf32>
    %330 = arith.divf %328, %329 : vector<16x32xf32>
    %331 = vector.extract_strided_slice %296 {offsets = [0, 32], sizes = [16, 32], strides = [1, 1]} : vector<16x128xf32> to vector<16x32xf32>
    %332 = arith.negf %331 : vector<16x32xf32>
    %333 = math.exp %332 : vector<16x32xf32>
    %cst_125 = arith.constant 1.000000e+00 : f32
    %334 = vector.broadcast %cst_125 : f32 to vector<16x32xf32>
    %335 = arith.addf %334, %333 : vector<16x32xf32>
    %336 = arith.divf %334, %335 : vector<16x32xf32>
    %337 = vector.extract_strided_slice %296 {offsets = [0, 64], sizes = [16, 32], strides = [1, 1]} : vector<16x128xf32> to vector<16x32xf32>
    %338 = math.tanh %337 : vector<16x32xf32>
    %339 = vector.extract_strided_slice %296 {offsets = [0, 96], sizes = [16, 32], strides = [1, 1]} : vector<16x128xf32> to vector<16x32xf32>
    %340 = arith.negf %339 : vector<16x32xf32>
    %341 = math.exp %340 : vector<16x32xf32>
    %cst_126 = arith.constant 1.000000e+00 : f32
    %342 = vector.broadcast %cst_126 : f32 to vector<16x32xf32>
    %343 = arith.addf %342, %341 : vector<16x32xf32>
    %344 = arith.divf %342, %343 : vector<16x32xf32>
    %345 = arith.mulf %336, %324 : vector<16x32xf32>
    %346 = arith.mulf %330, %338 : vector<16x32xf32>
    %347 = arith.addf %345, %346 : vector<16x32xf32>
    %348 = math.tanh %347 : vector<16x32xf32>
    %349 = arith.mulf %344, %348 : vector<16x32xf32>
    %350 = tpu.concatenate %321, %347 in 1 : vector<16x32xf32>, vector<16x32xf32> -> vector<16x64xf32>
    %c0_127 = arith.constant 0 : index
    %c0_128 = arith.constant 0 : index
    %351 = vector.load %arg14[%c0_127, %c0_128] : memref<16x64xf32, #tpu.memory_space<vmem>>, vector<16x64xf32>
    tpu.vector_store %arg14[%c0_127, %c0_128], %350 {strides = array<i32>} : memref<16x64xf32, #tpu.memory_space<vmem>>, vector<16x64xf32>,
    %352 = arith.truncf %323 : vector<16x32xf32> to vector<16x32xbf16>
    %353 = arith.truncf %349 : vector<16x32xf32> to vector<16x32xbf16>
    %354 = tpu.concatenate %352, %353 in 1 : vector<16x32xbf16>, vector<16x32xbf16> -> vector<16x64xbf16>
    %c0_129 = arith.constant 0 : index
    %c0_130 = arith.constant 0 : index
    %355 = vector.load %arg13[%c0_129, %c0_130] : memref<16x64xbf16, #tpu.memory_space<vmem>>, vector<16x64xbf16>
    tpu.vector_store %arg13[%c0_129, %c0_130], %354 {strides = array<i32>} : memref<16x64xbf16, #tpu.memory_space<vmem>>, vector<16x64xbf16>,
    %356 = arith.index_cast %c3_i32 : i32 to index
    %c0_131 = arith.constant 0 : index
    %c0_132 = arith.constant 0 : index
    %357 = vector.load %arg9[%356, %c0_131, %c0_132] : memref<8x16x32xbf16, #tpu.memory_space<vmem>>, vector<1x16x32xbf16>
    %358 = vector.shape_cast %357 : vector<1x16x32xbf16> to vector<16x32xbf16>
    %359 = vector.shape_cast %352 : vector<16x32xbf16> to vector<1x16x32xbf16>
    tpu.vector_store %arg9[%356, %c0_131, %c0_132], %359 {strides = array<i32>} : memref<8x16x32xbf16, #tpu.memory_space<vmem>>, vector<1x16x32xbf16>,
    %c7_i32_133 = arith.constant 7 : i32
    %360 = arith.subi %c7_i32_133, %c3_i32 : i32
    %361 = arith.index_cast %360 : i32 to index
    %c0_134 = arith.constant 0 : index
    %c0_135 = arith.constant 0 : index
    %362 = vector.load %arg10[%361, %c0_134, %c0_135] : memref<8x16x32xbf16, #tpu.memory_space<vmem>>, vector<1x16x32xbf16>
    %363 = vector.shape_cast %362 : vector<1x16x32xbf16> to vector<16x32xbf16>
    %364 = vector.shape_cast %353 : vector<16x32xbf16> to vector<1x16x32xbf16>
    tpu.vector_store %arg10[%361, %c0_134, %c0_135], %364 {strides = array<i32>} : memref<8x16x32xbf16, #tpu.memory_space<vmem>>, vector<1x16x32xbf16>,
    %c4_i32 = arith.constant 4 : i32
    %c0_136 = arith.constant 0 : index
    %c0_137 = arith.constant 0 : index
    %365 = vector.load %arg13[%c0_136, %c0_137] : memref<16x64xbf16, #tpu.memory_space<vmem>>, vector<16x64xbf16>
    %c0_138 = arith.constant 0 : index
    %c0_139 = arith.constant 0 : index
    %366 = vector.load %arg8[%c0_138, %c0_139] : memref<64x256xbf16, #tpu.memory_space<vmem>>, vector<64x256xbf16>
    %cst_140 = arith.constant dense<0.000000e+00> : vector<16x256xf32>
    %367 = tpu.matmul %365, %366, %cst_140 {dimension_numbers = #tpu.dot_dimension_numbers<[1], [0], [0], [1], [0, 0, 1, 1], [], []>} : vector<16x64xbf16>, vector<64x256xbf16>, vector<16x256xf32> -> vector<16x256xf32>
    %c16_i32_141 = arith.constant 16 : i32
    %368 = arith.muli %c4_i32, %c16_i32_141 : i32
    %369 = tpu.assume_multiple %368, 16 : i32
    %c7_i32_142 = arith.constant 7 : i32
    %370 = arith.subi %c7_i32_142, %c4_i32 : i32
    %c16_i32_143 = arith.constant 16 : i32
    %371 = arith.muli %370, %c16_i32_143 : i32
    %372 = tpu.assume_multiple %371, 16 : i32
    %373 = arith.index_cast %369 : i32 to index
    %c0_144 = arith.constant 0 : index
    %374 = vector.load %arg11[%373, %c0_144] : memref<128x128xf32, #tpu.memory_space<vmem>>, vector<16x128xf32>
    %375 = vector.extract_strided_slice %367 {offsets = [0, 0], sizes = [16, 128], strides = [1, 1]} : vector<16x256xf32> to vector<16x128xf32>
    %376 = arith.addf %374, %375 : vector<16x128xf32>
    %377 = arith.index_cast %372 : i32 to index
    %c0_145 = arith.constant 0 : index
    %378 = vector.load %arg12[%377, %c0_145] : memref<128x128xf32, #tpu.memory_space<vmem>>, vector<16x128xf32>
    %379 = vector.extract_strided_slice %367 {offsets = [0, 128], sizes = [16, 128], strides = [1, 1]} : vector<16x256xf32> to vector<16x128xf32>
    %380 = arith.addf %378, %379 : vector<16x128xf32>
    %c0_146 = arith.constant 0 : index
    %c0_147 = arith.constant 0 : index
    %381 = vector.load %arg14[%c0_146, %c0_147] : memref<16x64xf32, #tpu.memory_space<vmem>>, vector<16x64xf32>
    %382 = vector.extract_strided_slice %381 {offsets = [0, 0], sizes = [16, 32], strides = [1, 1]} : vector<16x64xf32> to vector<16x32xf32>
    %383 = vector.extract_strided_slice %376 {offsets = [0, 0], sizes = [16, 32], strides = [1, 1]} : vector<16x128xf32> to vector<16x32xf32>
    %384 = arith.negf %383 : vector<16x32xf32>
    %385 = math.exp %384 : vector<16x32xf32>
    %cst_148 = arith.constant 1.000000e+00 : f32
    %386 = vector.broadcast %cst_148 : f32 to vector<16x32xf32>
    %387 = arith.addf %386, %385 : vector<16x32xf32>
    %388 = arith.divf %386, %387 : vector<16x32xf32>
    %389 = vector.extract_strided_slice %376 {offsets = [0, 32], sizes = [16, 32], strides = [1, 1]} : vector<16x128xf32> to vector<16x32xf32>
    %390 = arith.negf %389 : vector<16x32xf32>
    %391 = math.exp %390 : vector<16x32xf32>
    %cst_149 = arith.constant 1.000000e+00 : f32
    %392 = vector.broadcast %cst_149 : f32 to vector<16x32xf32>
    %393 = arith.addf %392, %391 : vector<16x32xf32>
    %394 = arith.divf %392, %393 : vector<16x32xf32>
    %395 = vector.extract_strided_slice %376 {offsets = [0, 64], sizes = [16, 32], strides = [1, 1]} : vector<16x128xf32> to vector<16x32xf32>
    %396 = math.tanh %395 : vector<16x32xf32>
    %397 = vector.extract_strided_slice %376 {offsets = [0, 96], sizes = [16, 32], strides = [1, 1]} : vector<16x128xf32> to vector<16x32xf32>
    %398 = arith.negf %397 : vector<16x32xf32>
    %399 = math.exp %398 : vector<16x32xf32>
    %cst_150 = arith.constant 1.000000e+00 : f32
    %400 = vector.broadcast %cst_150 : f32 to vector<16x32xf32>
    %401 = arith.addf %400, %399 : vector<16x32xf32>
    %402 = arith.divf %400, %401 : vector<16x32xf32>
    %403 = arith.mulf %394, %382 : vector<16x32xf32>
    %404 = arith.mulf %388, %396 : vector<16x32xf32>
    %405 = arith.addf %403, %404 : vector<16x32xf32>
    %406 = math.tanh %405 : vector<16x32xf32>
    %407 = arith.mulf %402, %406 : vector<16x32xf32>
    %408 = vector.extract_strided_slice %381 {offsets = [0, 32], sizes = [16, 32], strides = [1, 1]} : vector<16x64xf32> to vector<16x32xf32>
    %409 = vector.extract_strided_slice %380 {offsets = [0, 0], sizes = [16, 32], strides = [1, 1]} : vector<16x128xf32> to vector<16x32xf32>
    %410 = arith.negf %409 : vector<16x32xf32>
    %411 = math.exp %410 : vector<16x32xf32>
    %cst_151 = arith.constant 1.000000e+00 : f32
    %412 = vector.broadcast %cst_151 : f32 to vector<16x32xf32>
    %413 = arith.addf %412, %411 : vector<16x32xf32>
    %414 = arith.divf %412, %413 : vector<16x32xf32>
    %415 = vector.extract_strided_slice %380 {offsets = [0, 32], sizes = [16, 32], strides = [1, 1]} : vector<16x128xf32> to vector<16x32xf32>
    %416 = arith.negf %415 : vector<16x32xf32>
    %417 = math.exp %416 : vector<16x32xf32>
    %cst_152 = arith.constant 1.000000e+00 : f32
    %418 = vector.broadcast %cst_152 : f32 to vector<16x32xf32>
    %419 = arith.addf %418, %417 : vector<16x32xf32>
    %420 = arith.divf %418, %419 : vector<16x32xf32>
    %421 = vector.extract_strided_slice %380 {offsets = [0, 64], sizes = [16, 32], strides = [1, 1]} : vector<16x128xf32> to vector<16x32xf32>
    %422 = math.tanh %421 : vector<16x32xf32>
    %423 = vector.extract_strided_slice %380 {offsets = [0, 96], sizes = [16, 32], strides = [1, 1]} : vector<16x128xf32> to vector<16x32xf32>
    %424 = arith.negf %423 : vector<16x32xf32>
    %425 = math.exp %424 : vector<16x32xf32>
    %cst_153 = arith.constant 1.000000e+00 : f32
    %426 = vector.broadcast %cst_153 : f32 to vector<16x32xf32>
    %427 = arith.addf %426, %425 : vector<16x32xf32>
    %428 = arith.divf %426, %427 : vector<16x32xf32>
    %429 = arith.mulf %420, %408 : vector<16x32xf32>
    %430 = arith.mulf %414, %422 : vector<16x32xf32>
    %431 = arith.addf %429, %430 : vector<16x32xf32>
    %432 = math.tanh %431 : vector<16x32xf32>
    %433 = arith.mulf %428, %432 : vector<16x32xf32>
    %434 = tpu.concatenate %405, %431 in 1 : vector<16x32xf32>, vector<16x32xf32> -> vector<16x64xf32>
    %c0_154 = arith.constant 0 : index
    %c0_155 = arith.constant 0 : index
    %435 = vector.load %arg14[%c0_154, %c0_155] : memref<16x64xf32, #tpu.memory_space<vmem>>, vector<16x64xf32>
    tpu.vector_store %arg14[%c0_154, %c0_155], %434 {strides = array<i32>} : memref<16x64xf32, #tpu.memory_space<vmem>>, vector<16x64xf32>,
    %436 = arith.truncf %407 : vector<16x32xf32> to vector<16x32xbf16>
    %437 = arith.truncf %433 : vector<16x32xf32> to vector<16x32xbf16>
    %438 = tpu.concatenate %436, %437 in 1 : vector<16x32xbf16>, vector<16x32xbf16> -> vector<16x64xbf16>
    %c0_156 = arith.constant 0 : index
    %c0_157 = arith.constant 0 : index
    %439 = vector.load %arg13[%c0_156, %c0_157] : memref<16x64xbf16, #tpu.memory_space<vmem>>, vector<16x64xbf16>
    tpu.vector_store %arg13[%c0_156, %c0_157], %438 {strides = array<i32>} : memref<16x64xbf16, #tpu.memory_space<vmem>>, vector<16x64xbf16>,
    %440 = arith.index_cast %c4_i32 : i32 to index
    %c0_158 = arith.constant 0 : index
    %c0_159 = arith.constant 0 : index
    %441 = vector.load %arg9[%440, %c0_158, %c0_159] : memref<8x16x32xbf16, #tpu.memory_space<vmem>>, vector<1x16x32xbf16>
    %442 = vector.shape_cast %441 : vector<1x16x32xbf16> to vector<16x32xbf16>
    %443 = vector.shape_cast %436 : vector<16x32xbf16> to vector<1x16x32xbf16>
    tpu.vector_store %arg9[%440, %c0_158, %c0_159], %443 {strides = array<i32>} : memref<8x16x32xbf16, #tpu.memory_space<vmem>>, vector<1x16x32xbf16>,
    %c7_i32_160 = arith.constant 7 : i32
    %444 = arith.subi %c7_i32_160, %c4_i32 : i32
    %445 = arith.index_cast %444 : i32 to index
    %c0_161 = arith.constant 0 : index
    %c0_162 = arith.constant 0 : index
    %446 = vector.load %arg10[%445, %c0_161, %c0_162] : memref<8x16x32xbf16, #tpu.memory_space<vmem>>, vector<1x16x32xbf16>
    %447 = vector.shape_cast %446 : vector<1x16x32xbf16> to vector<16x32xbf16>
    %448 = vector.shape_cast %437 : vector<16x32xbf16> to vector<1x16x32xbf16>
    tpu.vector_store %arg10[%445, %c0_161, %c0_162], %448 {strides = array<i32>} : memref<8x16x32xbf16, #tpu.memory_space<vmem>>, vector<1x16x32xbf16>,
    %c5_i32 = arith.constant 5 : i32
    %c0_163 = arith.constant 0 : index
    %c0_164 = arith.constant 0 : index
    %449 = vector.load %arg13[%c0_163, %c0_164] : memref<16x64xbf16, #tpu.memory_space<vmem>>, vector<16x64xbf16>
    %c0_165 = arith.constant 0 : index
    %c0_166 = arith.constant 0 : index
    %450 = vector.load %arg8[%c0_165, %c0_166] : memref<64x256xbf16, #tpu.memory_space<vmem>>, vector<64x256xbf16>
    %cst_167 = arith.constant dense<0.000000e+00> : vector<16x256xf32>
    %451 = tpu.matmul %449, %450, %cst_167 {dimension_numbers = #tpu.dot_dimension_numbers<[1], [0], [0], [1], [0, 0, 1, 1], [], []>} : vector<16x64xbf16>, vector<64x256xbf16>, vector<16x256xf32> -> vector<16x256xf32>
    %c16_i32_168 = arith.constant 16 : i32
    %452 = arith.muli %c5_i32, %c16_i32_168 : i32
    %453 = tpu.assume_multiple %452, 16 : i32
    %c7_i32_169 = arith.constant 7 : i32
    %454 = arith.subi %c7_i32_169, %c5_i32 : i32
    %c16_i32_170 = arith.constant 16 : i32
    %455 = arith.muli %454, %c16_i32_170 : i32
    %456 = tpu.assume_multiple %455, 16 : i32
    %457 = arith.index_cast %453 : i32 to index
    %c0_171 = arith.constant 0 : index
    %458 = vector.load %arg11[%457, %c0_171] : memref<128x128xf32, #tpu.memory_space<vmem>>, vector<16x128xf32>
    %459 = vector.extract_strided_slice %451 {offsets = [0, 0], sizes = [16, 128], strides = [1, 1]} : vector<16x256xf32> to vector<16x128xf32>
    %460 = arith.addf %458, %459 : vector<16x128xf32>
    %461 = arith.index_cast %456 : i32 to index
    %c0_172 = arith.constant 0 : index
    %462 = vector.load %arg12[%461, %c0_172] : memref<128x128xf32, #tpu.memory_space<vmem>>, vector<16x128xf32>
    %463 = vector.extract_strided_slice %451 {offsets = [0, 128], sizes = [16, 128], strides = [1, 1]} : vector<16x256xf32> to vector<16x128xf32>
    %464 = arith.addf %462, %463 : vector<16x128xf32>
    %c0_173 = arith.constant 0 : index
    %c0_174 = arith.constant 0 : index
    %465 = vector.load %arg14[%c0_173, %c0_174] : memref<16x64xf32, #tpu.memory_space<vmem>>, vector<16x64xf32>
    %466 = vector.extract_strided_slice %465 {offsets = [0, 0], sizes = [16, 32], strides = [1, 1]} : vector<16x64xf32> to vector<16x32xf32>
    %467 = vector.extract_strided_slice %460 {offsets = [0, 0], sizes = [16, 32], strides = [1, 1]} : vector<16x128xf32> to vector<16x32xf32>
    %468 = arith.negf %467 : vector<16x32xf32>
    %469 = math.exp %468 : vector<16x32xf32>
    %cst_175 = arith.constant 1.000000e+00 : f32
    %470 = vector.broadcast %cst_175 : f32 to vector<16x32xf32>
    %471 = arith.addf %470, %469 : vector<16x32xf32>
    %472 = arith.divf %470, %471 : vector<16x32xf32>
    %473 = vector.extract_strided_slice %460 {offsets = [0, 32], sizes = [16, 32], strides = [1, 1]} : vector<16x128xf32> to vector<16x32xf32>
    %474 = arith.negf %473 : vector<16x32xf32>
    %475 = math.exp %474 : vector<16x32xf32>
    %cst_176 = arith.constant 1.000000e+00 : f32
    %476 = vector.broadcast %cst_176 : f32 to vector<16x32xf32>
    %477 = arith.addf %476, %475 : vector<16x32xf32>
    %478 = arith.divf %476, %477 : vector<16x32xf32>
    %479 = vector.extract_strided_slice %460 {offsets = [0, 64], sizes = [16, 32], strides = [1, 1]} : vector<16x128xf32> to vector<16x32xf32>
    %480 = math.tanh %479 : vector<16x32xf32>
    %481 = vector.extract_strided_slice %460 {offsets = [0, 96], sizes = [16, 32], strides = [1, 1]} : vector<16x128xf32> to vector<16x32xf32>
    %482 = arith.negf %481 : vector<16x32xf32>
    %483 = math.exp %482 : vector<16x32xf32>
    %cst_177 = arith.constant 1.000000e+00 : f32
    %484 = vector.broadcast %cst_177 : f32 to vector<16x32xf32>
    %485 = arith.addf %484, %483 : vector<16x32xf32>
    %486 = arith.divf %484, %485 : vector<16x32xf32>
    %487 = arith.mulf %478, %466 : vector<16x32xf32>
    %488 = arith.mulf %472, %480 : vector<16x32xf32>
    %489 = arith.addf %487, %488 : vector<16x32xf32>
    %490 = math.tanh %489 : vector<16x32xf32>
    %491 = arith.mulf %486, %490 : vector<16x32xf32>
    %492 = vector.extract_strided_slice %465 {offsets = [0, 32], sizes = [16, 32], strides = [1, 1]} : vector<16x64xf32> to vector<16x32xf32>
    %493 = vector.extract_strided_slice %464 {offsets = [0, 0], sizes = [16, 32], strides = [1, 1]} : vector<16x128xf32> to vector<16x32xf32>
    %494 = arith.negf %493 : vector<16x32xf32>
    %495 = math.exp %494 : vector<16x32xf32>
    %cst_178 = arith.constant 1.000000e+00 : f32
    %496 = vector.broadcast %cst_178 : f32 to vector<16x32xf32>
    %497 = arith.addf %496, %495 : vector<16x32xf32>
    %498 = arith.divf %496, %497 : vector<16x32xf32>
    %499 = vector.extract_strided_slice %464 {offsets = [0, 32], sizes = [16, 32], strides = [1, 1]} : vector<16x128xf32> to vector<16x32xf32>
    %500 = arith.negf %499 : vector<16x32xf32>
    %501 = math.exp %500 : vector<16x32xf32>
    %cst_179 = arith.constant 1.000000e+00 : f32
    %502 = vector.broadcast %cst_179 : f32 to vector<16x32xf32>
    %503 = arith.addf %502, %501 : vector<16x32xf32>
    %504 = arith.divf %502, %503 : vector<16x32xf32>
    %505 = vector.extract_strided_slice %464 {offsets = [0, 64], sizes = [16, 32], strides = [1, 1]} : vector<16x128xf32> to vector<16x32xf32>
    %506 = math.tanh %505 : vector<16x32xf32>
    %507 = vector.extract_strided_slice %464 {offsets = [0, 96], sizes = [16, 32], strides = [1, 1]} : vector<16x128xf32> to vector<16x32xf32>
    %508 = arith.negf %507 : vector<16x32xf32>
    %509 = math.exp %508 : vector<16x32xf32>
    %cst_180 = arith.constant 1.000000e+00 : f32
    %510 = vector.broadcast %cst_180 : f32 to vector<16x32xf32>
    %511 = arith.addf %510, %509 : vector<16x32xf32>
    %512 = arith.divf %510, %511 : vector<16x32xf32>
    %513 = arith.mulf %504, %492 : vector<16x32xf32>
    %514 = arith.mulf %498, %506 : vector<16x32xf32>
    %515 = arith.addf %513, %514 : vector<16x32xf32>
    %516 = math.tanh %515 : vector<16x32xf32>
    %517 = arith.mulf %512, %516 : vector<16x32xf32>
    %518 = tpu.concatenate %489, %515 in 1 : vector<16x32xf32>, vector<16x32xf32> -> vector<16x64xf32>
    %c0_181 = arith.constant 0 : index
    %c0_182 = arith.constant 0 : index
    %519 = vector.load %arg14[%c0_181, %c0_182] : memref<16x64xf32, #tpu.memory_space<vmem>>, vector<16x64xf32>
    tpu.vector_store %arg14[%c0_181, %c0_182], %518 {strides = array<i32>} : memref<16x64xf32, #tpu.memory_space<vmem>>, vector<16x64xf32>,
    %520 = arith.truncf %491 : vector<16x32xf32> to vector<16x32xbf16>
    %521 = arith.truncf %517 : vector<16x32xf32> to vector<16x32xbf16>
    %522 = tpu.concatenate %520, %521 in 1 : vector<16x32xbf16>, vector<16x32xbf16> -> vector<16x64xbf16>
    %c0_183 = arith.constant 0 : index
    %c0_184 = arith.constant 0 : index
    %523 = vector.load %arg13[%c0_183, %c0_184] : memref<16x64xbf16, #tpu.memory_space<vmem>>, vector<16x64xbf16>
    tpu.vector_store %arg13[%c0_183, %c0_184], %522 {strides = array<i32>} : memref<16x64xbf16, #tpu.memory_space<vmem>>, vector<16x64xbf16>,
    %524 = arith.index_cast %c5_i32 : i32 to index
    %c0_185 = arith.constant 0 : index
    %c0_186 = arith.constant 0 : index
    %525 = vector.load %arg9[%524, %c0_185, %c0_186] : memref<8x16x32xbf16, #tpu.memory_space<vmem>>, vector<1x16x32xbf16>
    %526 = vector.shape_cast %525 : vector<1x16x32xbf16> to vector<16x32xbf16>
    %527 = vector.shape_cast %520 : vector<16x32xbf16> to vector<1x16x32xbf16>
    tpu.vector_store %arg9[%524, %c0_185, %c0_186], %527 {strides = array<i32>} : memref<8x16x32xbf16, #tpu.memory_space<vmem>>, vector<1x16x32xbf16>,
    %c7_i32_187 = arith.constant 7 : i32
    %528 = arith.subi %c7_i32_187, %c5_i32 : i32
    %529 = arith.index_cast %528 : i32 to index
    %c0_188 = arith.constant 0 : index
    %c0_189 = arith.constant 0 : index
    %530 = vector.load %arg10[%529, %c0_188, %c0_189] : memref<8x16x32xbf16, #tpu.memory_space<vmem>>, vector<1x16x32xbf16>
    %531 = vector.shape_cast %530 : vector<1x16x32xbf16> to vector<16x32xbf16>
    %532 = vector.shape_cast %521 : vector<16x32xbf16> to vector<1x16x32xbf16>
    tpu.vector_store %arg10[%529, %c0_188, %c0_189], %532 {strides = array<i32>} : memref<8x16x32xbf16, #tpu.memory_space<vmem>>, vector<1x16x32xbf16>,
    %c6_i32 = arith.constant 6 : i32
    %c0_190 = arith.constant 0 : index
    %c0_191 = arith.constant 0 : index
    %533 = vector.load %arg13[%c0_190, %c0_191] : memref<16x64xbf16, #tpu.memory_space<vmem>>, vector<16x64xbf16>
    %c0_192 = arith.constant 0 : index
    %c0_193 = arith.constant 0 : index
    %534 = vector.load %arg8[%c0_192, %c0_193] : memref<64x256xbf16, #tpu.memory_space<vmem>>, vector<64x256xbf16>
    %cst_194 = arith.constant dense<0.000000e+00> : vector<16x256xf32>
    %535 = tpu.matmul %533, %534, %cst_194 {dimension_numbers = #tpu.dot_dimension_numbers<[1], [0], [0], [1], [0, 0, 1, 1], [], []>} : vector<16x64xbf16>, vector<64x256xbf16>, vector<16x256xf32> -> vector<16x256xf32>
    %c16_i32_195 = arith.constant 16 : i32
    %536 = arith.muli %c6_i32, %c16_i32_195 : i32
    %537 = tpu.assume_multiple %536, 16 : i32
    %c7_i32_196 = arith.constant 7 : i32
    %538 = arith.subi %c7_i32_196, %c6_i32 : i32
    %c16_i32_197 = arith.constant 16 : i32
    %539 = arith.muli %538, %c16_i32_197 : i32
    %540 = tpu.assume_multiple %539, 16 : i32
    %541 = arith.index_cast %537 : i32 to index
    %c0_198 = arith.constant 0 : index
    %542 = vector.load %arg11[%541, %c0_198] : memref<128x128xf32, #tpu.memory_space<vmem>>, vector<16x128xf32>
    %543 = vector.extract_strided_slice %535 {offsets = [0, 0], sizes = [16, 128], strides = [1, 1]} : vector<16x256xf32> to vector<16x128xf32>
    %544 = arith.addf %542, %543 : vector<16x128xf32>
    %545 = arith.index_cast %540 : i32 to index
    %c0_199 = arith.constant 0 : index
    %546 = vector.load %arg12[%545, %c0_199] : memref<128x128xf32, #tpu.memory_space<vmem>>, vector<16x128xf32>
    %547 = vector.extract_strided_slice %535 {offsets = [0, 128], sizes = [16, 128], strides = [1, 1]} : vector<16x256xf32> to vector<16x128xf32>
    %548 = arith.addf %546, %547 : vector<16x128xf32>
    %c0_200 = arith.constant 0 : index
    %c0_201 = arith.constant 0 : index
    %549 = vector.load %arg14[%c0_200, %c0_201] : memref<16x64xf32, #tpu.memory_space<vmem>>, vector<16x64xf32>
    %550 = vector.extract_strided_slice %549 {offsets = [0, 0], sizes = [16, 32], strides = [1, 1]} : vector<16x64xf32> to vector<16x32xf32>
    %551 = vector.extract_strided_slice %544 {offsets = [0, 0], sizes = [16, 32], strides = [1, 1]} : vector<16x128xf32> to vector<16x32xf32>
    %552 = arith.negf %551 : vector<16x32xf32>
    %553 = math.exp %552 : vector<16x32xf32>
    %cst_202 = arith.constant 1.000000e+00 : f32
    %554 = vector.broadcast %cst_202 : f32 to vector<16x32xf32>
    %555 = arith.addf %554, %553 : vector<16x32xf32>
    %556 = arith.divf %554, %555 : vector<16x32xf32>
    %557 = vector.extract_strided_slice %544 {offsets = [0, 32], sizes = [16, 32], strides = [1, 1]} : vector<16x128xf32> to vector<16x32xf32>
    %558 = arith.negf %557 : vector<16x32xf32>
    %559 = math.exp %558 : vector<16x32xf32>
    %cst_203 = arith.constant 1.000000e+00 : f32
    %560 = vector.broadcast %cst_203 : f32 to vector<16x32xf32>
    %561 = arith.addf %560, %559 : vector<16x32xf32>
    %562 = arith.divf %560, %561 : vector<16x32xf32>
    %563 = vector.extract_strided_slice %544 {offsets = [0, 64], sizes = [16, 32], strides = [1, 1]} : vector<16x128xf32> to vector<16x32xf32>
    %564 = math.tanh %563 : vector<16x32xf32>
    %565 = vector.extract_strided_slice %544 {offsets = [0, 96], sizes = [16, 32], strides = [1, 1]} : vector<16x128xf32> to vector<16x32xf32>
    %566 = arith.negf %565 : vector<16x32xf32>
    %567 = math.exp %566 : vector<16x32xf32>
    %cst_204 = arith.constant 1.000000e+00 : f32
    %568 = vector.broadcast %cst_204 : f32 to vector<16x32xf32>
    %569 = arith.addf %568, %567 : vector<16x32xf32>
    %570 = arith.divf %568, %569 : vector<16x32xf32>
    %571 = arith.mulf %562, %550 : vector<16x32xf32>
    %572 = arith.mulf %556, %564 : vector<16x32xf32>
    %573 = arith.addf %571, %572 : vector<16x32xf32>
    %574 = math.tanh %573 : vector<16x32xf32>
    %575 = arith.mulf %570, %574 : vector<16x32xf32>
    %576 = vector.extract_strided_slice %549 {offsets = [0, 32], sizes = [16, 32], strides = [1, 1]} : vector<16x64xf32> to vector<16x32xf32>
    %577 = vector.extract_strided_slice %548 {offsets = [0, 0], sizes = [16, 32], strides = [1, 1]} : vector<16x128xf32> to vector<16x32xf32>
    %578 = arith.negf %577 : vector<16x32xf32>
    %579 = math.exp %578 : vector<16x32xf32>
    %cst_205 = arith.constant 1.000000e+00 : f32
    %580 = vector.broadcast %cst_205 : f32 to vector<16x32xf32>
    %581 = arith.addf %580, %579 : vector<16x32xf32>
    %582 = arith.divf %580, %581 : vector<16x32xf32>
    %583 = vector.extract_strided_slice %548 {offsets = [0, 32], sizes = [16, 32], strides = [1, 1]} : vector<16x128xf32> to vector<16x32xf32>
    %584 = arith.negf %583 : vector<16x32xf32>
    %585 = math.exp %584 : vector<16x32xf32>
    %cst_206 = arith.constant 1.000000e+00 : f32
    %586 = vector.broadcast %cst_206 : f32 to vector<16x32xf32>
    %587 = arith.addf %586, %585 : vector<16x32xf32>
    %588 = arith.divf %586, %587 : vector<16x32xf32>
    %589 = vector.extract_strided_slice %548 {offsets = [0, 64], sizes = [16, 32], strides = [1, 1]} : vector<16x128xf32> to vector<16x32xf32>
    %590 = math.tanh %589 : vector<16x32xf32>
    %591 = vector.extract_strided_slice %548 {offsets = [0, 96], sizes = [16, 32], strides = [1, 1]} : vector<16x128xf32> to vector<16x32xf32>
    %592 = arith.negf %591 : vector<16x32xf32>
    %593 = math.exp %592 : vector<16x32xf32>
    %cst_207 = arith.constant 1.000000e+00 : f32
    %594 = vector.broadcast %cst_207 : f32 to vector<16x32xf32>
    %595 = arith.addf %594, %593 : vector<16x32xf32>
    %596 = arith.divf %594, %595 : vector<16x32xf32>
    %597 = arith.mulf %588, %576 : vector<16x32xf32>
    %598 = arith.mulf %582, %590 : vector<16x32xf32>
    %599 = arith.addf %597, %598 : vector<16x32xf32>
    %600 = math.tanh %599 : vector<16x32xf32>
    %601 = arith.mulf %596, %600 : vector<16x32xf32>
    %602 = tpu.concatenate %573, %599 in 1 : vector<16x32xf32>, vector<16x32xf32> -> vector<16x64xf32>
    %c0_208 = arith.constant 0 : index
    %c0_209 = arith.constant 0 : index
    %603 = vector.load %arg14[%c0_208, %c0_209] : memref<16x64xf32, #tpu.memory_space<vmem>>, vector<16x64xf32>
    tpu.vector_store %arg14[%c0_208, %c0_209], %602 {strides = array<i32>} : memref<16x64xf32, #tpu.memory_space<vmem>>, vector<16x64xf32>,
    %604 = arith.truncf %575 : vector<16x32xf32> to vector<16x32xbf16>
    %605 = arith.truncf %601 : vector<16x32xf32> to vector<16x32xbf16>
    %606 = tpu.concatenate %604, %605 in 1 : vector<16x32xbf16>, vector<16x32xbf16> -> vector<16x64xbf16>
    %c0_210 = arith.constant 0 : index
    %c0_211 = arith.constant 0 : index
    %607 = vector.load %arg13[%c0_210, %c0_211] : memref<16x64xbf16, #tpu.memory_space<vmem>>, vector<16x64xbf16>
    tpu.vector_store %arg13[%c0_210, %c0_211], %606 {strides = array<i32>} : memref<16x64xbf16, #tpu.memory_space<vmem>>, vector<16x64xbf16>,
    %608 = arith.index_cast %c6_i32 : i32 to index
    %c0_212 = arith.constant 0 : index
    %c0_213 = arith.constant 0 : index
    %609 = vector.load %arg9[%608, %c0_212, %c0_213] : memref<8x16x32xbf16, #tpu.memory_space<vmem>>, vector<1x16x32xbf16>
    %610 = vector.shape_cast %609 : vector<1x16x32xbf16> to vector<16x32xbf16>
    %611 = vector.shape_cast %604 : vector<16x32xbf16> to vector<1x16x32xbf16>
    tpu.vector_store %arg9[%608, %c0_212, %c0_213], %611 {strides = array<i32>} : memref<8x16x32xbf16, #tpu.memory_space<vmem>>, vector<1x16x32xbf16>,
    %c7_i32_214 = arith.constant 7 : i32
    %612 = arith.subi %c7_i32_214, %c6_i32 : i32
    %613 = arith.index_cast %612 : i32 to index
    %c0_215 = arith.constant 0 : index
    %c0_216 = arith.constant 0 : index
    %614 = vector.load %arg10[%613, %c0_215, %c0_216] : memref<8x16x32xbf16, #tpu.memory_space<vmem>>, vector<1x16x32xbf16>
    %615 = vector.shape_cast %614 : vector<1x16x32xbf16> to vector<16x32xbf16>
    %616 = vector.shape_cast %605 : vector<16x32xbf16> to vector<1x16x32xbf16>
    tpu.vector_store %arg10[%613, %c0_215, %c0_216], %616 {strides = array<i32>} : memref<8x16x32xbf16, #tpu.memory_space<vmem>>, vector<1x16x32xbf16>,
    %c7_i32_217 = arith.constant 7 : i32
    %c0_218 = arith.constant 0 : index
    %c0_219 = arith.constant 0 : index
    %617 = vector.load %arg13[%c0_218, %c0_219] : memref<16x64xbf16, #tpu.memory_space<vmem>>, vector<16x64xbf16>
    %c0_220 = arith.constant 0 : index
    %c0_221 = arith.constant 0 : index
    %618 = vector.load %arg8[%c0_220, %c0_221] : memref<64x256xbf16, #tpu.memory_space<vmem>>, vector<64x256xbf16>
    %cst_222 = arith.constant dense<0.000000e+00> : vector<16x256xf32>
    %619 = tpu.matmul %617, %618, %cst_222 {dimension_numbers = #tpu.dot_dimension_numbers<[1], [0], [0], [1], [0, 0, 1, 1], [], []>} : vector<16x64xbf16>, vector<64x256xbf16>, vector<16x256xf32> -> vector<16x256xf32>
    %c16_i32_223 = arith.constant 16 : i32
    %620 = arith.muli %c7_i32_217, %c16_i32_223 : i32
    %621 = tpu.assume_multiple %620, 16 : i32
    %c7_i32_224 = arith.constant 7 : i32
    %622 = arith.subi %c7_i32_224, %c7_i32_217 : i32
    %c16_i32_225 = arith.constant 16 : i32
    %623 = arith.muli %622, %c16_i32_225 : i32
    %624 = tpu.assume_multiple %623, 16 : i32
    %625 = arith.index_cast %621 : i32 to index
    %c0_226 = arith.constant 0 : index
    %626 = vector.load %arg11[%625, %c0_226] : memref<128x128xf32, #tpu.memory_space<vmem>>, vector<16x128xf32>
    %627 = vector.extract_strided_slice %619 {offsets = [0, 0], sizes = [16, 128], strides = [1, 1]} : vector<16x256xf32> to vector<16x128xf32>
    %628 = arith.addf %626, %627 : vector<16x128xf32>
    %629 = arith.index_cast %624 : i32 to index
    %c0_227 = arith.constant 0 : index
    %630 = vector.load %arg12[%629, %c0_227] : memref<128x128xf32, #tpu.memory_space<vmem>>, vector<16x128xf32>
    %631 = vector.extract_strided_slice %619 {offsets = [0, 128], sizes = [16, 128], strides = [1, 1]} : vector<16x256xf32> to vector<16x128xf32>
    %632 = arith.addf %630, %631 : vector<16x128xf32>
    %c0_228 = arith.constant 0 : index
    %c0_229 = arith.constant 0 : index
    %633 = vector.load %arg14[%c0_228, %c0_229] : memref<16x64xf32, #tpu.memory_space<vmem>>, vector<16x64xf32>
    %634 = vector.extract_strided_slice %633 {offsets = [0, 0], sizes = [16, 32], strides = [1, 1]} : vector<16x64xf32> to vector<16x32xf32>
    %635 = vector.extract_strided_slice %628 {offsets = [0, 0], sizes = [16, 32], strides = [1, 1]} : vector<16x128xf32> to vector<16x32xf32>
    %636 = arith.negf %635 : vector<16x32xf32>
    %637 = math.exp %636 : vector<16x32xf32>
    %cst_230 = arith.constant 1.000000e+00 : f32
    %638 = vector.broadcast %cst_230 : f32 to vector<16x32xf32>
    %639 = arith.addf %638, %637 : vector<16x32xf32>
    %640 = arith.divf %638, %639 : vector<16x32xf32>
    %641 = vector.extract_strided_slice %628 {offsets = [0, 32], sizes = [16, 32], strides = [1, 1]} : vector<16x128xf32> to vector<16x32xf32>
    %642 = arith.negf %641 : vector<16x32xf32>
    %643 = math.exp %642 : vector<16x32xf32>
    %cst_231 = arith.constant 1.000000e+00 : f32
    %644 = vector.broadcast %cst_231 : f32 to vector<16x32xf32>
    %645 = arith.addf %644, %643 : vector<16x32xf32>
    %646 = arith.divf %644, %645 : vector<16x32xf32>
    %647 = vector.extract_strided_slice %628 {offsets = [0, 64], sizes = [16, 32], strides = [1, 1]} : vector<16x128xf32> to vector<16x32xf32>
    %648 = math.tanh %647 : vector<16x32xf32>
    %649 = vector.extract_strided_slice %628 {offsets = [0, 96], sizes = [16, 32], strides = [1, 1]} : vector<16x128xf32> to vector<16x32xf32>
    %650 = arith.negf %649 : vector<16x32xf32>
    %651 = math.exp %650 : vector<16x32xf32>
    %cst_232 = arith.constant 1.000000e+00 : f32
    %652 = vector.broadcast %cst_232 : f32 to vector<16x32xf32>
    %653 = arith.addf %652, %651 : vector<16x32xf32>
    %654 = arith.divf %652, %653 : vector<16x32xf32>
    %655 = arith.mulf %646, %634 : vector<16x32xf32>
    %656 = arith.mulf %640, %648 : vector<16x32xf32>
    %657 = arith.addf %655, %656 : vector<16x32xf32>
    %658 = math.tanh %657 : vector<16x32xf32>
    %659 = arith.mulf %654, %658 : vector<16x32xf32>
    %660 = vector.extract_strided_slice %633 {offsets = [0, 32], sizes = [16, 32], strides = [1, 1]} : vector<16x64xf32> to vector<16x32xf32>
    %661 = vector.extract_strided_slice %632 {offsets = [0, 0], sizes = [16, 32], strides = [1, 1]} : vector<16x128xf32> to vector<16x32xf32>
    %662 = arith.negf %661 : vector<16x32xf32>
    %663 = math.exp %662 : vector<16x32xf32>
    %cst_233 = arith.constant 1.000000e+00 : f32
    %664 = vector.broadcast %cst_233 : f32 to vector<16x32xf32>
    %665 = arith.addf %664, %663 : vector<16x32xf32>
    %666 = arith.divf %664, %665 : vector<16x32xf32>
    %667 = vector.extract_strided_slice %632 {offsets = [0, 32], sizes = [16, 32], strides = [1, 1]} : vector<16x128xf32> to vector<16x32xf32>
    %668 = arith.negf %667 : vector<16x32xf32>
    %669 = math.exp %668 : vector<16x32xf32>
    %cst_234 = arith.constant 1.000000e+00 : f32
    %670 = vector.broadcast %cst_234 : f32 to vector<16x32xf32>
    %671 = arith.addf %670, %669 : vector<16x32xf32>
    %672 = arith.divf %670, %671 : vector<16x32xf32>
    %673 = vector.extract_strided_slice %632 {offsets = [0, 64], sizes = [16, 32], strides = [1, 1]} : vector<16x128xf32> to vector<16x32xf32>
    %674 = math.tanh %673 : vector<16x32xf32>
    %675 = vector.extract_strided_slice %632 {offsets = [0, 96], sizes = [16, 32], strides = [1, 1]} : vector<16x128xf32> to vector<16x32xf32>
    %676 = arith.negf %675 : vector<16x32xf32>
    %677 = math.exp %676 : vector<16x32xf32>
    %cst_235 = arith.constant 1.000000e+00 : f32
    %678 = vector.broadcast %cst_235 : f32 to vector<16x32xf32>
    %679 = arith.addf %678, %677 : vector<16x32xf32>
    %680 = arith.divf %678, %679 : vector<16x32xf32>
    %681 = arith.mulf %672, %660 : vector<16x32xf32>
    %682 = arith.mulf %666, %674 : vector<16x32xf32>
    %683 = arith.addf %681, %682 : vector<16x32xf32>
    %684 = math.tanh %683 : vector<16x32xf32>
    %685 = arith.mulf %680, %684 : vector<16x32xf32>
    %686 = tpu.concatenate %657, %683 in 1 : vector<16x32xf32>, vector<16x32xf32> -> vector<16x64xf32>
    %c0_236 = arith.constant 0 : index
    %c0_237 = arith.constant 0 : index
    %687 = vector.load %arg14[%c0_236, %c0_237] : memref<16x64xf32, #tpu.memory_space<vmem>>, vector<16x64xf32>
    tpu.vector_store %arg14[%c0_236, %c0_237], %686 {strides = array<i32>} : memref<16x64xf32, #tpu.memory_space<vmem>>, vector<16x64xf32>,
    %688 = arith.truncf %659 : vector<16x32xf32> to vector<16x32xbf16>
    %689 = arith.truncf %685 : vector<16x32xf32> to vector<16x32xbf16>
    %690 = tpu.concatenate %688, %689 in 1 : vector<16x32xbf16>, vector<16x32xbf16> -> vector<16x64xbf16>
    %c0_238 = arith.constant 0 : index
    %c0_239 = arith.constant 0 : index
    %691 = vector.load %arg13[%c0_238, %c0_239] : memref<16x64xbf16, #tpu.memory_space<vmem>>, vector<16x64xbf16>
    tpu.vector_store %arg13[%c0_238, %c0_239], %690 {strides = array<i32>} : memref<16x64xbf16, #tpu.memory_space<vmem>>, vector<16x64xbf16>,
    %692 = arith.index_cast %c7_i32_217 : i32 to index
    %c0_240 = arith.constant 0 : index
    %c0_241 = arith.constant 0 : index
    %693 = vector.load %arg9[%692, %c0_240, %c0_241] : memref<8x16x32xbf16, #tpu.memory_space<vmem>>, vector<1x16x32xbf16>
    %694 = vector.shape_cast %693 : vector<1x16x32xbf16> to vector<16x32xbf16>
    %695 = vector.shape_cast %688 : vector<16x32xbf16> to vector<1x16x32xbf16>
    tpu.vector_store %arg9[%692, %c0_240, %c0_241], %695 {strides = array<i32>} : memref<8x16x32xbf16, #tpu.memory_space<vmem>>, vector<1x16x32xbf16>,
    %c7_i32_242 = arith.constant 7 : i32
    %696 = arith.subi %c7_i32_242, %c7_i32_217 : i32
    %697 = arith.index_cast %696 : i32 to index
    %c0_243 = arith.constant 0 : index
    %c0_244 = arith.constant 0 : index
    %698 = vector.load %arg10[%697, %c0_243, %c0_244] : memref<8x16x32xbf16, #tpu.memory_space<vmem>>, vector<1x16x32xbf16>
    %699 = vector.shape_cast %698 : vector<1x16x32xbf16> to vector<16x32xbf16>
    %700 = vector.shape_cast %689 : vector<16x32xbf16> to vector<1x16x32xbf16>
    tpu.vector_store %arg10[%697, %c0_243, %c0_244], %700 {strides = array<i32>} : memref<8x16x32xbf16, #tpu.memory_space<vmem>>, vector<1x16x32xbf16>,
    %c8_i32 = arith.constant 8 : i32
    return
  }
  func.func @transform_0(%arg0: i32, %arg1: i32) -> (i32, i32, i32) {
    %c0_i32 = arith.constant 0 : i32
    %c0_i32_0 = arith.constant 0 : i32
    return %arg1, %arg0, %c0_i32 : i32, i32, i32
  }
  func.func @transform_1(%arg0: i32, %arg1: i32) -> (i32, i32, i32) {
    %c0_i32 = arith.constant 0 : i32
    %c0_i32_0 = arith.constant 0 : i32
    return %arg1, %arg0, %c0_i32 : i32, i32, i32
  }
  func.func @transform_2(%arg0: i32, %arg1: i32) -> (i32, i32, i32) {
    %c0_i32 = arith.constant 0 : i32
    %0 = arith.subi %c0_i32, %arg1 : i32
    %c0_i32_0 = arith.constant 0 : i32
    %c0_i32_1 = arith.constant 0 : i32
    return %0, %arg0, %c0_i32_0 : i32, i32, i32
  }
  func.func @transform_3(%arg0: i32, %arg1: i32) -> (i32, i32, i32) {
    %c0_i32 = arith.constant 0 : i32
    %0 = arith.subi %c0_i32, %arg1 : i32
    %c0_i32_0 = arith.constant 0 : i32
    %c0_i32_1 = arith.constant 0 : i32
    return %0, %arg0, %c0_i32_0 : i32, i32, i32
  }
  func.func @transform_4(%arg0: i32, %arg1: i32) -> (i32, i32) {
    %c0_i32 = arith.constant 0 : i32
    %c0_i32_0 = arith.constant 0 : i32
    %c0_i32_1 = arith.constant 0 : i32
    return %c0_i32, %c0_i32_0 : i32, i32
  }
  func.func @transform_5(%arg0: i32, %arg1: i32) -> (i32, i32) {
    %c0_i32 = arith.constant 0 : i32
    %c0_i32_0 = arith.constant 0 : i32
    %c0_i32_1 = arith.constant 0 : i32
    return %c0_i32, %c0_i32_0 : i32, i32
  }
  func.func @transform_6(%arg0: i32, %arg1: i32) -> (i32, i32) {
    %c0_i32 = arith.constant 0 : i32
    %c0_i32_0 = arith.constant 0 : i32
    %c0_i32_1 = arith.constant 0 : i32
    return %c0_i32, %c0_i32_0 : i32, i32
  }
  func.func @transform_7(%arg0: i32, %arg1: i32) -> (i32, i32, i32) {
    %c0_i32 = arith.constant 0 : i32
    %c0_i32_0 = arith.constant 0 : i32
    return %arg1, %arg0, %c0_i32 : i32, i32, i32
  }
  func.func @transform_8(%arg0: i32, %arg1: i32) -> (i32, i32, i32) {
    %c0_i32 = arith.constant 0 : i32
    %0 = arith.subi %c0_i32, %arg1 : i32
    %c0_i32_0 = arith.constant 0 : i32
    %c0_i32_1 = arith.constant 0 : i32
    return %0, %arg0, %c0_i32_0 : i32, i32, i32
  }
}

module attributes {stable_mosaic.version = 11 : i64} {
  func.func @_bilstm_layer_kernel(%arg0: i32, %arg1: i32, %arg2: memref<8x16x16xbf16, #tpu.memory_space<vmem>>, %arg3: memref<8x16x16xbf16, #tpu.memory_space<vmem>>, %arg4: memref<16x256xbf16, #tpu.memory_space<vmem>>, %arg5: memref<1x256xf32, #tpu.memory_space<vmem>>, %arg6: memref<64x256xbf16, #tpu.memory_space<vmem>>, %arg7: memref<8x16x32xbf16, #tpu.memory_space<vmem>>, %arg8: memref<8x16x32xbf16, #tpu.memory_space<vmem>>, %arg9: memref<128x128xf32, #tpu.memory_space<vmem>>, %arg10: memref<128x128xf32, #tpu.memory_space<vmem>>, %arg11: memref<16x64xbf16, #tpu.memory_space<vmem>>, %arg12: memref<16x64xf32, #tpu.memory_space<vmem>>) attributes {dimension_semantics = [#tpu.dimension_semantics<parallel>, #tpu.dimension_semantics<arbitrary>], iteration_bounds = array<i64: 1, 1>, scalar_prefetch = 0 : i64, scratch_operands = 4 : i64, tpu.core_type = #tpu.core_type<tc>, window_params = [{transform_indices = @transform_0, window_bounds = array<i64: 8, 16, 16>}, {transform_indices = @transform_1, window_bounds = array<i64: 8, 16, 16>}, {pipeline_mode = #tpu.pipeline_mode<synchronous>, transform_indices = @transform_2, window_bounds = array<i64: 16, 256>}, {pipeline_mode = #tpu.pipeline_mode<synchronous>, transform_indices = @transform_3, window_bounds = array<i64: 1, 256>}, {pipeline_mode = #tpu.pipeline_mode<synchronous>, transform_indices = @transform_4, window_bounds = array<i64: 64, 256>}, {transform_indices = @transform_5, window_bounds = array<i64: 8, 16, 32>}, {transform_indices = @transform_6, window_bounds = array<i64: 8, 16, 32>}]} {
    %c0_i32 = arith.constant 0 : i32
    %0 = arith.cmpi eq, %arg1, %c0_i32 : i32
    %1 = arith.extui %0 : i1 to i32
    %c0_i32_0 = arith.constant 0 : i32
    %2 = arith.cmpi ne, %1, %c0_i32_0 : i32
    scf.if %2 {
      %cst_234 = arith.constant 0.000000e+00 : bf16
      %691 = vector.broadcast %cst_234 : bf16 to vector<16x64xbf16>
      %c0_235 = arith.constant 0 : index
      %c0_236 = arith.constant 0 : index
      %692 = vector.load %arg11[%c0_235, %c0_236] : memref<16x64xbf16, #tpu.memory_space<vmem>>, vector<16x64xbf16>
      tpu.vector_store %arg11[%c0_235, %c0_236], %691 {strides = array<i32>} : memref<16x64xbf16, #tpu.memory_space<vmem>>, vector<16x64xbf16>,
      %cst_237 = arith.constant 0.000000e+00 : f32
      %693 = vector.broadcast %cst_237 : f32 to vector<16x64xf32>
      %c0_238 = arith.constant 0 : index
      %c0_239 = arith.constant 0 : index
      %694 = vector.load %arg12[%c0_238, %c0_239] : memref<16x64xf32, #tpu.memory_space<vmem>>, vector<16x64xf32>
      tpu.vector_store %arg12[%c0_238, %c0_239], %693 {strides = array<i32>} : memref<16x64xf32, #tpu.memory_space<vmem>>, vector<16x64xf32>,
    } else {
    }
    %c0 = arith.constant 0 : index
    %c0_1 = arith.constant 0 : index
    %c0_2 = arith.constant 0 : index
    %3 = vector.load %arg2[%c0, %c0_1, %c0_2] : memref<8x16x16xbf16, #tpu.memory_space<vmem>>, vector<8x16x16xbf16>
    %4 = vector.shape_cast %3 : vector<8x16x16xbf16> to vector<128x16xbf16>
    %c0_3 = arith.constant 0 : index
    %c0_4 = arith.constant 0 : index
    %5 = vector.load %arg4[%c0_3, %c0_4] : memref<16x256xbf16, #tpu.memory_space<vmem>>, vector<16x128xbf16>
    %cst = arith.constant dense<0.000000e+00> : vector<128x128xf32>
    %6 = tpu.matmul %4, %5, %cst {dimension_numbers = #tpu.dot_dimension_numbers<[1], [0], [0], [1], [0, 0, 1, 1], [], []>} : vector<128x16xbf16>, vector<16x128xbf16>, vector<128x128xf32> -> vector<128x128xf32>
    %c0_5 = arith.constant 0 : index
    %c0_6 = arith.constant 0 : index
    %7 = vector.load %arg5[%c0_5, %c0_6] : memref<1x256xf32, #tpu.memory_space<vmem>>, vector<1x128xf32>
    %8 = vector.broadcast %7 : vector<1x128xf32> to vector<128x128xf32>
    %9 = arith.addf %6, %8 : vector<128x128xf32>
    %c0_7 = arith.constant 0 : index
    %c0_8 = arith.constant 0 : index
    %10 = vector.load %arg9[%c0_7, %c0_8] : memref<128x128xf32, #tpu.memory_space<vmem>>, vector<128x128xf32>
    tpu.vector_store %arg9[%c0_7, %c0_8], %9 {strides = array<i32>} : memref<128x128xf32, #tpu.memory_space<vmem>>, vector<128x128xf32>,
    %c0_9 = arith.constant 0 : index
    %c0_10 = arith.constant 0 : index
    %c0_11 = arith.constant 0 : index
    %11 = vector.load %arg3[%c0_9, %c0_10, %c0_11] : memref<8x16x16xbf16, #tpu.memory_space<vmem>>, vector<8x16x16xbf16>
    %12 = vector.shape_cast %11 : vector<8x16x16xbf16> to vector<128x16xbf16>
    %c0_12 = arith.constant 0 : index
    %c128 = arith.constant 128 : index
    %13 = vector.load %arg4[%c0_12, %c128] : memref<16x256xbf16, #tpu.memory_space<vmem>>, vector<16x128xbf16>
    %cst_13 = arith.constant dense<0.000000e+00> : vector<128x128xf32>
    %14 = tpu.matmul %12, %13, %cst_13 {dimension_numbers = #tpu.dot_dimension_numbers<[1], [0], [0], [1], [0, 0, 1, 1], [], []>} : vector<128x16xbf16>, vector<16x128xbf16>, vector<128x128xf32> -> vector<128x128xf32>
    %c0_14 = arith.constant 0 : index
    %c128_15 = arith.constant 128 : index
    %15 = vector.load %arg5[%c0_14, %c128_15] : memref<1x256xf32, #tpu.memory_space<vmem>>, vector<1x128xf32>
    %16 = vector.broadcast %15 : vector<1x128xf32> to vector<128x128xf32>
    %17 = arith.addf %14, %16 : vector<128x128xf32>
    %c0_16 = arith.constant 0 : index
    %c0_17 = arith.constant 0 : index
    %18 = vector.load %arg10[%c0_16, %c0_17] : memref<128x128xf32, #tpu.memory_space<vmem>>, vector<128x128xf32>
    tpu.vector_store %arg10[%c0_16, %c0_17], %17 {strides = array<i32>} : memref<128x128xf32, #tpu.memory_space<vmem>>, vector<128x128xf32>,
    %c0_i32_18 = arith.constant 0 : i32
    %c0_19 = arith.constant 0 : index
    %c0_20 = arith.constant 0 : index
    %19 = vector.load %arg11[%c0_19, %c0_20] : memref<16x64xbf16, #tpu.memory_space<vmem>>, vector<16x64xbf16>
    %c0_21 = arith.constant 0 : index
    %c0_22 = arith.constant 0 : index
    %20 = vector.load %arg6[%c0_21, %c0_22] : memref<64x256xbf16, #tpu.memory_space<vmem>>, vector<64x256xbf16>
    %cst_23 = arith.constant dense<0.000000e+00> : vector<16x256xf32>
    %21 = tpu.matmul %19, %20, %cst_23 {dimension_numbers = #tpu.dot_dimension_numbers<[1], [0], [0], [1], [0, 0, 1, 1], [], []>} : vector<16x64xbf16>, vector<64x256xbf16>, vector<16x256xf32> -> vector<16x256xf32>
    %c16_i32 = arith.constant 16 : i32
    %22 = arith.muli %c0_i32_18, %c16_i32 : i32
    %23 = tpu.assume_multiple %22, 16 : i32
    %c7_i32 = arith.constant 7 : i32
    %24 = arith.subi %c7_i32, %c0_i32_18 : i32
    %c16_i32_24 = arith.constant 16 : i32
    %25 = arith.muli %24, %c16_i32_24 : i32
    %26 = tpu.assume_multiple %25, 16 : i32
    %27 = arith.index_cast %23 : i32 to index
    %c0_25 = arith.constant 0 : index
    %28 = vector.load %arg9[%27, %c0_25] : memref<128x128xf32, #tpu.memory_space<vmem>>, vector<16x128xf32>
    %29 = vector.extract_strided_slice %21 {offsets = [0, 0], sizes = [16, 128], strides = [1, 1]} : vector<16x256xf32> to vector<16x128xf32>
    %30 = arith.addf %28, %29 : vector<16x128xf32>
    %31 = arith.index_cast %26 : i32 to index
    %c0_26 = arith.constant 0 : index
    %32 = vector.load %arg10[%31, %c0_26] : memref<128x128xf32, #tpu.memory_space<vmem>>, vector<16x128xf32>
    %33 = vector.extract_strided_slice %21 {offsets = [0, 128], sizes = [16, 128], strides = [1, 1]} : vector<16x256xf32> to vector<16x128xf32>
    %34 = arith.addf %32, %33 : vector<16x128xf32>
    %c0_27 = arith.constant 0 : index
    %c0_28 = arith.constant 0 : index
    %35 = vector.load %arg12[%c0_27, %c0_28] : memref<16x64xf32, #tpu.memory_space<vmem>>, vector<16x64xf32>
    %36 = vector.extract_strided_slice %35 {offsets = [0, 0], sizes = [16, 32], strides = [1, 1]} : vector<16x64xf32> to vector<16x32xf32>
    %37 = vector.extract_strided_slice %30 {offsets = [0, 0], sizes = [16, 32], strides = [1, 1]} : vector<16x128xf32> to vector<16x32xf32>
    %38 = arith.negf %37 : vector<16x32xf32>
    %39 = math.exp %38 : vector<16x32xf32>
    %cst_29 = arith.constant 1.000000e+00 : f32
    %40 = vector.broadcast %cst_29 : f32 to vector<16x32xf32>
    %41 = arith.addf %40, %39 : vector<16x32xf32>
    %42 = arith.divf %40, %41 : vector<16x32xf32>
    %43 = vector.extract_strided_slice %30 {offsets = [0, 32], sizes = [16, 32], strides = [1, 1]} : vector<16x128xf32> to vector<16x32xf32>
    %44 = arith.negf %43 : vector<16x32xf32>
    %45 = math.exp %44 : vector<16x32xf32>
    %cst_30 = arith.constant 1.000000e+00 : f32
    %46 = vector.broadcast %cst_30 : f32 to vector<16x32xf32>
    %47 = arith.addf %46, %45 : vector<16x32xf32>
    %48 = arith.divf %46, %47 : vector<16x32xf32>
    %49 = vector.extract_strided_slice %30 {offsets = [0, 64], sizes = [16, 32], strides = [1, 1]} : vector<16x128xf32> to vector<16x32xf32>
    %50 = math.tanh %49 : vector<16x32xf32>
    %51 = vector.extract_strided_slice %30 {offsets = [0, 96], sizes = [16, 32], strides = [1, 1]} : vector<16x128xf32> to vector<16x32xf32>
    %52 = arith.negf %51 : vector<16x32xf32>
    %53 = math.exp %52 : vector<16x32xf32>
    %cst_31 = arith.constant 1.000000e+00 : f32
    %54 = vector.broadcast %cst_31 : f32 to vector<16x32xf32>
    %55 = arith.addf %54, %53 : vector<16x32xf32>
    %56 = arith.divf %54, %55 : vector<16x32xf32>
    %57 = arith.mulf %48, %36 : vector<16x32xf32>
    %58 = arith.mulf %42, %50 : vector<16x32xf32>
    %59 = arith.addf %57, %58 : vector<16x32xf32>
    %60 = math.tanh %59 : vector<16x32xf32>
    %61 = arith.mulf %56, %60 : vector<16x32xf32>
    %62 = vector.extract_strided_slice %35 {offsets = [0, 32], sizes = [16, 32], strides = [1, 1]} : vector<16x64xf32> to vector<16x32xf32>
    %63 = vector.extract_strided_slice %34 {offsets = [0, 0], sizes = [16, 32], strides = [1, 1]} : vector<16x128xf32> to vector<16x32xf32>
    %64 = arith.negf %63 : vector<16x32xf32>
    %65 = math.exp %64 : vector<16x32xf32>
    %cst_32 = arith.constant 1.000000e+00 : f32
    %66 = vector.broadcast %cst_32 : f32 to vector<16x32xf32>
    %67 = arith.addf %66, %65 : vector<16x32xf32>
    %68 = arith.divf %66, %67 : vector<16x32xf32>
    %69 = vector.extract_strided_slice %34 {offsets = [0, 32], sizes = [16, 32], strides = [1, 1]} : vector<16x128xf32> to vector<16x32xf32>
    %70 = arith.negf %69 : vector<16x32xf32>
    %71 = math.exp %70 : vector<16x32xf32>
    %cst_33 = arith.constant 1.000000e+00 : f32
    %72 = vector.broadcast %cst_33 : f32 to vector<16x32xf32>
    %73 = arith.addf %72, %71 : vector<16x32xf32>
    %74 = arith.divf %72, %73 : vector<16x32xf32>
    %75 = vector.extract_strided_slice %34 {offsets = [0, 64], sizes = [16, 32], strides = [1, 1]} : vector<16x128xf32> to vector<16x32xf32>
    %76 = math.tanh %75 : vector<16x32xf32>
    %77 = vector.extract_strided_slice %34 {offsets = [0, 96], sizes = [16, 32], strides = [1, 1]} : vector<16x128xf32> to vector<16x32xf32>
    %78 = arith.negf %77 : vector<16x32xf32>
    %79 = math.exp %78 : vector<16x32xf32>
    %cst_34 = arith.constant 1.000000e+00 : f32
    %80 = vector.broadcast %cst_34 : f32 to vector<16x32xf32>
    %81 = arith.addf %80, %79 : vector<16x32xf32>
    %82 = arith.divf %80, %81 : vector<16x32xf32>
    %83 = arith.mulf %74, %62 : vector<16x32xf32>
    %84 = arith.mulf %68, %76 : vector<16x32xf32>
    %85 = arith.addf %83, %84 : vector<16x32xf32>
    %86 = math.tanh %85 : vector<16x32xf32>
    %87 = arith.mulf %82, %86 : vector<16x32xf32>
    %88 = tpu.concatenate %59, %85 in 1 : vector<16x32xf32>, vector<16x32xf32> -> vector<16x64xf32>
    %c0_35 = arith.constant 0 : index
    %c0_36 = arith.constant 0 : index
    %89 = vector.load %arg12[%c0_35, %c0_36] : memref<16x64xf32, #tpu.memory_space<vmem>>, vector<16x64xf32>
    tpu.vector_store %arg12[%c0_35, %c0_36], %88 {strides = array<i32>} : memref<16x64xf32, #tpu.memory_space<vmem>>, vector<16x64xf32>,
    %90 = arith.truncf %61 : vector<16x32xf32> to vector<16x32xbf16>
    %91 = arith.truncf %87 : vector<16x32xf32> to vector<16x32xbf16>
    %92 = tpu.concatenate %90, %91 in 1 : vector<16x32xbf16>, vector<16x32xbf16> -> vector<16x64xbf16>
    %c0_37 = arith.constant 0 : index
    %c0_38 = arith.constant 0 : index
    %93 = vector.load %arg11[%c0_37, %c0_38] : memref<16x64xbf16, #tpu.memory_space<vmem>>, vector<16x64xbf16>
    tpu.vector_store %arg11[%c0_37, %c0_38], %92 {strides = array<i32>} : memref<16x64xbf16, #tpu.memory_space<vmem>>, vector<16x64xbf16>,
    %94 = arith.index_cast %c0_i32_18 : i32 to index
    %c0_39 = arith.constant 0 : index
    %c0_40 = arith.constant 0 : index
    %95 = vector.load %arg7[%94, %c0_39, %c0_40] : memref<8x16x32xbf16, #tpu.memory_space<vmem>>, vector<1x16x32xbf16>
    %96 = vector.shape_cast %95 : vector<1x16x32xbf16> to vector<16x32xbf16>
    %97 = vector.shape_cast %90 : vector<16x32xbf16> to vector<1x16x32xbf16>
    tpu.vector_store %arg7[%94, %c0_39, %c0_40], %97 {strides = array<i32>} : memref<8x16x32xbf16, #tpu.memory_space<vmem>>, vector<1x16x32xbf16>,
    %c7_i32_41 = arith.constant 7 : i32
    %98 = arith.subi %c7_i32_41, %c0_i32_18 : i32
    %99 = arith.index_cast %98 : i32 to index
    %c0_42 = arith.constant 0 : index
    %c0_43 = arith.constant 0 : index
    %100 = vector.load %arg8[%99, %c0_42, %c0_43] : memref<8x16x32xbf16, #tpu.memory_space<vmem>>, vector<1x16x32xbf16>
    %101 = vector.shape_cast %100 : vector<1x16x32xbf16> to vector<16x32xbf16>
    %102 = vector.shape_cast %91 : vector<16x32xbf16> to vector<1x16x32xbf16>
    tpu.vector_store %arg8[%99, %c0_42, %c0_43], %102 {strides = array<i32>} : memref<8x16x32xbf16, #tpu.memory_space<vmem>>, vector<1x16x32xbf16>,
    %c1_i32 = arith.constant 1 : i32
    %c0_44 = arith.constant 0 : index
    %c0_45 = arith.constant 0 : index
    %103 = vector.load %arg11[%c0_44, %c0_45] : memref<16x64xbf16, #tpu.memory_space<vmem>>, vector<16x64xbf16>
    %c0_46 = arith.constant 0 : index
    %c0_47 = arith.constant 0 : index
    %104 = vector.load %arg6[%c0_46, %c0_47] : memref<64x256xbf16, #tpu.memory_space<vmem>>, vector<64x256xbf16>
    %cst_48 = arith.constant dense<0.000000e+00> : vector<16x256xf32>
    %105 = tpu.matmul %103, %104, %cst_48 {dimension_numbers = #tpu.dot_dimension_numbers<[1], [0], [0], [1], [0, 0, 1, 1], [], []>} : vector<16x64xbf16>, vector<64x256xbf16>, vector<16x256xf32> -> vector<16x256xf32>
    %c16_i32_49 = arith.constant 16 : i32
    %106 = arith.muli %c1_i32, %c16_i32_49 : i32
    %107 = tpu.assume_multiple %106, 16 : i32
    %c7_i32_50 = arith.constant 7 : i32
    %108 = arith.subi %c7_i32_50, %c1_i32 : i32
    %c16_i32_51 = arith.constant 16 : i32
    %109 = arith.muli %108, %c16_i32_51 : i32
    %110 = tpu.assume_multiple %109, 16 : i32
    %111 = arith.index_cast %107 : i32 to index
    %c0_52 = arith.constant 0 : index
    %112 = vector.load %arg9[%111, %c0_52] : memref<128x128xf32, #tpu.memory_space<vmem>>, vector<16x128xf32>
    %113 = vector.extract_strided_slice %105 {offsets = [0, 0], sizes = [16, 128], strides = [1, 1]} : vector<16x256xf32> to vector<16x128xf32>
    %114 = arith.addf %112, %113 : vector<16x128xf32>
    %115 = arith.index_cast %110 : i32 to index
    %c0_53 = arith.constant 0 : index
    %116 = vector.load %arg10[%115, %c0_53] : memref<128x128xf32, #tpu.memory_space<vmem>>, vector<16x128xf32>
    %117 = vector.extract_strided_slice %105 {offsets = [0, 128], sizes = [16, 128], strides = [1, 1]} : vector<16x256xf32> to vector<16x128xf32>
    %118 = arith.addf %116, %117 : vector<16x128xf32>
    %c0_54 = arith.constant 0 : index
    %c0_55 = arith.constant 0 : index
    %119 = vector.load %arg12[%c0_54, %c0_55] : memref<16x64xf32, #tpu.memory_space<vmem>>, vector<16x64xf32>
    %120 = vector.extract_strided_slice %119 {offsets = [0, 0], sizes = [16, 32], strides = [1, 1]} : vector<16x64xf32> to vector<16x32xf32>
    %121 = vector.extract_strided_slice %114 {offsets = [0, 0], sizes = [16, 32], strides = [1, 1]} : vector<16x128xf32> to vector<16x32xf32>
    %122 = arith.negf %121 : vector<16x32xf32>
    %123 = math.exp %122 : vector<16x32xf32>
    %cst_56 = arith.constant 1.000000e+00 : f32
    %124 = vector.broadcast %cst_56 : f32 to vector<16x32xf32>
    %125 = arith.addf %124, %123 : vector<16x32xf32>
    %126 = arith.divf %124, %125 : vector<16x32xf32>
    %127 = vector.extract_strided_slice %114 {offsets = [0, 32], sizes = [16, 32], strides = [1, 1]} : vector<16x128xf32> to vector<16x32xf32>
    %128 = arith.negf %127 : vector<16x32xf32>
    %129 = math.exp %128 : vector<16x32xf32>
    %cst_57 = arith.constant 1.000000e+00 : f32
    %130 = vector.broadcast %cst_57 : f32 to vector<16x32xf32>
    %131 = arith.addf %130, %129 : vector<16x32xf32>
    %132 = arith.divf %130, %131 : vector<16x32xf32>
    %133 = vector.extract_strided_slice %114 {offsets = [0, 64], sizes = [16, 32], strides = [1, 1]} : vector<16x128xf32> to vector<16x32xf32>
    %134 = math.tanh %133 : vector<16x32xf32>
    %135 = vector.extract_strided_slice %114 {offsets = [0, 96], sizes = [16, 32], strides = [1, 1]} : vector<16x128xf32> to vector<16x32xf32>
    %136 = arith.negf %135 : vector<16x32xf32>
    %137 = math.exp %136 : vector<16x32xf32>
    %cst_58 = arith.constant 1.000000e+00 : f32
    %138 = vector.broadcast %cst_58 : f32 to vector<16x32xf32>
    %139 = arith.addf %138, %137 : vector<16x32xf32>
    %140 = arith.divf %138, %139 : vector<16x32xf32>
    %141 = arith.mulf %132, %120 : vector<16x32xf32>
    %142 = arith.mulf %126, %134 : vector<16x32xf32>
    %143 = arith.addf %141, %142 : vector<16x32xf32>
    %144 = math.tanh %143 : vector<16x32xf32>
    %145 = arith.mulf %140, %144 : vector<16x32xf32>
    %146 = vector.extract_strided_slice %119 {offsets = [0, 32], sizes = [16, 32], strides = [1, 1]} : vector<16x64xf32> to vector<16x32xf32>
    %147 = vector.extract_strided_slice %118 {offsets = [0, 0], sizes = [16, 32], strides = [1, 1]} : vector<16x128xf32> to vector<16x32xf32>
    %148 = arith.negf %147 : vector<16x32xf32>
    %149 = math.exp %148 : vector<16x32xf32>
    %cst_59 = arith.constant 1.000000e+00 : f32
    %150 = vector.broadcast %cst_59 : f32 to vector<16x32xf32>
    %151 = arith.addf %150, %149 : vector<16x32xf32>
    %152 = arith.divf %150, %151 : vector<16x32xf32>
    %153 = vector.extract_strided_slice %118 {offsets = [0, 32], sizes = [16, 32], strides = [1, 1]} : vector<16x128xf32> to vector<16x32xf32>
    %154 = arith.negf %153 : vector<16x32xf32>
    %155 = math.exp %154 : vector<16x32xf32>
    %cst_60 = arith.constant 1.000000e+00 : f32
    %156 = vector.broadcast %cst_60 : f32 to vector<16x32xf32>
    %157 = arith.addf %156, %155 : vector<16x32xf32>
    %158 = arith.divf %156, %157 : vector<16x32xf32>
    %159 = vector.extract_strided_slice %118 {offsets = [0, 64], sizes = [16, 32], strides = [1, 1]} : vector<16x128xf32> to vector<16x32xf32>
    %160 = math.tanh %159 : vector<16x32xf32>
    %161 = vector.extract_strided_slice %118 {offsets = [0, 96], sizes = [16, 32], strides = [1, 1]} : vector<16x128xf32> to vector<16x32xf32>
    %162 = arith.negf %161 : vector<16x32xf32>
    %163 = math.exp %162 : vector<16x32xf32>
    %cst_61 = arith.constant 1.000000e+00 : f32
    %164 = vector.broadcast %cst_61 : f32 to vector<16x32xf32>
    %165 = arith.addf %164, %163 : vector<16x32xf32>
    %166 = arith.divf %164, %165 : vector<16x32xf32>
    %167 = arith.mulf %158, %146 : vector<16x32xf32>
    %168 = arith.mulf %152, %160 : vector<16x32xf32>
    %169 = arith.addf %167, %168 : vector<16x32xf32>
    %170 = math.tanh %169 : vector<16x32xf32>
    %171 = arith.mulf %166, %170 : vector<16x32xf32>
    %172 = tpu.concatenate %143, %169 in 1 : vector<16x32xf32>, vector<16x32xf32> -> vector<16x64xf32>
    %c0_62 = arith.constant 0 : index
    %c0_63 = arith.constant 0 : index
    %173 = vector.load %arg12[%c0_62, %c0_63] : memref<16x64xf32, #tpu.memory_space<vmem>>, vector<16x64xf32>
    tpu.vector_store %arg12[%c0_62, %c0_63], %172 {strides = array<i32>} : memref<16x64xf32, #tpu.memory_space<vmem>>, vector<16x64xf32>,
    %174 = arith.truncf %145 : vector<16x32xf32> to vector<16x32xbf16>
    %175 = arith.truncf %171 : vector<16x32xf32> to vector<16x32xbf16>
    %176 = tpu.concatenate %174, %175 in 1 : vector<16x32xbf16>, vector<16x32xbf16> -> vector<16x64xbf16>
    %c0_64 = arith.constant 0 : index
    %c0_65 = arith.constant 0 : index
    %177 = vector.load %arg11[%c0_64, %c0_65] : memref<16x64xbf16, #tpu.memory_space<vmem>>, vector<16x64xbf16>
    tpu.vector_store %arg11[%c0_64, %c0_65], %176 {strides = array<i32>} : memref<16x64xbf16, #tpu.memory_space<vmem>>, vector<16x64xbf16>,
    %178 = arith.index_cast %c1_i32 : i32 to index
    %c0_66 = arith.constant 0 : index
    %c0_67 = arith.constant 0 : index
    %179 = vector.load %arg7[%178, %c0_66, %c0_67] : memref<8x16x32xbf16, #tpu.memory_space<vmem>>, vector<1x16x32xbf16>
    %180 = vector.shape_cast %179 : vector<1x16x32xbf16> to vector<16x32xbf16>
    %181 = vector.shape_cast %174 : vector<16x32xbf16> to vector<1x16x32xbf16>
    tpu.vector_store %arg7[%178, %c0_66, %c0_67], %181 {strides = array<i32>} : memref<8x16x32xbf16, #tpu.memory_space<vmem>>, vector<1x16x32xbf16>,
    %c7_i32_68 = arith.constant 7 : i32
    %182 = arith.subi %c7_i32_68, %c1_i32 : i32
    %183 = arith.index_cast %182 : i32 to index
    %c0_69 = arith.constant 0 : index
    %c0_70 = arith.constant 0 : index
    %184 = vector.load %arg8[%183, %c0_69, %c0_70] : memref<8x16x32xbf16, #tpu.memory_space<vmem>>, vector<1x16x32xbf16>
    %185 = vector.shape_cast %184 : vector<1x16x32xbf16> to vector<16x32xbf16>
    %186 = vector.shape_cast %175 : vector<16x32xbf16> to vector<1x16x32xbf16>
    tpu.vector_store %arg8[%183, %c0_69, %c0_70], %186 {strides = array<i32>} : memref<8x16x32xbf16, #tpu.memory_space<vmem>>, vector<1x16x32xbf16>,
    %c2_i32 = arith.constant 2 : i32
    %c0_71 = arith.constant 0 : index
    %c0_72 = arith.constant 0 : index
    %187 = vector.load %arg11[%c0_71, %c0_72] : memref<16x64xbf16, #tpu.memory_space<vmem>>, vector<16x64xbf16>
    %c0_73 = arith.constant 0 : index
    %c0_74 = arith.constant 0 : index
    %188 = vector.load %arg6[%c0_73, %c0_74] : memref<64x256xbf16, #tpu.memory_space<vmem>>, vector<64x256xbf16>
    %cst_75 = arith.constant dense<0.000000e+00> : vector<16x256xf32>
    %189 = tpu.matmul %187, %188, %cst_75 {dimension_numbers = #tpu.dot_dimension_numbers<[1], [0], [0], [1], [0, 0, 1, 1], [], []>} : vector<16x64xbf16>, vector<64x256xbf16>, vector<16x256xf32> -> vector<16x256xf32>
    %c16_i32_76 = arith.constant 16 : i32
    %190 = arith.muli %c2_i32, %c16_i32_76 : i32
    %191 = tpu.assume_multiple %190, 16 : i32
    %c7_i32_77 = arith.constant 7 : i32
    %192 = arith.subi %c7_i32_77, %c2_i32 : i32
    %c16_i32_78 = arith.constant 16 : i32
    %193 = arith.muli %192, %c16_i32_78 : i32
    %194 = tpu.assume_multiple %193, 16 : i32
    %195 = arith.index_cast %191 : i32 to index
    %c0_79 = arith.constant 0 : index
    %196 = vector.load %arg9[%195, %c0_79] : memref<128x128xf32, #tpu.memory_space<vmem>>, vector<16x128xf32>
    %197 = vector.extract_strided_slice %189 {offsets = [0, 0], sizes = [16, 128], strides = [1, 1]} : vector<16x256xf32> to vector<16x128xf32>
    %198 = arith.addf %196, %197 : vector<16x128xf32>
    %199 = arith.index_cast %194 : i32 to index
    %c0_80 = arith.constant 0 : index
    %200 = vector.load %arg10[%199, %c0_80] : memref<128x128xf32, #tpu.memory_space<vmem>>, vector<16x128xf32>
    %201 = vector.extract_strided_slice %189 {offsets = [0, 128], sizes = [16, 128], strides = [1, 1]} : vector<16x256xf32> to vector<16x128xf32>
    %202 = arith.addf %200, %201 : vector<16x128xf32>
    %c0_81 = arith.constant 0 : index
    %c0_82 = arith.constant 0 : index
    %203 = vector.load %arg12[%c0_81, %c0_82] : memref<16x64xf32, #tpu.memory_space<vmem>>, vector<16x64xf32>
    %204 = vector.extract_strided_slice %203 {offsets = [0, 0], sizes = [16, 32], strides = [1, 1]} : vector<16x64xf32> to vector<16x32xf32>
    %205 = vector.extract_strided_slice %198 {offsets = [0, 0], sizes = [16, 32], strides = [1, 1]} : vector<16x128xf32> to vector<16x32xf32>
    %206 = arith.negf %205 : vector<16x32xf32>
    %207 = math.exp %206 : vector<16x32xf32>
    %cst_83 = arith.constant 1.000000e+00 : f32
    %208 = vector.broadcast %cst_83 : f32 to vector<16x32xf32>
    %209 = arith.addf %208, %207 : vector<16x32xf32>
    %210 = arith.divf %208, %209 : vector<16x32xf32>
    %211 = vector.extract_strided_slice %198 {offsets = [0, 32], sizes = [16, 32], strides = [1, 1]} : vector<16x128xf32> to vector<16x32xf32>
    %212 = arith.negf %211 : vector<16x32xf32>
    %213 = math.exp %212 : vector<16x32xf32>
    %cst_84 = arith.constant 1.000000e+00 : f32
    %214 = vector.broadcast %cst_84 : f32 to vector<16x32xf32>
    %215 = arith.addf %214, %213 : vector<16x32xf32>
    %216 = arith.divf %214, %215 : vector<16x32xf32>
    %217 = vector.extract_strided_slice %198 {offsets = [0, 64], sizes = [16, 32], strides = [1, 1]} : vector<16x128xf32> to vector<16x32xf32>
    %218 = math.tanh %217 : vector<16x32xf32>
    %219 = vector.extract_strided_slice %198 {offsets = [0, 96], sizes = [16, 32], strides = [1, 1]} : vector<16x128xf32> to vector<16x32xf32>
    %220 = arith.negf %219 : vector<16x32xf32>
    %221 = math.exp %220 : vector<16x32xf32>
    %cst_85 = arith.constant 1.000000e+00 : f32
    %222 = vector.broadcast %cst_85 : f32 to vector<16x32xf32>
    %223 = arith.addf %222, %221 : vector<16x32xf32>
    %224 = arith.divf %222, %223 : vector<16x32xf32>
    %225 = arith.mulf %216, %204 : vector<16x32xf32>
    %226 = arith.mulf %210, %218 : vector<16x32xf32>
    %227 = arith.addf %225, %226 : vector<16x32xf32>
    %228 = math.tanh %227 : vector<16x32xf32>
    %229 = arith.mulf %224, %228 : vector<16x32xf32>
    %230 = vector.extract_strided_slice %203 {offsets = [0, 32], sizes = [16, 32], strides = [1, 1]} : vector<16x64xf32> to vector<16x32xf32>
    %231 = vector.extract_strided_slice %202 {offsets = [0, 0], sizes = [16, 32], strides = [1, 1]} : vector<16x128xf32> to vector<16x32xf32>
    %232 = arith.negf %231 : vector<16x32xf32>
    %233 = math.exp %232 : vector<16x32xf32>
    %cst_86 = arith.constant 1.000000e+00 : f32
    %234 = vector.broadcast %cst_86 : f32 to vector<16x32xf32>
    %235 = arith.addf %234, %233 : vector<16x32xf32>
    %236 = arith.divf %234, %235 : vector<16x32xf32>
    %237 = vector.extract_strided_slice %202 {offsets = [0, 32], sizes = [16, 32], strides = [1, 1]} : vector<16x128xf32> to vector<16x32xf32>
    %238 = arith.negf %237 : vector<16x32xf32>
    %239 = math.exp %238 : vector<16x32xf32>
    %cst_87 = arith.constant 1.000000e+00 : f32
    %240 = vector.broadcast %cst_87 : f32 to vector<16x32xf32>
    %241 = arith.addf %240, %239 : vector<16x32xf32>
    %242 = arith.divf %240, %241 : vector<16x32xf32>
    %243 = vector.extract_strided_slice %202 {offsets = [0, 64], sizes = [16, 32], strides = [1, 1]} : vector<16x128xf32> to vector<16x32xf32>
    %244 = math.tanh %243 : vector<16x32xf32>
    %245 = vector.extract_strided_slice %202 {offsets = [0, 96], sizes = [16, 32], strides = [1, 1]} : vector<16x128xf32> to vector<16x32xf32>
    %246 = arith.negf %245 : vector<16x32xf32>
    %247 = math.exp %246 : vector<16x32xf32>
    %cst_88 = arith.constant 1.000000e+00 : f32
    %248 = vector.broadcast %cst_88 : f32 to vector<16x32xf32>
    %249 = arith.addf %248, %247 : vector<16x32xf32>
    %250 = arith.divf %248, %249 : vector<16x32xf32>
    %251 = arith.mulf %242, %230 : vector<16x32xf32>
    %252 = arith.mulf %236, %244 : vector<16x32xf32>
    %253 = arith.addf %251, %252 : vector<16x32xf32>
    %254 = math.tanh %253 : vector<16x32xf32>
    %255 = arith.mulf %250, %254 : vector<16x32xf32>
    %256 = tpu.concatenate %227, %253 in 1 : vector<16x32xf32>, vector<16x32xf32> -> vector<16x64xf32>
    %c0_89 = arith.constant 0 : index
    %c0_90 = arith.constant 0 : index
    %257 = vector.load %arg12[%c0_89, %c0_90] : memref<16x64xf32, #tpu.memory_space<vmem>>, vector<16x64xf32>
    tpu.vector_store %arg12[%c0_89, %c0_90], %256 {strides = array<i32>} : memref<16x64xf32, #tpu.memory_space<vmem>>, vector<16x64xf32>,
    %258 = arith.truncf %229 : vector<16x32xf32> to vector<16x32xbf16>
    %259 = arith.truncf %255 : vector<16x32xf32> to vector<16x32xbf16>
    %260 = tpu.concatenate %258, %259 in 1 : vector<16x32xbf16>, vector<16x32xbf16> -> vector<16x64xbf16>
    %c0_91 = arith.constant 0 : index
    %c0_92 = arith.constant 0 : index
    %261 = vector.load %arg11[%c0_91, %c0_92] : memref<16x64xbf16, #tpu.memory_space<vmem>>, vector<16x64xbf16>
    tpu.vector_store %arg11[%c0_91, %c0_92], %260 {strides = array<i32>} : memref<16x64xbf16, #tpu.memory_space<vmem>>, vector<16x64xbf16>,
    %262 = arith.index_cast %c2_i32 : i32 to index
    %c0_93 = arith.constant 0 : index
    %c0_94 = arith.constant 0 : index
    %263 = vector.load %arg7[%262, %c0_93, %c0_94] : memref<8x16x32xbf16, #tpu.memory_space<vmem>>, vector<1x16x32xbf16>
    %264 = vector.shape_cast %263 : vector<1x16x32xbf16> to vector<16x32xbf16>
    %265 = vector.shape_cast %258 : vector<16x32xbf16> to vector<1x16x32xbf16>
    tpu.vector_store %arg7[%262, %c0_93, %c0_94], %265 {strides = array<i32>} : memref<8x16x32xbf16, #tpu.memory_space<vmem>>, vector<1x16x32xbf16>,
    %c7_i32_95 = arith.constant 7 : i32
    %266 = arith.subi %c7_i32_95, %c2_i32 : i32
    %267 = arith.index_cast %266 : i32 to index
    %c0_96 = arith.constant 0 : index
    %c0_97 = arith.constant 0 : index
    %268 = vector.load %arg8[%267, %c0_96, %c0_97] : memref<8x16x32xbf16, #tpu.memory_space<vmem>>, vector<1x16x32xbf16>
    %269 = vector.shape_cast %268 : vector<1x16x32xbf16> to vector<16x32xbf16>
    %270 = vector.shape_cast %259 : vector<16x32xbf16> to vector<1x16x32xbf16>
    tpu.vector_store %arg8[%267, %c0_96, %c0_97], %270 {strides = array<i32>} : memref<8x16x32xbf16, #tpu.memory_space<vmem>>, vector<1x16x32xbf16>,
    %c3_i32 = arith.constant 3 : i32
    %c0_98 = arith.constant 0 : index
    %c0_99 = arith.constant 0 : index
    %271 = vector.load %arg11[%c0_98, %c0_99] : memref<16x64xbf16, #tpu.memory_space<vmem>>, vector<16x64xbf16>
    %c0_100 = arith.constant 0 : index
    %c0_101 = arith.constant 0 : index
    %272 = vector.load %arg6[%c0_100, %c0_101] : memref<64x256xbf16, #tpu.memory_space<vmem>>, vector<64x256xbf16>
    %cst_102 = arith.constant dense<0.000000e+00> : vector<16x256xf32>
    %273 = tpu.matmul %271, %272, %cst_102 {dimension_numbers = #tpu.dot_dimension_numbers<[1], [0], [0], [1], [0, 0, 1, 1], [], []>} : vector<16x64xbf16>, vector<64x256xbf16>, vector<16x256xf32> -> vector<16x256xf32>
    %c16_i32_103 = arith.constant 16 : i32
    %274 = arith.muli %c3_i32, %c16_i32_103 : i32
    %275 = tpu.assume_multiple %274, 16 : i32
    %c7_i32_104 = arith.constant 7 : i32
    %276 = arith.subi %c7_i32_104, %c3_i32 : i32
    %c16_i32_105 = arith.constant 16 : i32
    %277 = arith.muli %276, %c16_i32_105 : i32
    %278 = tpu.assume_multiple %277, 16 : i32
    %279 = arith.index_cast %275 : i32 to index
    %c0_106 = arith.constant 0 : index
    %280 = vector.load %arg9[%279, %c0_106] : memref<128x128xf32, #tpu.memory_space<vmem>>, vector<16x128xf32>
    %281 = vector.extract_strided_slice %273 {offsets = [0, 0], sizes = [16, 128], strides = [1, 1]} : vector<16x256xf32> to vector<16x128xf32>
    %282 = arith.addf %280, %281 : vector<16x128xf32>
    %283 = arith.index_cast %278 : i32 to index
    %c0_107 = arith.constant 0 : index
    %284 = vector.load %arg10[%283, %c0_107] : memref<128x128xf32, #tpu.memory_space<vmem>>, vector<16x128xf32>
    %285 = vector.extract_strided_slice %273 {offsets = [0, 128], sizes = [16, 128], strides = [1, 1]} : vector<16x256xf32> to vector<16x128xf32>
    %286 = arith.addf %284, %285 : vector<16x128xf32>
    %c0_108 = arith.constant 0 : index
    %c0_109 = arith.constant 0 : index
    %287 = vector.load %arg12[%c0_108, %c0_109] : memref<16x64xf32, #tpu.memory_space<vmem>>, vector<16x64xf32>
    %288 = vector.extract_strided_slice %287 {offsets = [0, 0], sizes = [16, 32], strides = [1, 1]} : vector<16x64xf32> to vector<16x32xf32>
    %289 = vector.extract_strided_slice %282 {offsets = [0, 0], sizes = [16, 32], strides = [1, 1]} : vector<16x128xf32> to vector<16x32xf32>
    %290 = arith.negf %289 : vector<16x32xf32>
    %291 = math.exp %290 : vector<16x32xf32>
    %cst_110 = arith.constant 1.000000e+00 : f32
    %292 = vector.broadcast %cst_110 : f32 to vector<16x32xf32>
    %293 = arith.addf %292, %291 : vector<16x32xf32>
    %294 = arith.divf %292, %293 : vector<16x32xf32>
    %295 = vector.extract_strided_slice %282 {offsets = [0, 32], sizes = [16, 32], strides = [1, 1]} : vector<16x128xf32> to vector<16x32xf32>
    %296 = arith.negf %295 : vector<16x32xf32>
    %297 = math.exp %296 : vector<16x32xf32>
    %cst_111 = arith.constant 1.000000e+00 : f32
    %298 = vector.broadcast %cst_111 : f32 to vector<16x32xf32>
    %299 = arith.addf %298, %297 : vector<16x32xf32>
    %300 = arith.divf %298, %299 : vector<16x32xf32>
    %301 = vector.extract_strided_slice %282 {offsets = [0, 64], sizes = [16, 32], strides = [1, 1]} : vector<16x128xf32> to vector<16x32xf32>
    %302 = math.tanh %301 : vector<16x32xf32>
    %303 = vector.extract_strided_slice %282 {offsets = [0, 96], sizes = [16, 32], strides = [1, 1]} : vector<16x128xf32> to vector<16x32xf32>
    %304 = arith.negf %303 : vector<16x32xf32>
    %305 = math.exp %304 : vector<16x32xf32>
    %cst_112 = arith.constant 1.000000e+00 : f32
    %306 = vector.broadcast %cst_112 : f32 to vector<16x32xf32>
    %307 = arith.addf %306, %305 : vector<16x32xf32>
    %308 = arith.divf %306, %307 : vector<16x32xf32>
    %309 = arith.mulf %300, %288 : vector<16x32xf32>
    %310 = arith.mulf %294, %302 : vector<16x32xf32>
    %311 = arith.addf %309, %310 : vector<16x32xf32>
    %312 = math.tanh %311 : vector<16x32xf32>
    %313 = arith.mulf %308, %312 : vector<16x32xf32>
    %314 = vector.extract_strided_slice %287 {offsets = [0, 32], sizes = [16, 32], strides = [1, 1]} : vector<16x64xf32> to vector<16x32xf32>
    %315 = vector.extract_strided_slice %286 {offsets = [0, 0], sizes = [16, 32], strides = [1, 1]} : vector<16x128xf32> to vector<16x32xf32>
    %316 = arith.negf %315 : vector<16x32xf32>
    %317 = math.exp %316 : vector<16x32xf32>
    %cst_113 = arith.constant 1.000000e+00 : f32
    %318 = vector.broadcast %cst_113 : f32 to vector<16x32xf32>
    %319 = arith.addf %318, %317 : vector<16x32xf32>
    %320 = arith.divf %318, %319 : vector<16x32xf32>
    %321 = vector.extract_strided_slice %286 {offsets = [0, 32], sizes = [16, 32], strides = [1, 1]} : vector<16x128xf32> to vector<16x32xf32>
    %322 = arith.negf %321 : vector<16x32xf32>
    %323 = math.exp %322 : vector<16x32xf32>
    %cst_114 = arith.constant 1.000000e+00 : f32
    %324 = vector.broadcast %cst_114 : f32 to vector<16x32xf32>
    %325 = arith.addf %324, %323 : vector<16x32xf32>
    %326 = arith.divf %324, %325 : vector<16x32xf32>
    %327 = vector.extract_strided_slice %286 {offsets = [0, 64], sizes = [16, 32], strides = [1, 1]} : vector<16x128xf32> to vector<16x32xf32>
    %328 = math.tanh %327 : vector<16x32xf32>
    %329 = vector.extract_strided_slice %286 {offsets = [0, 96], sizes = [16, 32], strides = [1, 1]} : vector<16x128xf32> to vector<16x32xf32>
    %330 = arith.negf %329 : vector<16x32xf32>
    %331 = math.exp %330 : vector<16x32xf32>
    %cst_115 = arith.constant 1.000000e+00 : f32
    %332 = vector.broadcast %cst_115 : f32 to vector<16x32xf32>
    %333 = arith.addf %332, %331 : vector<16x32xf32>
    %334 = arith.divf %332, %333 : vector<16x32xf32>
    %335 = arith.mulf %326, %314 : vector<16x32xf32>
    %336 = arith.mulf %320, %328 : vector<16x32xf32>
    %337 = arith.addf %335, %336 : vector<16x32xf32>
    %338 = math.tanh %337 : vector<16x32xf32>
    %339 = arith.mulf %334, %338 : vector<16x32xf32>
    %340 = tpu.concatenate %311, %337 in 1 : vector<16x32xf32>, vector<16x32xf32> -> vector<16x64xf32>
    %c0_116 = arith.constant 0 : index
    %c0_117 = arith.constant 0 : index
    %341 = vector.load %arg12[%c0_116, %c0_117] : memref<16x64xf32, #tpu.memory_space<vmem>>, vector<16x64xf32>
    tpu.vector_store %arg12[%c0_116, %c0_117], %340 {strides = array<i32>} : memref<16x64xf32, #tpu.memory_space<vmem>>, vector<16x64xf32>,
    %342 = arith.truncf %313 : vector<16x32xf32> to vector<16x32xbf16>
    %343 = arith.truncf %339 : vector<16x32xf32> to vector<16x32xbf16>
    %344 = tpu.concatenate %342, %343 in 1 : vector<16x32xbf16>, vector<16x32xbf16> -> vector<16x64xbf16>
    %c0_118 = arith.constant 0 : index
    %c0_119 = arith.constant 0 : index
    %345 = vector.load %arg11[%c0_118, %c0_119] : memref<16x64xbf16, #tpu.memory_space<vmem>>, vector<16x64xbf16>
    tpu.vector_store %arg11[%c0_118, %c0_119], %344 {strides = array<i32>} : memref<16x64xbf16, #tpu.memory_space<vmem>>, vector<16x64xbf16>,
    %346 = arith.index_cast %c3_i32 : i32 to index
    %c0_120 = arith.constant 0 : index
    %c0_121 = arith.constant 0 : index
    %347 = vector.load %arg7[%346, %c0_120, %c0_121] : memref<8x16x32xbf16, #tpu.memory_space<vmem>>, vector<1x16x32xbf16>
    %348 = vector.shape_cast %347 : vector<1x16x32xbf16> to vector<16x32xbf16>
    %349 = vector.shape_cast %342 : vector<16x32xbf16> to vector<1x16x32xbf16>
    tpu.vector_store %arg7[%346, %c0_120, %c0_121], %349 {strides = array<i32>} : memref<8x16x32xbf16, #tpu.memory_space<vmem>>, vector<1x16x32xbf16>,
    %c7_i32_122 = arith.constant 7 : i32
    %350 = arith.subi %c7_i32_122, %c3_i32 : i32
    %351 = arith.index_cast %350 : i32 to index
    %c0_123 = arith.constant 0 : index
    %c0_124 = arith.constant 0 : index
    %352 = vector.load %arg8[%351, %c0_123, %c0_124] : memref<8x16x32xbf16, #tpu.memory_space<vmem>>, vector<1x16x32xbf16>
    %353 = vector.shape_cast %352 : vector<1x16x32xbf16> to vector<16x32xbf16>
    %354 = vector.shape_cast %343 : vector<16x32xbf16> to vector<1x16x32xbf16>
    tpu.vector_store %arg8[%351, %c0_123, %c0_124], %354 {strides = array<i32>} : memref<8x16x32xbf16, #tpu.memory_space<vmem>>, vector<1x16x32xbf16>,
    %c4_i32 = arith.constant 4 : i32
    %c0_125 = arith.constant 0 : index
    %c0_126 = arith.constant 0 : index
    %355 = vector.load %arg11[%c0_125, %c0_126] : memref<16x64xbf16, #tpu.memory_space<vmem>>, vector<16x64xbf16>
    %c0_127 = arith.constant 0 : index
    %c0_128 = arith.constant 0 : index
    %356 = vector.load %arg6[%c0_127, %c0_128] : memref<64x256xbf16, #tpu.memory_space<vmem>>, vector<64x256xbf16>
    %cst_129 = arith.constant dense<0.000000e+00> : vector<16x256xf32>
    %357 = tpu.matmul %355, %356, %cst_129 {dimension_numbers = #tpu.dot_dimension_numbers<[1], [0], [0], [1], [0, 0, 1, 1], [], []>} : vector<16x64xbf16>, vector<64x256xbf16>, vector<16x256xf32> -> vector<16x256xf32>
    %c16_i32_130 = arith.constant 16 : i32
    %358 = arith.muli %c4_i32, %c16_i32_130 : i32
    %359 = tpu.assume_multiple %358, 16 : i32
    %c7_i32_131 = arith.constant 7 : i32
    %360 = arith.subi %c7_i32_131, %c4_i32 : i32
    %c16_i32_132 = arith.constant 16 : i32
    %361 = arith.muli %360, %c16_i32_132 : i32
    %362 = tpu.assume_multiple %361, 16 : i32
    %363 = arith.index_cast %359 : i32 to index
    %c0_133 = arith.constant 0 : index
    %364 = vector.load %arg9[%363, %c0_133] : memref<128x128xf32, #tpu.memory_space<vmem>>, vector<16x128xf32>
    %365 = vector.extract_strided_slice %357 {offsets = [0, 0], sizes = [16, 128], strides = [1, 1]} : vector<16x256xf32> to vector<16x128xf32>
    %366 = arith.addf %364, %365 : vector<16x128xf32>
    %367 = arith.index_cast %362 : i32 to index
    %c0_134 = arith.constant 0 : index
    %368 = vector.load %arg10[%367, %c0_134] : memref<128x128xf32, #tpu.memory_space<vmem>>, vector<16x128xf32>
    %369 = vector.extract_strided_slice %357 {offsets = [0, 128], sizes = [16, 128], strides = [1, 1]} : vector<16x256xf32> to vector<16x128xf32>
    %370 = arith.addf %368, %369 : vector<16x128xf32>
    %c0_135 = arith.constant 0 : index
    %c0_136 = arith.constant 0 : index
    %371 = vector.load %arg12[%c0_135, %c0_136] : memref<16x64xf32, #tpu.memory_space<vmem>>, vector<16x64xf32>
    %372 = vector.extract_strided_slice %371 {offsets = [0, 0], sizes = [16, 32], strides = [1, 1]} : vector<16x64xf32> to vector<16x32xf32>
    %373 = vector.extract_strided_slice %366 {offsets = [0, 0], sizes = [16, 32], strides = [1, 1]} : vector<16x128xf32> to vector<16x32xf32>
    %374 = arith.negf %373 : vector<16x32xf32>
    %375 = math.exp %374 : vector<16x32xf32>
    %cst_137 = arith.constant 1.000000e+00 : f32
    %376 = vector.broadcast %cst_137 : f32 to vector<16x32xf32>
    %377 = arith.addf %376, %375 : vector<16x32xf32>
    %378 = arith.divf %376, %377 : vector<16x32xf32>
    %379 = vector.extract_strided_slice %366 {offsets = [0, 32], sizes = [16, 32], strides = [1, 1]} : vector<16x128xf32> to vector<16x32xf32>
    %380 = arith.negf %379 : vector<16x32xf32>
    %381 = math.exp %380 : vector<16x32xf32>
    %cst_138 = arith.constant 1.000000e+00 : f32
    %382 = vector.broadcast %cst_138 : f32 to vector<16x32xf32>
    %383 = arith.addf %382, %381 : vector<16x32xf32>
    %384 = arith.divf %382, %383 : vector<16x32xf32>
    %385 = vector.extract_strided_slice %366 {offsets = [0, 64], sizes = [16, 32], strides = [1, 1]} : vector<16x128xf32> to vector<16x32xf32>
    %386 = math.tanh %385 : vector<16x32xf32>
    %387 = vector.extract_strided_slice %366 {offsets = [0, 96], sizes = [16, 32], strides = [1, 1]} : vector<16x128xf32> to vector<16x32xf32>
    %388 = arith.negf %387 : vector<16x32xf32>
    %389 = math.exp %388 : vector<16x32xf32>
    %cst_139 = arith.constant 1.000000e+00 : f32
    %390 = vector.broadcast %cst_139 : f32 to vector<16x32xf32>
    %391 = arith.addf %390, %389 : vector<16x32xf32>
    %392 = arith.divf %390, %391 : vector<16x32xf32>
    %393 = arith.mulf %384, %372 : vector<16x32xf32>
    %394 = arith.mulf %378, %386 : vector<16x32xf32>
    %395 = arith.addf %393, %394 : vector<16x32xf32>
    %396 = math.tanh %395 : vector<16x32xf32>
    %397 = arith.mulf %392, %396 : vector<16x32xf32>
    %398 = vector.extract_strided_slice %371 {offsets = [0, 32], sizes = [16, 32], strides = [1, 1]} : vector<16x64xf32> to vector<16x32xf32>
    %399 = vector.extract_strided_slice %370 {offsets = [0, 0], sizes = [16, 32], strides = [1, 1]} : vector<16x128xf32> to vector<16x32xf32>
    %400 = arith.negf %399 : vector<16x32xf32>
    %401 = math.exp %400 : vector<16x32xf32>
    %cst_140 = arith.constant 1.000000e+00 : f32
    %402 = vector.broadcast %cst_140 : f32 to vector<16x32xf32>
    %403 = arith.addf %402, %401 : vector<16x32xf32>
    %404 = arith.divf %402, %403 : vector<16x32xf32>
    %405 = vector.extract_strided_slice %370 {offsets = [0, 32], sizes = [16, 32], strides = [1, 1]} : vector<16x128xf32> to vector<16x32xf32>
    %406 = arith.negf %405 : vector<16x32xf32>
    %407 = math.exp %406 : vector<16x32xf32>
    %cst_141 = arith.constant 1.000000e+00 : f32
    %408 = vector.broadcast %cst_141 : f32 to vector<16x32xf32>
    %409 = arith.addf %408, %407 : vector<16x32xf32>
    %410 = arith.divf %408, %409 : vector<16x32xf32>
    %411 = vector.extract_strided_slice %370 {offsets = [0, 64], sizes = [16, 32], strides = [1, 1]} : vector<16x128xf32> to vector<16x32xf32>
    %412 = math.tanh %411 : vector<16x32xf32>
    %413 = vector.extract_strided_slice %370 {offsets = [0, 96], sizes = [16, 32], strides = [1, 1]} : vector<16x128xf32> to vector<16x32xf32>
    %414 = arith.negf %413 : vector<16x32xf32>
    %415 = math.exp %414 : vector<16x32xf32>
    %cst_142 = arith.constant 1.000000e+00 : f32
    %416 = vector.broadcast %cst_142 : f32 to vector<16x32xf32>
    %417 = arith.addf %416, %415 : vector<16x32xf32>
    %418 = arith.divf %416, %417 : vector<16x32xf32>
    %419 = arith.mulf %410, %398 : vector<16x32xf32>
    %420 = arith.mulf %404, %412 : vector<16x32xf32>
    %421 = arith.addf %419, %420 : vector<16x32xf32>
    %422 = math.tanh %421 : vector<16x32xf32>
    %423 = arith.mulf %418, %422 : vector<16x32xf32>
    %424 = tpu.concatenate %395, %421 in 1 : vector<16x32xf32>, vector<16x32xf32> -> vector<16x64xf32>
    %c0_143 = arith.constant 0 : index
    %c0_144 = arith.constant 0 : index
    %425 = vector.load %arg12[%c0_143, %c0_144] : memref<16x64xf32, #tpu.memory_space<vmem>>, vector<16x64xf32>
    tpu.vector_store %arg12[%c0_143, %c0_144], %424 {strides = array<i32>} : memref<16x64xf32, #tpu.memory_space<vmem>>, vector<16x64xf32>,
    %426 = arith.truncf %397 : vector<16x32xf32> to vector<16x32xbf16>
    %427 = arith.truncf %423 : vector<16x32xf32> to vector<16x32xbf16>
    %428 = tpu.concatenate %426, %427 in 1 : vector<16x32xbf16>, vector<16x32xbf16> -> vector<16x64xbf16>
    %c0_145 = arith.constant 0 : index
    %c0_146 = arith.constant 0 : index
    %429 = vector.load %arg11[%c0_145, %c0_146] : memref<16x64xbf16, #tpu.memory_space<vmem>>, vector<16x64xbf16>
    tpu.vector_store %arg11[%c0_145, %c0_146], %428 {strides = array<i32>} : memref<16x64xbf16, #tpu.memory_space<vmem>>, vector<16x64xbf16>,
    %430 = arith.index_cast %c4_i32 : i32 to index
    %c0_147 = arith.constant 0 : index
    %c0_148 = arith.constant 0 : index
    %431 = vector.load %arg7[%430, %c0_147, %c0_148] : memref<8x16x32xbf16, #tpu.memory_space<vmem>>, vector<1x16x32xbf16>
    %432 = vector.shape_cast %431 : vector<1x16x32xbf16> to vector<16x32xbf16>
    %433 = vector.shape_cast %426 : vector<16x32xbf16> to vector<1x16x32xbf16>
    tpu.vector_store %arg7[%430, %c0_147, %c0_148], %433 {strides = array<i32>} : memref<8x16x32xbf16, #tpu.memory_space<vmem>>, vector<1x16x32xbf16>,
    %c7_i32_149 = arith.constant 7 : i32
    %434 = arith.subi %c7_i32_149, %c4_i32 : i32
    %435 = arith.index_cast %434 : i32 to index
    %c0_150 = arith.constant 0 : index
    %c0_151 = arith.constant 0 : index
    %436 = vector.load %arg8[%435, %c0_150, %c0_151] : memref<8x16x32xbf16, #tpu.memory_space<vmem>>, vector<1x16x32xbf16>
    %437 = vector.shape_cast %436 : vector<1x16x32xbf16> to vector<16x32xbf16>
    %438 = vector.shape_cast %427 : vector<16x32xbf16> to vector<1x16x32xbf16>
    tpu.vector_store %arg8[%435, %c0_150, %c0_151], %438 {strides = array<i32>} : memref<8x16x32xbf16, #tpu.memory_space<vmem>>, vector<1x16x32xbf16>,
    %c5_i32 = arith.constant 5 : i32
    %c0_152 = arith.constant 0 : index
    %c0_153 = arith.constant 0 : index
    %439 = vector.load %arg11[%c0_152, %c0_153] : memref<16x64xbf16, #tpu.memory_space<vmem>>, vector<16x64xbf16>
    %c0_154 = arith.constant 0 : index
    %c0_155 = arith.constant 0 : index
    %440 = vector.load %arg6[%c0_154, %c0_155] : memref<64x256xbf16, #tpu.memory_space<vmem>>, vector<64x256xbf16>
    %cst_156 = arith.constant dense<0.000000e+00> : vector<16x256xf32>
    %441 = tpu.matmul %439, %440, %cst_156 {dimension_numbers = #tpu.dot_dimension_numbers<[1], [0], [0], [1], [0, 0, 1, 1], [], []>} : vector<16x64xbf16>, vector<64x256xbf16>, vector<16x256xf32> -> vector<16x256xf32>
    %c16_i32_157 = arith.constant 16 : i32
    %442 = arith.muli %c5_i32, %c16_i32_157 : i32
    %443 = tpu.assume_multiple %442, 16 : i32
    %c7_i32_158 = arith.constant 7 : i32
    %444 = arith.subi %c7_i32_158, %c5_i32 : i32
    %c16_i32_159 = arith.constant 16 : i32
    %445 = arith.muli %444, %c16_i32_159 : i32
    %446 = tpu.assume_multiple %445, 16 : i32
    %447 = arith.index_cast %443 : i32 to index
    %c0_160 = arith.constant 0 : index
    %448 = vector.load %arg9[%447, %c0_160] : memref<128x128xf32, #tpu.memory_space<vmem>>, vector<16x128xf32>
    %449 = vector.extract_strided_slice %441 {offsets = [0, 0], sizes = [16, 128], strides = [1, 1]} : vector<16x256xf32> to vector<16x128xf32>
    %450 = arith.addf %448, %449 : vector<16x128xf32>
    %451 = arith.index_cast %446 : i32 to index
    %c0_161 = arith.constant 0 : index
    %452 = vector.load %arg10[%451, %c0_161] : memref<128x128xf32, #tpu.memory_space<vmem>>, vector<16x128xf32>
    %453 = vector.extract_strided_slice %441 {offsets = [0, 128], sizes = [16, 128], strides = [1, 1]} : vector<16x256xf32> to vector<16x128xf32>
    %454 = arith.addf %452, %453 : vector<16x128xf32>
    %c0_162 = arith.constant 0 : index
    %c0_163 = arith.constant 0 : index
    %455 = vector.load %arg12[%c0_162, %c0_163] : memref<16x64xf32, #tpu.memory_space<vmem>>, vector<16x64xf32>
    %456 = vector.extract_strided_slice %455 {offsets = [0, 0], sizes = [16, 32], strides = [1, 1]} : vector<16x64xf32> to vector<16x32xf32>
    %457 = vector.extract_strided_slice %450 {offsets = [0, 0], sizes = [16, 32], strides = [1, 1]} : vector<16x128xf32> to vector<16x32xf32>
    %458 = arith.negf %457 : vector<16x32xf32>
    %459 = math.exp %458 : vector<16x32xf32>
    %cst_164 = arith.constant 1.000000e+00 : f32
    %460 = vector.broadcast %cst_164 : f32 to vector<16x32xf32>
    %461 = arith.addf %460, %459 : vector<16x32xf32>
    %462 = arith.divf %460, %461 : vector<16x32xf32>
    %463 = vector.extract_strided_slice %450 {offsets = [0, 32], sizes = [16, 32], strides = [1, 1]} : vector<16x128xf32> to vector<16x32xf32>
    %464 = arith.negf %463 : vector<16x32xf32>
    %465 = math.exp %464 : vector<16x32xf32>
    %cst_165 = arith.constant 1.000000e+00 : f32
    %466 = vector.broadcast %cst_165 : f32 to vector<16x32xf32>
    %467 = arith.addf %466, %465 : vector<16x32xf32>
    %468 = arith.divf %466, %467 : vector<16x32xf32>
    %469 = vector.extract_strided_slice %450 {offsets = [0, 64], sizes = [16, 32], strides = [1, 1]} : vector<16x128xf32> to vector<16x32xf32>
    %470 = math.tanh %469 : vector<16x32xf32>
    %471 = vector.extract_strided_slice %450 {offsets = [0, 96], sizes = [16, 32], strides = [1, 1]} : vector<16x128xf32> to vector<16x32xf32>
    %472 = arith.negf %471 : vector<16x32xf32>
    %473 = math.exp %472 : vector<16x32xf32>
    %cst_166 = arith.constant 1.000000e+00 : f32
    %474 = vector.broadcast %cst_166 : f32 to vector<16x32xf32>
    %475 = arith.addf %474, %473 : vector<16x32xf32>
    %476 = arith.divf %474, %475 : vector<16x32xf32>
    %477 = arith.mulf %468, %456 : vector<16x32xf32>
    %478 = arith.mulf %462, %470 : vector<16x32xf32>
    %479 = arith.addf %477, %478 : vector<16x32xf32>
    %480 = math.tanh %479 : vector<16x32xf32>
    %481 = arith.mulf %476, %480 : vector<16x32xf32>
    %482 = vector.extract_strided_slice %455 {offsets = [0, 32], sizes = [16, 32], strides = [1, 1]} : vector<16x64xf32> to vector<16x32xf32>
    %483 = vector.extract_strided_slice %454 {offsets = [0, 0], sizes = [16, 32], strides = [1, 1]} : vector<16x128xf32> to vector<16x32xf32>
    %484 = arith.negf %483 : vector<16x32xf32>
    %485 = math.exp %484 : vector<16x32xf32>
    %cst_167 = arith.constant 1.000000e+00 : f32
    %486 = vector.broadcast %cst_167 : f32 to vector<16x32xf32>
    %487 = arith.addf %486, %485 : vector<16x32xf32>
    %488 = arith.divf %486, %487 : vector<16x32xf32>
    %489 = vector.extract_strided_slice %454 {offsets = [0, 32], sizes = [16, 32], strides = [1, 1]} : vector<16x128xf32> to vector<16x32xf32>
    %490 = arith.negf %489 : vector<16x32xf32>
    %491 = math.exp %490 : vector<16x32xf32>
    %cst_168 = arith.constant 1.000000e+00 : f32
    %492 = vector.broadcast %cst_168 : f32 to vector<16x32xf32>
    %493 = arith.addf %492, %491 : vector<16x32xf32>
    %494 = arith.divf %492, %493 : vector<16x32xf32>
    %495 = vector.extract_strided_slice %454 {offsets = [0, 64], sizes = [16, 32], strides = [1, 1]} : vector<16x128xf32> to vector<16x32xf32>
    %496 = math.tanh %495 : vector<16x32xf32>
    %497 = vector.extract_strided_slice %454 {offsets = [0, 96], sizes = [16, 32], strides = [1, 1]} : vector<16x128xf32> to vector<16x32xf32>
    %498 = arith.negf %497 : vector<16x32xf32>
    %499 = math.exp %498 : vector<16x32xf32>
    %cst_169 = arith.constant 1.000000e+00 : f32
    %500 = vector.broadcast %cst_169 : f32 to vector<16x32xf32>
    %501 = arith.addf %500, %499 : vector<16x32xf32>
    %502 = arith.divf %500, %501 : vector<16x32xf32>
    %503 = arith.mulf %494, %482 : vector<16x32xf32>
    %504 = arith.mulf %488, %496 : vector<16x32xf32>
    %505 = arith.addf %503, %504 : vector<16x32xf32>
    %506 = math.tanh %505 : vector<16x32xf32>
    %507 = arith.mulf %502, %506 : vector<16x32xf32>
    %508 = tpu.concatenate %479, %505 in 1 : vector<16x32xf32>, vector<16x32xf32> -> vector<16x64xf32>
    %c0_170 = arith.constant 0 : index
    %c0_171 = arith.constant 0 : index
    %509 = vector.load %arg12[%c0_170, %c0_171] : memref<16x64xf32, #tpu.memory_space<vmem>>, vector<16x64xf32>
    tpu.vector_store %arg12[%c0_170, %c0_171], %508 {strides = array<i32>} : memref<16x64xf32, #tpu.memory_space<vmem>>, vector<16x64xf32>,
    %510 = arith.truncf %481 : vector<16x32xf32> to vector<16x32xbf16>
    %511 = arith.truncf %507 : vector<16x32xf32> to vector<16x32xbf16>
    %512 = tpu.concatenate %510, %511 in 1 : vector<16x32xbf16>, vector<16x32xbf16> -> vector<16x64xbf16>
    %c0_172 = arith.constant 0 : index
    %c0_173 = arith.constant 0 : index
    %513 = vector.load %arg11[%c0_172, %c0_173] : memref<16x64xbf16, #tpu.memory_space<vmem>>, vector<16x64xbf16>
    tpu.vector_store %arg11[%c0_172, %c0_173], %512 {strides = array<i32>} : memref<16x64xbf16, #tpu.memory_space<vmem>>, vector<16x64xbf16>,
    %514 = arith.index_cast %c5_i32 : i32 to index
    %c0_174 = arith.constant 0 : index
    %c0_175 = arith.constant 0 : index
    %515 = vector.load %arg7[%514, %c0_174, %c0_175] : memref<8x16x32xbf16, #tpu.memory_space<vmem>>, vector<1x16x32xbf16>
    %516 = vector.shape_cast %515 : vector<1x16x32xbf16> to vector<16x32xbf16>
    %517 = vector.shape_cast %510 : vector<16x32xbf16> to vector<1x16x32xbf16>
    tpu.vector_store %arg7[%514, %c0_174, %c0_175], %517 {strides = array<i32>} : memref<8x16x32xbf16, #tpu.memory_space<vmem>>, vector<1x16x32xbf16>,
    %c7_i32_176 = arith.constant 7 : i32
    %518 = arith.subi %c7_i32_176, %c5_i32 : i32
    %519 = arith.index_cast %518 : i32 to index
    %c0_177 = arith.constant 0 : index
    %c0_178 = arith.constant 0 : index
    %520 = vector.load %arg8[%519, %c0_177, %c0_178] : memref<8x16x32xbf16, #tpu.memory_space<vmem>>, vector<1x16x32xbf16>
    %521 = vector.shape_cast %520 : vector<1x16x32xbf16> to vector<16x32xbf16>
    %522 = vector.shape_cast %511 : vector<16x32xbf16> to vector<1x16x32xbf16>
    tpu.vector_store %arg8[%519, %c0_177, %c0_178], %522 {strides = array<i32>} : memref<8x16x32xbf16, #tpu.memory_space<vmem>>, vector<1x16x32xbf16>,
    %c6_i32 = arith.constant 6 : i32
    %c0_179 = arith.constant 0 : index
    %c0_180 = arith.constant 0 : index
    %523 = vector.load %arg11[%c0_179, %c0_180] : memref<16x64xbf16, #tpu.memory_space<vmem>>, vector<16x64xbf16>
    %c0_181 = arith.constant 0 : index
    %c0_182 = arith.constant 0 : index
    %524 = vector.load %arg6[%c0_181, %c0_182] : memref<64x256xbf16, #tpu.memory_space<vmem>>, vector<64x256xbf16>
    %cst_183 = arith.constant dense<0.000000e+00> : vector<16x256xf32>
    %525 = tpu.matmul %523, %524, %cst_183 {dimension_numbers = #tpu.dot_dimension_numbers<[1], [0], [0], [1], [0, 0, 1, 1], [], []>} : vector<16x64xbf16>, vector<64x256xbf16>, vector<16x256xf32> -> vector<16x256xf32>
    %c16_i32_184 = arith.constant 16 : i32
    %526 = arith.muli %c6_i32, %c16_i32_184 : i32
    %527 = tpu.assume_multiple %526, 16 : i32
    %c7_i32_185 = arith.constant 7 : i32
    %528 = arith.subi %c7_i32_185, %c6_i32 : i32
    %c16_i32_186 = arith.constant 16 : i32
    %529 = arith.muli %528, %c16_i32_186 : i32
    %530 = tpu.assume_multiple %529, 16 : i32
    %531 = arith.index_cast %527 : i32 to index
    %c0_187 = arith.constant 0 : index
    %532 = vector.load %arg9[%531, %c0_187] : memref<128x128xf32, #tpu.memory_space<vmem>>, vector<16x128xf32>
    %533 = vector.extract_strided_slice %525 {offsets = [0, 0], sizes = [16, 128], strides = [1, 1]} : vector<16x256xf32> to vector<16x128xf32>
    %534 = arith.addf %532, %533 : vector<16x128xf32>
    %535 = arith.index_cast %530 : i32 to index
    %c0_188 = arith.constant 0 : index
    %536 = vector.load %arg10[%535, %c0_188] : memref<128x128xf32, #tpu.memory_space<vmem>>, vector<16x128xf32>
    %537 = vector.extract_strided_slice %525 {offsets = [0, 128], sizes = [16, 128], strides = [1, 1]} : vector<16x256xf32> to vector<16x128xf32>
    %538 = arith.addf %536, %537 : vector<16x128xf32>
    %c0_189 = arith.constant 0 : index
    %c0_190 = arith.constant 0 : index
    %539 = vector.load %arg12[%c0_189, %c0_190] : memref<16x64xf32, #tpu.memory_space<vmem>>, vector<16x64xf32>
    %540 = vector.extract_strided_slice %539 {offsets = [0, 0], sizes = [16, 32], strides = [1, 1]} : vector<16x64xf32> to vector<16x32xf32>
    %541 = vector.extract_strided_slice %534 {offsets = [0, 0], sizes = [16, 32], strides = [1, 1]} : vector<16x128xf32> to vector<16x32xf32>
    %542 = arith.negf %541 : vector<16x32xf32>
    %543 = math.exp %542 : vector<16x32xf32>
    %cst_191 = arith.constant 1.000000e+00 : f32
    %544 = vector.broadcast %cst_191 : f32 to vector<16x32xf32>
    %545 = arith.addf %544, %543 : vector<16x32xf32>
    %546 = arith.divf %544, %545 : vector<16x32xf32>
    %547 = vector.extract_strided_slice %534 {offsets = [0, 32], sizes = [16, 32], strides = [1, 1]} : vector<16x128xf32> to vector<16x32xf32>
    %548 = arith.negf %547 : vector<16x32xf32>
    %549 = math.exp %548 : vector<16x32xf32>
    %cst_192 = arith.constant 1.000000e+00 : f32
    %550 = vector.broadcast %cst_192 : f32 to vector<16x32xf32>
    %551 = arith.addf %550, %549 : vector<16x32xf32>
    %552 = arith.divf %550, %551 : vector<16x32xf32>
    %553 = vector.extract_strided_slice %534 {offsets = [0, 64], sizes = [16, 32], strides = [1, 1]} : vector<16x128xf32> to vector<16x32xf32>
    %554 = math.tanh %553 : vector<16x32xf32>
    %555 = vector.extract_strided_slice %534 {offsets = [0, 96], sizes = [16, 32], strides = [1, 1]} : vector<16x128xf32> to vector<16x32xf32>
    %556 = arith.negf %555 : vector<16x32xf32>
    %557 = math.exp %556 : vector<16x32xf32>
    %cst_193 = arith.constant 1.000000e+00 : f32
    %558 = vector.broadcast %cst_193 : f32 to vector<16x32xf32>
    %559 = arith.addf %558, %557 : vector<16x32xf32>
    %560 = arith.divf %558, %559 : vector<16x32xf32>
    %561 = arith.mulf %552, %540 : vector<16x32xf32>
    %562 = arith.mulf %546, %554 : vector<16x32xf32>
    %563 = arith.addf %561, %562 : vector<16x32xf32>
    %564 = math.tanh %563 : vector<16x32xf32>
    %565 = arith.mulf %560, %564 : vector<16x32xf32>
    %566 = vector.extract_strided_slice %539 {offsets = [0, 32], sizes = [16, 32], strides = [1, 1]} : vector<16x64xf32> to vector<16x32xf32>
    %567 = vector.extract_strided_slice %538 {offsets = [0, 0], sizes = [16, 32], strides = [1, 1]} : vector<16x128xf32> to vector<16x32xf32>
    %568 = arith.negf %567 : vector<16x32xf32>
    %569 = math.exp %568 : vector<16x32xf32>
    %cst_194 = arith.constant 1.000000e+00 : f32
    %570 = vector.broadcast %cst_194 : f32 to vector<16x32xf32>
    %571 = arith.addf %570, %569 : vector<16x32xf32>
    %572 = arith.divf %570, %571 : vector<16x32xf32>
    %573 = vector.extract_strided_slice %538 {offsets = [0, 32], sizes = [16, 32], strides = [1, 1]} : vector<16x128xf32> to vector<16x32xf32>
    %574 = arith.negf %573 : vector<16x32xf32>
    %575 = math.exp %574 : vector<16x32xf32>
    %cst_195 = arith.constant 1.000000e+00 : f32
    %576 = vector.broadcast %cst_195 : f32 to vector<16x32xf32>
    %577 = arith.addf %576, %575 : vector<16x32xf32>
    %578 = arith.divf %576, %577 : vector<16x32xf32>
    %579 = vector.extract_strided_slice %538 {offsets = [0, 64], sizes = [16, 32], strides = [1, 1]} : vector<16x128xf32> to vector<16x32xf32>
    %580 = math.tanh %579 : vector<16x32xf32>
    %581 = vector.extract_strided_slice %538 {offsets = [0, 96], sizes = [16, 32], strides = [1, 1]} : vector<16x128xf32> to vector<16x32xf32>
    %582 = arith.negf %581 : vector<16x32xf32>
    %583 = math.exp %582 : vector<16x32xf32>
    %cst_196 = arith.constant 1.000000e+00 : f32
    %584 = vector.broadcast %cst_196 : f32 to vector<16x32xf32>
    %585 = arith.addf %584, %583 : vector<16x32xf32>
    %586 = arith.divf %584, %585 : vector<16x32xf32>
    %587 = arith.mulf %578, %566 : vector<16x32xf32>
    %588 = arith.mulf %572, %580 : vector<16x32xf32>
    %589 = arith.addf %587, %588 : vector<16x32xf32>
    %590 = math.tanh %589 : vector<16x32xf32>
    %591 = arith.mulf %586, %590 : vector<16x32xf32>
    %592 = tpu.concatenate %563, %589 in 1 : vector<16x32xf32>, vector<16x32xf32> -> vector<16x64xf32>
    %c0_197 = arith.constant 0 : index
    %c0_198 = arith.constant 0 : index
    %593 = vector.load %arg12[%c0_197, %c0_198] : memref<16x64xf32, #tpu.memory_space<vmem>>, vector<16x64xf32>
    tpu.vector_store %arg12[%c0_197, %c0_198], %592 {strides = array<i32>} : memref<16x64xf32, #tpu.memory_space<vmem>>, vector<16x64xf32>,
    %594 = arith.truncf %565 : vector<16x32xf32> to vector<16x32xbf16>
    %595 = arith.truncf %591 : vector<16x32xf32> to vector<16x32xbf16>
    %596 = tpu.concatenate %594, %595 in 1 : vector<16x32xbf16>, vector<16x32xbf16> -> vector<16x64xbf16>
    %c0_199 = arith.constant 0 : index
    %c0_200 = arith.constant 0 : index
    %597 = vector.load %arg11[%c0_199, %c0_200] : memref<16x64xbf16, #tpu.memory_space<vmem>>, vector<16x64xbf16>
    tpu.vector_store %arg11[%c0_199, %c0_200], %596 {strides = array<i32>} : memref<16x64xbf16, #tpu.memory_space<vmem>>, vector<16x64xbf16>,
    %598 = arith.index_cast %c6_i32 : i32 to index
    %c0_201 = arith.constant 0 : index
    %c0_202 = arith.constant 0 : index
    %599 = vector.load %arg7[%598, %c0_201, %c0_202] : memref<8x16x32xbf16, #tpu.memory_space<vmem>>, vector<1x16x32xbf16>
    %600 = vector.shape_cast %599 : vector<1x16x32xbf16> to vector<16x32xbf16>
    %601 = vector.shape_cast %594 : vector<16x32xbf16> to vector<1x16x32xbf16>
    tpu.vector_store %arg7[%598, %c0_201, %c0_202], %601 {strides = array<i32>} : memref<8x16x32xbf16, #tpu.memory_space<vmem>>, vector<1x16x32xbf16>,
    %c7_i32_203 = arith.constant 7 : i32
    %602 = arith.subi %c7_i32_203, %c6_i32 : i32
    %603 = arith.index_cast %602 : i32 to index
    %c0_204 = arith.constant 0 : index
    %c0_205 = arith.constant 0 : index
    %604 = vector.load %arg8[%603, %c0_204, %c0_205] : memref<8x16x32xbf16, #tpu.memory_space<vmem>>, vector<1x16x32xbf16>
    %605 = vector.shape_cast %604 : vector<1x16x32xbf16> to vector<16x32xbf16>
    %606 = vector.shape_cast %595 : vector<16x32xbf16> to vector<1x16x32xbf16>
    tpu.vector_store %arg8[%603, %c0_204, %c0_205], %606 {strides = array<i32>} : memref<8x16x32xbf16, #tpu.memory_space<vmem>>, vector<1x16x32xbf16>,
    %c7_i32_206 = arith.constant 7 : i32
    %c0_207 = arith.constant 0 : index
    %c0_208 = arith.constant 0 : index
    %607 = vector.load %arg11[%c0_207, %c0_208] : memref<16x64xbf16, #tpu.memory_space<vmem>>, vector<16x64xbf16>
    %c0_209 = arith.constant 0 : index
    %c0_210 = arith.constant 0 : index
    %608 = vector.load %arg6[%c0_209, %c0_210] : memref<64x256xbf16, #tpu.memory_space<vmem>>, vector<64x256xbf16>
    %cst_211 = arith.constant dense<0.000000e+00> : vector<16x256xf32>
    %609 = tpu.matmul %607, %608, %cst_211 {dimension_numbers = #tpu.dot_dimension_numbers<[1], [0], [0], [1], [0, 0, 1, 1], [], []>} : vector<16x64xbf16>, vector<64x256xbf16>, vector<16x256xf32> -> vector<16x256xf32>
    %c16_i32_212 = arith.constant 16 : i32
    %610 = arith.muli %c7_i32_206, %c16_i32_212 : i32
    %611 = tpu.assume_multiple %610, 16 : i32
    %c7_i32_213 = arith.constant 7 : i32
    %612 = arith.subi %c7_i32_213, %c7_i32_206 : i32
    %c16_i32_214 = arith.constant 16 : i32
    %613 = arith.muli %612, %c16_i32_214 : i32
    %614 = tpu.assume_multiple %613, 16 : i32
    %615 = arith.index_cast %611 : i32 to index
    %c0_215 = arith.constant 0 : index
    %616 = vector.load %arg9[%615, %c0_215] : memref<128x128xf32, #tpu.memory_space<vmem>>, vector<16x128xf32>
    %617 = vector.extract_strided_slice %609 {offsets = [0, 0], sizes = [16, 128], strides = [1, 1]} : vector<16x256xf32> to vector<16x128xf32>
    %618 = arith.addf %616, %617 : vector<16x128xf32>
    %619 = arith.index_cast %614 : i32 to index
    %c0_216 = arith.constant 0 : index
    %620 = vector.load %arg10[%619, %c0_216] : memref<128x128xf32, #tpu.memory_space<vmem>>, vector<16x128xf32>
    %621 = vector.extract_strided_slice %609 {offsets = [0, 128], sizes = [16, 128], strides = [1, 1]} : vector<16x256xf32> to vector<16x128xf32>
    %622 = arith.addf %620, %621 : vector<16x128xf32>
    %c0_217 = arith.constant 0 : index
    %c0_218 = arith.constant 0 : index
    %623 = vector.load %arg12[%c0_217, %c0_218] : memref<16x64xf32, #tpu.memory_space<vmem>>, vector<16x64xf32>
    %624 = vector.extract_strided_slice %623 {offsets = [0, 0], sizes = [16, 32], strides = [1, 1]} : vector<16x64xf32> to vector<16x32xf32>
    %625 = vector.extract_strided_slice %618 {offsets = [0, 0], sizes = [16, 32], strides = [1, 1]} : vector<16x128xf32> to vector<16x32xf32>
    %626 = arith.negf %625 : vector<16x32xf32>
    %627 = math.exp %626 : vector<16x32xf32>
    %cst_219 = arith.constant 1.000000e+00 : f32
    %628 = vector.broadcast %cst_219 : f32 to vector<16x32xf32>
    %629 = arith.addf %628, %627 : vector<16x32xf32>
    %630 = arith.divf %628, %629 : vector<16x32xf32>
    %631 = vector.extract_strided_slice %618 {offsets = [0, 32], sizes = [16, 32], strides = [1, 1]} : vector<16x128xf32> to vector<16x32xf32>
    %632 = arith.negf %631 : vector<16x32xf32>
    %633 = math.exp %632 : vector<16x32xf32>
    %cst_220 = arith.constant 1.000000e+00 : f32
    %634 = vector.broadcast %cst_220 : f32 to vector<16x32xf32>
    %635 = arith.addf %634, %633 : vector<16x32xf32>
    %636 = arith.divf %634, %635 : vector<16x32xf32>
    %637 = vector.extract_strided_slice %618 {offsets = [0, 64], sizes = [16, 32], strides = [1, 1]} : vector<16x128xf32> to vector<16x32xf32>
    %638 = math.tanh %637 : vector<16x32xf32>
    %639 = vector.extract_strided_slice %618 {offsets = [0, 96], sizes = [16, 32], strides = [1, 1]} : vector<16x128xf32> to vector<16x32xf32>
    %640 = arith.negf %639 : vector<16x32xf32>
    %641 = math.exp %640 : vector<16x32xf32>
    %cst_221 = arith.constant 1.000000e+00 : f32
    %642 = vector.broadcast %cst_221 : f32 to vector<16x32xf32>
    %643 = arith.addf %642, %641 : vector<16x32xf32>
    %644 = arith.divf %642, %643 : vector<16x32xf32>
    %645 = arith.mulf %636, %624 : vector<16x32xf32>
    %646 = arith.mulf %630, %638 : vector<16x32xf32>
    %647 = arith.addf %645, %646 : vector<16x32xf32>
    %648 = math.tanh %647 : vector<16x32xf32>
    %649 = arith.mulf %644, %648 : vector<16x32xf32>
    %650 = vector.extract_strided_slice %623 {offsets = [0, 32], sizes = [16, 32], strides = [1, 1]} : vector<16x64xf32> to vector<16x32xf32>
    %651 = vector.extract_strided_slice %622 {offsets = [0, 0], sizes = [16, 32], strides = [1, 1]} : vector<16x128xf32> to vector<16x32xf32>
    %652 = arith.negf %651 : vector<16x32xf32>
    %653 = math.exp %652 : vector<16x32xf32>
    %cst_222 = arith.constant 1.000000e+00 : f32
    %654 = vector.broadcast %cst_222 : f32 to vector<16x32xf32>
    %655 = arith.addf %654, %653 : vector<16x32xf32>
    %656 = arith.divf %654, %655 : vector<16x32xf32>
    %657 = vector.extract_strided_slice %622 {offsets = [0, 32], sizes = [16, 32], strides = [1, 1]} : vector<16x128xf32> to vector<16x32xf32>
    %658 = arith.negf %657 : vector<16x32xf32>
    %659 = math.exp %658 : vector<16x32xf32>
    %cst_223 = arith.constant 1.000000e+00 : f32
    %660 = vector.broadcast %cst_223 : f32 to vector<16x32xf32>
    %661 = arith.addf %660, %659 : vector<16x32xf32>
    %662 = arith.divf %660, %661 : vector<16x32xf32>
    %663 = vector.extract_strided_slice %622 {offsets = [0, 64], sizes = [16, 32], strides = [1, 1]} : vector<16x128xf32> to vector<16x32xf32>
    %664 = math.tanh %663 : vector<16x32xf32>
    %665 = vector.extract_strided_slice %622 {offsets = [0, 96], sizes = [16, 32], strides = [1, 1]} : vector<16x128xf32> to vector<16x32xf32>
    %666 = arith.negf %665 : vector<16x32xf32>
    %667 = math.exp %666 : vector<16x32xf32>
    %cst_224 = arith.constant 1.000000e+00 : f32
    %668 = vector.broadcast %cst_224 : f32 to vector<16x32xf32>
    %669 = arith.addf %668, %667 : vector<16x32xf32>
    %670 = arith.divf %668, %669 : vector<16x32xf32>
    %671 = arith.mulf %662, %650 : vector<16x32xf32>
    %672 = arith.mulf %656, %664 : vector<16x32xf32>
    %673 = arith.addf %671, %672 : vector<16x32xf32>
    %674 = math.tanh %673 : vector<16x32xf32>
    %675 = arith.mulf %670, %674 : vector<16x32xf32>
    %676 = tpu.concatenate %647, %673 in 1 : vector<16x32xf32>, vector<16x32xf32> -> vector<16x64xf32>
    %c0_225 = arith.constant 0 : index
    %c0_226 = arith.constant 0 : index
    %677 = vector.load %arg12[%c0_225, %c0_226] : memref<16x64xf32, #tpu.memory_space<vmem>>, vector<16x64xf32>
    tpu.vector_store %arg12[%c0_225, %c0_226], %676 {strides = array<i32>} : memref<16x64xf32, #tpu.memory_space<vmem>>, vector<16x64xf32>,
    %678 = arith.truncf %649 : vector<16x32xf32> to vector<16x32xbf16>
    %679 = arith.truncf %675 : vector<16x32xf32> to vector<16x32xbf16>
    %680 = tpu.concatenate %678, %679 in 1 : vector<16x32xbf16>, vector<16x32xbf16> -> vector<16x64xbf16>
    %c0_227 = arith.constant 0 : index
    %c0_228 = arith.constant 0 : index
    %681 = vector.load %arg11[%c0_227, %c0_228] : memref<16x64xbf16, #tpu.memory_space<vmem>>, vector<16x64xbf16>
    tpu.vector_store %arg11[%c0_227, %c0_228], %680 {strides = array<i32>} : memref<16x64xbf16, #tpu.memory_space<vmem>>, vector<16x64xbf16>,
    %682 = arith.index_cast %c7_i32_206 : i32 to index
    %c0_229 = arith.constant 0 : index
    %c0_230 = arith.constant 0 : index
    %683 = vector.load %arg7[%682, %c0_229, %c0_230] : memref<8x16x32xbf16, #tpu.memory_space<vmem>>, vector<1x16x32xbf16>
    %684 = vector.shape_cast %683 : vector<1x16x32xbf16> to vector<16x32xbf16>
    %685 = vector.shape_cast %678 : vector<16x32xbf16> to vector<1x16x32xbf16>
    tpu.vector_store %arg7[%682, %c0_229, %c0_230], %685 {strides = array<i32>} : memref<8x16x32xbf16, #tpu.memory_space<vmem>>, vector<1x16x32xbf16>,
    %c7_i32_231 = arith.constant 7 : i32
    %686 = arith.subi %c7_i32_231, %c7_i32_206 : i32
    %687 = arith.index_cast %686 : i32 to index
    %c0_232 = arith.constant 0 : index
    %c0_233 = arith.constant 0 : index
    %688 = vector.load %arg8[%687, %c0_232, %c0_233] : memref<8x16x32xbf16, #tpu.memory_space<vmem>>, vector<1x16x32xbf16>
    %689 = vector.shape_cast %688 : vector<1x16x32xbf16> to vector<16x32xbf16>
    %690 = vector.shape_cast %679 : vector<16x32xbf16> to vector<1x16x32xbf16>
    tpu.vector_store %arg8[%687, %c0_232, %c0_233], %690 {strides = array<i32>} : memref<8x16x32xbf16, #tpu.memory_space<vmem>>, vector<1x16x32xbf16>,
    %c8_i32 = arith.constant 8 : i32
    return
  }
  func.func @transform_0(%arg0: i32, %arg1: i32) -> (i32, i32, i32) {
    %c0_i32 = arith.constant 0 : i32
    %c0_i32_0 = arith.constant 0 : i32
    return %arg1, %arg0, %c0_i32 : i32, i32, i32
  }
  func.func @transform_1(%arg0: i32, %arg1: i32) -> (i32, i32, i32) {
    %c0_i32 = arith.constant 0 : i32
    %0 = arith.subi %c0_i32, %arg1 : i32
    %c0_i32_0 = arith.constant 0 : i32
    %c0_i32_1 = arith.constant 0 : i32
    return %0, %arg0, %c0_i32_0 : i32, i32, i32
  }
  func.func @transform_2(%arg0: i32, %arg1: i32) -> (i32, i32) {
    %c0_i32 = arith.constant 0 : i32
    %c0_i32_0 = arith.constant 0 : i32
    %c0_i32_1 = arith.constant 0 : i32
    return %c0_i32, %c0_i32_0 : i32, i32
  }
  func.func @transform_3(%arg0: i32, %arg1: i32) -> (i32, i32) {
    %c0_i32 = arith.constant 0 : i32
    %c0_i32_0 = arith.constant 0 : i32
    %c0_i32_1 = arith.constant 0 : i32
    return %c0_i32, %c0_i32_0 : i32, i32
  }
  func.func @transform_4(%arg0: i32, %arg1: i32) -> (i32, i32) {
    %c0_i32 = arith.constant 0 : i32
    %c0_i32_0 = arith.constant 0 : i32
    %c0_i32_1 = arith.constant 0 : i32
    return %c0_i32, %c0_i32_0 : i32, i32
  }
  func.func @transform_5(%arg0: i32, %arg1: i32) -> (i32, i32, i32) {
    %c0_i32 = arith.constant 0 : i32
    %c0_i32_0 = arith.constant 0 : i32
    return %arg1, %arg0, %c0_i32 : i32, i32, i32
  }
  func.func @transform_6(%arg0: i32, %arg1: i32) -> (i32, i32, i32) {
    %c0_i32 = arith.constant 0 : i32
    %0 = arith.subi %c0_i32, %arg1 : i32
    %c0_i32_0 = arith.constant 0 : i32
    %c0_i32_1 = arith.constant 0 : i32
    return %0, %arg0, %c0_i32_0 : i32, i32, i32
  }
}

</mosaic_0001>

<bundles_post_ra>
// kernel: ner_forward.5
= control target key start
LH: loop header
LB: loop body
LE: loop exit
PB: predicated region body
PF: predicated region fallthrough
CT: control target
= control target key end

     0   :  { %vm88_vm0 = vcmask 261120   ;;  %s1104_s11 = smov 96   ;;  %s1805_s1 = inlined_call_operand.vmem [shape: bf16[8,16,32], index: 1, kind: input, shape index: {}]   ;;  %s1806_s0 = inlined_call_operand.vmem [shape: bf16[8,16,32], index: 0, kind: input, shape index: {}]   ;;  %s1807_s4 = inlined_call_operand.vmem [shape: bf16[64,128], index: 4, kind: input, shape index: {}]   ;;  %s1808_s3 = inlined_call_operand.vmem [shape: f32[1,64], index: 3, kind: input, shape index: {}]   ;;  %s1809_s2 = inlined_call_operand.vmem [shape: f32[1,64], index: 2, kind: input, shape index: {}]   ;;  %s1810_s5 = inlined_call_operand.vmem [shape: f32[1,128], index: 5, kind: input, shape index: {}]   ;;  %s1811_s6 = inlined_call_operand.vmem [shape: f32[8,16,128], index: 6, kind: output, shape index: {}]  }
   0x1   :  { %v1143_v0 = vld [vmem:[%s1805_s1] sm:$0xff]   ;;  %v1157_v6 = vld [vmem:[%s1806_s0 + $0x8] sm:$0xff]   ;;  %v1189_v18 = vld [vmem:[%s1806_s0 + $0x10] sm:$0xff]  }
   0x2   :  { %v1148_v1 = vld [vmem:[%s1806_s0] sm:$0xff]   ;;  %v947_v2 = vunpack.c.l.bf16 %v1143_v0  ;;  %v948_v4 = vunpack.c.h.bf16 %v1143_v0  ;;  %v920_v11 = vunpack.c.h.bf16 %v1157_v6  ;;  %v919_v12 = vunpack.c.l.bf16 %v1157_v6  ;;  %v1176_v13 = vld [vmem:[%s1805_s1 + $0x8] sm:$0xff]   ;;  %v1202_v23 = vld [vmem:[%s1805_s1 + $0x10] sm:$0xff]  }
   0x3   :  { %v915_v3 = vunpack.c.l.bf16 %v1148_v1  ;;  %v916_v5 = vunpack.c.h.bf16 %v1148_v1  ;;  %v952_v16 = vunpack.c.h.bf16 %v1176_v13  ;;  %v951_v17 = vunpack.c.l.bf16 %v1176_v13  ;;  %v1215_v28 = vld [vmem:[%s1806_s0 + $0x18] sm:$0xff]   ;;  %v1241_v38 = vld [vmem:[%s1806_s0 + $0x20] sm:$0xff]   ;;  %v1267_v48 = vld [vmem:[%s1806_s0 + $0x28] sm:$0xff]  }
   0x4   :  { %v137_v7 = vsel %vm88_vm0, %v947_v2, 0.0  ;;  %v140_v9 = vsel %vm88_vm0, %v948_v4, 0.0  ;;  %v98_v14 = vsel %vm88_vm0, %v920_v11, 0.0  ;;  %v95_v15 = vsel %vm88_vm0, %v919_v12, 0.0  ;;  %v1228_v33 = vld [vmem:[%s1805_s1 + $0x18] sm:$0xff]   ;;  %v1254_v43 = vld [vmem:[%s1805_s1 + $0x20] sm:$0xff]  }
   0x5   :  { %v89_v8 = vsel %vm88_vm0, %v915_v3, 0.0  ;;  %138 = vadd.xlane.f32.xlu1 %v137_v7  ;;  %v92_v10 = vsel %vm88_vm0, %v916_v5, 0.0  ;;  %v146_v19 = vsel %vm88_vm0, %v952_v16, 0.0  ;;  %v143_v20 = vsel %vm88_vm0, %v951_v17, 0.0  ;;  %v1280_v53 = vld [vmem:[%s1805_s1 + $0x28] sm:$0xff]   ;;  %v1293_v58 = vld [vmem:[%s1806_s0 + $0x30] sm:$0xff]  }
   0x6   :  { %90 = vadd.xlane.f32.xlu0 %v89_v8  ;;  %v924_v21 = vunpack.c.h.bf16 %v1189_v18  ;;  %v923_v22 = vunpack.c.l.bf16 %v1189_v18  ;;  %v956_v26 = vunpack.c.h.bf16 %v1202_v23  ;;  %v955_v27 = vunpack.c.l.bf16 %v1202_v23  ;;  %v1306_v63 = vld [vmem:[%s1805_s1 + $0x30] sm:$0xff]  }
   0x7   :  { %v928_v31 = vunpack.c.h.bf16 %v1215_v28  ;;  %v927_v32 = vunpack.c.l.bf16 %v1215_v28  ;;  %v960_v36 = vunpack.c.h.bf16 %v1228_v33  ;;  %v959_v37 = vunpack.c.l.bf16 %v1228_v33 }
   0x8   :  { %v104_v24 = vsel %vm88_vm0, %v924_v21, 0.0  ;;  %v101_v25 = vsel %vm88_vm0, %v923_v22, 0.0  ;;  %v152_v29 = vsel %vm88_vm0, %v956_v26, 0.0  ;;  %v149_v30 = vsel %vm88_vm0, %v955_v27, 0.0 }
   0x9   :  { %141 = vadd.xlane.f32.xlu1 %v140_v9  ;;  %v110_v34 = vsel %vm88_vm0, %v928_v31, 0.0  ;;  %v107_v35 = vsel %vm88_vm0, %v927_v32, 0.0  ;;  %v158_v39 = vsel %vm88_vm0, %v960_v36, 0.0  ;;  %v155_v40 = vsel %vm88_vm0, %v959_v37, 0.0 }
   0xa   :  { %93 = vadd.xlane.f32.xlu0 %v92_v10  ;;  %v932_v41 = vunpack.c.h.bf16 %v1241_v38  ;;  %v931_v42 = vunpack.c.l.bf16 %v1241_v38  ;;  %v964_v46 = vunpack.c.h.bf16 %v1254_v43  ;;  %v963_v47 = vunpack.c.l.bf16 %v1254_v43 }
   0xb   :  { %v936_v51 = vunpack.c.h.bf16 %v1267_v48  ;;  %v935_v52 = vunpack.c.l.bf16 %v1267_v48  ;;  %v968_v56 = vunpack.c.h.bf16 %v1280_v53  ;;  %v967_v57 = vunpack.c.l.bf16 %v1280_v53 }
   0xc   :  { %v116_v44 = vsel %vm88_vm0, %v932_v41, 0.0  ;;  %v113_v45 = vsel %vm88_vm0, %v931_v42, 0.0  ;;  %v164_v49 = vsel %vm88_vm0, %v964_v46, 0.0  ;;  %v161_v50 = vsel %vm88_vm0, %v963_v47, 0.0 }
   0xd   :  { %99 = vadd.xlane.f32.xlu1 %v98_v14  ;;  %v122_v54 = vsel %vm88_vm0, %v936_v51, 0.0  ;;  %v119_v55 = vsel %vm88_vm0, %v935_v52, 0.0  ;;  %v170_v59 = vsel %vm88_vm0, %v968_v56, 0.0  ;;  %v167_v60 = vsel %vm88_vm0, %v967_v57, 0.0  ;;  %v1319_v14 = vld [vmem:[%s1806_s0 + $0x38] sm:$0xff]  }
   0xe   :  { %96 = vadd.xlane.f32.xlu0 %v95_v15  ;;  %v940_v61 = vunpack.c.h.bf16 %v1293_v58  ;;  %v939_v62 = vunpack.c.l.bf16 %v1293_v58  ;;  %v972_v9 = vunpack.c.h.bf16 %v1306_v63  ;;  %v971_v10 = vunpack.c.l.bf16 %v1306_v63  ;;  %v1069_v63 = vld [vmem:[%s1807_s4 + $0x8] sm:$0xff]  }
  0x10   :  { %v128_v7 = vsel %vm88_vm0, %v940_v61, 0.0  ;;  %v125_v8 = vsel %vm88_vm0, %v939_v62, 0.0  ;;  %v176_v15 = vsel %vm88_vm0, %v972_v9, 0.0 }
  0x11   :  { %147 = vadd.xlane.f32.xlu1 %v146_v19  ;;  %v173_v19 = vsel %vm88_vm0, %v971_v10, 0.0 }
  0x12   :  { %144 = vadd.xlane.f32.xlu0 %v143_v20  ;;  %v944_v20 = vunpack.c.h.bf16 %v1319_v14 }
  0x15   :  { %105 = vadd.xlane.f32.xlu1 %v104_v24  ;;  %v943_v24 = vunpack.c.l.bf16 %v1319_v14 }
  0x16   :  { %102 = vadd.xlane.f32.xlu0 %v101_v25  ;;  %v1332_v25 = vld [vmem:[%s1805_s1 + $0x38] sm:$0xff]  }
  0x19   :  { %153 = vadd.xlane.f32.xlu1 %v152_v29  ;;  %v134_v29 = vsel %vm88_vm0, %v944_v20, 0.0 }
  0x1a   :  { %150 = vadd.xlane.f32.xlu0 %v149_v30  ;;  %v131_v30 = vsel %vm88_vm0, %v943_v24, 0.0 }
  0x1d   :  { %111 = vadd.xlane.f32.xlu1 %v110_v34  ;;  %v976_v34 = vunpack.c.h.bf16 %v1332_v25 }
  0x1e   :  { %108 = vadd.xlane.f32.xlu0 %v107_v35  ;;  %v975_v35 = vunpack.c.l.bf16 %v1332_v25 }
  0x21   :  { %159 = vadd.xlane.f32.xlu1 %v158_v39  ;;  %v182_v39 = vsel %vm88_vm0, %v976_v34, 0.0 }
  0x22   :  { %156 = vadd.xlane.f32.xlu0 %v155_v40  ;;  %v179_v40 = vsel %vm88_vm0, %v975_v35, 0.0 }
  0x25   :  { %117 = vadd.xlane.f32.xlu1 %v116_v44 }
  0x26   :  { %114 = vadd.xlane.f32.xlu0 %v113_v45 }
  0x29   :  { %165 = vadd.xlane.f32.xlu1 %v164_v49 }
  0x2a   :  { %162 = vadd.xlane.f32.xlu0 %v161_v50 }
  0x2d   :  { %123 = vadd.xlane.f32.xlu1 %v122_v54 }
  0x2e   :  { %120 = vadd.xlane.f32.xlu0 %v119_v55 }
  0x31   :  { %171 = vadd.xlane.f32.xlu1 %v170_v59 }
  0x32   :  { %168 = vadd.xlane.f32.xlu0 %v167_v60 }
  0x35   :  { %129 = vadd.xlane.f32.xlu1 %v128_v7 }
  0x36   :  { %126 = vadd.xlane.f32.xlu0 %v125_v8 }
  0x39   :  { %177 = vadd.xlane.f32.xlu1 %v176_v15 }
  0x3a   :  { %174 = vadd.xlane.f32.xlu0 %v173_v19 }
  0x3d   :  { %135 = vadd.xlane.f32.xlu1 %v134_v29 }
  0x3e   :  { %132 = vadd.xlane.f32.xlu0 %v131_v30 }
  0x41   :  { %183 = vadd.xlane.f32.xlu1 %v182_v39 }
  0x42   :  { %180 = vadd.xlane.f32.xlu0 %v179_v40 }
  0x92   :  { %v139_v44 = vpop.xlane.xlu1 %138 }
  0x93   :  { %v91_v45 = vpop.xlane.xlu0 %90 }
  0x94   :  { %v185_v49 = vadd.f32 %v139_v44, %v91_v45 }
  0x96   :  { %v201_v50 = vmul.f32 0.015625, %v185_v49  ;;  %v142_v54 = vpop.xlane.xlu1 %141 }
  0x97   :  { %v94_v55 = vpop.xlane.xlu0 %93 }
  0x98   :  { %v1350_v59 = vsub.f32 %v915_v3, %v201_v50  ;;  %v1354_v60 = vsub.f32 %v947_v2, %v201_v50  ;;  %v186_v7 = vadd.f32 %v142_v54, %v94_v55 }
  0x9a   :  { %v202_v8 = vmul.f32 0.015625, %v186_v7  ;;  %v249_v15 = vmul.f32 %v1350_v59, %v1350_v59  ;;  %v100_v19 = vpop.xlane.xlu1 %99  ;;  %v313_v2 = vmul.f32 %v1354_v60, %v1354_v60 }
  0x9b   :  { %v97_v29 = vpop.xlane.xlu0 %96 }
  0x9c   :  { %v1360_v30 = vsub.f32 %v916_v5, %v202_v8  ;;  %v1364_v39 = vsub.f32 %v948_v4, %v202_v8  ;;  %v265_v3 = vsel %vm88_vm0, %v249_v15, 0.0  ;;  %v329_v0 = vsel %vm88_vm0, %v313_v2, 0.0 }
  0x9d   :  { %266 = vadd.xlane.f32.xlu0 %v265_v3 }
  0x9e   :  { %v250_v40 = vmul.f32 %v1360_v30, %v1360_v30  ;;  %v148_v44 = vpop.xlane.xlu1 %147  ;;  %v314_v1 = vmul.f32 %v1364_v39, %v1364_v39 }
  0x9f   :  { %v145_v45 = vpop.xlane.xlu0 %144  ;;  %v188_v5 = vadd.f32 %v148_v44, %v100_v19 }
  0xa0   :  { %v187_v49 = vadd.f32 %v145_v45, %v97_v29  ;;  %v268_v4 = vsel %vm88_vm0, %v250_v40, 0.0  ;;  %v332_v8 = vsel %vm88_vm0, %v314_v1, 0.0 }
  0xa1   :  { %330 = vadd.xlane.f32.xlu0 %v329_v0  ;;  %269 = vadd.xlane.f32.xlu1 %v268_v4  ;;  %v204_v50 = vmul.f32 0.015625, %v188_v5 }
  0xa2   :  { %v203_v54 = vmul.f32 0.015625, %v187_v49  ;;  %v106_v55 = vpop.xlane.xlu1 %105 }
  0xa3   :  { %v103_v7 = vpop.xlane.xlu0 %102  ;;  %v1378_v15 = vsub.f32 %v920_v11, %v204_v50  ;;  %v1382_v19 = vsub.f32 %v952_v16, %v204_v50 }
  0xa4   :  { %v1386_v29 = vsub.f32 %v919_v12, %v203_v54  ;;  %v1390_v3 = vsub.f32 %v951_v17, %v203_v54 }
  0xa5   :  { %333 = vadd.xlane.f32.xlu1 %v332_v8  ;;  %v252_v2 = vmul.f32 %v1378_v15, %v1378_v15  ;;  %v316_v16 = vmul.f32 %v1382_v19, %v1382_v19 }
  0xa6   :  { %v251_v11 = vmul.f32 %v1386_v29, %v1386_v29  ;;  %v154_v40 = vpop.xlane.xlu1 %153  ;;  %v315_v6 = vmul.f32 %v1390_v3, %v1390_v3 }
  0xa7   :  { %v151_v44 = vpop.xlane.xlu0 %150  ;;  %v190_v12 = vadd.f32 %v154_v40, %v106_v55  ;;  %v274_v13 = vsel %vm88_vm0, %v252_v2, 0.0  ;;  %v338_v4 = vsel %vm88_vm0, %v316_v16, 0.0 }
  0xa8   :  { %v189_v45 = vadd.f32 %v151_v44, %v103_v7  ;;  %v271_v17 = vsel %vm88_vm0, %v251_v11, 0.0  ;;  %v335_v50 = vsel %vm88_vm0, %v315_v6, 0.0 }
  0xa9   :  { %275 = vadd.xlane.f32.xlu1 %v274_v13  ;;  %272 = vadd.xlane.f32.xlu0 %v271_v17  ;;  %v206_v1 = vmul.f32 0.015625, %v190_v12 }
  0xaa   :  { %v205_v5 = vmul.f32 0.015625, %v189_v45  ;;  %v112_v49 = vpop.xlane.xlu1 %111 }
  0xab   :  { %v109_v0 = vpop.xlane.xlu0 %108  ;;  %v1406_v54 = vsub.f32 %v924_v21, %v206_v1  ;;  %v1410_v55 = vsub.f32 %v956_v26, %v206_v1 }
  0xac   :  { %v1414_v7 = vsub.f32 %v923_v22, %v205_v5  ;;  %v1418_v8 = vsub.f32 %v955_v27, %v205_v5 }
  0xad   :  { %339 = vadd.xlane.f32.xlu1 %v338_v4  ;;  %336 = vadd.xlane.f32.xlu0 %v335_v50  ;;  %v254_v2 = vmul.f32 %v1406_v54, %v1406_v54  ;;  %v318_v26 = vmul.f32 %v1410_v55, %v1410_v55 }
  0xae   :  { %v253_v21 = vmul.f32 %v1414_v7, %v1414_v7  ;;  %v160_v11 = vpop.xlane.xlu1 %159  ;;  %v317_v18 = vmul.f32 %v1418_v8, %v1418_v8 }
  0xaf   :  { %v157_v40 = vpop.xlane.xlu0 %156  ;;  %v192_v22 = vadd.f32 %v160_v11, %v112_v49  ;;  %v280_v27 = vsel %vm88_vm0, %v254_v2, 0.0  ;;  %v344_v13 = vsel %vm88_vm0, %v318_v26, 0.0 }
  0xb0   :  { %v191_v23 = vadd.f32 %v157_v40, %v109_v0  ;;  %v277_v44 = vsel %vm88_vm0, %v253_v21, 0.0  ;;  %v341_v17 = vsel %vm88_vm0, %v317_v18, 0.0 }
  0xb1   :  { %281 = vadd.xlane.f32.xlu1 %v280_v27  ;;  %278 = vadd.xlane.f32.xlu0 %v277_v44  ;;  %v208_v16 = vmul.f32 0.015625, %v192_v22 }
  0xb2   :  { %v207_v6 = vmul.f32 0.015625, %v191_v23  ;;  %v118_v12 = vpop.xlane.xlu1 %117 }
  0xb3   :  { %v115_v45 = vpop.xlane.xlu0 %114  ;;  %v1434_v1 = vsub.f32 %v928_v31, %v208_v16  ;;  %v1438_v5 = vsub.f32 %v960_v36, %v208_v16 }
  0xb4   :  { %v1442_v49 = vsub.f32 %v927_v32, %v207_v6  ;;  %v1446_v0 = vsub.f32 %v959_v37, %v207_v6 }
  0xb5   :  { %345 = vadd.xlane.f32.xlu1 %v344_v13  ;;  %342 = vadd.xlane.f32.xlu0 %v341_v17  ;;  %v256_v4 = vmul.f32 %v1434_v1, %v1434_v1  ;;  %v320_v36 = vmul.f32 %v1438_v5, %v1438_v5 }
  0xb6   :  { %v255_v31 = vmul.f32 %v1442_v49, %v1442_v49  ;;  %v166_v50 = vpop.xlane.xlu1 %165  ;;  %v319_v28 = vmul.f32 %v1446_v0, %v1446_v0 }
  0xb7   :  { %v163_v2 = vpop.xlane.xlu0 %162  ;;  %v194_v32 = vadd.f32 %v166_v50, %v118_v12  ;;  %v286_v37 = vsel %vm88_vm0, %v256_v4, 0.0  ;;  %v350_v22 = vsel %vm88_vm0, %v320_v36, 0.0 }
  0xb8   :  { %v193_v33 = vadd.f32 %v163_v2, %v115_v45  ;;  %v283_v21 = vsel %vm88_vm0, %v255_v31, 0.0  ;;  %v347_v23 = vsel %vm88_vm0, %v319_v28, 0.0 }
  0xb9   :  { %287 = vadd.xlane.f32.xlu1 %v286_v37  ;;  %284 = vadd.xlane.f32.xlu0 %v283_v21  ;;  %v210_v11 = vmul.f32 0.015625, %v194_v32 }
  0xba   :  { %v209_v40 = vmul.f32 0.015625, %v193_v33  ;;  %v124_v26 = vpop.xlane.xlu1 %123 }
  0xbb   :  { %v121_v18 = vpop.xlane.xlu0 %120  ;;  %v1462_v27 = vsub.f32 %v932_v41, %v210_v11  ;;  %v1466_v44 = vsub.f32 %v964_v46, %v210_v11 }
  0xbc   :  { %v1470_v16 = vsub.f32 %v931_v42, %v209_v40  ;;  %v1474_v6 = vsub.f32 %v963_v47, %v209_v40 }
  0xbd   :  { %351 = vadd.xlane.f32.xlu1 %v350_v22  ;;  %348 = vadd.xlane.f32.xlu0 %v347_v23  ;;  %v258_v12 = vmul.f32 %v1462_v27, %v1462_v27  ;;  %v322_v46 = vmul.f32 %v1466_v44, %v1466_v44 }
  0xbe   :  { %v257_v41 = vmul.f32 %v1470_v16, %v1470_v16  ;;  %v172_v45 = vpop.xlane.xlu1 %171  ;;  %v321_v38 = vmul.f32 %v1474_v6, %v1474_v6 }
  0xbf   :  { %v169_v13 = vpop.xlane.xlu0 %168  ;;  %v196_v42 = vadd.f32 %v172_v45, %v124_v26  ;;  %v292_v47 = vsel %vm88_vm0, %v258_v12, 0.0  ;;  %v356_v36 = vsel %vm88_vm0, %v322_v46, 0.0  ;;  %v1068_v46 = vld [vmem:[%s1807_s4] sm:$0xff]  }
  0xc0   :  { %v195_v43 = vadd.f32 %v169_v13, %v121_v18  ;;  %v289_v17 = vsel %vm88_vm0, %v257_v41, 0.0  ;;  %v353_v28 = vsel %vm88_vm0, %v321_v38, 0.0  ;;  %1031 = vmatprep.subr.bf16.mxu0 %v1068_v46 }
  0xc1   :  { %293 = vadd.xlane.f32.xlu1 %v292_v47  ;;  %290 = vadd.xlane.f32.xlu0 %v289_v17  ;;  %v212_v4 = vmul.f32 0.015625, %v196_v42 }
  0xc2   :  { %v211_v31 = vmul.f32 0.015625, %v195_v43  ;;  %v130_v50 = vpop.xlane.xlu1 %129  ;;  %1032 = vmatpush3.bf16.msra.mxu0 %v1068_v46 }
  0xc3   :  { %v127_v2 = vpop.xlane.xlu0 %126  ;;  %v1490_v32 = vsub.f32 %v936_v51, %v212_v4  ;;  %v1494_v33 = vsub.f32 %v968_v56, %v212_v4  ;;  %1033 = vmatprep.subr.bf16.mxu0 %v1069_v63 }
  0xc4   :  { %v1498_v37 = vsub.f32 %v935_v52, %v211_v31  ;;  %v1502_v21 = vsub.f32 %v967_v57, %v211_v31 }
  0xc5   :  { %357 = vadd.xlane.f32.xlu1 %v356_v36  ;;  %354 = vadd.xlane.f32.xlu0 %v353_v28  ;;  %v260_v11 = vmul.f32 %v1490_v32, %v1490_v32  ;;  %v324_v56 = vmul.f32 %v1494_v33, %v1494_v33 }
  0xc6   :  { %v259_v51 = vmul.f32 %v1498_v37, %v1498_v37  ;;  %v178_v40 = vpop.xlane.xlu1 %177  ;;  %v323_v48 = vmul.f32 %v1502_v21, %v1502_v21  ;;  %1034 = vmatpush3.bf16.msra.mxu0 %v1069_v63 }
  0xc7   :  { %v175_v26 = vpop.xlane.xlu0 %174  ;;  %v198_v52 = vadd.f32 %v178_v40, %v130_v50  ;;  %v298_v57 = vsel %vm88_vm0, %v260_v11, 0.0  ;;  %v362_v12 = vsel %vm88_vm0, %v324_v56, 0.0 }
  0xc8   :  { %v197_v53 = vadd.f32 %v175_v26, %v127_v2  ;;  %v295_v18 = vsel %vm88_vm0, %v259_v51, 0.0  ;;  %v359_v13 = vsel %vm88_vm0, %v323_v48, 0.0 }
  0xc9   :  { %299 = vadd.xlane.f32.xlu1 %v298_v57  ;;  %296 = vadd.xlane.f32.xlu0 %v295_v18  ;;  %v214_v22 = vmul.f32 0.015625, %v198_v52  ;;  %v1581_v57 = vld [vmem:[%s1808_s3] ss:$0 sm:$0xff]  ;;  %v1070_v18 = vld [vmem:[%s1807_s4 + $0x10] sm:$0xff]  }
  0xca   :  { %v213_v23 = vmul.f32 0.015625, %v197_v53  ;;  %v136_v41 = vpop.xlane.xlu1 %135  ;;  %1011 = vmatprep.subr.bf16.mxu1 %v1070_v18 }
  0xcb   :  { %v133_v45 = vpop.xlane.xlu0 %132  ;;  %v1521_v38 = vsub.f32 %v940_v61, %v214_v22  ;;  %v1525_v42 = vsub.f32 %v972_v9, %v214_v22  ;;  %v1590_v22 = vld [vmem:[%s1809_s2] ss:$0 sm:$0xff]  ;;  %1012 = vmatpush3.bf16.msra.mxu1 %v1070_v18 }
  0xcc   :  { %v1529_v43 = vsub.f32 %v939_v62, %v213_v23  ;;  %v1533_v47 = vsub.f32 %v971_v10, %v213_v23  ;;  %v1071_v23 = vld [vmem:[%s1807_s4 + $0x18] sm:$0xff]  }
  0xcd   :  { %363 = vadd.xlane.f32.xlu1 %v362_v12  ;;  %360 = vadd.xlane.f32.xlu0 %v359_v13  ;;  %v262_v17 = vmul.f32 %v1521_v38, %v1521_v38  ;;  %v326_v58 = vmul.f32 %v1525_v42, %v1525_v42 }
  0xce   :  { %v261_v61 = vmul.f32 %v1529_v43, %v1529_v43  ;;  %v184_v4 = vpop.xlane.xlu1 %183  ;;  %v325_v62 = vmul.f32 %v1533_v47, %v1533_v47  ;;  %1013 = vmatprep.subr.bf16.mxu1 %v1071_v23 }
  0xcf   :  { %v181_v9 = vpop.xlane.xlu0 %180  ;;  %v200_v10 = vadd.f32 %v184_v4, %v136_v41  ;;  %v304_v50 = vsel %vm88_vm0, %v262_v17, 0.0  ;;  %v368_v11 = vsel %vm88_vm0, %v326_v58, 0.0  ;;  %1014 = vmatpush3.bf16.msra.mxu1 %v1071_v23 }
  0xd0   :  { %v199_v31 = vadd.f32 %v181_v9, %v133_v45  ;;  %v301_v2 = vsel %vm88_vm0, %v261_v61, 0.0  ;;  %v365_v51 = vsel %vm88_vm0, %v325_v62, 0.0 }
  0xd1   :  { %305 = vadd.xlane.f32.xlu1 %v304_v50  ;;  %302 = vadd.xlane.f32.xlu0 %v301_v2  ;;  %v216_v36 = vmul.f32 0.015625, %v200_v10 }
  0xd2   :  { %v215_v28 = vmul.f32 0.015625, %v199_v31 }
  0xd3   :  { %v1552_v56 = vsub.f32 %v944_v20, %v216_v36  ;;  %v1556_v40 = vsub.f32 %v976_v34, %v216_v36 }
  0xd4   :  { %v1560_v26 = vsub.f32 %v943_v24, %v215_v28  ;;  %v1564_v48 = vsub.f32 %v975_v35, %v215_v28 }
  0xd5   :  { %369 = vadd.xlane.f32.xlu1 %v368_v11  ;;  %366 = vadd.xlane.f32.xlu0 %v365_v51  ;;  %v264_v52 = vmul.f32 %v1552_v56, %v1552_v56  ;;  %v328_v14 = vmul.f32 %v1556_v40, %v1556_v40 }
  0xd6   :  { %v263_v20 = vmul.f32 %v1560_v26, %v1560_v26  ;;  %v327_v24 = vmul.f32 %v1564_v48, %v1564_v48 }
  0xd7   :  { %v310_v53 = vsel %vm88_vm0, %v264_v52, 0.0  ;;  %v374_v25 = vsel %vm88_vm0, %v328_v14, 0.0 }
  0xd8   :  { %v307_v34 = vsel %vm88_vm0, %v263_v20, 0.0  ;;  %v371_v35 = vsel %vm88_vm0, %v327_v24, 0.0 }
  0xd9   :  { %311 = vadd.xlane.f32.xlu1 %v310_v53  ;;  %308 = vadd.xlane.f32.xlu0 %v307_v34 }
  0xdd   :  { %375 = vadd.xlane.f32.xlu1 %v374_v25  ;;  %372 = vadd.xlane.f32.xlu0 %v371_v35 }
  0xee   :  { %538 = vrot.lane.b32.xlu1 %v1581_v57, %s1104_s11 }
  0xf3   :  { %519 = vrot.lane.b32.xlu0 %v1590_v22, %s1104_s11 }
 0x12a   :  { %v267_v12 = vpop.xlane.xlu0 %266 }
 0x12e   :  { %v270_v41 = vpop.xlane.xlu1 %269  ;;  %v331_v45 = vpop.xlane.xlu0 %330 }
 0x12f   :  { %v377_v13 = vadd.f32 %v331_v45, %v267_v12 }
 0x131   :  { %v393_v46 = vmul.f32 0.015625, %v377_v13 }
 0x132   :  { %v334_v17 = vpop.xlane.xlu1 %333 }
 0x133   :  { %v409_v61 = vadd.f32 1e-05, %v393_v46  ;;  %v378_v4 = vadd.f32 %v334_v17, %v270_v41 }
 0x135   :  { %1072 = vrsqrt.f32 %v409_v61  ;;  %v394_v9 = vmul.f32 0.015625, %v378_v4 }
 0x136   :  { %v276_v58 = vpop.xlane.xlu1 %275  ;;  %v273_v62 = vpop.xlane.xlu0 %272 }
 0x137   :  { %v410_v63 = vadd.f32 1e-05, %v394_v9 }
 0x139   :  { %1074 = vrsqrt.f32 %v410_v63 }
 0x13a   :  { %v340_v10 = vpop.xlane.xlu1 %339  ;;  %v337_v31 = vpop.xlane.xlu0 %336 }
 0x13b   :  { %v380_v50 = vadd.f32 %v340_v10, %v276_v58  ;;  %v379_v2 = vadd.f32 %v337_v31, %v273_v62 }
 0x13d   :  { %v396_v36 = vmul.f32 0.015625, %v380_v50  ;;  %v395_v28 = vmul.f32 0.015625, %v379_v2 }
 0x13e   :  { %v282_v11 = vpop.xlane.xlu1 %281  ;;  %v279_v51 = vpop.xlane.xlu0 %278 }
 0x13f   :  { %v1596_v52 = vpop.eup %1072  ;;  %v412_v20 = vadd.f32 1e-05, %v396_v36  ;;  %v411_v53 = vadd.f32 1e-05, %v395_v28 }
 0x140   :  { %v443_v34 = vmul.f32 %v1596_v52, %v1350_v59 }
 0x141   :  { %1076 = vrsqrt.f32 %v412_v20 }
 0x142   :  { %1078 = vrsqrt.f32 %v411_v53  ;;  %v346_v14 = vpop.xlane.xlu1 %345  ;;  %v343_v24 = vpop.xlane.xlu0 %342  ;;  %v465_v12 = vmul.f32 %v1590_v22, %v443_v34 }
 0x143   :  { %v1600_v25 = vpop.eup %1074  ;;  %v382_v35 = vadd.f32 %v346_v14, %v282_v11  ;;  %v381_v18 = vadd.f32 %v343_v24, %v279_v51 }
 0x144   :  { %v444_v23 = vmul.f32 %v1600_v25, %v1360_v30  ;;  %v487_v4 = vadd.f32 %v1581_v57, %v465_v12 }
 0x145   :  { %v398_v41 = vmul.f32 0.015625, %v382_v35  ;;  %v397_v45 = vmul.f32 0.015625, %v381_v18 }
 0x146   :  { %v288_v13 = vpop.xlane.xlu1 %287  ;;  %v285_v46 = vpop.xlane.xlu0 %284  ;;  %v466_v17 = vmul.f32 %v1590_v22, %v444_v23 }
 0x147   :  { %v414_v59 = vadd.f32 1e-05, %v398_v41  ;;  %v413_v61 = vadd.f32 1e-05, %v397_v45 }
 0x148   :  { %v488_v9 = vadd.f32 %v1581_v57, %v466_v17 }
 0x149   :  { %1080 = vrsqrt.f32 %v414_v59 }
 0x14a   :  { %1082 = vrsqrt.f32 %v413_v61  ;;  %v352_v58 = vpop.xlane.xlu1 %351  ;;  %v349_v62 = vpop.xlane.xlu0 %348  ;;  %v557_v63 = vpack.c.bf16 %v488_v9, %v487_v4 }
 0x14b   :  { %v1608_v30 = vpop.eup %1076  ;;  %v384_v10 = vadd.f32 %v352_v58, %v288_v13  ;;  %v383_v31 = vadd.f32 %v349_v62, %v285_v46 }
 0x14c   :  { %v1610_v50 = vpop.eup %1078  ;;  %v446_v2 = vmul.f32 %v1608_v30, %v1378_v15  ;;  %1035 = vmatprep.mubr.msk.bf16.mxu0 %vm88_vm0, %v557_v63 }
 0x14d   :  { %v445_v36 = vmul.f32 %v1610_v50, %v1386_v29  ;;  %v400_v28 = vmul.f32 0.015625, %v384_v10  ;;  %v399_v11 = vmul.f32 0.015625, %v383_v31 }
 0x14e   :  { %v294_v51 = vpop.xlane.xlu1 %293  ;;  %v291_v20 = vpop.xlane.xlu0 %290  ;;  %v468_v53 = vmul.f32 %v1590_v22, %v446_v2 }
 0x14f   :  { %v416_v34 = vadd.f32 1e-05, %v400_v28  ;;  %v415_v14 = vadd.f32 1e-05, %v399_v11  ;;  %v467_v24 = vmul.f32 %v1590_v22, %v445_v36 }
 0x150   :  { %v490_v35 = vadd.f32 %v1581_v57, %v468_v53 }
 0x151   :  { %1084 = vrsqrt.f32 %v416_v34  ;;  %v489_v15 = vadd.f32 %v1581_v57, %v467_v24 }
 0x152   :  { %1086 = vrsqrt.f32 %v415_v14  ;;  %v358_v18 = vpop.xlane.xlu1 %357  ;;  %v355_v23 = vpop.xlane.xlu0 %354 }
 0x153   :  { %v1621_v12 = vpop.eup %1080  ;;  %v386_v29 = vadd.f32 %v358_v18, %v294_v51  ;;  %v385_v41 = vadd.f32 %v355_v23, %v291_v20  ;;  %v558_v45 = vpack.c.bf16 %v490_v35, %v489_v15 }
 0x154   :  { %v1623_v13 = vpop.eup %1082  ;;  %v448_v46 = vmul.f32 %v1621_v12, %v1406_v54 }
 0x155   :  { %v447_v17 = vmul.f32 %v1623_v13, %v1414_v7  ;;  %v402_v59 = vmul.f32 0.015625, %v386_v29  ;;  %v401_v61 = vmul.f32 0.015625, %v385_v41  ;;  %1036 = vmatmul.mubr.msk.bf16.vlgmr.msra.gmra.mrb[0].mxu0 %vm88_vm0, %v558_v45 }
 0x156   :  { %v300_v4 = vpop.xlane.xlu1 %299  ;;  %v297_v9 = vpop.xlane.xlu0 %296  ;;  %v470_v58 = vmul.f32 %v1590_v22, %v448_v46 }
 0x157   :  { %v418_v62 = vadd.f32 1e-05, %v402_v59  ;;  %v417_v63 = vadd.f32 1e-05, %v401_v61  ;;  %v469_v10 = vmul.f32 %v1590_v22, %v447_v17 }
 0x158   :  { %v492_v31 = vadd.f32 %v1581_v57, %v470_v58 }
 0x159   :  { %1088 = vrsqrt.f32 %v418_v62  ;;  %v491_v54 = vadd.f32 %v1581_v57, %v469_v10 }
 0x15a   :  { %1090 = vrsqrt.f32 %v417_v63  ;;  %v364_v2 = vpop.xlane.xlu1 %363  ;;  %v361_v7 = vpop.xlane.xlu0 %360 }
 0x15b   :  { %v1085_v36 = vpop.eup %1084  ;;  %v388_v28 = vadd.f32 %v364_v2, %v300_v4  ;;  %v387_v11 = vadd.f32 %v361_v7, %v297_v9  ;;  %v559_v51 = vpack.c.bf16 %v492_v31, %v491_v54 }
 0x15c   :  { %v1087_v20 = vpop.eup %1086  ;;  %v450_v53 = vmul.f32 %v1085_v36, %v1434_v1 }
 0x15d   :  { %v449_v34 = vmul.f32 %v1087_v20, %v1442_v49  ;;  %v404_v14 = vmul.f32 0.015625, %v388_v28  ;;  %v403_v24 = vmul.f32 0.015625, %v387_v11  ;;  %1039 = vmatprep.mubr.msk.bf16.mxu0 %vm88_vm0, %v559_v51 }
 0x15e   :  { %v306_v35 = vpop.xlane.xlu1 %305  ;;  %v303_v15 = vpop.xlane.xlu0 %302  ;;  %v472_v18 = vmul.f32 %v1590_v22, %v450_v53 }
 0x15f   :  { %v420_v23 = vadd.f32 1e-05, %v404_v14  ;;  %v419_v29 = vadd.f32 1e-05, %v403_v24  ;;  %v471_v41 = vmul.f32 %v1590_v22, %v449_v34 }
 0x160   :  { %v494_v45 = vadd.f32 %v1581_v57, %v472_v18 }
 0x161   :  { %1092 = vrsqrt.f32 %v420_v23  ;;  %v493_v46 = vadd.f32 %v1581_v57, %v471_v41  ;;  %v506_v23 = vmul.f32 %v1608_v30, %v1382_v19  ;;  %v510_v19 = vmul.f32 %v1085_v36, %v1438_v5 }
 0x162   :  { %1094 = vrsqrt.f32 %v419_v29  ;;  %v370_v1 = vpop.xlane.xlu1 %369  ;;  %v367_v49 = vpop.xlane.xlu0 %366  ;;  %v505_v29 = vmul.f32 %v1610_v50, %v1390_v3  ;;  %v509_v3 = vmul.f32 %v1087_v20, %v1446_v0 }
 0x163   :  { %v1089_v17 = vpop.eup %1088  ;;  %v390_v59 = vadd.f32 %v370_v1, %v306_v35  ;;  %v389_v61 = vadd.f32 %v367_v49, %v303_v15  ;;  %v560_v4 = vpack.c.bf16 %v494_v45, %v493_v46  ;;  %v503_v15 = vmul.f32 %v1596_v52, %v1354_v60 }
 0x164   :  { %v1091_v9 = vpop.eup %1090  ;;  %v452_v58 = vmul.f32 %v1089_v17, %v1462_v27  ;;  %v504_v45 = vmul.f32 %v1600_v25, %v1364_v39  ;;  %v508_v46 = vmul.f32 %v1621_v12, %v1410_v55  ;;  %v507_v60 = vmul.f32 %v1623_v13, %v1418_v8 }
 0x165   :  { %v451_v62 = vmul.f32 %v1091_v9, %v1470_v16  ;;  %v406_v63 = vmul.f32 0.015625, %v390_v59  ;;  %v405_v10 = vmul.f32 0.015625, %v389_v61  ;;  %1040 = vmatmul.mubr.msk.bf16.gmra.mrb[4].mxu0 %vm88_vm0, %v560_v4 }
 0x166   :  { %v312_v31 = vpop.xlane.xlu1 %311  ;;  %v309_v54 = vpop.xlane.xlu0 %308  ;;  %v474_v2 = vmul.f32 %v1590_v22, %v452_v58 }
 0x167   :  { %v422_v7 = vadd.f32 1e-05, %v406_v63  ;;  %v421_v28 = vadd.f32 1e-05, %v405_v10  ;;  %v473_v11 = vmul.f32 %v1590_v22, %v451_v62  ;;  %v512_v62 = vmul.f32 %v1089_v17, %v1466_v44 }
 0x168   :  { %v496_v51 = vadd.f32 %v1581_v57, %v474_v2  ;;  %v511_v2 = vmul.f32 %v1091_v9, %v1474_v6 }
 0x169   :  { %1096 = vrsqrt.f32 %v422_v7  ;;  %v495_v53 = vadd.f32 %v1581_v57, %v473_v11 }
 0x16a   :  { %1098 = vrsqrt.f32 %v421_v28  ;;  %v376_v27 = vpop.xlane.xlu1 %375  ;;  %v373_v16 = vpop.xlane.xlu0 %372 }
 0x16b   :  { %v1093_v34 = vpop.eup %1092  ;;  %v392_v14 = vadd.f32 %v376_v27, %v312_v31  ;;  %v391_v24 = vadd.f32 %v373_v16, %v309_v54  ;;  %v561_v35 = vpack.c.bf16 %v496_v51, %v495_v53 }
 0x16c   :  { %v1095_v18 = vpop.eup %1094  ;;  %v454_v41 = vmul.f32 %v1093_v34, %v1490_v32 }
 0x16d   :  { %v453_v1 = vmul.f32 %v1095_v18, %v1498_v37  ;;  %v408_v49 = vmul.f32 0.015625, %v392_v14  ;;  %v407_v59 = vmul.f32 0.015625, %v391_v24  ;;  %1043 = vmatprep.mubr.msk.bf16.mxu0 %vm88_vm0, %v561_v35  ;;  %v513_v16 = vmul.f32 %v1095_v18, %v1502_v21 }
 0x16e   :  { %v1665_v32 = vpop.permute.xlu0 %519  ;;  %v1667_v52 = vpop.permute.xlu1 %538  ;;  %v476_v39 = vmul.f32 %v1590_v22, %v454_v41  ;;  %v514_v24 = vmul.f32 %v1093_v34, %v1494_v33 }
 0x16f   :  { %v424_v55 = vadd.f32 1e-05, %v408_v49  ;;  %v423_v25 = vadd.f32 1e-05, %v407_v59  ;;  %v475_v37 = vmul.f32 %v1590_v22, %v453_v1  ;;  %v522_v30 = vmul.f32 %v1665_v32, %v503_v15 }
 0x170   :  { %v498_v50 = vadd.f32 %v1581_v57, %v476_v39  ;;  %v523_v8 = vmul.f32 %v1665_v32, %v504_v45  ;;  %v524_v5 = vmul.f32 %v1665_v32, %v505_v29  ;;  %v525_v0 = vmul.f32 %v1665_v32, %v506_v23 }
 0x171   :  { %1100 = vrsqrt.f32 %v424_v55  ;;  %v497_v12 = vadd.f32 %v1581_v57, %v475_v37  ;;  %v541_v13 = vadd.f32 %v1667_v52, %v522_v30  ;;  %v526_v36 = vmul.f32 %v1665_v32, %v507_v60 }
 0x172   :  { %1102 = vrsqrt.f32 %v423_v25  ;;  %v542_v20 = vadd.f32 %v1667_v52, %v523_v8  ;;  %v543_v61 = vadd.f32 %v1667_v52, %v524_v5  ;;  %v544_v4 = vadd.f32 %v1667_v52, %v525_v0 }
 0x173   :  { %v1097_v58 = vpop.eup %1096  ;;  %v562_v63 = vpack.c.bf16 %v498_v50, %v497_v12  ;;  %v527_v10 = vmul.f32 %v1665_v32, %v508_v46  ;;  %v545_v31 = vadd.f32 %v1667_v52, %v526_v36  ;;  %v528_v44 = vmul.f32 %v1665_v32, %v509_v3 }
 0x174   :  { %v1099_v54 = vpop.eup %1098  ;;  %v456_v7 = vmul.f32 %v1097_v58, %v1521_v38  ;;  %v569_v28 = vpack.c.bf16 %v542_v20, %v541_v13  ;;  %v570_v11 = vpack.c.bf16 %v544_v4, %v543_v61  ;;  %v529_v17 = vmul.f32 %v1665_v32, %v510_v19 }
 0x175   :  { %v455_v51 = vmul.f32 %v1099_v54, %v1529_v43  ;;  %1044 = vmatmul.mubr.msk.bf16.gmra.mrb[8].mxu0 %vm88_vm0, %v562_v63  ;;  %v546_v53 = vadd.f32 %v1667_v52, %v527_v10  ;;  %v530_v6 = vmul.f32 %v1665_v32, %v511_v2  ;;  %v531_v38 = vmul.f32 %v1665_v32, %v512_v62  ;;  %v1739_v2 = vld [vmem:[%s1810_s5] ss:$0 sm:$0xff] }
 0x176   :  { %1015 = vmatprep.mubr.msk.bf16.mxu1 %vm88_vm0, %v569_v28  ;;  %v478_v27 = vmul.f32 %v1590_v22, %v456_v7  ;;  %v547_v15 = vadd.f32 %v1667_v52, %v528_v44  ;;  %v548_v23 = vadd.f32 %v1667_v52, %v529_v17  ;;  %v516_v29 = vmul.f32 %v1097_v58, %v1525_v42 }
 0x177   :  { %1016 = vmatmul.mubr.msk.bf16.vlgmr.msra.gmra.mrb[0].mxu1 %vm88_vm0, %v570_v11  ;;  %v571_v9 = vpack.c.bf16 %v546_v53, %v545_v31  ;;  %v477_v43 = vmul.f32 %v1590_v22, %v455_v51  ;;  %v515_v41 = vmul.f32 %v1099_v54, %v1533_v47  ;;  %v549_v45 = vadd.f32 %v1667_v52, %v530_v6 }
 0x178   :  { %v500_v14 = vadd.f32 %v1581_v57, %v478_v27  ;;  %v550_v21 = vadd.f32 %v1667_v52, %v531_v38  ;;  %v532_v34 = vmul.f32 %v1665_v32, %v513_v16  ;;  %v572_v59 = vpack.c.bf16 %v548_v23, %v547_v15 }
 0x179   :  { %1019 = vmatprep.mubr.msk.bf16.mxu1 %vm88_vm0, %v571_v9  ;;  %v499_v35 = vadd.f32 %v1581_v57, %v477_v43  ;;  %v533_v42 = vmul.f32 %v1665_v32, %v514_v24  ;;  %v534_v19 = vmul.f32 %v1665_v32, %v515_v41  ;;  %v535_v3 = vmul.f32 %v1665_v32, %v516_v29 }
 0x17a   :  { %v573_v60 = vpack.c.bf16 %v550_v21, %v549_v45  ;;  %v551_v39 = vadd.f32 %v1667_v52, %v532_v34 }
 0x17b   :  { %v1101_v18 = vpop.eup %1100  ;;  %v563_v46 = vpack.c.bf16 %v500_v14, %v499_v35  ;;  %v552_v30 = vadd.f32 %v1667_v52, %v533_v42  ;;  %v553_v50 = vadd.f32 %v1667_v52, %v534_v19  ;;  %v554_v8 = vadd.f32 %v1667_v52, %v535_v3 }
 0x17c   :  { %v1103_v1 = vpop.eup %1102  ;;  %v458_v33 = vmul.f32 %v1101_v18, %v1552_v56  ;;  %v518_v55 = vmul.f32 %v1101_v18, %v1556_v40 }
 0x17d   :  { %v457_v49 = vmul.f32 %v1103_v1, %v1560_v26  ;;  %1047 = vmatprep.mubr.msk.bf16.mxu0 %vm88_vm0, %v563_v46  ;;  %v517_v25 = vmul.f32 %v1103_v1, %v1564_v48  ;;  %v575_v13 = vpack.c.bf16 %v554_v8, %v553_v50 }
 0x17e   :  { %v480_v47 = vmul.f32 %v1590_v22, %v458_v33  ;;  %v537_v12 = vmul.f32 %v1665_v32, %v518_v55 }
 0x17f   :  { %1020 = vmatmul.mubr.msk.bf16.gmra.mrb[4].mxu1 %vm88_vm0, %v572_v59  ;;  %v479_v56 = vmul.f32 %v1590_v22, %v457_v49  ;;  %v574_v22 = vpack.c.bf16 %v552_v30, %v551_v39  ;;  %v536_v0 = vmul.f32 %v1665_v32, %v517_v25 }
 0x180   :  { %1023 = vmatprep.mubr.msk.bf16.mxu1 %vm88_vm0, %v573_v60  ;;  %v502_v26 = vadd.f32 %v1581_v57, %v480_v47  ;;  %v556_v48 = vadd.f32 %v1667_v52, %v537_v12 }
 0x181   :  { %v501_v37 = vadd.f32 %v1581_v57, %v479_v56  ;;  %v555_v40 = vadd.f32 %v1667_v52, %v536_v0 }
 0x183   :  { %v564_v5 = vpack.c.bf16 %v502_v26, %v501_v37  ;;  %v576_v57 = vpack.c.bf16 %v556_v48, %v555_v40 }
 0x185   :  { %1048 = vmatmul.mubr.msk.bf16.gmra.mrb[12].mxu0 %vm88_vm0, %v564_v5 }
 0x187   :  { %1024 = vmatmul.mubr.msk.bf16.gmra.mrb[8].mxu1 %vm88_vm0, %v574_v22 }
 0x188   :  { %1027 = vmatprep.mubr.msk.bf16.mxu1 %vm88_vm0, %v575_v13 }
 0x18f   :  { %1028 = vmatmul.mubr.msk.bf16.gmra.mrb[12].mxu1 %vm88_vm0, %v576_v57 }
 0x228   :  { %v1037_v36 = vpop.f32.mrb[0].mxu0 }
 0x229   :  { %v784_v20 = vpop.f32.mrb[1].mxu0 }
 0x22a   :  { %v1038_v61 = vpop.f32.mrb[2].mxu0 }
 0x22b   :  { %v787_v4 = vpop.f32.mrb[3].mxu0 }
 0x238   :  { %v1041_v58 = vpop.f32.mrb[4].mxu0 }
 0x239   :  { %v800_v62 = vpop.f32.mrb[5].mxu0 }
 0x23a   :  { %v1042_v63 = vpop.f32.mrb[6].mxu0 }
 0x23b   :  { %v803_v32 = vpop.f32.mrb[7].mxu0 }
 0x248   :  { %v1045_v10 = vpop.f32.mrb[8].mxu0 }
 0x249   :  { %v816_v31 = vpop.f32.mrb[9].mxu0 }
 0x24a   :  { %v1017_v54 = vpop.f32.mrb[0].mxu1  ;;  %v1046_v52 = vpop.f32.mrb[10].mxu0 }
 0x24b   :  { %v793_v7 = vadd.f32 %v1037_v36, %v1017_v54  ;;  %v651_v28 = vpop.f32.mrb[1].mxu1  ;;  %v819_v11 = vpop.f32.mrb[11].mxu0 }
 0x24c   :  { %v785_v51 = vadd.f32 %v784_v20, %v651_v28  ;;  %v1018_v53 = vpop.f32.mrb[2].mxu1 }
 0x24d   :  { %v856_v44 = vadd.f32 %v1739_v2, %v793_v7  ;;  %v796_v17 = vadd.f32 %v1038_v61, %v1018_v53  ;;  %v654_v27 = vpop.f32.mrb[3].mxu1 }
 0x24e   :  { %v854_v6 = vadd.f32 %v1739_v2, %v785_v51  ;;  %v788_v38 = vadd.f32 %v787_v4, %v654_v27 }
 0x24f   :  { %872 = vst [vmem:[%s1811_s6 + $0x10] sm:$0xff] %v856_v44  ;;  %v857_v9 = vadd.f32 %v1739_v2, %v796_v17 }
 0x250   :  { %870 = vst [vmem:[%s1811_s6] sm:$0xff] %v854_v6  ;;  %v855_v43 = vadd.f32 %v1739_v2, %v788_v38 }
 0x251   :  { %873 = vst [vmem:[%s1811_s6 + $0x18] sm:$0xff] %v857_v9 }
 0x252   :  { %871 = vst [vmem:[%s1811_s6 + $0x8] sm:$0xff] %v855_v43  ;;  %v1021_v16 = vpop.f32.mrb[4].mxu1 }
 0x253   :  { %v809_v14 = vadd.f32 %v1041_v58, %v1021_v16  ;;  %v667_v24 = vpop.f32.mrb[5].mxu1 }
 0x254   :  { %v801_v35 = vadd.f32 %v800_v62, %v667_v24  ;;  %v1022_v15 = vpop.f32.mrb[6].mxu1 }
 0x255   :  { %v860_v23 = vadd.f32 %v1739_v2, %v809_v14  ;;  %v812_v29 = vadd.f32 %v1042_v63, %v1022_v15  ;;  %v670_v41 = vpop.f32.mrb[7].mxu1 }
 0x256   :  { %v858_v45 = vadd.f32 %v1739_v2, %v801_v35  ;;  %v804_v21 = vadd.f32 %v803_v32, %v670_v41 }
 0x257   :  { %876 = vst [vmem:[%s1811_s6 + $0x30] sm:$0xff] %v860_v23  ;;  %v861_v18 = vadd.f32 %v1739_v2, %v812_v29 }
 0x258   :  { %874 = vst [vmem:[%s1811_s6 + $0x20] sm:$0xff] %v858_v45  ;;  %v859_v46 = vadd.f32 %v1739_v2, %v804_v21  ;;  %v1049_v1 = vpop.f32.mrb[12].mxu0 }
 0x259   :  { %877 = vst [vmem:[%s1811_s6 + $0x38] sm:$0xff] %v861_v18  ;;  %v832_v33 = vpop.f32.mrb[13].mxu0 }
 0x25a   :  { %875 = vst [vmem:[%s1811_s6 + $0x28] sm:$0xff] %v859_v46  ;;  %v1025_v34 = vpop.f32.mrb[8].mxu1  ;;  %v1050_v49 = vpop.f32.mrb[14].mxu0 }
 0x25b   :  { %v825_v59 = vadd.f32 %v1045_v10, %v1025_v34  ;;  %v683_v42 = vpop.f32.mrb[9].mxu1  ;;  %v835_v60 = vpop.f32.mrb[15].mxu0 }
 0x25c   :  { %v817_v47 = vadd.f32 %v816_v31, %v683_v42  ;;  %v1026_v19 = vpop.f32.mrb[10].mxu1 }
 0x25d   :  { %v864_v3 = vadd.f32 %v1739_v2, %v825_v59  ;;  %v828_v56 = vadd.f32 %v1046_v52, %v1026_v19  ;;  %v686_v26 = vpop.f32.mrb[11].mxu1 }
 0x25e   :  { %v862_v39 = vadd.f32 %v1739_v2, %v817_v47  ;;  %v820_v55 = vadd.f32 %v819_v11, %v686_v26 }
 0x25f   :  { %880 = vst [vmem:[%s1811_s6 + $0x50] sm:$0xff] %v864_v3  ;;  %v865_v25 = vadd.f32 %v1739_v2, %v828_v56 }
 0x260   :  { %878 = vst [vmem:[%s1811_s6 + $0x40] sm:$0xff] %v862_v39  ;;  %v863_v37 = vadd.f32 %v1739_v2, %v820_v55 }
 0x261   :  { %881 = vst [vmem:[%s1811_s6 + $0x58] sm:$0xff] %v865_v25 }
 0x262   :  { %879 = vst [vmem:[%s1811_s6 + $0x48] sm:$0xff] %v863_v37  ;;  %v1029_v30 = vpop.f32.mrb[12].mxu1 }
 0x263   :  { %v841_v50 = vadd.f32 %v1049_v1, %v1029_v30  ;;  %v699_v8 = vpop.f32.mrb[13].mxu1 }
 0x264   :  { %v833_v5 = vadd.f32 %v832_v33, %v699_v8  ;;  %v1030_v22 = vpop.f32.mrb[14].mxu1 }
 0x265   :  { %v868_v0 = vadd.f32 %v1739_v2, %v841_v50  ;;  %v844_v12 = vadd.f32 %v1050_v49, %v1030_v22  ;;  %v702_v13 = vpop.f32.mrb[15].mxu1 }
 0x266   :  { %v866_v40 = vadd.f32 %v1739_v2, %v833_v5  ;;  %v836_v48 = vadd.f32 %v835_v60, %v702_v13 }
 0x267   :  { %884 = vst [vmem:[%s1811_s6 + $0x70] sm:$0xff] %v868_v0  ;;  %v869_v57 = vadd.f32 %v1739_v2, %v844_v12 }
 0x268   :  { %882 = vst [vmem:[%s1811_s6 + $0x60] sm:$0xff] %v866_v40  ;;  %v867_v36 = vadd.f32 %v1739_v2, %v836_v48 }
 0x269   :  { %885 = vst [vmem:[%s1811_s6 + $0x78] sm:$0xff] %v869_v57 }
 0x26a   :  { %883 = vst [vmem:[%s1811_s6 + $0x68] sm:$0xff] %v867_v36 }

// kernel: ner_forward.3
= control target key start
LH: loop header
LB: loop body
LE: loop exit
PB: predicated region body
PF: predicated region fallthrough
CT: control target
= control target key end

     0   :  { %vm143_vm0 = vcmask 130048   ;;  %vm68_vm1 = vcmask 523264   ;;  %v3211_v1 = vmov 0   ;;  %v3212_v28 = vmov 0.0   ;;  %s3214_s25 = smov 32   ;;  %s3215_s26 = smov 96   ;;  %s4116_s2 = inlined_call_operand.vmem [shape: bf16[16,256], index: 2, kind: input, shape index: {}]   ;;  %s4117_s0 = inlined_call_operand.vmem [shape: bf16[8,16,16], index: 0, kind: input, shape index: {}, may-alias: {0,1}]   ;;  %s4118_s4 = inlined_call_operand.vmem [shape: bf16[64,256], index: 4, kind: input, shape index: {}]   ;;  %s4119_s1 = inlined_call_operand.vmem [shape: bf16[8,16,16], index: 1, kind: input, shape index: {}, may-alias: {0,1}]   ;;  %s4120_s3 = inlined_call_operand.vmem [shape: f32[1,256], index: 3, kind: input, shape index: {}]   ;;  %s4121_s5 = inlined_call_operand.vmem [shape: bf16[8,16,32], index: 5, kind: output, shape index: {0}]   ;;  %s4122_s6 = inlined_call_operand.vmem [shape: bf16[8,16,32], index: 6, kind: output, shape index: {1}]  }
   0x1   :  { %v2913_v0 = vld [vmem:[%s4116_s2] ss:$8 sps:$4 sm:$0xff]   ;;  %69 = vst.msk [vmem:[#allocation4] sm:$0xff] %vm68_vm1, %v3211_v1  ;;  %v2918_v5 = vld [vmem:[%s4118_s4 + $0x4] ss:$8 sps:$4 sm:$0xff]   ;;  %v2921_v8 = vld [vmem:[%s4117_s0 + $0x10] sm:$0xff]  }
   0x2   :  { %v2914_v2 = vld [vmem:[%s4117_s0] sm:$0xff]   ;;  %2872 = vmatprep.subr.bf16.mxu0 %v2913_v0  ;;  %v2915_v3 = vld [vmem:[%s4117_s0 + $0x8] sm:$0xff]   ;;  %v2923_v10 = vld [vmem:[%s4117_s0 + $0x18] sm:$0xff]   ;;  %70 = vst.msk [vmem:[#allocation5] sm:$0xff] %vm68_vm1, %v3212_v28  ;;  %vm708_vm2 = vcmask 261120   ;;  %vm736_vm3 = vcmask 257024  }
   0x3   :  { %2873 = vmatpush3.bf16.msra.mxu0 %v2913_v0  ;;  %2874 = vmatprep.mubr.msk.bf16.mxu0 %vm143_vm0, %v2914_v2  ;;  %v3266_v4 = vld [vmem:[%s4118_s4] ss:$8 sps:$4 sm:$0xff]   ;;  %v2919_v6 = vld [vmem:[%s4116_s2 + $0x4] ss:$8 sps:$4 sm:$0xff]   ;;  %v3293_v11 = vld [vmem:[%s4118_s4 + $0x10] ss:$8 sps:$4 sm:$0xff]  }
   0x4   :  { %542 = vmatprep.subr.bf16.mxu0 %v2918_v5  ;;  %v2920_v7 = vld [vmem:[%s4119_s1] sm:$0xff]   ;;  %2890 = vmatprep.subr.bf16.mxu1 %v2919_v6  ;;  %v2922_v9 = vld [vmem:[%s4119_s1 + $0x8] sm:$0xff]   ;;  %v3298_v12 = vld [vmem:[%s4118_s4 + $0x14] ss:$8 sps:$4 sm:$0xff]   ;;  %71 = vst.msk [vmem:[#allocation5 + $0x8] sm:$0xff] %vm68_vm1, %v3212_v28 }
   0x5   :  { %2891 = vmatpush3.bf16.msra.mxu1 %v2919_v6  ;;  %2892 = vmatprep.mubr.msk.bf16.mxu1 %vm143_vm0, %v2920_v7  ;;  %v2927_v13 = vld [vmem:[%s4119_s1 + $0x10] sm:$0xff]   ;;  %v2928_v14 = vld [vmem:[%s4117_s0 + $0x20] sm:$0xff]   ;;  %v2929_v15 = vld [vmem:[%s4119_s1 + $0x18] sm:$0xff]  }
   0x6   :  { %2875 = vmatmul.mubr.msk.bf16.vlgmr.msra.gmra.mrb[0].mxu0 %vm143_vm0, %v2915_v3  ;;  %804 = vmatprep.subr.bf16.mxu1 %v2918_v5  ;;  %v3320_v16 = vld [vmem:[%s4118_s4 + $0x20] ss:$8 sps:$4 sm:$0xff]   ;;  %v3325_v17 = vld [vmem:[%s4118_s4 + $0x24] ss:$8 sps:$4 sm:$0xff]   ;;  %v2935_v20 = vld [vmem:[%s4117_s0 + $0x30] sm:$0xff]  }
   0x7   :  { %543 = vmatpush1.bf16.msra.mxu0 %v3266_v4  ;;  %2878 = vmatprep.mubr.msk.bf16.mxu0 %vm143_vm0, %v2921_v8  ;;  %v2934_v18 = vld [vmem:[%s4119_s1 + $0x20] sm:$0xff]   ;;  %v2930_v19 = vld [vmem:[%s4117_s0 + $0x28] sm:$0xff]   ;;  %v3345_v21 = vld [vmem:[%s4118_s4 + $0x30] ss:$8 sps:$4 sm:$0xff]  }
   0x8   :  { %2893 = vmatmul.mubr.msk.bf16.vlgmr.msra.gmra.mrb[0].mxu1 %vm143_vm0, %v2922_v9  ;;  %544 = vmatprep.subr.bf16.mxu0 %v3298_v12  ;;  %v3351_v22 = vld [vmem:[%s4118_s4 + $0x34] ss:$8 sps:$4 sm:$0xff]   ;;  %v2936_v23 = vld [vmem:[%s4119_s1 + $0x28] sm:$0xff]   ;;  %v489_v27 = vld [vmem:[#allocation4] sm:$0xff] }
   0x9   :  { %805 = vmatpush1.bf16.msra.mxu1 %v3266_v4  ;;  %2896 = vmatprep.mubr.msk.bf16.mxu1 %vm143_vm0, %v2927_v13  ;;  %v2941_v24 = vld [vmem:[%s4119_s1 + $0x30] sm:$0xff]   ;;  %v2937_v25 = vld [vmem:[%s4117_s0 + $0x38] sm:$0xff]   ;;  %v3391_v29 = vld [vmem:[%s4120_s3] ss:$0 sm:$0xff] }
   0xa   :  { %806 = vmatprep.subr.bf16.mxu1 %v3298_v12  ;;  %v2942_v26 = vld [vmem:[%s4119_s1 + $0x38] sm:$0xff]   ;;  %v2640_v36 = vld [vmem:[%s4120_s3 + $0x1] ss:$0 sm:$0xff]  ;;  %s3213_s3 = smov 64  }
   0xb   :  { %545 = vmatpush1.bf16.msra.mxu0 %v3293_v11 }
   0xc   :  { %546 = vmatprep.subr.bf16.mxu0 %v3325_v17 }
   0xd   :  { %807 = vmatpush1.bf16.msra.mxu1 %v3293_v11 }
   0xe   :  { %2879 = vmatmul.mubr.msk.bf16.gmra.mrb[4].mxu0 %vm143_vm0, %v2923_v10  ;;  %808 = vmatprep.subr.bf16.mxu1 %v3325_v17 }
   0xf   :  { %2882 = vmatprep.mubr.msk.bf16.mxu0 %vm143_vm0, %v2928_v14  ;;  %547 = vmatpush1.bf16.msra.mxu0 %v3320_v16 }
  0x10   :  { %2897 = vmatmul.mubr.msk.bf16.gmra.mrb[4].mxu1 %vm143_vm0, %v2929_v15  ;;  %548 = vmatprep.subr.bf16.mxu0 %v3351_v22 }
  0x11   :  { %2900 = vmatprep.mubr.msk.bf16.mxu1 %vm143_vm0, %v2934_v18  ;;  %809 = vmatpush1.bf16.msra.mxu1 %v3320_v16 }
  0x12   :  { %810 = vmatprep.subr.bf16.mxu1 %v3351_v22 }
  0x13   :  { %549 = vmatpush1.bf16.msra.mxu0 %v3345_v21 }
  0x14   :  { %1066 = vmatprep.subr.bf16.mxu0 %v2918_v5 }
  0x15   :  { %811 = vmatpush1.bf16.msra.mxu1 %v3345_v21 }
  0x16   :  { %2883 = vmatmul.mubr.msk.bf16.gmra.mrb[8].mxu0 %vm143_vm0, %v2930_v19  ;;  %1328 = vmatprep.subr.bf16.mxu1 %v2918_v5 }
  0x17   :  { %2886 = vmatprep.mubr.msk.bf16.mxu0 %vm143_vm0, %v2935_v20 }
  0x18   :  { %2901 = vmatmul.mubr.msk.bf16.gmra.mrb[8].mxu1 %vm143_vm0, %v2936_v23 }
  0x19   :  { %2904 = vmatprep.mubr.msk.bf16.mxu1 %vm143_vm0, %v2941_v24 }
  0x1e   :  { %2887 = vmatmul.mubr.msk.bf16.gmra.mrb[12].mxu0 %vm143_vm0, %v2937_v25 }
  0x1f   :  { %574 = vmatprep.mubr.bf16.mxu0 %v3211_v1 }
  0x20   :  { %2905 = vmatmul.mubr.msk.bf16.gmra.mrb[12].mxu1 %vm143_vm0, %v2942_v26 }
  0x21   :  { %836 = vmatprep.mubr.bf16.mxu1 %v3211_v1 }
  0x26   :  { %2666 = vmatmul.mubr.msk.bf16.vlgmr.msra.gmra.mrb[16].mxu0 %vm68_vm1, %v489_v27 }
  0x27   :  { %1067 = vmatpush1.bf16.msra.mxu0 %v3266_v4  ;;  %1098 = vmatprep.mubr.bf16.mxu0 %v3211_v1 }
  0x28   :  { %1068 = vmatprep.subr.bf16.mxu0 %v3298_v12 }
  0x2b   :  { %1069 = vmatpush1.bf16.msra.mxu0 %v3293_v11 }
  0x2c   :  { %1070 = vmatprep.subr.bf16.mxu0 %v3325_v17 }
  0x2f   :  { %1071 = vmatpush1.bf16.msra.mxu0 %v3320_v16 }
  0x30   :  { %1072 = vmatprep.subr.bf16.mxu0 %v3351_v22 }
  0x33   :  { %1073 = vmatpush1.bf16.msra.mxu0 %v3345_v21 }
  0xd9   :  { %v2876_v30 = vpop.f32.mrb[0].mxu0 }
  0xda   :  { %v3394_v31 = vadd.f32 %v2876_v30, %v3391_v29  ;;  %v202_v32 = vpop.f32.mrb[1].mxu0 }
  0xdb   :  { %v2877_v33 = vpop.f32.mrb[2].mxu0  ;;  %v2894_v37 = vpop.f32.mrb[0].mxu1 }
  0xdc   :  { %v3397_v34 = vadd.f32 %v2877_v33, %v3391_v29  ;;  %v205_v35 = vpop.f32.mrb[3].mxu0  ;;  %v3402_v38 = vadd.f32 %v2894_v37, %v2640_v36  ;;  %v410_v39 = vpop.f32.mrb[1].mxu1 }
  0xdd   :  { %v3404_v40 = vadd.f32 %v2640_v36, %v410_v39  ;;  %v2895_v41 = vpop.f32.mrb[2].mxu1  ;;  %v203_v39 = vadd.f32 %v3391_v29, %v202_v32 }
  0xde   :  { %v3406_v43 = vadd.f32 %v2895_v41, %v2640_v36  ;;  %v413_v44 = vpop.f32.mrb[3].mxu1 }
  0xdf   :  { %v3411_v47 = vadd.f32 %v2640_v36, %v413_v44 }
  0xe1   :  { %v2880_v42 = vpop.f32.mrb[4].mxu0 }
  0xe2   :  { %v3409_v45 = vadd.f32 %v2880_v42, %v3391_v29  ;;  %v218_v46 = vpop.f32.mrb[5].mxu0 }
  0xe3   :  { %v3414_v48 = vadd.f32 %v3391_v29, %v218_v46  ;;  %v2881_v49 = vpop.f32.mrb[6].mxu0  ;;  %v2898_v53 = vpop.f32.mrb[4].mxu1 }
  0xe4   :  { %v3417_v50 = vadd.f32 %v2881_v49, %v3391_v29  ;;  %v221_v51 = vpop.f32.mrb[7].mxu0  ;;  %v3422_v54 = vadd.f32 %v2898_v53, %v2640_v36  ;;  %v426_v55 = vpop.f32.mrb[5].mxu1 }
  0xe5   :  { %v3420_v52 = vadd.f32 %v3391_v29, %v221_v51  ;;  %v3424_v56 = vadd.f32 %v2640_v36, %v426_v55  ;;  %v2899_v57 = vpop.f32.mrb[6].mxu1  ;;  %v206_v51 = vadd.f32 %v3391_v29, %v205_v35 }
  0xe6   :  { %v3426_v59 = vadd.f32 %v2899_v57, %v2640_v36  ;;  %v429_v60 = vpop.f32.mrb[7].mxu1 }
  0xe7   :  { %v3431_v63 = vadd.f32 %v2640_v36, %v429_v60 }
  0xe9   :  { %v2884_v58 = vpop.f32.mrb[8].mxu0 }
  0xea   :  { %v3429_v61 = vadd.f32 %v2884_v58, %v3391_v29  ;;  %v234_v62 = vpop.f32.mrb[9].mxu0 }
  0xeb   :  { %v3434_v0 = vadd.f32 %v3391_v29, %v234_v62  ;;  %v2885_v2 = vpop.f32.mrb[10].mxu0  ;;  %v2902_v7 = vpop.f32.mrb[8].mxu1 }
  0xec   :  { %v3437_v3 = vadd.f32 %v2885_v2, %v3391_v29  ;;  %v237_v5 = vpop.f32.mrb[11].mxu0  ;;  %v3442_v8 = vadd.f32 %v2902_v7, %v2640_v36  ;;  %v442_v9 = vpop.f32.mrb[9].mxu1 }
  0xed   :  { %v3440_v6 = vadd.f32 %v3391_v29, %v237_v5  ;;  %v3444_v10 = vadd.f32 %v2640_v36, %v442_v9  ;;  %v2903_v13 = vpop.f32.mrb[10].mxu1  ;;  %v595_v9 = vld [vmem:[#allocation5 + $0x8] sm:$0xff] }
  0xee   :  { %v3446_v15 = vadd.f32 %v2903_v13, %v2640_v36  ;;  %v445_v18 = vpop.f32.mrb[11].mxu1 }
  0xef   :  { %v3451_v23 = vadd.f32 %v2640_v36, %v445_v18 }
  0xf1   :  { %v2888_v14 = vpop.f32.mrb[12].mxu0 }
  0xf2   :  { %v3449_v19 = vadd.f32 %v2888_v14, %v3391_v29  ;;  %v250_v20 = vpop.f32.mrb[13].mxu0 }
  0xf3   :  { %v3454_v24 = vadd.f32 %v3391_v29, %v250_v20  ;;  %v2889_v25 = vpop.f32.mrb[14].mxu0  ;;  %v2906_v30 = vpop.f32.mrb[12].mxu1 }
  0xf4   :  { %v3457_v26 = vadd.f32 %v2889_v25, %v3391_v29  ;;  %v253_v27 = vpop.f32.mrb[15].mxu0  ;;  %v467_v33 = vadd.f32 %v2906_v30, %v2640_v36  ;;  %v458_v37 = vpop.f32.mrb[13].mxu1 }
  0xf5   :  { %v3460_v28 = vadd.f32 %v3391_v29, %v253_v27  ;;  %v3463_v41 = vadd.f32 %v2640_v36, %v458_v37  ;;  %v2907_v42 = vpop.f32.mrb[14].mxu1 }
  0xf6   :  { %v470_v46 = vadd.f32 %v2907_v42, %v2640_v36  ;;  %v461_v49 = vpop.f32.mrb[15].mxu1 }
  0xf7   :  { %v3466_v57 = vadd.f32 %v2640_v36, %v461_v49  ;;  %v594_v36 = vld [vmem:[#allocation5] sm:$0xff] }
  0xf9   :  { %v576_v44 = vpop.f32.mrb[16].mxu0 }
  0xfa   :  { %v587_v53 = vadd.f32 %v576_v44, %v203_v39  ;;  %v578_v55 = vpop.f32.mrb[17].mxu0 }
  0xfb   :  { %v592_v58 = vadd.f32 %v578_v55, %v467_v33  ;;  %v580_v60 = vpop.f32.mrb[18].mxu0 }
  0xfc   :  { %2955 = vtanh.f32 %v587_v53  ;;  %v588_v62 = vadd.f32 %v580_v60, %v206_v51  ;;  %v582_v2 = vpop.f32.mrb[19].mxu0  ;;  %v2667_v13 = vmul.f32 -1.442695, %v587_v53 }
  0xfd   :  { %2957 = vtanh.f32 %v592_v58  ;;  %v593_v5 = vadd.f32 %v582_v2, %v470_v46  ;;  %v2669_v14 = vmul.f32 -1.442695, %v592_v58 }
  0xfe   :  { %2959 = vtanh.f32 %v588_v62  ;;  %v2668_v18 = vmul.f32 -1.442695, %v588_v62 }
  0xff   :  { %2961 = vtanh.f32 %v593_v5  ;;  %v2670_v20 = vmul.f32 -1.442695, %v593_v5 }
 0x100   :  { %2963 = vpow2.f32 %v2667_v13 }
 0x101   :  { %2965 = vpow2.f32 %v2669_v14 }
 0x102   :  { %2967 = vpow2.f32 %v2668_v18 }
 0x103   :  { %2969 = vpow2.f32 %v2670_v20 }
 0x106   :  { %v2956_v32 = vpop.eup %2955 }
 0x107   :  { %v2958_v7 = vpop.eup %2957  ;;  %622 = vrot.lane.b32.xlu0 %v2956_v32, %s3213_s3 }
 0x108   :  { %670 = vrot.lane.b32.xlu1 %v2958_v7, %s3213_s3  ;;  %v2960_v29 = vpop.eup %2959 }
 0x109   :  { %v2962_v35 = vpop.eup %2961 }
 0x10a   :  { %v2964_v25 = vpop.eup %2963 }
 0x10b   :  { %624 = vrot.lane.b32.xlu0 %v2960_v29, %s3213_s3  ;;  %v602_v27 = vadd.f32 1.0, %v2964_v25  ;;  %v2966_v30 = vpop.eup %2965 }
 0x10c   :  { %672 = vrot.lane.b32.xlu1 %v2962_v35, %s3213_s3  ;;  %v2968_v33 = vpop.eup %2967  ;;  %v658_v37 = vadd.f32 1.0, %v2966_v30 }
 0x10d   :  { %2971 = vrcp.f32 %v602_v27  ;;  %v603_v39 = vadd.f32 1.0, %v2968_v33  ;;  %v2970_v42 = vpop.eup %2969 }
 0x10e   :  { %2973 = vrcp.f32 %v658_v37  ;;  %v659_v44 = vadd.f32 1.0, %v2970_v42 }
 0x10f   :  { %612 = vrot.lane.b32.xlu0 %v594_v36, %s3214_s25  ;;  %2975 = vrcp.f32 %v603_v39 }
 0x110   :  { %614 = vrot.lane.b32.xlu1 %v595_v9, %s3214_s25  ;;  %2977 = vrcp.f32 %v659_v44 }
 0x117   :  { %v2972_v46 = vpop.eup %2971 }
 0x118   :  { %v2974_v55 = vpop.eup %2973 }
 0x119   :  { %v2976_v58 = vpop.eup %2975  ;;  %v666_v20 = vmul.f32 %v2974_v55, %v594_v36 }
 0x11a   :  { %v2978_v32 = vpop.eup %2977 }
 0x11b   :  { %v667_v39 = vmul.f32 %v2978_v32, %v595_v9 }
 0x179   :  { %v623_v49 = vpop.permute.xlu0 %622 }
 0x17a   :  { %v628_v51 = vmul.f32 %v2972_v46, %v623_v49  ;;  %v671_v53 = vpop.permute.xlu1 %670 }
 0x17b   :  { %v676_v60 = vmul.f32 %v2974_v55, %v671_v53 }
 0x17c   :  { %632 = vrot.lane.b32.xlu0 %v628_v51, %s3214_s25 }
 0x17d   :  { %v625_v62 = vpop.permute.xlu0 %624 }
 0x17e   :  { %v629_v2 = vmul.f32 %v2976_v58, %v625_v62  ;;  %v673_v5 = vpop.permute.xlu1 %672 }
 0x17f   :  { %v677_v7 = vmul.f32 %v2978_v32, %v673_v5 }
 0x180   :  { %680 = vrot.lane.b32.xlu0 %v676_v60, %s3214_s25  ;;  %634 = vrot.lane.b32.xlu1 %v629_v2, %s3214_s25 }
 0x181   :  { %v613_v29 = vpop.permute.xlu0 %612 }
 0x182   :  { %v618_v35 = vmul.f32 %v2972_v46, %v613_v29  ;;  %v615_v14 = vpop.permute.xlu1 %614 }
 0x183   :  { %v619_v25 = vmul.f32 %v2976_v58, %v615_v14 }
 0x184   :  { %682 = vrot.lane.b32.xlu1 %v677_v7, %s3214_s25 }
 0x1ee   :  { %v633_v13 = vpop.permute.xlu0 %632 }
 0x1ef   :  { %v638_v18 = vadd.f32 %v633_v13, %v618_v35 }
 0x1f1   :  { %2979 = vtanh.f32 %v638_v18 }
 0x1f2   :  { %v681_v27 = vpop.permute.xlu0 %680  ;;  %v635_v30 = vpop.permute.xlu1 %634 }
 0x1f3   :  { %v686_v33 = vadd.f32 %v681_v27, %v666_v20  ;;  %v639_v37 = vadd.f32 %v635_v30, %v619_v25 }
 0x1f5   :  { %2981 = vtanh.f32 %v686_v33 }
 0x1f6   :  { %2983 = vtanh.f32 %v639_v37  ;;  %v683_v42 = vpop.permute.xlu1 %682 }
 0x1f7   :  { %v687_v44 = vadd.f32 %v683_v42, %v667_v39 }
 0x1f9   :  { %2985 = vtanh.f32 %v687_v44 }
 0x1fb   :  { %v2980_v49 = vpop.eup %2979 }
 0x1fc   :  { %644 = vrot.lane.b32.xlu0 %v2980_v49, %s3213_s3 }
 0x1ff   :  { %v2982_v51 = vpop.eup %2981 }
 0x200   :  { %v2984_v53 = vpop.eup %2983  ;;  %692 = vrot.lane.b32.xlu0 %v2982_v51, %s3213_s3 }
 0x201   :  { %646 = vrot.lane.b32.xlu1 %v2984_v53, %s3213_s3 }
 0x203   :  { %v2986_v36 = vpop.eup %2985 }
 0x205   :  { %694 = vrot.lane.b32.xlu1 %v2986_v36, %s3213_s3 }
 0x26e   :  { %v645_v60 = vpop.permute.xlu0 %644 }
 0x26f   :  { %v3482_v2 = vmul.f32 %v2972_v46, %v645_v60 }
 0x272   :  { %v693_v5 = vpop.permute.xlu0 %692 }
 0x273   :  { %v647_v62 = vpop.permute.xlu1 %646  ;;  %v3488_v35 = vmul.f32 %v2974_v55, %v693_v5 }
 0x274   :  { %v3484_v9 = vmul.f32 %v2976_v58, %v647_v62 }
 0x276   :  { %v713_v7 = vpack.c.bf16 %v3484_v9, %v3482_v2 }
 0x277   :  { %v695_v29 = vpop.permute.xlu1 %694 }
 0x278   :  { %v3490_v13 = vmul.f32 %v2978_v32, %v695_v29  ;;  %716 = vrot.lane.b32.xlu0 %v713_v7, %s3214_s25 }
 0x27a   :  { %v714_v14 = vpack.c.bf16 %v3490_v13, %v3488_v35 }
 0x27c   :  { %702 = vrot.lane.b32.xlu0 %v638_v18, %s3215_s26  ;;  %719 = vrot.lane.b32.xlu1 %v714_v14, %s3213_s3 }
 0x280   :  { %704 = vrot.lane.b32.xlu1 %v639_v37, %s3215_s26 }
 0x2ea   :  { %v717_v46 = vpop.permute.xlu0 %716 }
 0x2ee   :  { %v720_v58 = vpop.permute.xlu1 %719  ;;  %v703_v20 = vpop.permute.xlu0 %702 }
 0x2ef   :  { %v723_v55 = vsel %vm708_vm2, %v717_v46, %v720_v58  ;;  %v709_v32 = vsel %vm708_vm2, %v703_v20, %v686_v33 }
 0x2f0   :  { %725 = vst.msk [vmem:[#allocation4] sm:$0xff] %vm68_vm1, %v723_v55  ;;  %711 = vst.msk [vmem:[#allocation5] sm:$0xff] %vm68_vm1, %v709_v32 }
 0x2f2   :  { %v705_v25 = vpop.permute.xlu1 %704 }
 0x2f3   :  { %v710_v27 = vsel %vm708_vm2, %v705_v25, %v687_v44 }
 0x2f4   :  { %712 = vst.msk [vmem:[#allocation5 + $0x8] sm:$0xff] %vm68_vm1, %v710_v27 }
 0x2f7   :  { %v752_v18 = vld [vmem:[#allocation4] sm:$0xff] }
 0x2f8   :  { %2685 = vmatmul.mubr.msk.bf16.vlgmr.msra.gmra.mrb[16].mxu1 %vm68_vm1, %v752_v18 }
 0x2f9   :  { %1329 = vmatpush1.bf16.msra.mxu1 %v3266_v4  ;;  %1360 = vmatprep.mubr.bf16.mxu1 %v3211_v1 }
 0x2fa   :  { %1330 = vmatprep.subr.bf16.mxu1 %v3298_v12 }
 0x2fd   :  { %1331 = vmatpush1.bf16.msra.mxu1 %v3293_v11 }
 0x2fe   :  { %1332 = vmatprep.subr.bf16.mxu1 %v3325_v17 }
 0x301   :  { %1333 = vmatpush1.bf16.msra.mxu1 %v3320_v16 }
 0x302   :  { %1334 = vmatprep.subr.bf16.mxu1 %v3351_v22  ;;  %v857_v22 = vld [vmem:[#allocation5] sm:$0xff] }
 0x305   :  { %1335 = vmatpush1.bf16.msra.mxu1 %v3345_v21 }
 0x3cb   :  { %v838_v30 = vpop.f32.mrb[16].mxu1 }
 0x3cc   :  { %v850_v33 = vadd.f32 %v838_v30, %v3394_v31  ;;  %v840_v37 = vpop.f32.mrb[17].mxu1 }
 0x3cd   :  { %v855_v4 = vadd.f32 %v840_v37, %v3463_v41  ;;  %v842_v39 = vpop.f32.mrb[18].mxu1 }
 0x3ce   :  { %2987 = vtanh.f32 %v850_v33  ;;  %v851_v12 = vadd.f32 %v842_v39, %v3397_v34  ;;  %v844_v42 = vpop.f32.mrb[19].mxu1  ;;  %v858_v34 = vld [vmem:[#allocation5 + $0x8] sm:$0xff]  ;;  %v2686_v41 = vmul.f32 -1.442695, %v850_v33 }
 0x3cf   :  { %v856_v11 = vadd.f32 %v844_v42, %v3466_v57  ;;  %2989 = vtanh.f32 %v855_v4  ;;  %v2688_v57 = vmul.f32 -1.442695, %v855_v4 }
 0x3d0   :  { %2991 = vtanh.f32 %v851_v12  ;;  %v2687_v44 = vmul.f32 -1.442695, %v851_v12 }
 0x3d1   :  { %2993 = vtanh.f32 %v856_v11  ;;  %v2689_v49 = vmul.f32 -1.442695, %v856_v11 }
 0x3d2   :  { %2995 = vpow2.f32 %v2686_v41 }
 0x3d3   :  { %2997 = vpow2.f32 %v2688_v57 }
 0x3d4   :  { %2999 = vpow2.f32 %v2687_v44 }
 0x3d5   :  { %3001 = vpow2.f32 %v2689_v49 }
 0x3d8   :  { %v2988_v16 = vpop.eup %2987 }
 0x3d9   :  { %885 = vrot.lane.b32.xlu0 %v2988_v16, %s3213_s3  ;;  %v2990_v17 = vpop.eup %2989 }
 0x3da   :  { %v2992_v21 = vpop.eup %2991 }
 0x3db   :  { %887 = vrot.lane.b32.xlu1 %v2992_v21, %s3213_s3  ;;  %v2994_v31 = vpop.eup %2993 }
 0x3dc   :  { %v2996_v51 = vpop.eup %2995 }
 0x3dd   :  { %933 = vrot.lane.b32.xlu0 %v2990_v17, %s3213_s3  ;;  %v865_v53 = vadd.f32 1.0, %v2996_v51  ;;  %v2998_v36 = vpop.eup %2997 }
 0x3de   :  { %v3000_v60 = vpop.eup %2999  ;;  %v921_v62 = vadd.f32 1.0, %v2998_v36 }
 0x3df   :  { %935 = vrot.lane.b32.xlu1 %v2994_v31, %s3213_s3  ;;  %3003 = vrcp.f32 %v865_v53  ;;  %v866_v5 = vadd.f32 1.0, %v3000_v60  ;;  %v3002_v7 = vpop.eup %3001 }
 0x3e0   :  { %3005 = vrcp.f32 %v921_v62  ;;  %v922_v29 = vadd.f32 1.0, %v3002_v7 }
 0x3e1   :  { %875 = vrot.lane.b32.xlu0 %v857_v22, %s3214_s25  ;;  %3007 = vrcp.f32 %v866_v5 }
 0x3e2   :  { %3009 = vrcp.f32 %v922_v29 }
 0x3e3   :  { %877 = vrot.lane.b32.xlu1 %v858_v34, %s3214_s25 }
 0x3e9   :  { %v3004_v14 = vpop.eup %3003 }
 0x3ea   :  { %v3006_v20 = vpop.eup %3005 }
 0x3eb   :  { %v3008_v32 = vpop.eup %3007  ;;  %v929_v16 = vmul.f32 %v3006_v20, %v857_v22 }
 0x3ec   :  { %v3010_v30 = vpop.eup %3009 }
 0x3ed   :  { %v930_v44 = vmul.f32 %v3010_v30, %v858_v34 }
 0x44b   :  { %v886_v46 = vpop.permute.xlu0 %885 }
 0x44c   :  { %v891_v58 = vmul.f32 %v3004_v14, %v886_v46 }
 0x44d   :  { %v888_v25 = vpop.permute.xlu1 %887 }
 0x44e   :  { %895 = vrot.lane.b32.xlu0 %v891_v58, %s3214_s25  ;;  %v892_v18 = vmul.f32 %v3008_v32, %v888_v25 }
 0x44f   :  { %v934_v55 = vpop.permute.xlu0 %933 }
 0x450   :  { %v939_v27 = vmul.f32 %v3006_v20, %v934_v55  ;;  %897 = vrot.lane.b32.xlu1 %v892_v18, %s3214_s25 }
 0x451   :  { %v936_v33 = vpop.permute.xlu1 %935 }
 0x452   :  { %943 = vrot.lane.b32.xlu0 %v939_v27, %s3214_s25  ;;  %v940_v37 = vmul.f32 %v3010_v30, %v936_v33 }
 0x453   :  { %v876_v4 = vpop.permute.xlu0 %875 }
 0x454   :  { %945 = vrot.lane.b32.xlu1 %v940_v37, %s3214_s25  ;;  %v881_v39 = vmul.f32 %v3004_v14, %v876_v4 }
 0x455   :  { %v878_v42 = vpop.permute.xlu1 %877 }
 0x456   :  { %v882_v17 = vmul.f32 %v3008_v32, %v878_v42 }
 0x4c0   :  { %v896_v12 = vpop.permute.xlu0 %895 }
 0x4c1   :  { %v901_v11 = vadd.f32 %v896_v12, %v881_v39 }
 0x4c2   :  { %v898_v31 = vpop.permute.xlu1 %897 }
 0x4c3   :  { %3011 = vtanh.f32 %v901_v11  ;;  %v902_v57 = vadd.f32 %v898_v31, %v882_v17 }
 0x4c4   :  { %v944_v21 = vpop.permute.xlu0 %943 }
 0x4c5   :  { %v949_v41 = vadd.f32 %v944_v21, %v929_v16 }
 0x4c6   :  { %v946_v49 = vpop.permute.xlu1 %945 }
 0x4c7   :  { %3013 = vtanh.f32 %v949_v41  ;;  %v950_v51 = vadd.f32 %v946_v49, %v930_v44 }
 0x4c8   :  { %3015 = vtanh.f32 %v902_v57 }
 0x4c9   :  { %3017 = vtanh.f32 %v950_v51 }
 0x4cd   :  { %v3012_v53 = vpop.eup %3011 }
 0x4ce   :  { %907 = vrot.lane.b32.xlu0 %v3012_v53, %s3213_s3 }
 0x4d1   :  { %v3014_v36 = vpop.eup %3013 }
 0x4d2   :  { %v3016_v60 = vpop.eup %3015  ;;  %955 = vrot.lane.b32.xlu0 %v3014_v36, %s3213_s3 }
 0x4d3   :  { %909 = vrot.lane.b32.xlu1 %v3016_v60, %s3213_s3  ;;  %v3018_v22 = vpop.eup %3017 }
 0x4d7   :  { %957 = vrot.lane.b32.xlu1 %v3018_v22, %s3213_s3 }
 0x540   :  { %v908_v62 = vpop.permute.xlu0 %907 }
 0x541   :  { %v3531_v7 = vmul.f32 %v3004_v14, %v908_v62 }
 0x544   :  { %v956_v29 = vpop.permute.xlu0 %955 }
 0x545   :  { %v910_v5 = vpop.permute.xlu1 %909  ;;  %v3537_v55 = vmul.f32 %v3006_v20, %v956_v29 }
 0x546   :  { %v3533_v34 = vmul.f32 %v3008_v32, %v910_v5 }
 0x548   :  { %v975_v46 = vpack.c.bf16 %v3533_v34, %v3531_v7 }
 0x549   :  { %v958_v58 = vpop.permute.xlu1 %957 }
 0x54a   :  { %v3539_v25 = vmul.f32 %v3010_v30, %v958_v58  ;;  %978 = vrot.lane.b32.xlu0 %v975_v46, %s3214_s25 }
 0x54c   :  { %v976_v27 = vpack.c.bf16 %v3539_v25, %v3537_v55 }
 0x54e   :  { %965 = vrot.lane.b32.xlu0 %v901_v11, %s3215_s26  ;;  %981 = vrot.lane.b32.xlu1 %v976_v27, %s3213_s3 }
 0x552   :  { %967 = vrot.lane.b32.xlu1 %v902_v57, %s3215_s26 }
 0x5bc   :  { %v979_v14 = vpop.permute.xlu0 %978 }
 0x5c0   :  { %v982_v32 = vpop.permute.xlu1 %981  ;;  %v966_v18 = vpop.permute.xlu0 %965 }
 0x5c1   :  { %v985_v33 = vsel %vm708_vm2, %v979_v14, %v982_v32  ;;  %v971_v20 = vsel %vm708_vm2, %v966_v18, %v949_v41 }
 0x5c2   :  { %987 = vst.msk [vmem:[#allocation4] sm:$0xff] %vm68_vm1, %v985_v33  ;;  %973 = vst.msk [vmem:[#allocation5] sm:$0xff] %vm68_vm1, %v971_v20 }
 0x5c4   :  { %v968_v30 = vpop.permute.xlu1 %967 }
 0x5c5   :  { %v972_v37 = vsel %vm708_vm2, %v968_v30, %v950_v51 }
 0x5c6   :  { %974 = vst.msk [vmem:[#allocation5 + $0x8] sm:$0xff] %vm68_vm1, %v972_v37 }
 0x5c9   :  { %v1014_v4 = vld [vmem:[#allocation4] sm:$0xff] }
 0x5ca   :  { %2706 = vmatmul.mubr.msk.bf16.vlgmr.msra.gmra.mrb[20].mxu0 %vm68_vm1, %v1014_v4 }
 0x5cb   :  { %1622 = vmatprep.mubr.bf16.mxu0 %v3211_v1 }
 0x69d   :  { %v1100_v39 = vpop.f32.mrb[20].mxu0 }
 0x69e   :  { %v1112_v12 = vadd.f32 %v1100_v39, %v3414_v48  ;;  %v1102_v42 = vpop.f32.mrb[21].mxu0  ;;  %v1119_v48 = vld [vmem:[#allocation5] sm:$0xff] }
 0x69f   :  { %v1117_v11 = vadd.f32 %v1102_v42, %v3442_v8  ;;  %v1104_v16 = vpop.f32.mrb[22].mxu0 }
 0x6a0   :  { %3019 = vtanh.f32 %v1112_v12  ;;  %v1113_v17 = vadd.f32 %v1104_v16, %v3420_v52  ;;  %v1106_v21 = vpop.f32.mrb[23].mxu0  ;;  %v1120_v52 = vld [vmem:[#allocation5 + $0x8] sm:$0xff] }
 0x6a1   :  { %v1118_v31 = vadd.f32 %v1106_v21, %v3446_v15  ;;  %3021 = vtanh.f32 %v1117_v11  ;;  %v2707_v15 = vmul.f32 -1.442695, %v1112_v12  ;;  %v2709_v49 = vmul.f32 -1.442695, %v1117_v11 }
 0x6a2   :  { %3023 = vtanh.f32 %v1113_v17  ;;  %v2708_v51 = vmul.f32 -1.442695, %v1113_v17 }
 0x6a3   :  { %3025 = vtanh.f32 %v1118_v31  ;;  %v2710_v53 = vmul.f32 -1.442695, %v1118_v31 }
 0x6a4   :  { %3027 = vpow2.f32 %v2707_v15 }
 0x6a5   :  { %3029 = vpow2.f32 %v2709_v49 }
 0x6a6   :  { %3031 = vpow2.f32 %v2708_v51 }
 0x6a7   :  { %3033 = vpow2.f32 %v2710_v53 }
 0x6aa   :  { %v3020_v41 = vpop.eup %3019 }
 0x6ab   :  { %1147 = vrot.lane.b32.xlu0 %v3020_v41, %s3213_s3  ;;  %v3022_v57 = vpop.eup %3021 }
 0x6ac   :  { %v3024_v44 = vpop.eup %3023 }
 0x6ad   :  { %1149 = vrot.lane.b32.xlu1 %v3024_v44, %s3213_s3  ;;  %v3026_v8 = vpop.eup %3025 }
 0x6ae   :  { %v3028_v36 = vpop.eup %3027 }
 0x6af   :  { %1195 = vrot.lane.b32.xlu0 %v3022_v57, %s3213_s3  ;;  %v1127_v60 = vadd.f32 1.0, %v3028_v36  ;;  %v3030_v22 = vpop.eup %3029 }
 0x6b0   :  { %v3032_v62 = vpop.eup %3031  ;;  %v1183_v5 = vadd.f32 1.0, %v3030_v22 }
 0x6b1   :  { %1197 = vrot.lane.b32.xlu1 %v3026_v8, %s3213_s3  ;;  %3035 = vrcp.f32 %v1127_v60  ;;  %v1128_v29 = vadd.f32 1.0, %v3032_v62  ;;  %v3034_v46 = vpop.eup %3033 }
 0x6b2   :  { %3037 = vrcp.f32 %v1183_v5  ;;  %v1184_v58 = vadd.f32 1.0, %v3034_v46 }
 0x6b3   :  { %1137 = vrot.lane.b32.xlu0 %v1119_v48, %s3214_s25  ;;  %3039 = vrcp.f32 %v1128_v29 }
 0x6b4   :  { %3041 = vrcp.f32 %v1184_v58 }
 0x6b5   :  { %1139 = vrot.lane.b32.xlu1 %v1120_v52, %s3214_s25 }
 0x6bb   :  { %v3036_v27 = vpop.eup %3035 }
 0x6bc   :  { %v3038_v18 = vpop.eup %3037 }
 0x6bd   :  { %v3040_v20 = vpop.eup %3039  ;;  %v1191_v41 = vmul.f32 %v3038_v18, %v1119_v48 }
 0x6be   :  { %v3042_v39 = vpop.eup %3041 }
 0x6bf   :  { %v1192_v51 = vmul.f32 %v3042_v39, %v1120_v52 }
 0x71d   :  { %v1148_v14 = vpop.permute.xlu0 %1147 }
 0x71e   :  { %v1153_v32 = vmul.f32 %v3036_v27, %v1148_v14 }
 0x71f   :  { %v1150_v30 = vpop.permute.xlu1 %1149 }
 0x720   :  { %1157 = vrot.lane.b32.xlu0 %v1153_v32, %s3214_s25  ;;  %v1154_v4 = vmul.f32 %v3040_v20, %v1150_v30 }
 0x721   :  { %v1196_v33 = vpop.permute.xlu0 %1195 }
 0x722   :  { %v1201_v37 = vmul.f32 %v3038_v18, %v1196_v33  ;;  %1159 = vrot.lane.b32.xlu1 %v1154_v4, %s3214_s25 }
 0x723   :  { %v1198_v12 = vpop.permute.xlu1 %1197 }
 0x724   :  { %1205 = vrot.lane.b32.xlu0 %v1201_v37, %s3214_s25  ;;  %v1202_v42 = vmul.f32 %v3042_v39, %v1198_v12 }
 0x725   :  { %v1138_v11 = vpop.permute.xlu0 %1137 }
 0x726   :  { %1207 = vrot.lane.b32.xlu1 %v1202_v42, %s3214_s25  ;;  %v1143_v16 = vmul.f32 %v3036_v27, %v1138_v11 }
 0x727   :  { %v1140_v21 = vpop.permute.xlu1 %1139 }
 0x728   :  { %v1144_v57 = vmul.f32 %v3040_v20, %v1140_v21 }
 0x792   :  { %v1158_v17 = vpop.permute.xlu0 %1157 }
 0x793   :  { %v1163_v31 = vadd.f32 %v1158_v17, %v1143_v16 }
 0x794   :  { %v1160_v8 = vpop.permute.xlu1 %1159 }
 0x795   :  { %3043 = vtanh.f32 %v1163_v31  ;;  %v1164_v49 = vadd.f32 %v1160_v8, %v1144_v57 }
 0x796   :  { %v1206_v44 = vpop.permute.xlu0 %1205 }
 0x797   :  { %v1211_v15 = vadd.f32 %v1206_v44, %v1191_v41 }
 0x798   :  { %v1208_v53 = vpop.permute.xlu1 %1207 }
 0x799   :  { %3045 = vtanh.f32 %v1211_v15  ;;  %v1212_v36 = vadd.f32 %v1208_v53, %v1192_v51 }
 0x79a   :  { %3047 = vtanh.f32 %v1164_v49 }
 0x79b   :  { %3049 = vtanh.f32 %v1212_v36 }
 0x79f   :  { %v3044_v60 = vpop.eup %3043 }
 0x7a0   :  { %1169 = vrot.lane.b32.xlu0 %v3044_v60, %s3213_s3 }
 0x7a3   :  { %v3046_v22 = vpop.eup %3045 }
 0x7a4   :  { %v3048_v62 = vpop.eup %3047  ;;  %1217 = vrot.lane.b32.xlu0 %v3046_v22, %s3213_s3 }
 0x7a5   :  { %1171 = vrot.lane.b32.xlu1 %v3048_v62, %s3213_s3  ;;  %v3050_v48 = vpop.eup %3049 }
 0x7a9   :  { %1219 = vrot.lane.b32.xlu1 %v3050_v48, %s3213_s3 }
 0x812   :  { %v1170_v5 = vpop.permute.xlu0 %1169 }
 0x813   :  { %v3573_v46 = vmul.f32 %v3036_v27, %v1170_v5 }
 0x816   :  { %v1218_v58 = vpop.permute.xlu0 %1217 }
 0x817   :  { %v1172_v29 = vpop.permute.xlu1 %1171  ;;  %v3579_v33 = vmul.f32 %v3038_v18, %v1218_v58 }
 0x818   :  { %v3575_v52 = vmul.f32 %v3040_v20, %v1172_v29 }
 0x81a   :  { %v1237_v14 = vpack.c.bf16 %v3575_v52, %v3573_v46 }
 0x81b   :  { %v1220_v32 = vpop.permute.xlu1 %1219 }
 0x81c   :  { %v3581_v30 = vmul.f32 %v3042_v39, %v1220_v32  ;;  %1240 = vrot.lane.b32.xlu0 %v1237_v14, %s3214_s25 }
 0x81e   :  { %v1238_v37 = vpack.c.bf16 %v3581_v30, %v3579_v33 }
 0x820   :  { %1227 = vrot.lane.b32.xlu0 %v1163_v31, %s3215_s26  ;;  %1243 = vrot.lane.b32.xlu1 %v1238_v37, %s3213_s3 }
 0x824   :  { %1229 = vrot.lane.b32.xlu1 %v1164_v49, %s3215_s26 }
 0x88e   :  { %v1241_v27 = vpop.permute.xlu0 %1240 }
 0x892   :  { %v1244_v20 = vpop.permute.xlu1 %1243  ;;  %v1228_v4 = vpop.permute.xlu0 %1227 }
 0x893   :  { %v1247_v12 = vsel %vm708_vm2, %v1241_v27, %v1244_v20  ;;  %v1233_v18 = vsel %vm708_vm2, %v1228_v4, %v1211_v15 }
 0x894   :  { %1249 = vst.msk [vmem:[#allocation4] sm:$0xff] %vm68_vm1, %v1247_v12  ;;  %1235 = vst.msk [vmem:[#allocation5] sm:$0xff] %vm68_vm1, %v1233_v18 }
 0x896   :  { %v1230_v39 = vpop.permute.xlu1 %1229 }
 0x897   :  { %v1234_v42 = vsel %vm708_vm2, %v1230_v39, %v1212_v36 }
 0x898   :  { %1236 = vst.msk [vmem:[#allocation5 + $0x8] sm:$0xff] %vm68_vm1, %v1234_v42 }
 0x89b   :  { %v1276_v11 = vld [vmem:[#allocation4] sm:$0xff] }
 0x89c   :  { %2727 = vmatmul.mubr.msk.bf16.vlgmr.msra.gmra.mrb[20].mxu1 %vm68_vm1, %v1276_v11 }
 0x89d   :  { %1884 = vmatprep.mubr.bf16.mxu1 %v3211_v1 }
 0x96f   :  { %v1362_v16 = vpop.f32.mrb[20].mxu1 }
 0x970   :  { %v1374_v17 = vadd.f32 %v1362_v16, %v3409_v45  ;;  %v1364_v21 = vpop.f32.mrb[21].mxu1  ;;  %v1381_v45 = vld [vmem:[#allocation5] sm:$0xff] }
 0x971   :  { %v1379_v31 = vadd.f32 %v1364_v21, %v3444_v10  ;;  %v1366_v41 = vpop.f32.mrb[22].mxu1 }
 0x972   :  { %3051 = vtanh.f32 %v1374_v17  ;;  %v1375_v57 = vadd.f32 %v1366_v41, %v3417_v50  ;;  %v1368_v44 = vpop.f32.mrb[23].mxu1  ;;  %v1382_v50 = vld [vmem:[#allocation5 + $0x8] sm:$0xff] }
 0x973   :  { %v1380_v8 = vadd.f32 %v1368_v44, %v3451_v23  ;;  %3053 = vtanh.f32 %v1379_v31  ;;  %v2728_v23 = vmul.f32 -1.442695, %v1374_v17  ;;  %v2730_v53 = vmul.f32 -1.442695, %v1379_v31 }
 0x974   :  { %3055 = vtanh.f32 %v1375_v57  ;;  %v2729_v36 = vmul.f32 -1.442695, %v1375_v57 }
 0x975   :  { %3057 = vtanh.f32 %v1380_v8  ;;  %v2731_v60 = vmul.f32 -1.442695, %v1380_v8 }
 0x976   :  { %3059 = vpow2.f32 %v2728_v23 }
 0x977   :  { %3061 = vpow2.f32 %v2730_v53 }
 0x978   :  { %3063 = vpow2.f32 %v2729_v36 }
 0x979   :  { %3065 = vpow2.f32 %v2731_v60 }
 0x97c   :  { %v3052_v15 = vpop.eup %3051 }
 0x97d   :  { %1409 = vrot.lane.b32.xlu0 %v3052_v15, %s3213_s3  ;;  %v3054_v49 = vpop.eup %3053 }
 0x97e   :  { %v3056_v51 = vpop.eup %3055 }
 0x97f   :  { %1411 = vrot.lane.b32.xlu1 %v3056_v51, %s3213_s3  ;;  %v3058_v10 = vpop.eup %3057 }
 0x980   :  { %v3060_v22 = vpop.eup %3059 }
 0x981   :  { %1457 = vrot.lane.b32.xlu0 %v3054_v49, %s3213_s3  ;;  %v1389_v62 = vadd.f32 1.0, %v3060_v22  ;;  %v3062_v48 = vpop.eup %3061 }
 0x982   :  { %v3064_v5 = vpop.eup %3063  ;;  %v1445_v29 = vadd.f32 1.0, %v3062_v48 }
 0x983   :  { %1459 = vrot.lane.b32.xlu1 %v3058_v10, %s3213_s3  ;;  %3067 = vrcp.f32 %v1389_v62  ;;  %v1390_v58 = vadd.f32 1.0, %v3064_v5  ;;  %v3066_v14 = vpop.eup %3065 }
 0x984   :  { %3069 = vrcp.f32 %v1445_v29  ;;  %v1446_v32 = vadd.f32 1.0, %v3066_v14  ;;  %v2945_v29 = vld [vmem:[%s4118_s4 + $0x4] ss:$8 sps:$4 sm:$0xff]   ;;  %v3645_v14 = vld [vmem:[%s4118_s4 + $0x14] ss:$8 sps:$4 sm:$0xff]  }
 0x985   :  { %1399 = vrot.lane.b32.xlu0 %v1381_v45, %s3214_s25  ;;  %3071 = vrcp.f32 %v1390_v58  ;;  %1590 = vmatprep.subr.bf16.mxu0 %v2945_v29  ;;  %v3640_v58 = vld [vmem:[%s4118_s4 + $0x10] ss:$8 sps:$4 sm:$0xff]  }
 0x986   :  { %3073 = vrcp.f32 %v1446_v32  ;;  %1852 = vmatprep.subr.bf16.mxu1 %v2945_v29 }
 0x987   :  { %1401 = vrot.lane.b32.xlu1 %v1382_v50, %s3214_s25 }
 0x98d   :  { %v3607_v37 = vpop.eup %3067 }
 0x98e   :  { %v3611_v4 = vpop.eup %3069 }
 0x98f   :  { %v3072_v18 = vpop.eup %3071  ;;  %v1453_v15 = vmul.f32 %v3611_v4, %v1381_v45  ;;  %v3628_v45 = vld [vmem:[%s4118_s4] ss:$8 sps:$4 sm:$0xff]  }
 0x990   :  { %v3616_v16 = vpop.eup %3073  ;;  %1591 = vmatpush1.bf16.msra.mxu0 %v3628_v45  ;;  %1853 = vmatpush1.bf16.msra.mxu1 %v3628_v45 }
 0x991   :  { %v1454_v36 = vmul.f32 %v3616_v16, %v1382_v50  ;;  %1592 = vmatprep.subr.bf16.mxu0 %v3645_v14  ;;  %1854 = vmatprep.subr.bf16.mxu1 %v3645_v14 }
 0x994   :  { %1593 = vmatpush1.bf16.msra.mxu0 %v3640_v58  ;;  %1855 = vmatpush1.bf16.msra.mxu1 %v3640_v58 }
 0x9ef   :  { %v1410_v27 = vpop.permute.xlu0 %1409 }
 0x9f0   :  { %v1415_v20 = vmul.f32 %v3607_v37, %v1410_v27  ;;  %v3654_v27 = vld [vmem:[%s4118_s4 + $0x24] ss:$8 sps:$4 sm:$0xff]  }
 0x9f1   :  { %v1412_v39 = vpop.permute.xlu1 %1411  ;;  %1594 = vmatprep.subr.bf16.mxu0 %v3654_v27  ;;  %1856 = vmatprep.subr.bf16.mxu1 %v3654_v27 }
 0x9f2   :  { %1419 = vrot.lane.b32.xlu0 %v1415_v20, %s3214_s25  ;;  %v1416_v11 = vmul.f32 %v3072_v18, %v1412_v39  ;;  %v3659_v20 = vld [vmem:[%s4118_s4 + $0x20] ss:$8 sps:$4 sm:$0xff]   ;;  %v3668_v39 = vld [vmem:[%s4118_s4 + $0x34] ss:$8 sps:$4 sm:$0xff]  }
 0x9f3   :  { %v1458_v12 = vpop.permute.xlu0 %1457  ;;  %1595 = vmatpush1.bf16.msra.mxu0 %v3659_v20  ;;  %1857 = vmatpush1.bf16.msra.mxu1 %v3659_v20 }
 0x9f4   :  { %v1463_v42 = vmul.f32 %v3611_v4, %v1458_v12  ;;  %1421 = vrot.lane.b32.xlu1 %v1416_v11, %s3214_s25  ;;  %1596 = vmatprep.subr.bf16.mxu0 %v3668_v39 }
 0x9f5   :  { %v1460_v17 = vpop.permute.xlu1 %1459  ;;  %1858 = vmatprep.subr.bf16.mxu1 %v3668_v39 }
 0x9f6   :  { %1467 = vrot.lane.b32.xlu0 %v1463_v42, %s3214_s25  ;;  %v1464_v21 = vmul.f32 %v3616_v16, %v1460_v17  ;;  %v3678_v17 = vld [vmem:[%s4118_s4 + $0x30] ss:$8 sps:$4 sm:$0xff]  }
 0x9f7   :  { %v1400_v31 = vpop.permute.xlu0 %1399  ;;  %1597 = vmatpush1.bf16.msra.mxu0 %v3678_v17  ;;  %1859 = vmatpush1.bf16.msra.mxu1 %v3678_v17 }
 0x9f8   :  { %1469 = vrot.lane.b32.xlu1 %v1464_v21, %s3214_s25  ;;  %v1405_v41 = vmul.f32 %v3607_v37, %v1400_v31  ;;  %2114 = vmatprep.subr.bf16.mxu0 %v2945_v29 }
 0x9f9   :  { %v1402_v44 = vpop.permute.xlu1 %1401  ;;  %2376 = vmatprep.subr.bf16.mxu1 %v2945_v29 }
 0x9fa   :  { %v1406_v49 = vmul.f32 %v3072_v18, %v1402_v44 }
 0xa64   :  { %v1420_v57 = vpop.permute.xlu0 %1419 }
 0xa65   :  { %v1425_v8 = vadd.f32 %v1420_v57, %v1405_v41 }
 0xa66   :  { %v1422_v10 = vpop.permute.xlu1 %1421 }
 0xa67   :  { %3075 = vtanh.f32 %v1425_v8  ;;  %v1426_v53 = vadd.f32 %v1422_v10, %v1406_v49 }
 0xa68   :  { %v1468_v51 = vpop.permute.xlu0 %1467 }
 0xa69   :  { %v1473_v23 = vadd.f32 %v1468_v51, %v1453_v15 }
 0xa6a   :  { %v1470_v60 = vpop.permute.xlu1 %1469 }
 0xa6b   :  { %3077 = vtanh.f32 %v1473_v23  ;;  %v1474_v22 = vadd.f32 %v1470_v60, %v1454_v36 }
 0xa6c   :  { %3079 = vtanh.f32 %v1426_v53 }
 0xa6d   :  { %3081 = vtanh.f32 %v1474_v22 }
 0xa71   :  { %v3076_v62 = vpop.eup %3075 }
 0xa72   :  { %1431 = vrot.lane.b32.xlu0 %v3076_v62, %s3213_s3 }
 0xa75   :  { %v3078_v48 = vpop.eup %3077 }
 0xa76   :  { %v3080_v5 = vpop.eup %3079  ;;  %1479 = vrot.lane.b32.xlu0 %v3078_v48, %s3213_s3 }
 0xa77   :  { %1433 = vrot.lane.b32.xlu1 %v3080_v5, %s3213_s3  ;;  %v3082_v50 = vpop.eup %3081 }
 0xa7b   :  { %1481 = vrot.lane.b32.xlu1 %v3082_v50, %s3213_s3 }
 0xae4   :  { %v1432_v32 = vpop.permute.xlu0 %1431 }
 0xae5   :  { %v3671_v42 = vmul.f32 %v3607_v37, %v1432_v32 }
 0xae8   :  { %v1480_v21 = vpop.permute.xlu0 %1479 }
 0xae9   :  { %v1434_v12 = vpop.permute.xlu1 %1433 }
 0xaea   :  { %v3673_v11 = vmul.f32 %v3072_v18, %v1434_v12  ;;  %v3687_v18 = vmul.f32 %v3611_v4, %v1480_v21 }
 0xaec   :  { %v1499_v31 = vpack.c.bf16 %v3673_v11, %v3671_v42 }
 0xaed   :  { %v1482_v37 = vpop.permute.xlu1 %1481 }
 0xaee   :  { %v3690_v41 = vmul.f32 %v3616_v16, %v1482_v37  ;;  %1502 = vrot.lane.b32.xlu0 %v1499_v31, %s3214_s25 }
 0xaf0   :  { %v1500_v57 = vpack.c.bf16 %v3690_v41, %v3687_v18 }
 0xaf2   :  { %1489 = vrot.lane.b32.xlu0 %v1425_v8, %s3215_s26  ;;  %1505 = vrot.lane.b32.xlu1 %v1500_v57, %s3213_s3 }
 0xaf6   :  { %1491 = vrot.lane.b32.xlu1 %v1426_v53, %s3215_s26 }
 0xb60   :  { %v1503_v44 = vpop.permute.xlu0 %1502 }
 0xb64   :  { %v1506_v15 = vpop.permute.xlu1 %1505  ;;  %v1490_v49 = vpop.permute.xlu0 %1489 }
 0xb65   :  { %v1509_v4 = vsel %vm708_vm2, %v1503_v44, %v1506_v15  ;;  %v1495_v51 = vsel %vm708_vm2, %v1490_v49, %v1473_v23 }
 0xb66   :  { %1511 = vst.msk [vmem:[#allocation4] sm:$0xff] %vm68_vm1, %v1509_v4  ;;  %1497 = vst.msk [vmem:[#allocation5] sm:$0xff] %vm68_vm1, %v1495_v51 }
 0xb68   :  { %v1492_v16 = vpop.permute.xlu1 %1491 }
 0xb69   :  { %v1496_v10 = vsel %vm708_vm2, %v1492_v16, %v1474_v22 }
 0xb6a   :  { %1498 = vst.msk [vmem:[#allocation5 + $0x8] sm:$0xff] %vm68_vm1, %v1496_v10 }
 0xb6d   :  { %v1538_v8 = vld [vmem:[#allocation4] sm:$0xff] }
 0xb6e   :  { %2748 = vmatmul.mubr.msk.bf16.vlgmr.msra.gmra.mrb[24].mxu0 %vm68_vm1, %v1538_v8 }
 0xb6f   :  { %2115 = vmatpush1.bf16.msra.mxu0 %v3628_v45  ;;  %2146 = vmatprep.mubr.bf16.mxu0 %v3211_v1 }
 0xb70   :  { %2116 = vmatprep.subr.bf16.mxu0 %v3645_v14 }
 0xb73   :  { %2117 = vmatpush1.bf16.msra.mxu0 %v3640_v58 }
 0xb74   :  { %2118 = vmatprep.subr.bf16.mxu0 %v3654_v27 }
 0xb77   :  { %2119 = vmatpush1.bf16.msra.mxu0 %v3659_v20 }
 0xb78   :  { %2120 = vmatprep.subr.bf16.mxu0 %v3668_v39 }
 0xb7b   :  { %2121 = vmatpush1.bf16.msra.mxu0 %v3678_v17 }
 0xc41   :  { %v1624_v23 = vpop.f32.mrb[24].mxu0 }
 0xc42   :  { %v1636_v53 = vadd.f32 %v1624_v23, %v3434_v0  ;;  %v1626_v36 = vpop.f32.mrb[25].mxu0 }
 0xc43   :  { %v1641_v60 = vadd.f32 %v1626_v36, %v3422_v54  ;;  %v1628_v22 = vpop.f32.mrb[26].mxu0  ;;  %v1643_v54 = vld [vmem:[#allocation5] sm:$0xff] }
 0xc44   :  { %3083 = vtanh.f32 %v1636_v53  ;;  %v1637_v62 = vadd.f32 %v1628_v22, %v3440_v6  ;;  %v1630_v48 = vpop.f32.mrb[27].mxu0  ;;  %v1644_v6 = vld [vmem:[#allocation5 + $0x8] sm:$0xff] }
 0xc45   :  { %v1642_v5 = vadd.f32 %v1630_v48, %v3426_v59  ;;  %3085 = vtanh.f32 %v1641_v60  ;;  %v2749_v59 = vmul.f32 -1.442695, %v1636_v53  ;;  %v2751_v12 = vmul.f32 -1.442695, %v1641_v60 }
 0xc46   :  { %3087 = vtanh.f32 %v1637_v62  ;;  %v2750_v21 = vmul.f32 -1.442695, %v1637_v62 }
 0xc47   :  { %3089 = vtanh.f32 %v1642_v5  ;;  %v2752_v31 = vmul.f32 -1.442695, %v1642_v5 }
 0xc48   :  { %3091 = vpow2.f32 %v2749_v59 }
 0xc49   :  { %3093 = vpow2.f32 %v2751_v12 }
 0xc4a   :  { %3095 = vpow2.f32 %v2750_v21 }
 0xc4b   :  { %3097 = vpow2.f32 %v2752_v31 }
 0xc4e   :  { %v3084_v29 = vpop.eup %3083 }
 0xc4f   :  { %1671 = vrot.lane.b32.xlu0 %v3084_v29, %s3213_s3  ;;  %v3086_v50 = vpop.eup %3085 }
 0xc50   :  { %v3088_v32 = vpop.eup %3087 }
 0xc51   :  { %1673 = vrot.lane.b32.xlu1 %v3088_v32, %s3213_s3  ;;  %v3090_v0 = vpop.eup %3089 }
 0xc52   :  { %v3092_v37 = vpop.eup %3091 }
 0xc53   :  { %1719 = vrot.lane.b32.xlu0 %v3086_v50, %s3213_s3  ;;  %v1651_v57 = vadd.f32 1.0, %v3092_v37  ;;  %v3094_v44 = vpop.eup %3093 }
 0xc54   :  { %v3096_v15 = vpop.eup %3095  ;;  %v1707_v49 = vadd.f32 1.0, %v3094_v44 }
 0xc55   :  { %1721 = vrot.lane.b32.xlu1 %v3090_v0, %s3213_s3  ;;  %3099 = vrcp.f32 %v1651_v57  ;;  %v1652_v4 = vadd.f32 1.0, %v3096_v15  ;;  %v3098_v51 = vpop.eup %3097 }
 0xc56   :  { %3101 = vrcp.f32 %v1707_v49  ;;  %v1708_v16 = vadd.f32 1.0, %v3098_v51 }
 0xc57   :  { %1661 = vrot.lane.b32.xlu0 %v1643_v54, %s3214_s25  ;;  %3103 = vrcp.f32 %v1652_v4 }
 0xc58   :  { %3105 = vrcp.f32 %v1708_v16 }
 0xc59   :  { %1663 = vrot.lane.b32.xlu1 %v1644_v6, %s3214_s25 }
 0xc5f   :  { %v3100_v10 = vpop.eup %3099 }
 0xc60   :  { %v3102_v53 = vpop.eup %3101 }
 0xc61   :  { %v3104_v60 = vpop.eup %3103  ;;  %v1715_v31 = vmul.f32 %v3102_v53, %v1643_v54 }
 0xc62   :  { %v3106_v5 = vpop.eup %3105 }
 0xc63   :  { %v1716_v4 = vmul.f32 %v3106_v5, %v1644_v6 }
 0xcc1   :  { %v1672_v8 = vpop.permute.xlu0 %1671 }
 0xcc2   :  { %v1677_v23 = vmul.f32 %v3100_v10, %v1672_v8 }
 0xcc3   :  { %v1674_v22 = vpop.permute.xlu1 %1673 }
 0xcc4   :  { %1681 = vrot.lane.b32.xlu0 %v1677_v23, %s3214_s25  ;;  %v1678_v48 = vmul.f32 %v3104_v60, %v1674_v22 }
 0xcc5   :  { %v1720_v36 = vpop.permute.xlu0 %1719 }
 0xcc6   :  { %v1725_v62 = vmul.f32 %v3102_v53, %v1720_v36  ;;  %1683 = vrot.lane.b32.xlu1 %v1678_v48, %s3214_s25 }
 0xcc7   :  { %v1722_v29 = vpop.permute.xlu1 %1721 }
 0xcc8   :  { %1729 = vrot.lane.b32.xlu0 %v1725_v62, %s3214_s25  ;;  %v1726_v50 = vmul.f32 %v3106_v5, %v1722_v29 }
 0xcc9   :  { %v1662_v32 = vpop.permute.xlu0 %1661 }
 0xcca   :  { %1731 = vrot.lane.b32.xlu1 %v1726_v50, %s3214_s25  ;;  %v1667_v0 = vmul.f32 %v3100_v10, %v1662_v32 }
 0xccb   :  { %v1664_v12 = vpop.permute.xlu1 %1663 }
 0xccc   :  { %v1668_v37 = vmul.f32 %v3104_v60, %v1664_v12 }
 0xd36   :  { %v1682_v59 = vpop.permute.xlu0 %1681 }
 0xd37   :  { %v1687_v21 = vadd.f32 %v1682_v59, %v1667_v0 }
 0xd38   :  { %v1684_v44 = vpop.permute.xlu1 %1683 }
 0xd39   :  { %3107 = vtanh.f32 %v1687_v21  ;;  %v1688_v49 = vadd.f32 %v1684_v44, %v1668_v37 }
 0xd3a   :  { %v1730_v57 = vpop.permute.xlu0 %1729 }
 0xd3b   :  { %v1735_v15 = vadd.f32 %v1730_v57, %v1715_v31 }
 0xd3c   :  { %v1732_v51 = vpop.permute.xlu1 %1731 }
 0xd3d   :  { %3109 = vtanh.f32 %v1735_v15  ;;  %v1736_v16 = vadd.f32 %v1732_v51, %v1716_v4 }
 0xd3e   :  { %3111 = vtanh.f32 %v1688_v49 }
 0xd3f   :  { %3113 = vtanh.f32 %v1736_v16 }
 0xd43   :  { %v3108_v8 = vpop.eup %3107 }
 0xd44   :  { %1693 = vrot.lane.b32.xlu0 %v3108_v8, %s3213_s3 }
 0xd47   :  { %v3110_v23 = vpop.eup %3109 }
 0xd48   :  { %v3112_v36 = vpop.eup %3111  ;;  %1741 = vrot.lane.b32.xlu0 %v3110_v23, %s3213_s3 }
 0xd49   :  { %1695 = vrot.lane.b32.xlu1 %v3112_v36, %s3213_s3  ;;  %v3114_v54 = vpop.eup %3113 }
 0xd4d   :  { %1743 = vrot.lane.b32.xlu1 %v3114_v54, %s3213_s3 }
 0xdb6   :  { %v1694_v22 = vpop.permute.xlu0 %1693 }
 0xdb7   :  { %v3731_v48 = vmul.f32 %v3100_v10, %v1694_v22 }
 0xdba   :  { %v1742_v29 = vpop.permute.xlu0 %1741 }
 0xdbb   :  { %v1696_v62 = vpop.permute.xlu1 %1695  ;;  %v3737_v0 = vmul.f32 %v3102_v53, %v1742_v29 }
 0xdbc   :  { %v3733_v6 = vmul.f32 %v3104_v60, %v1696_v62 }
 0xdbe   :  { %v1761_v50 = vpack.c.bf16 %v3733_v6, %v3731_v48 }
 0xdbf   :  { %v1744_v32 = vpop.permute.xlu1 %1743 }
 0xdc0   :  { %v3739_v59 = vmul.f32 %v3106_v5, %v1744_v32  ;;  %1764 = vrot.lane.b32.xlu0 %v1761_v50, %s3214_s25 }
 0xdc2   :  { %v1762_v12 = vpack.c.bf16 %v3739_v59, %v3737_v0 }
 0xdc4   :  { %1751 = vrot.lane.b32.xlu0 %v1687_v21, %s3215_s26  ;;  %1767 = vrot.lane.b32.xlu1 %v1762_v12, %s3213_s3 }
 0xdc8   :  { %1753 = vrot.lane.b32.xlu1 %v1688_v49, %s3215_s26 }
 0xe32   :  { %v1765_v10 = vpop.permute.xlu0 %1764 }
 0xe36   :  { %v1768_v60 = vpop.permute.xlu1 %1767  ;;  %v1752_v31 = vpop.permute.xlu0 %1751 }
 0xe37   :  { %v1771_v37 = vsel %vm708_vm2, %v1765_v10, %v1768_v60  ;;  %v1757_v53 = vsel %vm708_vm2, %v1752_v31, %v1735_v15 }
 0xe38   :  { %1773 = vst.msk [vmem:[#allocation4] sm:$0xff] %vm68_vm1, %v1771_v37  ;;  %1759 = vst.msk [vmem:[#allocation5] sm:$0xff] %vm68_vm1, %v1757_v53 }
 0xe3a   :  { %v1754_v5 = vpop.permute.xlu1 %1753 }
 0xe3b   :  { %v1758_v57 = vsel %vm708_vm2, %v1754_v5, %v1736_v16 }
 0xe3c   :  { %1760 = vst.msk [vmem:[#allocation5 + $0x8] sm:$0xff] %vm68_vm1, %v1758_v57 }
 0xe3f   :  { %v1800_v21 = vld [vmem:[#allocation4] sm:$0xff] }
 0xe40   :  { %2769 = vmatmul.mubr.msk.bf16.vlgmr.msra.gmra.mrb[24].mxu1 %vm68_vm1, %v1800_v21 }
 0xe41   :  { %2377 = vmatpush1.bf16.msra.mxu1 %v3628_v45  ;;  %2408 = vmatprep.mubr.bf16.mxu1 %v3211_v1 }
 0xe42   :  { %2378 = vmatprep.subr.bf16.mxu1 %v3645_v14 }
 0xe45   :  { %2379 = vmatpush1.bf16.msra.mxu1 %v3640_v58 }
 0xe46   :  { %2380 = vmatprep.subr.bf16.mxu1 %v3654_v27 }
 0xe49   :  { %2381 = vmatpush1.bf16.msra.mxu1 %v3659_v20 }
 0xe4a   :  { %2382 = vmatprep.subr.bf16.mxu1 %v3668_v39 }
 0xe4d   :  { %2383 = vmatpush1.bf16.msra.mxu1 %v3678_v17 }
 0xf13   :  { %v1886_v44 = vpop.f32.mrb[24].mxu1 }
 0xf14   :  { %v1898_v15 = vadd.f32 %v1886_v44, %v3429_v61  ;;  %v1888_v49 = vpop.f32.mrb[25].mxu1 }
 0xf15   :  { %v1903_v45 = vadd.f32 %v1888_v49, %v3424_v56  ;;  %v1890_v4 = vpop.f32.mrb[26].mxu1  ;;  %v1905_v56 = vld [vmem:[#allocation5] sm:$0xff] }
 0xf16   :  { %3115 = vtanh.f32 %v1898_v15  ;;  %v1899_v1 = vadd.f32 %v1890_v4, %v3437_v3  ;;  %v1892_v14 = vpop.f32.mrb[27].mxu1  ;;  %v1906_v3 = vld [vmem:[#allocation5 + $0x8] sm:$0xff] }
 0xf17   :  { %v1904_v58 = vadd.f32 %v1892_v14, %v3431_v63  ;;  %3117 = vtanh.f32 %v1903_v45  ;;  %v2770_v63 = vmul.f32 -1.442695, %v1898_v15  ;;  %v2772_v17 = vmul.f32 -1.442695, %v1903_v45 }
 0xf18   :  { %3119 = vtanh.f32 %v1899_v1  ;;  %v2771_v51 = vmul.f32 -1.442695, %v1899_v1 }
 0xf19   :  { %3121 = vtanh.f32 %v1904_v58  ;;  %v2773_v16 = vmul.f32 -1.442695, %v1904_v58 }
 0xf1a   :  { %3123 = vpow2.f32 %v2770_v63 }
 0xf1b   :  { %3125 = vpow2.f32 %v2772_v17 }
 0xf1c   :  { %3127 = vpow2.f32 %v2771_v51 }
 0xf1d   :  { %3129 = vpow2.f32 %v2773_v16 }
 0xf20   :  { %v3116_v27 = vpop.eup %3115 }
 0xf21   :  { %1933 = vrot.lane.b32.xlu0 %v3116_v27, %s3213_s3  ;;  %v3118_v20 = vpop.eup %3117 }
 0xf22   :  { %v3120_v39 = vpop.eup %3119 }
 0xf23   :  { %1935 = vrot.lane.b32.xlu1 %v3120_v39, %s3213_s3  ;;  %v3122_v61 = vpop.eup %3121 }
 0xf24   :  { %v3124_v8 = vpop.eup %3123 }
 0xf25   :  { %1981 = vrot.lane.b32.xlu0 %v3118_v20, %s3213_s3  ;;  %v1913_v23 = vadd.f32 1.0, %v3124_v8  ;;  %v3126_v36 = vpop.eup %3125 }
 0xf26   :  { %v3128_v54 = vpop.eup %3127  ;;  %v1969_v22 = vadd.f32 1.0, %v3126_v36 }
 0xf27   :  { %1983 = vrot.lane.b32.xlu1 %v3122_v61, %s3213_s3  ;;  %3131 = vrcp.f32 %v1913_v23  ;;  %v1914_v62 = vadd.f32 1.0, %v3128_v54  ;;  %v3130_v29 = vpop.eup %3129 }
 0xf28   :  { %3133 = vrcp.f32 %v1969_v22  ;;  %v1970_v50 = vadd.f32 1.0, %v3130_v29 }
 0xf29   :  { %1923 = vrot.lane.b32.xlu0 %v1905_v56, %s3214_s25  ;;  %3135 = vrcp.f32 %v1914_v62 }
 0xf2a   :  { %3137 = vrcp.f32 %v1970_v50 }
 0xf2b   :  { %1925 = vrot.lane.b32.xlu1 %v1906_v3, %s3214_s25 }
 0xf31   :  { %v3132_v32 = vpop.eup %3131 }
 0xf32   :  { %v3134_v60 = vpop.eup %3133 }
 0xf33   :  { %v3136_v37 = vpop.eup %3135  ;;  %v1977_v58 = vmul.f32 %v3134_v60, %v1905_v56 }
 0xf34   :  { %v3138_v21 = vpop.eup %3137 }
 0xf35   :  { %v1978_v17 = vmul.f32 %v3138_v21, %v1906_v3 }
 0xf93   :  { %v1934_v12 = vpop.permute.xlu0 %1933 }
 0xf94   :  { %v1939_v10 = vmul.f32 %v3132_v32, %v1934_v12 }
 0xf95   :  { %v1936_v53 = vpop.permute.xlu1 %1935 }
 0xf96   :  { %1943 = vrot.lane.b32.xlu0 %v1939_v10, %s3214_s25  ;;  %v1940_v57 = vmul.f32 %v3136_v37, %v1936_v53 }
 0xf97   :  { %v1982_v31 = vpop.permute.xlu0 %1981 }
 0xf98   :  { %v1987_v5 = vmul.f32 %v3134_v60, %v1982_v31  ;;  %1945 = vrot.lane.b32.xlu1 %v1940_v57, %s3214_s25 }
 0xf99   :  { %v1984_v44 = vpop.permute.xlu1 %1983 }
 0xf9a   :  { %1991 = vrot.lane.b32.xlu0 %v1987_v5, %s3214_s25  ;;  %v1988_v15 = vmul.f32 %v3138_v21, %v1984_v44 }
 0xf9b   :  { %v1924_v49 = vpop.permute.xlu0 %1923 }
 0xf9c   :  { %1993 = vrot.lane.b32.xlu1 %v1988_v15, %s3214_s25  ;;  %v1929_v45 = vmul.f32 %v3132_v32, %v1924_v49 }
 0xf9d   :  { %v1926_v1 = vpop.permute.xlu1 %1925 }
 0xf9e   :  { %v1930_v27 = vmul.f32 %v3136_v37, %v1926_v1 }
0x1008   :  { %v1944_v4 = vpop.permute.xlu0 %1943 }
0x1009   :  { %v1949_v14 = vadd.f32 %v1944_v4, %v1929_v45 }
0x100a   :  { %v1946_v39 = vpop.permute.xlu1 %1945 }
0x100b   :  { %3139 = vtanh.f32 %v1949_v14  ;;  %v1950_v63 = vadd.f32 %v1946_v39, %v1930_v27 }
0x100c   :  { %v1992_v20 = vpop.permute.xlu0 %1991 }
0x100d   :  { %v1997_v61 = vadd.f32 %v1992_v20, %v1977_v58 }
0x100e   :  { %v1994_v51 = vpop.permute.xlu1 %1993 }
0x100f   :  { %3141 = vtanh.f32 %v1997_v61  ;;  %v1998_v16 = vadd.f32 %v1994_v51, %v1978_v17 }
0x1010   :  { %3143 = vtanh.f32 %v1950_v63 }
0x1011   :  { %3145 = vtanh.f32 %v1998_v16 }
0x1015   :  { %v3140_v8 = vpop.eup %3139 }
0x1016   :  { %1955 = vrot.lane.b32.xlu0 %v3140_v8, %s3213_s3 }
0x1019   :  { %v3142_v23 = vpop.eup %3141 }
0x101a   :  { %v3144_v36 = vpop.eup %3143  ;;  %2003 = vrot.lane.b32.xlu0 %v3142_v23, %s3213_s3 }
0x101b   :  { %1957 = vrot.lane.b32.xlu1 %v3144_v36, %s3213_s3  ;;  %v3146_v56 = vpop.eup %3145 }
0x101f   :  { %2005 = vrot.lane.b32.xlu1 %v3146_v56, %s3213_s3 }
0x1088   :  { %v1956_v54 = vpop.permute.xlu0 %1955 }
0x1089   :  { %v3780_v62 = vmul.f32 %v3132_v32, %v1956_v54 }
0x108c   :  { %v2004_v29 = vpop.permute.xlu0 %2003 }
0x108d   :  { %v1958_v22 = vpop.permute.xlu1 %1957  ;;  %v3786_v10 = vmul.f32 %v3134_v60, %v2004_v29 }
0x108e   :  { %v3782_v3 = vmul.f32 %v3136_v37, %v1958_v22 }
0x1090   :  { %v2023_v50 = vpack.c.bf16 %v3782_v3, %v3780_v62 }
0x1091   :  { %v2006_v12 = vpop.permute.xlu1 %2005 }
0x1092   :  { %v3788_v31 = vmul.f32 %v3138_v21, %v2006_v12  ;;  %2026 = vrot.lane.b32.xlu0 %v2023_v50, %s3214_s25 }
0x1094   :  { %v2024_v53 = vpack.c.bf16 %v3788_v31, %v3786_v10 }
0x1096   :  { %2013 = vrot.lane.b32.xlu0 %v1949_v14, %s3215_s26  ;;  %2029 = vrot.lane.b32.xlu1 %v2024_v53, %s3213_s3 }
0x109a   :  { %2015 = vrot.lane.b32.xlu1 %v1950_v63, %s3215_s26 }
0x1104   :  { %v2027_v32 = vpop.permute.xlu0 %2026 }
0x1108   :  { %v2030_v37 = vpop.permute.xlu1 %2029  ;;  %v2014_v5 = vpop.permute.xlu0 %2013 }
0x1109   :  { %v2033_v57 = vsel %vm708_vm2, %v2027_v32, %v2030_v37  ;;  %v2019_v60 = vsel %vm708_vm2, %v2014_v5, %v1997_v61 }
0x110a   :  { %2035 = vst.msk [vmem:[#allocation4] sm:$0xff] %vm68_vm1, %v2033_v57  ;;  %2021 = vst.msk [vmem:[#allocation5] sm:$0xff] %vm68_vm1, %v2019_v60 }
0x110c   :  { %v2016_v21 = vpop.permute.xlu1 %2015 }
0x110d   :  { %v2020_v44 = vsel %vm708_vm2, %v2016_v21, %v1998_v16 }
0x110e   :  { %2022 = vst.msk [vmem:[#allocation5 + $0x8] sm:$0xff] %vm68_vm1, %v2020_v44 }
0x1111   :  { %v2062_v15 = vld [vmem:[#allocation4] sm:$0xff] }
0x1112   :  { %2790 = vmatmul.mubr.msk.bf16.vlgmr.msra.gmra.mrb[28].mxu0 %vm68_vm1, %v2062_v15 }
0x11e5   :  { %v2148_v49 = vpop.f32.mrb[28].mxu0 }
0x11e6   :  { %v2160_v45 = vadd.f32 %v2148_v49, %v3454_v24  ;;  %v2150_v4 = vpop.f32.mrb[29].mxu0 }
0x11e7   :  { %v2165_v1 = vadd.f32 %v2150_v4, %v3402_v38  ;;  %v2152_v14 = vpop.f32.mrb[30].mxu0  ;;  %v2167_v38 = vld [vmem:[#allocation5] sm:$0xff] }
0x11e8   :  { %3147 = vtanh.f32 %v2160_v45  ;;  %v2161_v58 = vadd.f32 %v2152_v14, %v3460_v28  ;;  %v2154_v27 = vpop.f32.mrb[31].mxu0  ;;  %v2168_v28 = vld [vmem:[#allocation5 + $0x8] sm:$0xff] }
0x11e9   :  { %v2166_v20 = vadd.f32 %v2154_v27, %v3406_v43  ;;  %3149 = vtanh.f32 %v2165_v1  ;;  %v2791_v43 = vmul.f32 -1.442695, %v2160_v45  ;;  %v2793_v17 = vmul.f32 -1.442695, %v2165_v1 }
0x11ea   :  { %3151 = vtanh.f32 %v2161_v58  ;;  %v2792_v51 = vmul.f32 -1.442695, %v2161_v58 }
0x11eb   :  { %3153 = vtanh.f32 %v2166_v20  ;;  %v2794_v16 = vmul.f32 -1.442695, %v2166_v20 }
0x11ec   :  { %3155 = vpow2.f32 %v2791_v43 }
0x11ed   :  { %3157 = vpow2.f32 %v2793_v17 }
0x11ee   :  { %3159 = vpow2.f32 %v2792_v51 }
0x11ef   :  { %3161 = vpow2.f32 %v2794_v16 }
0x11f2   :  { %v3148_v39 = vpop.eup %3147 }
0x11f3   :  { %2195 = vrot.lane.b32.xlu0 %v3148_v39, %s3213_s3  ;;  %v3150_v61 = vpop.eup %3149 }
0x11f4   :  { %v3152_v63 = vpop.eup %3151 }
0x11f5   :  { %2197 = vrot.lane.b32.xlu1 %v3152_v63, %s3213_s3  ;;  %v3154_v24 = vpop.eup %3153 }
0x11f6   :  { %v3156_v8 = vpop.eup %3155 }
0x11f7   :  { %2243 = vrot.lane.b32.xlu0 %v3150_v61, %s3213_s3  ;;  %v2175_v23 = vadd.f32 1.0, %v3156_v8  ;;  %v3158_v36 = vpop.eup %3157 }
0x11f8   :  { %v3160_v56 = vpop.eup %3159  ;;  %v2231_v54 = vadd.f32 1.0, %v3158_v36 }
0x11f9   :  { %2245 = vrot.lane.b32.xlu1 %v3154_v24, %s3213_s3  ;;  %3163 = vrcp.f32 %v2175_v23  ;;  %v2176_v22 = vadd.f32 1.0, %v3160_v56  ;;  %v3162_v29 = vpop.eup %3161 }
0x11fa   :  { %3165 = vrcp.f32 %v2231_v54  ;;  %v2232_v50 = vadd.f32 1.0, %v3162_v29 }
0x11fb   :  { %2185 = vrot.lane.b32.xlu0 %v2167_v38, %s3214_s25  ;;  %3167 = vrcp.f32 %v2176_v22 }
0x11fc   :  { %3169 = vrcp.f32 %v2232_v50 }
0x11fd   :  { %2187 = vrot.lane.b32.xlu1 %v2168_v28, %s3214_s25 }
0x1203   :  { %v3164_v12 = vpop.eup %3163 }
0x1204   :  { %v3166_v37 = vpop.eup %3165 }
0x1205   :  { %v3168_v57 = vpop.eup %3167  ;;  %v2239_v20 = vmul.f32 %v3166_v37, %v2167_v38 }
0x1206   :  { %v3170_v15 = vpop.eup %3169 }
0x1207   :  { %v2240_v17 = vmul.f32 %v3170_v15, %v2168_v28 }
0x1265   :  { %v2196_v53 = vpop.permute.xlu0 %2195 }
0x1266   :  { %v2201_v32 = vmul.f32 %v3164_v12, %v2196_v53 }
0x1267   :  { %v2198_v60 = vpop.permute.xlu1 %2197 }
0x1268   :  { %2205 = vrot.lane.b32.xlu0 %v2201_v32, %s3214_s25  ;;  %v2202_v44 = vmul.f32 %v3168_v57, %v2198_v60 }
0x1269   :  { %v2244_v5 = vpop.permute.xlu0 %2243 }
0x126a   :  { %v2249_v21 = vmul.f32 %v3166_v37, %v2244_v5  ;;  %2207 = vrot.lane.b32.xlu1 %v2202_v44, %s3214_s25 }
0x126b   :  { %v2246_v49 = vpop.permute.xlu1 %2245 }
0x126c   :  { %2253 = vrot.lane.b32.xlu0 %v2249_v21, %s3214_s25  ;;  %v2250_v45 = vmul.f32 %v3170_v15, %v2246_v49 }
0x126d   :  { %v2186_v4 = vpop.permute.xlu0 %2185 }
0x126e   :  { %2255 = vrot.lane.b32.xlu1 %v2250_v45, %s3214_s25  ;;  %v2191_v1 = vmul.f32 %v3164_v12, %v2186_v4 }
0x126f   :  { %v2188_v58 = vpop.permute.xlu1 %2187 }
0x1270   :  { %v2192_v39 = vmul.f32 %v3168_v57, %v2188_v58 }
0x12da   :  { %v2206_v14 = vpop.permute.xlu0 %2205 }
0x12db   :  { %v2211_v27 = vadd.f32 %v2206_v14, %v2191_v1 }
0x12dc   :  { %v2208_v63 = vpop.permute.xlu1 %2207 }
0x12dd   :  { %3171 = vtanh.f32 %v2211_v27  ;;  %v2212_v43 = vadd.f32 %v2208_v63, %v2192_v39 }
0x12de   :  { %v2254_v61 = vpop.permute.xlu0 %2253 }
0x12df   :  { %v2259_v24 = vadd.f32 %v2254_v61, %v2239_v20 }
0x12e0   :  { %v2256_v51 = vpop.permute.xlu1 %2255 }
0x12e1   :  { %3173 = vtanh.f32 %v2259_v24  ;;  %v2260_v16 = vadd.f32 %v2256_v51, %v2240_v17 }
0x12e2   :  { %3175 = vtanh.f32 %v2212_v43 }
0x12e3   :  { %3177 = vtanh.f32 %v2260_v16 }
0x12e7   :  { %v3172_v8 = vpop.eup %3171 }
0x12e8   :  { %2217 = vrot.lane.b32.xlu0 %v3172_v8, %s3213_s3 }
0x12eb   :  { %v3174_v23 = vpop.eup %3173 }
0x12ec   :  { %v3176_v36 = vpop.eup %3175  ;;  %2265 = vrot.lane.b32.xlu0 %v3174_v23, %s3213_s3 }
0x12ed   :  { %2219 = vrot.lane.b32.xlu1 %v3176_v36, %s3213_s3  ;;  %v3178_v38 = vpop.eup %3177 }
0x12f1   :  { %2267 = vrot.lane.b32.xlu1 %v3178_v38, %s3213_s3 }
0x135a   :  { %v2218_v56 = vpop.permute.xlu0 %2217 }
0x135b   :  { %v3821_v22 = vmul.f32 %v3164_v12, %v2218_v56 }
0x135e   :  { %v2266_v29 = vpop.permute.xlu0 %2265 }
0x135f   :  { %v2220_v54 = vpop.permute.xlu1 %2219  ;;  %v3827_v32 = vmul.f32 %v3166_v37, %v2266_v29 }
0x1360   :  { %v3823_v28 = vmul.f32 %v3168_v57, %v2220_v54 }
0x1362   :  { %v2285_v50 = vpack.c.bf16 %v3823_v28, %v3821_v22 }
0x1363   :  { %v2268_v53 = vpop.permute.xlu1 %2267 }
0x1364   :  { %v3829_v5 = vmul.f32 %v3170_v15, %v2268_v53  ;;  %2288 = vrot.lane.b32.xlu0 %v2285_v50, %s3214_s25 }
0x1366   :  { %v2286_v60 = vpack.c.bf16 %v3829_v5, %v3827_v32 }
0x1368   :  { %2275 = vrot.lane.b32.xlu0 %v2211_v27, %s3215_s26  ;;  %2291 = vrot.lane.b32.xlu1 %v2286_v60, %s3213_s3 }
0x136c   :  { %2277 = vrot.lane.b32.xlu1 %v2212_v43, %s3215_s26 }
0x13d6   :  { %v2289_v12 = vpop.permute.xlu0 %2288 }
0x13da   :  { %v2292_v57 = vpop.permute.xlu1 %2291  ;;  %v2276_v21 = vpop.permute.xlu0 %2275 }
0x13db   :  { %v2295_v44 = vsel %vm708_vm2, %v2289_v12, %v2292_v57  ;;  %v2281_v37 = vsel %vm708_vm2, %v2276_v21, %v2259_v24 }
0x13dc   :  { %2297 = vst.msk [vmem:[#allocation4] sm:$0xff] %vm68_vm1, %v2295_v44  ;;  %2283 = vst.msk [vmem:[#allocation5] sm:$0xff] %vm68_vm1, %v2281_v37 }
0x13de   :  { %v2278_v15 = vpop.permute.xlu1 %2277 }
0x13df   :  { %v2282_v49 = vsel %vm708_vm2, %v2278_v15, %v2260_v16 }
0x13e0   :  { %2284 = vst.msk [vmem:[#allocation5 + $0x8] sm:$0xff] %vm68_vm1, %v2282_v49 }
0x13e3   :  { %v2324_v45 = vld [vmem:[#allocation4] sm:$0xff] }
0x13e4   :  { %2811 = vmatmul.mubr.msk.bf16.vlgmr.msra.gmra.mrb[28].mxu1 %vm68_vm1, %v2324_v45 }
0x14b7   :  { %v2410_v4 = vpop.f32.mrb[28].mxu1 }
0x14b8   :  { %v2422_v1 = vadd.f32 %v2410_v4, %v3449_v19  ;;  %v2412_v14 = vpop.f32.mrb[29].mxu1  ;;  %v2822_v4 = vpack.c.bf16 %v3482_v2, %v3482_v2  ;;  %v2825_v2 = vpack.c.bf16 %v3490_v13, %v3490_v13 }
0x14b9   :  { %v2426_v58 = vadd.f32 %v2412_v14, %v3404_v40  ;;  %v2414_v27 = vpop.f32.mrb[30].mxu1  ;;  %v2428_v40 = vld [vmem:[#allocation5] sm:$0xff] }
0x14ba   :  { %3179 = vtanh.f32 %v2422_v1  ;;  %v2423_v20 = vadd.f32 %v2414_v27, %v3457_v26  ;;  %v2416_v39 = vpop.f32.mrb[31].mxu1  ;;  %v2429_v26 = vld [vmem:[#allocation5 + $0x8] sm:$0xff]  ;;  %v2823_v27 = vpack.c.bf16 %v3484_v9, %v3484_v9 }
0x14bb   :  { %v2427_v61 = vadd.f32 %v2416_v39, %v3411_v47  ;;  %3181 = vtanh.f32 %v2426_v58  ;;  %v2812_v47 = vmul.f32 -1.442695, %v2422_v1  ;;  %v2814_v17 = vmul.f32 -1.442695, %v2426_v58 }
0x14bc   :  { %3183 = vtanh.f32 %v2423_v20  ;;  %v2813_v51 = vmul.f32 -1.442695, %v2423_v20  ;;  %v2824_v58 = vpack.c.bf16 %v3488_v35, %v3488_v35 }
0x14bd   :  { %3185 = vtanh.f32 %v2427_v61  ;;  %v2815_v16 = vmul.f32 -1.442695, %v2427_v61 }
0x14be   :  { %3187 = vpow2.f32 %v2812_v47 }
0x14bf   :  { %3189 = vpow2.f32 %v2814_v17 }
0x14c0   :  { %3191 = vpow2.f32 %v2813_v51 }
0x14c1   :  { %3193 = vpow2.f32 %v2815_v16 }
0x14c4   :  { %v3180_v63 = vpop.eup %3179 }
0x14c5   :  { %2456 = vrot.lane.b32.xlu0 %v3180_v63, %s3213_s3  ;;  %v3182_v24 = vpop.eup %3181 }
0x14c6   :  { %v3184_v43 = vpop.eup %3183 }
0x14c7   :  { %2458 = vrot.lane.b32.xlu1 %v3184_v43, %s3213_s3  ;;  %v3186_v19 = vpop.eup %3185 }
0x14c8   :  { %v3188_v8 = vpop.eup %3187 }
0x14c9   :  { %2504 = vrot.lane.b32.xlu0 %v3182_v24, %s3213_s3  ;;  %v2436_v23 = vadd.f32 1.0, %v3188_v8  ;;  %v3190_v36 = vpop.eup %3189 }
0x14ca   :  { %v3192_v38 = vpop.eup %3191  ;;  %v2492_v56 = vadd.f32 1.0, %v3190_v36 }
0x14cb   :  { %2506 = vrot.lane.b32.xlu1 %v3186_v19, %s3213_s3  ;;  %3195 = vrcp.f32 %v2436_v23  ;;  %v2437_v54 = vadd.f32 1.0, %v3192_v38  ;;  %v3194_v29 = vpop.eup %3193 }
0x14cc   :  { %3197 = vrcp.f32 %v2492_v56  ;;  %v2493_v50 = vadd.f32 1.0, %v3194_v29 }
0x14cd   :  { %2446 = vrot.lane.b32.xlu0 %v2428_v40, %s3214_s25  ;;  %3199 = vrcp.f32 %v2437_v54  ;;  %v2826_v54 = vpack.c.bf16 %v3531_v7, %v3531_v7  ;;  %v2830_v7 = vpack.c.bf16 %v3573_v46, %v3573_v46  ;;  %v2834_v46 = vpack.c.bf16 %v3671_v42, %v3671_v42 }
0x14ce   :  { %3201 = vrcp.f32 %v2493_v50  ;;  %v2828_v50 = vpack.c.bf16 %v3537_v55, %v3537_v55  ;;  %v2831_v55 = vpack.c.bf16 %v3575_v52, %v3575_v52  ;;  %v2835_v52 = vpack.c.bf16 %v3673_v11, %v3673_v11 }
0x14cf   :  { %2448 = vrot.lane.b32.xlu1 %v2429_v26, %s3214_s25  ;;  %v2838_v42 = vpack.c.bf16 %v3731_v48, %v3731_v48  ;;  %v2839_v11 = vpack.c.bf16 %v3733_v6, %v3733_v6  ;;  %v2842_v48 = vpack.c.bf16 %v3780_v62, %v3780_v62  ;;  %v2843_v6 = vpack.c.bf16 %v3782_v3, %v3782_v3 }
0x14d0   :  { %v2846_v62 = vpack.c.bf16 %v3821_v22, %v3821_v22  ;;  %v2847_v3 = vpack.c.bf16 %v3823_v28, %v3823_v28  ;;  %v2849_v22 = vpack.c.bf16 %v3829_v5, %v3829_v5 }
0x14d5   :  { %v3854_v53 = vpop.eup %3195 }
0x14d6   :  { %v3858_v57 = vpop.eup %3197 }
0x14d7   :  { %v3860_v44 = vpop.eup %3199  ;;  %v2500_v35 = vmul.f32 %v3858_v57, %v2428_v40 }
0x14d8   :  { %v3866_v45 = vpop.eup %3201 }
0x14d9   :  { %v2501_v13 = vmul.f32 %v3866_v45, %v2429_v26 }
0x1537   :  { %v2457_v60 = vpop.permute.xlu0 %2456 }
0x1538   :  { %v2462_v12 = vmul.f32 %v3854_v53, %v2457_v60  ;;  %v2827_v60 = vpack.c.bf16 %v3533_v34, %v3533_v34  ;;  %v2832_v34 = vpack.c.bf16 %v3579_v33, %v3579_v33  ;;  %v2836_v33 = vpack.c.bf16 %v3687_v18, %v3687_v18 }
0x1539   :  { %v2459_v37 = vpop.permute.xlu1 %2458  ;;  %v2840_v18 = vpack.c.bf16 %v3737_v0, %v3737_v0  ;;  %v2844_v0 = vpack.c.bf16 %v3786_v10, %v3786_v10  ;;  %v2848_v10 = vpack.c.bf16 %v3827_v32, %v3827_v32 }
0x153a   :  { %2466 = vrot.lane.b32.xlu0 %v2462_v12, %s3214_s25  ;;  %v2463_v49 = vmul.f32 %v3860_v44, %v2459_v37  ;;  %v2829_v12 = vpack.c.bf16 %v3539_v25, %v3539_v25  ;;  %v2833_v25 = vpack.c.bf16 %v3581_v30, %v3581_v30  ;;  %v2837_v30 = vpack.c.bf16 %v3690_v41, %v3690_v41 }
0x153b   :  { %v2505_v21 = vpop.permute.xlu0 %2504  ;;  %v2841_v41 = vpack.c.bf16 %v3739_v59, %v3739_v59  ;;  %v2845_v59 = vpack.c.bf16 %v3788_v31, %v3788_v31 }
0x153c   :  { %v2510_v15 = vmul.f32 %v3858_v57, %v2505_v21  ;;  %2468 = vrot.lane.b32.xlu1 %v2463_v49, %s3214_s25 }
0x153d   :  { %v2507_v1 = vpop.permute.xlu1 %2506 }
0x153e   :  { %2514 = vrot.lane.b32.xlu0 %v2510_v15, %s3214_s25  ;;  %v2511_v14 = vmul.f32 %v3866_v45, %v2507_v1 }
0x153f   :  { %v2447_v20 = vpop.permute.xlu0 %2446 }
0x1540   :  { %2516 = vrot.lane.b32.xlu1 %v2511_v14, %s3214_s25  ;;  %v2452_v39 = vmul.f32 %v3854_v53, %v2447_v20 }
0x1541   :  { %v2449_v63 = vpop.permute.xlu1 %2448 }
0x1542   :  { %730 = vrot.lane.b32.xlu0 %v2822_v4, %s3214_s25  ;;  %v2453_v9 = vmul.f32 %v3860_v44, %v2449_v63 }
0x1544   :  { %732 = vrot.lane.b32.xlu1 %v2823_v27, %s3214_s25 }
0x1546   :  { %743 = vrot.lane.b32.xlu0 %v2824_v58, %s3214_s25 }
0x1548   :  { %745 = vrot.lane.b32.xlu1 %v2825_v2, %s3214_s25 }
0x15ac   :  { %v2467_v61 = vpop.permute.xlu0 %2466 }
0x15ad   :  { %v2472_v24 = vadd.f32 %v2467_v61, %v2452_v39 }
0x15ae   :  { %v2469_v19 = vpop.permute.xlu1 %2468 }
0x15af   :  { %3203 = vtanh.f32 %v2472_v24  ;;  %v2473_v17 = vadd.f32 %v2469_v19, %v2453_v9 }
0x15b0   :  { %v2515_v43 = vpop.permute.xlu0 %2514 }
0x15b1   :  { %v3885_v47 = vadd.f32 %v2515_v43, %v2500_v35 }
0x15b2   :  { %v2517_v16 = vpop.permute.xlu1 %2516 }
0x15b3   :  { %3205 = vtanh.f32 %v3885_v47  ;;  %v3893_v40 = vadd.f32 %v2517_v16, %v2501_v13 }
0x15b4   :  { %3207 = vtanh.f32 %v2473_v17  ;;  %v731_v51 = vpop.permute.xlu0 %730 }
0x15b5   :  { %737 = vst.msk [vmem:[%s4121_s5] sm:$0xf] %vm736_vm3, %v731_v51  ;;  %3209 = vtanh.f32 %v3893_v40 }
0x15b6   :  { %v733_v36 = vpop.permute.xlu1 %732 }
0x15b7   :  { %738 = vst.msk [vmem:[%s4121_s5 + $0x4] sm:$0xf] %vm736_vm3, %v733_v36 }
0x15b8   :  { %v744_v8 = vpop.permute.xlu0 %743 }
0x15b9   :  { %v3204_v23 = vpop.eup %3203  ;;  %2675 = vst.msk [vmem:[%s4122_s6 + $0x38] sm:$0xf] %vm736_vm3, %v744_v8 }
0x15ba   :  { %2478 = vrot.lane.b32.xlu0 %v3204_v23, %s3213_s3  ;;  %v746_v38 = vpop.permute.xlu1 %745 }
0x15bb   :  { %2676 = vst.msk [vmem:[%s4122_s6 + $0x3c] sm:$0xf] %vm736_vm3, %v746_v38 }
0x15bd   :  { %v3206_v26 = vpop.eup %3205 }
0x15be   :  { %v3208_v56 = vpop.eup %3207  ;;  %2526 = vrot.lane.b32.xlu0 %v3206_v26, %s3213_s3 }
0x15bf   :  { %2480 = vrot.lane.b32.xlu1 %v3208_v56, %s3213_s3  ;;  %v3210_v29 = vpop.eup %3209 }
0x15c2   :  { %992 = vrot.lane.b32.xlu0 %v2826_v54, %s3214_s25 }
0x15c3   :  { %2528 = vrot.lane.b32.xlu1 %v3210_v29, %s3213_s3 }
0x15c6   :  { %1005 = vrot.lane.b32.xlu0 %v2828_v50, %s3214_s25 }
0x15c7   :  { %994 = vrot.lane.b32.xlu1 %v2827_v60, %s3214_s25 }
0x15ca   :  { %2538 = vrot.lane.b32.xlu0 %v2473_v17, %s3215_s26 }
0x15cb   :  { %2536 = vrot.lane.b32.xlu1 %v2472_v24, %s3215_s26 }
0x15ce   :  { %1254 = vrot.lane.b32.xlu0 %v2830_v7, %s3214_s25 }
0x15cf   :  { %1007 = vrot.lane.b32.xlu1 %v2829_v12, %s3214_s25 }
0x15d2   :  { %1267 = vrot.lane.b32.xlu0 %v2832_v34, %s3214_s25 }
0x15d3   :  { %1256 = vrot.lane.b32.xlu1 %v2831_v55, %s3214_s25 }
0x15d6   :  { %1516 = vrot.lane.b32.xlu0 %v2834_v46, %s3214_s25 }
0x15d7   :  { %1269 = vrot.lane.b32.xlu1 %v2833_v25, %s3214_s25 }
0x15da   :  { %1529 = vrot.lane.b32.xlu0 %v2836_v33, %s3214_s25 }
0x15db   :  { %1518 = vrot.lane.b32.xlu1 %v2835_v52, %s3214_s25 }
0x15de   :  { %1778 = vrot.lane.b32.xlu0 %v2838_v42, %s3214_s25 }
0x15df   :  { %1531 = vrot.lane.b32.xlu1 %v2837_v30, %s3214_s25 }
0x15e2   :  { %1791 = vrot.lane.b32.xlu0 %v2840_v18, %s3214_s25 }
0x15e3   :  { %1780 = vrot.lane.b32.xlu1 %v2839_v11, %s3214_s25 }
0x15e6   :  { %2040 = vrot.lane.b32.xlu0 %v2842_v48, %s3214_s25 }
0x15e7   :  { %1793 = vrot.lane.b32.xlu1 %v2841_v41, %s3214_s25 }
0x15ea   :  { %2053 = vrot.lane.b32.xlu0 %v2844_v0, %s3214_s25 }
0x15eb   :  { %2042 = vrot.lane.b32.xlu1 %v2843_v6, %s3214_s25 }
0x15ee   :  { %2302 = vrot.lane.b32.xlu0 %v2846_v62, %s3214_s25 }
0x15ef   :  { %2055 = vrot.lane.b32.xlu1 %v2845_v59, %s3214_s25 }
0x15f2   :  { %2315 = vrot.lane.b32.xlu0 %v2848_v10, %s3214_s25 }
0x15f3   :  { %2304 = vrot.lane.b32.xlu1 %v2847_v3, %s3214_s25 }
0x15f7   :  { %2317 = vrot.lane.b32.xlu1 %v2849_v22, %s3214_s25 }
0x162c   :  { %v2479_v31 = vpop.permute.xlu0 %2478 }
0x162d   :  { %v2484_v21 = vmul.f32 %v3854_v53, %v2479_v31 }
0x162f   :  { %v2850_v37 = vpack.c.bf16 %v2484_v21, %v2484_v21 }
0x1630   :  { %v2527_v15 = vpop.permute.xlu0 %2526 }
0x1631   :  { %v2481_v49 = vpop.permute.xlu1 %2480  ;;  %2563 = vrot.lane.b32.xlu0 %v2850_v37, %s3214_s25  ;;  %v2532_v5 = vmul.f32 %v3858_v57, %v2527_v15 }
0x1632   :  { %v2485_v32 = vmul.f32 %v3860_v44, %v2481_v49 }
0x1633   :  { %v2852_v57 = vpack.c.bf16 %v2532_v5, %v2532_v5 }
0x1634   :  { %v2546_v28 = vpack.c.bf16 %v2485_v32, %v2484_v21  ;;  %v993_v4 = vpop.permute.xlu0 %992  ;;  %v2851_v53 = vpack.c.bf16 %v2485_v32, %v2485_v32 }
0x1635   :  { %v2529_v1 = vpop.permute.xlu1 %2528  ;;  %2692 = vst.msk [vmem:[%s4121_s5 + $0x8] sm:$0xf] %vm736_vm3, %v993_v4 }
0x1636   :  { %v2533_v14 = vmul.f32 %v3866_v45, %v2529_v1  ;;  %2549 = vrot.lane.b32.xlu1 %v2546_v28, %s3214_s25 }
0x1638   :  { %v2547_v58 = vpack.c.bf16 %v2533_v14, %v2532_v5  ;;  %v1006_v27 = vpop.permute.xlu0 %1005  ;;  %v2853_v44 = vpack.c.bf16 %v2533_v14, %v2533_v14 }
0x1639   :  { %v995_v2 = vpop.permute.xlu1 %994  ;;  %2696 = vst.msk [vmem:[%s4122_s6 + $0x30] sm:$0xf] %vm736_vm3, %v1006_v27 }
0x163a   :  { %2693 = vst.msk [vmem:[%s4121_s5 + $0xc] sm:$0xf] %vm736_vm3, %v995_v2  ;;  %2565 = vrot.lane.b32.xlu1 %v2851_v53, %s3214_s25  ;;  %2552 = vrot.lane.b32.xlu0 %v2547_v58, %s3213_s3 }
0x163c   :  { %v2539_v45 = vpop.permute.xlu0 %2538 }
0x163d   :  { %v2537_v20 = vpop.permute.xlu1 %2536  ;;  %v2543_v39 = vsel %vm708_vm2, %v2539_v45, %v3893_v40 }
0x163e   :  { %v2542_v61 = vsel %vm708_vm2, %v2537_v20, %v3885_v47  ;;  %2578 = vrot.lane.b32.xlu1 %v2853_v44, %s3214_s25  ;;  %2576 = vrot.lane.b32.xlu0 %v2852_v57, %s3214_s25  ;;  %2545 = vst.msk [vmem:[#allocation5 + $0x8] sm:$0xff] %vm68_vm1, %v2543_v39 }
0x163f   :  { %2544 = vst.msk [vmem:[#allocation5] sm:$0xff] %vm68_vm1, %v2542_v61 }
0x1640   :  { %v1255_v63 = vpop.permute.xlu0 %1254 }
0x1641   :  { %v1008_v24 = vpop.permute.xlu1 %1007  ;;  %2713 = vst.msk [vmem:[%s4121_s5 + $0x10] sm:$0xf] %vm736_vm3, %v1255_v63 }
0x1642   :  { %2697 = vst.msk [vmem:[%s4122_s6 + $0x34] sm:$0xf] %vm736_vm3, %v1008_v24 }
0x1644   :  { %v1268_v35 = vpop.permute.xlu0 %1267 }
0x1645   :  { %v1257_v9 = vpop.permute.xlu1 %1256  ;;  %2717 = vst.msk [vmem:[%s4122_s6 + $0x28] sm:$0xf] %vm736_vm3, %v1268_v35 }
0x1646   :  { %2714 = vst.msk [vmem:[%s4121_s5 + $0x14] sm:$0xf] %vm736_vm3, %v1257_v9 }
0x1648   :  { %v1517_v43 = vpop.permute.xlu0 %1516 }
0x1649   :  { %v1270_v19 = vpop.permute.xlu1 %1269  ;;  %2734 = vst.msk [vmem:[%s4121_s5 + $0x18] sm:$0xf] %vm736_vm3, %v1517_v43 }
0x164a   :  { %2718 = vst.msk [vmem:[%s4122_s6 + $0x2c] sm:$0xf] %vm736_vm3, %v1270_v19 }
0x164c   :  { %v1530_v47 = vpop.permute.xlu0 %1529 }
0x164d   :  { %v1519_v17 = vpop.permute.xlu1 %1518  ;;  %2738 = vst.msk [vmem:[%s4122_s6 + $0x20] sm:$0xf] %vm736_vm3, %v1530_v47 }
0x164e   :  { %2735 = vst.msk [vmem:[%s4121_s5 + $0x1c] sm:$0xf] %vm736_vm3, %v1519_v17 }
0x1650   :  { %v1779_v13 = vpop.permute.xlu0 %1778 }
0x1651   :  { %v1532_v51 = vpop.permute.xlu1 %1531  ;;  %2755 = vst.msk [vmem:[%s4121_s5 + $0x20] sm:$0xf] %vm736_vm3, %v1779_v13 }
0x1652   :  { %2739 = vst.msk [vmem:[%s4122_s6 + $0x24] sm:$0xf] %vm736_vm3, %v1532_v51 }
0x1654   :  { %v1792_v16 = vpop.permute.xlu0 %1791 }
0x1655   :  { %v1781_v40 = vpop.permute.xlu1 %1780  ;;  %2759 = vst.msk [vmem:[%s4122_s6 + $0x18] sm:$0xf] %vm736_vm3, %v1792_v16 }
0x1656   :  { %2756 = vst.msk [vmem:[%s4121_s5 + $0x24] sm:$0xf] %vm736_vm3, %v1781_v40 }
0x1658   :  { %v2041_v8 = vpop.permute.xlu0 %2040 }
0x1659   :  { %v1794_v23 = vpop.permute.xlu1 %1793  ;;  %2776 = vst.msk [vmem:[%s4121_s5 + $0x28] sm:$0xf] %vm736_vm3, %v2041_v8 }
0x165a   :  { %2760 = vst.msk [vmem:[%s4122_s6 + $0x1c] sm:$0xf] %vm736_vm3, %v1794_v23 }
0x165c   :  { %v2054_v36 = vpop.permute.xlu0 %2053 }
0x165d   :  { %v2043_v26 = vpop.permute.xlu1 %2042  ;;  %2780 = vst.msk [vmem:[%s4122_s6 + $0x10] sm:$0xf] %vm736_vm3, %v2054_v36 }
0x165e   :  { %2777 = vst.msk [vmem:[%s4121_s5 + $0x2c] sm:$0xf] %vm736_vm3, %v2043_v26 }
0x1660   :  { %v2303_v38 = vpop.permute.xlu0 %2302 }
0x1661   :  { %v2056_v56 = vpop.permute.xlu1 %2055  ;;  %2797 = vst.msk [vmem:[%s4121_s5 + $0x30] sm:$0xf] %vm736_vm3, %v2303_v38 }
0x1662   :  { %2781 = vst.msk [vmem:[%s4122_s6 + $0x14] sm:$0xf] %vm736_vm3, %v2056_v56 }
0x1664   :  { %v2316_v54 = vpop.permute.xlu0 %2315 }
0x1665   :  { %v2305_v29 = vpop.permute.xlu1 %2304  ;;  %2801 = vst.msk [vmem:[%s4122_s6 + $0x8] sm:$0xf] %vm736_vm3, %v2316_v54 }
0x1666   :  { %2798 = vst.msk [vmem:[%s4121_s5 + $0x34] sm:$0xf] %vm736_vm3, %v2305_v29 }
0x1669   :  { %v2318_v50 = vpop.permute.xlu1 %2317 }
0x166a   :  { %2802 = vst.msk [vmem:[%s4122_s6 + $0xc] sm:$0xf] %vm736_vm3, %v2318_v50 }
0x16a3   :  { %v2564_v60 = vpop.permute.xlu0 %2563 }
0x16a4   :  { %2818 = vst.msk [vmem:[%s4121_s5 + $0x38] sm:$0xf] %vm736_vm3, %v2564_v60 }
0x16a8   :  { %v2550_v7 = vpop.permute.xlu1 %2549 }
0x16ac   :  { %v2566_v12 = vpop.permute.xlu1 %2565  ;;  %v2553_v34 = vpop.permute.xlu0 %2552 }
0x16ad   :  { %2819 = vst.msk [vmem:[%s4121_s5 + $0x3c] sm:$0xf] %vm736_vm3, %v2566_v12  ;;  %v2556_v55 = vsel %vm708_vm2, %v2550_v7, %v2553_v34 }
0x16ae   :  { %2558 = vst.msk [vmem:[#allocation4] sm:$0xff] %vm68_vm1, %v2556_v55 }
0x16b0   :  { %v2579_v46 = vpop.permute.xlu1 %2578  ;;  %v2577_v25 = vpop.permute.xlu0 %2576 }
0x16b1   :  { %2583 = vst.msk [vmem:[%s4122_s6 + $0x4] sm:$0xf] %vm736_vm3, %v2579_v46  ;;  %2582 = vst.msk [vmem:[%s4122_s6] sm:$0xf] %vm736_vm3, %v2577_v25 }

// kernel: ner_forward.4
= control target key start
LH: loop header
LB: loop body
LE: loop exit
PB: predicated region body
PF: predicated region fallthrough
CT: control target
= control target key end

     0   :  { %vm195_vm0 = vcmask 261120   ;;  %vm99_vm1 = vcmask 523264   ;;  %v3839_v1 = vmov 0   ;;  %v3840_v50 = vmov 0.0   ;;  %s3842_s30 = smov 32   ;;  %s3843_s9 = smov 96   ;;  %s4854_s4 = inlined_call_operand.vmem [shape: bf16[64,256], index: 4, kind: input, shape index: {}]   ;;  %s4855_s1 = inlined_call_operand.vmem [shape: bf16[8,16,32], index: 1, kind: input, shape index: {}, may-alias: {1,3}]   ;;  %s4856_s3 = inlined_call_operand.vmem [shape: bf16[8,16,32], index: 3, kind: input, shape index: {}, may-alias: {1,3}]   ;;  %s4857_s0 = inlined_call_operand.vmem [shape: bf16[8,16,32], index: 0, kind: input, shape index: {}, may-alias: {0,2}]   ;;  %s4858_s2 = inlined_call_operand.vmem [shape: bf16[8,16,32], index: 2, kind: input, shape index: {}, may-alias: {0,2}]   ;;  %s4859_s6 = inlined_call_operand.vmem [shape: bf16[64,256], index: 6, kind: input, shape index: {}]   ;;  %s4860_s5 = inlined_call_operand.vmem [shape: f32[1,256], index: 5, kind: input, shape index: {}]   ;;  %s4861_s7 = inlined_call_operand.vmem [shape: bf16[8,16,32], index: 7, kind: output, shape index: {0}]   ;;  %s4862_s8 = inlined_call_operand.vmem [shape: bf16[8,16,32], index: 8, kind: output, shape index: {1}]  }
   0x1   :  { %v3519_v0 = vld [vmem:[%s4854_s4 + $0x20] ss:$8 sps:$4 sm:$0xff]   ;;  %100 = vst.msk [vmem:[#allocation4] sm:$0xff] %vm99_vm1, %v3839_v1  ;;  %v3520_v2 = vld [vmem:[%s4854_s4 + $0x24] ss:$8 sps:$4 sm:$0xff]   ;;  %v3528_v10 = vld [vmem:[%s4855_s1 + $0x10] sm:$0xff]  }
   0x2   :  { %3402 = vmatprep.subr.bf16.mxu0 %v3519_v0  ;;  %v3521_v3 = vld [vmem:[%s4854_s4 + $0x30] ss:$8 sps:$4 sm:$0xff]   ;;  %3442 = vmatprep.subr.bf16.mxu1 %v3520_v2  ;;  %v3522_v4 = vld [vmem:[%s4854_s4 + $0x34] ss:$8 sps:$4 sm:$0xff]   ;;  %v3523_v5 = vld [vmem:[%s4855_s1] sm:$0xff]   ;;  %101 = vst.msk [vmem:[#allocation5] sm:$0xff] %vm99_vm1, %v3840_v50 }
   0x3   :  { %3403 = vmatpush3.bf16.msra.mxu0 %v3519_v0  ;;  %3443 = vmatpush3.bf16.msra.mxu1 %v3520_v2  ;;  %v3524_v6 = vld [vmem:[%s4856_s3] sm:$0xff]   ;;  %v3525_v7 = vld [vmem:[%s4855_s1 + $0x8] sm:$0xff]   ;;  %v3529_v11 = vld [vmem:[%s4856_s3 + $0x10] sm:$0xff]   ;;  %102 = vst.msk [vmem:[#allocation5 + $0x8] sm:$0xff] %vm99_vm1, %v3840_v50  ;;  %vm1200_vm2 = vcmask 257024  }
   0x4   :  { %3404 = vmatprep.subr.bf16.mxu0 %v3521_v3  ;;  %3444 = vmatprep.subr.bf16.mxu1 %v3522_v4  ;;  %v3526_v8 = vld [vmem:[%s4854_s4] ss:$8 sps:$4 sm:$0xff]   ;;  %v3530_v12 = vld [vmem:[%s4855_s1 + $0x18] sm:$0xff]   ;;  %v3532_v13 = vld [vmem:[%s4854_s4 + $0x4] ss:$8 sps:$4 sm:$0xff]  }
   0x5   :  { %3406 = vmatprep.mubr.msk.bf16.mxu0 %vm195_vm0, %v3523_v5  ;;  %3446 = vmatprep.mubr.msk.bf16.mxu1 %vm195_vm0, %v3524_v6  ;;  %v3527_v9 = vld [vmem:[%s4856_s3 + $0x8] sm:$0xff]   ;;  %v3531_v14 = vld [vmem:[%s4856_s3 + $0x18] sm:$0xff]   ;;  %v3533_v15 = vld [vmem:[%s4855_s1 + $0x20] sm:$0xff]  }
   0x6   :  { %v3534_v16 = vld [vmem:[%s4856_s3 + $0x20] sm:$0xff]   ;;  %v3536_v17 = vld [vmem:[%s4854_s4 + $0x10] ss:$8 sps:$4 sm:$0xff]   ;;  %v3535_v18 = vld [vmem:[%s4855_s1 + $0x28] sm:$0xff]  }
   0x7   :  { %3405 = vmatpush3.bf16.msra.mxu0 %v3521_v3  ;;  %3445 = vmatpush3.bf16.msra.mxu1 %v3522_v4  ;;  %v3537_v19 = vld [vmem:[%s4856_s3 + $0x28] sm:$0xff]   ;;  %v3538_v20 = vld [vmem:[%s4855_s1 + $0x30] sm:$0xff]   ;;  %v3540_v23 = vld [vmem:[%s4855_s1 + $0x38] sm:$0xff]  }
   0x8   :  { %3422 = vmatprep.subr.bf16.mxu0 %v3526_v8  ;;  %3462 = vmatprep.subr.bf16.mxu1 %v3532_v13  ;;  %v3542_v21 = vld [vmem:[%s4854_s4 + $0x14] ss:$8 sps:$4 sm:$0xff]   ;;  %v3549_v24 = vld [vmem:[%s4859_s6 + $0x4] ss:$8 sps:$4 sm:$0xff]   ;;  %v3999_v30 = vld [vmem:[%s4859_s6] ss:$8 sps:$4 sm:$0xff]  }
   0x9   :  { %v3539_v22 = vld [vmem:[%s4856_s3 + $0x30] sm:$0xff]   ;;  %v3541_v25 = vld [vmem:[%s4856_s3 + $0x38] sm:$0xff]   ;;  %v3543_v26 = vld [vmem:[%s4857_s0] sm:$0xff]  }
   0xa   :  { %3407 = vmatmul.mubr.msk.bf16.vlgmr.msra.gmra.mrb[0].mxu0 %vm195_vm0, %v3525_v7  ;;  %3447 = vmatmul.mubr.msk.bf16.vlgmr.msra.gmra.mrb[0].mxu1 %vm195_vm0, %v3527_v9  ;;  %v3544_v27 = vld [vmem:[%s4858_s2] sm:$0xff]   ;;  %v3545_v28 = vld [vmem:[%s4857_s0 + $0x8] sm:$0xff]   ;;  %v3550_v31 = vld [vmem:[%s4857_s0 + $0x10] sm:$0xff]  }
   0xb   :  { %3423 = vmatpush3.bf16.msra.mxu0 %v3526_v8  ;;  %3410 = vmatprep.mubr.msk.bf16.mxu0 %vm195_vm0, %v3528_v10  ;;  %v3546_v29 = vld [vmem:[%s4858_s2 + $0x8] sm:$0xff]   ;;  %v3551_v32 = vld [vmem:[%s4858_s2 + $0x10] sm:$0xff]   ;;  %v3552_v35 = vld [vmem:[%s4857_s0 + $0x18] sm:$0xff]  }
   0xc   :  { %3450 = vmatprep.mubr.msk.bf16.mxu1 %vm195_vm0, %v3529_v11  ;;  %3463 = vmatpush3.bf16.msra.mxu1 %v3532_v13  ;;  %v4010_v33 = vld [vmem:[%s4859_s6 + $0x14] ss:$8 sps:$4 sm:$0xff]   ;;  %v4018_v34 = vld [vmem:[%s4859_s6 + $0x10] ss:$8 sps:$4 sm:$0xff]   ;;  %v4028_v36 = vld [vmem:[%s4859_s6 + $0x24] ss:$8 sps:$4 sm:$0xff]  }
   0xd   :  { %3424 = vmatprep.subr.bf16.mxu0 %v3536_v17  ;;  %3464 = vmatprep.subr.bf16.mxu1 %v3542_v21  ;;  %v3553_v37 = vld [vmem:[%s4858_s2 + $0x18] sm:$0xff]   ;;  %v3557_v38 = vld [vmem:[%s4857_s0 + $0x20] sm:$0xff]   ;;  %v3559_v43 = vld [vmem:[%s4857_s0 + $0x28] sm:$0xff]  }
   0xe   :  { %v3558_v39 = vld [vmem:[%s4858_s2 + $0x20] sm:$0xff]   ;;  %v4052_v41 = vld [vmem:[%s4859_s6 + $0x34] ss:$8 sps:$4 sm:$0xff]   ;;  %v4064_v42 = vld [vmem:[%s4859_s6 + $0x30] ss:$8 sps:$4 sm:$0xff]  }
   0xf   :  { %3425 = vmatpush3.bf16.msra.mxu0 %v3536_v17  ;;  %v4046_v40 = vld [vmem:[%s4859_s6 + $0x20] ss:$8 sps:$4 sm:$0xff]   ;;  %v3564_v45 = vld [vmem:[%s4857_s0 + $0x30] sm:$0xff]   ;;  %v3566_v47 = vld [vmem:[%s4857_s0 + $0x38] sm:$0xff]  }
  0x10   :  { %3465 = vmatpush3.bf16.msra.mxu1 %v3542_v21  ;;  %1007 = vmatprep.subr.bf16.mxu0 %v3549_v24  ;;  %v3560_v44 = vld [vmem:[%s4858_s2 + $0x28] sm:$0xff]   ;;  %v3565_v46 = vld [vmem:[%s4858_s2 + $0x30] sm:$0xff]   ;;  %v3567_v48 = vld [vmem:[%s4858_s2 + $0x38] sm:$0xff]  }
  0x11   :  { %1268 = vmatprep.subr.bf16.mxu1 %v3549_v24  ;;  %v954_v49 = vld [vmem:[#allocation4] sm:$0xff] }
  0x12   :  { %3411 = vmatmul.mubr.msk.bf16.gmra.mrb[4].mxu0 %vm195_vm0, %v3530_v12  ;;  %3451 = vmatmul.mubr.msk.bf16.gmra.mrb[4].mxu1 %vm195_vm0, %v3531_v14  ;;  %v4111_v51 = vld [vmem:[%s4860_s5] ss:$0 sm:$0xff]  ;;  %v4116_v52 = vld [vmem:[%s4860_s5 + $0x1] ss:$0 sm:$0xff]  ;;  %s3841_s5 = smov 64  }
  0x13   :  { %3414 = vmatprep.mubr.msk.bf16.mxu0 %vm195_vm0, %v3533_v15  ;;  %3454 = vmatprep.mubr.msk.bf16.mxu1 %vm195_vm0, %v3534_v16 }
  0x1a   :  { %3415 = vmatmul.mubr.msk.bf16.gmra.mrb[8].mxu0 %vm195_vm0, %v3535_v18  ;;  %3455 = vmatmul.mubr.msk.bf16.gmra.mrb[8].mxu1 %vm195_vm0, %v3537_v19 }
  0x1b   :  { %3418 = vmatprep.mubr.msk.bf16.mxu0 %vm195_vm0, %v3538_v20  ;;  %3458 = vmatprep.mubr.msk.bf16.mxu1 %vm195_vm0, %v3539_v22 }
  0x22   :  { %3419 = vmatmul.mubr.msk.bf16.gmra.mrb[12].mxu0 %vm195_vm0, %v3540_v23  ;;  %3459 = vmatmul.mubr.msk.bf16.gmra.mrb[12].mxu1 %vm195_vm0, %v3541_v25 }
  0x23   :  { %3426 = vmatprep.mubr.msk.bf16.mxu0 %vm195_vm0, %v3543_v26  ;;  %3466 = vmatprep.mubr.msk.bf16.mxu1 %vm195_vm0, %v3544_v27 }
  0x2a   :  { %3427 = vmatmul.mubr.msk.bf16.vlgmr.msra.gmra.mrb[0].mxu0 %vm195_vm0, %v3545_v28  ;;  %3467 = vmatmul.mubr.msk.bf16.vlgmr.msra.gmra.mrb[0].mxu1 %vm195_vm0, %v3546_v29 }
  0x2b   :  { %1008 = vmatpush1.bf16.msra.mxu0 %v3999_v30  ;;  %3430 = vmatprep.mubr.msk.bf16.mxu0 %vm195_vm0, %v3550_v31 }
  0x2c   :  { %3470 = vmatprep.mubr.msk.bf16.mxu1 %vm195_vm0, %v3551_v32  ;;  %1009 = vmatprep.subr.bf16.mxu0 %v4010_v33 }
  0x2d   :  { %1269 = vmatpush1.bf16.msra.mxu1 %v3999_v30 }
  0x2e   :  { %1270 = vmatprep.subr.bf16.mxu1 %v4010_v33 }
  0x2f   :  { %1010 = vmatpush1.bf16.msra.mxu0 %v4018_v34 }
  0x30   :  { %1011 = vmatprep.subr.bf16.mxu0 %v4028_v36 }
  0x31   :  { %1271 = vmatpush1.bf16.msra.mxu1 %v4018_v34 }
  0x32   :  { %3431 = vmatmul.mubr.msk.bf16.gmra.mrb[4].mxu0 %vm195_vm0, %v3552_v35  ;;  %1272 = vmatprep.subr.bf16.mxu1 %v4028_v36 }
  0x33   :  { %3471 = vmatmul.mubr.msk.bf16.gmra.mrb[4].mxu1 %vm195_vm0, %v3553_v37  ;;  %3434 = vmatprep.mubr.msk.bf16.mxu0 %vm195_vm0, %v3557_v38 }
  0x34   :  { %3474 = vmatprep.mubr.msk.bf16.mxu1 %vm195_vm0, %v3558_v39  ;;  %1012 = vmatpush1.bf16.msra.mxu0 %v4046_v40 }
  0x35   :  { %1013 = vmatprep.subr.bf16.mxu0 %v4052_v41  ;;  %1273 = vmatpush1.bf16.msra.mxu1 %v4046_v40 }
  0x36   :  { %1274 = vmatprep.subr.bf16.mxu1 %v4052_v41 }
  0x38   :  { %1014 = vmatpush1.bf16.msra.mxu0 %v4064_v42 }
  0x39   :  { %1275 = vmatpush1.bf16.msra.mxu1 %v4064_v42  ;;  %1530 = vmatprep.subr.bf16.mxu0 %v3549_v24 }
  0x3a   :  { %3435 = vmatmul.mubr.msk.bf16.gmra.mrb[8].mxu0 %vm195_vm0, %v3559_v43  ;;  %1792 = vmatprep.subr.bf16.mxu1 %v3549_v24 }
  0x3b   :  { %3475 = vmatmul.mubr.msk.bf16.gmra.mrb[8].mxu1 %vm195_vm0, %v3560_v44  ;;  %3438 = vmatprep.mubr.msk.bf16.mxu0 %vm195_vm0, %v3564_v45 }
  0x3c   :  { %3478 = vmatprep.mubr.msk.bf16.mxu1 %vm195_vm0, %v3565_v46 }
  0x42   :  { %3439 = vmatmul.mubr.msk.bf16.gmra.mrb[12].mxu0 %vm195_vm0, %v3566_v47 }
  0x43   :  { %3479 = vmatmul.mubr.msk.bf16.gmra.mrb[12].mxu1 %vm195_vm0, %v3567_v48  ;;  %1039 = vmatprep.mubr.bf16.mxu0 %v3839_v1 }
  0x44   :  { %1300 = vmatprep.mubr.bf16.mxu1 %v3839_v1 }
  0x4a   :  { %3174 = vmatmul.mubr.msk.bf16.vlgmr.msra.gmra.mrb[16].mxu0 %vm99_vm1, %v954_v49 }
  0x4b   :  { %1531 = vmatpush1.bf16.msra.mxu0 %v3999_v30  ;;  %1562 = vmatprep.mubr.bf16.mxu0 %v3839_v1 }
  0x4c   :  { %1532 = vmatprep.subr.bf16.mxu0 %v4010_v33 }
  0x4f   :  { %1533 = vmatpush1.bf16.msra.mxu0 %v4018_v34 }
  0x50   :  { %1534 = vmatprep.subr.bf16.mxu0 %v4028_v36 }
  0x53   :  { %1535 = vmatpush1.bf16.msra.mxu0 %v4046_v40 }
  0x54   :  { %1536 = vmatprep.subr.bf16.mxu0 %v4052_v41 }
  0x57   :  { %1537 = vmatpush1.bf16.msra.mxu0 %v4064_v42 }
  0xfd   :  { %v3428_v53 = vpop.f32.mrb[0].mxu0  ;;  %v3468_v55 = vpop.f32.mrb[0].mxu1 }
  0xfe   :  { %v4119_v54 = vadd.f32 %v3428_v53, %v4111_v51  ;;  %v427_v56 = vpop.f32.mrb[1].mxu0  ;;  %v4122_v57 = vadd.f32 %v3468_v55, %v4116_v52  ;;  %v852_v58 = vpop.f32.mrb[1].mxu1 }
  0xff   :  { %v3429_v59 = vpop.f32.mrb[2].mxu0  ;;  %v4125_v60 = vadd.f32 %v4116_v52, %v852_v58  ;;  %v3469_v62 = vpop.f32.mrb[2].mxu1 }
 0x100   :  { %v4128_v61 = vadd.f32 %v3429_v59, %v4111_v51  ;;  %v430_v63 = vpop.f32.mrb[3].mxu0  ;;  %v4131_v0 = vadd.f32 %v3469_v62, %v4116_v52  ;;  %v855_v2 = vpop.f32.mrb[3].mxu1 }
 0x101   :  { %v4134_v3 = vadd.f32 %v4116_v52, %v855_v2 }
 0x105   :  { %v3432_v4 = vpop.f32.mrb[4].mxu0 }
 0x106   :  { %v4137_v5 = vadd.f32 %v3432_v4, %v4111_v51  ;;  %v3472_v6 = vpop.f32.mrb[4].mxu1  ;;  %v443_v7 = vpop.f32.mrb[5].mxu0  ;;  %v497_v4 = vadd.f32 %v4111_v51, %v427_v56 }
 0x107   :  { %v4140_v8 = vadd.f32 %v3472_v6, %v4116_v52  ;;  %v4143_v9 = vadd.f32 %v4111_v51, %v443_v7  ;;  %v868_v10 = vpop.f32.mrb[5].mxu1  ;;  %v3433_v11 = vpop.f32.mrb[6].mxu0 }
 0x108   :  { %v4146_v12 = vadd.f32 %v4116_v52, %v868_v10  ;;  %v4149_v13 = vadd.f32 %v3433_v11, %v4111_v51  ;;  %v3473_v14 = vpop.f32.mrb[6].mxu1  ;;  %v446_v15 = vpop.f32.mrb[7].mxu0  ;;  %v498_v10 = vadd.f32 %v4111_v51, %v430_v63  ;;  %v1059_v63 = vld [vmem:[#allocation5] sm:$0xff] }
 0x109   :  { %v4152_v16 = vadd.f32 %v3473_v14, %v4116_v52  ;;  %v4155_v17 = vadd.f32 %v4111_v51, %v446_v15  ;;  %v871_v18 = vpop.f32.mrb[7].mxu1 }
 0x10a   :  { %v4158_v19 = vadd.f32 %v4116_v52, %v871_v18 }
 0x10d   :  { %v3436_v20 = vpop.f32.mrb[8].mxu0 }
 0x10e   :  { %v4161_v21 = vadd.f32 %v3436_v20, %v4111_v51  ;;  %v3476_v22 = vpop.f32.mrb[8].mxu1  ;;  %v459_v23 = vpop.f32.mrb[9].mxu0 }
 0x10f   :  { %v4164_v24 = vadd.f32 %v3476_v22, %v4116_v52  ;;  %v4167_v25 = vadd.f32 %v4111_v51, %v459_v23  ;;  %v884_v26 = vpop.f32.mrb[9].mxu1  ;;  %v3437_v27 = vpop.f32.mrb[10].mxu0 }
 0x110   :  { %v4170_v28 = vadd.f32 %v4116_v52, %v884_v26  ;;  %v4173_v29 = vadd.f32 %v3437_v27, %v4111_v51  ;;  %v3477_v31 = vpop.f32.mrb[10].mxu1  ;;  %v462_v32 = vpop.f32.mrb[11].mxu0 }
 0x111   :  { %v4176_v35 = vadd.f32 %v3477_v31, %v4116_v52  ;;  %v4179_v37 = vadd.f32 %v4111_v51, %v462_v32  ;;  %v887_v38 = vpop.f32.mrb[11].mxu1  ;;  %v1060_v31 = vld [vmem:[#allocation5 + $0x8] sm:$0xff] }
 0x112   :  { %v4182_v39 = vadd.f32 %v4116_v52, %v887_v38 }
 0x115   :  { %v3440_v43 = vpop.f32.mrb[12].mxu0 }
 0x116   :  { %v4185_v44 = vadd.f32 %v3440_v43, %v4111_v51  ;;  %v3480_v45 = vpop.f32.mrb[12].mxu1  ;;  %v475_v46 = vpop.f32.mrb[13].mxu0 }
 0x117   :  { %v4188_v47 = vadd.f32 %v4111_v51, %v475_v46  ;;  %v900_v48 = vpop.f32.mrb[13].mxu1  ;;  %v3441_v49 = vpop.f32.mrb[14].mxu0  ;;  %v936_v6 = vadd.f32 %v3480_v45, %v4116_v52 }
 0x118   :  { %v4191_v50 = vadd.f32 %v4116_v52, %v900_v48  ;;  %v4194_v53 = vadd.f32 %v3441_v49, %v4111_v51  ;;  %v3481_v55 = vpop.f32.mrb[14].mxu1  ;;  %v478_v58 = vpop.f32.mrb[15].mxu0 }
 0x119   :  { %v4197_v59 = vadd.f32 %v4111_v51, %v478_v58  ;;  %v903_v62 = vpop.f32.mrb[15].mxu1  ;;  %v937_v15 = vadd.f32 %v3481_v55, %v4116_v52 }
 0x11a   :  { %v4200_v2 = vadd.f32 %v4116_v52, %v903_v62 }
 0x11d   :  { %v1041_v7 = vpop.f32.mrb[16].mxu0 }
 0x11e   :  { %v1052_v11 = vadd.f32 %v1041_v7, %v497_v4  ;;  %v1043_v14 = vpop.f32.mrb[17].mxu0 }
 0x11f   :  { %v1057_v18 = vadd.f32 %v1043_v14, %v936_v6  ;;  %v1045_v20 = vpop.f32.mrb[18].mxu0 }
 0x120   :  { %3583 = vtanh.f32 %v1052_v11  ;;  %v1053_v22 = vadd.f32 %v1045_v20, %v498_v10  ;;  %v1047_v23 = vpop.f32.mrb[19].mxu0  ;;  %v3175_v32 = vmul.f32 -1.442695, %v1052_v11 }
 0x121   :  { %3585 = vtanh.f32 %v1057_v18  ;;  %v1058_v26 = vadd.f32 %v1047_v23, %v937_v15  ;;  %v3177_v38 = vmul.f32 -1.442695, %v1057_v18 }
 0x122   :  { %3587 = vtanh.f32 %v1053_v22  ;;  %v3176_v43 = vmul.f32 -1.442695, %v1053_v22 }
 0x123   :  { %3589 = vtanh.f32 %v1058_v26  ;;  %v3178_v45 = vmul.f32 -1.442695, %v1058_v26 }
 0x124   :  { %3591 = vpow2.f32 %v3175_v32 }
 0x125   :  { %3593 = vpow2.f32 %v3177_v38 }
 0x126   :  { %3595 = vpow2.f32 %v3176_v43 }
 0x127   :  { %3597 = vpow2.f32 %v3178_v45 }
 0x12a   :  { %v3584_v27 = vpop.eup %3583 }
 0x12b   :  { %v3586_v56 = vpop.eup %3585  ;;  %1087 = vrot.lane.b32.xlu0 %v3584_v27, %s3841_s5 }
 0x12c   :  { %1135 = vrot.lane.b32.xlu1 %v3586_v56, %s3841_s5  ;;  %v3588_v51 = vpop.eup %3587 }
 0x12d   :  { %v3590_v52 = vpop.eup %3589 }
 0x12e   :  { %v3592_v46 = vpop.eup %3591 }
 0x12f   :  { %1089 = vrot.lane.b32.xlu0 %v3588_v51, %s3841_s5  ;;  %v1067_v48 = vadd.f32 1.0, %v3592_v46  ;;  %v3594_v49 = vpop.eup %3593 }
 0x130   :  { %1137 = vrot.lane.b32.xlu1 %v3590_v52, %s3841_s5  ;;  %v3596_v55 = vpop.eup %3595  ;;  %v1123_v58 = vadd.f32 1.0, %v3594_v49 }
 0x131   :  { %3599 = vrcp.f32 %v1067_v48  ;;  %v1068_v62 = vadd.f32 1.0, %v3596_v55  ;;  %v3598_v4 = vpop.eup %3597 }
 0x132   :  { %3601 = vrcp.f32 %v1123_v58  ;;  %v1124_v6 = vadd.f32 1.0, %v3598_v4 }
 0x133   :  { %1077 = vrot.lane.b32.xlu0 %v1059_v63, %s3842_s30  ;;  %3603 = vrcp.f32 %v1068_v62 }
 0x134   :  { %1079 = vrot.lane.b32.xlu1 %v1060_v31, %s3842_s30  ;;  %3605 = vrcp.f32 %v1124_v6 }
 0x13b   :  { %v3600_v7 = vpop.eup %3599 }
 0x13c   :  { %v3602_v15 = vpop.eup %3601 }
 0x13d   :  { %v3604_v18 = vpop.eup %3603  ;;  %v1131_v45 = vmul.f32 %v3602_v15, %v1059_v63 }
 0x13e   :  { %v3606_v27 = vpop.eup %3605 }
 0x13f   :  { %v1132_v62 = vmul.f32 %v3606_v27, %v1060_v31 }
 0x19d   :  { %v1088_v10 = vpop.permute.xlu0 %1087 }
 0x19e   :  { %v1093_v11 = vmul.f32 %v3600_v7, %v1088_v10  ;;  %v1136_v14 = vpop.permute.xlu1 %1135 }
 0x19f   :  { %v1141_v20 = vmul.f32 %v3602_v15, %v1136_v14 }
 0x1a0   :  { %1097 = vrot.lane.b32.xlu0 %v1093_v11, %s3842_s30 }
 0x1a1   :  { %v1090_v22 = vpop.permute.xlu0 %1089 }
 0x1a2   :  { %v1094_v23 = vmul.f32 %v3604_v18, %v1090_v22  ;;  %v1138_v26 = vpop.permute.xlu1 %1137 }
 0x1a3   :  { %v1142_v56 = vmul.f32 %v3606_v27, %v1138_v26 }
 0x1a4   :  { %1145 = vrot.lane.b32.xlu0 %v1141_v20, %s3842_s30  ;;  %1099 = vrot.lane.b32.xlu1 %v1094_v23, %s3842_s30 }
 0x1a5   :  { %v1078_v51 = vpop.permute.xlu0 %1077 }
 0x1a6   :  { %v1083_v52 = vmul.f32 %v3600_v7, %v1078_v51  ;;  %v1080_v38 = vpop.permute.xlu1 %1079 }
 0x1a7   :  { %v1084_v46 = vmul.f32 %v3604_v18, %v1080_v38 }
 0x1a8   :  { %1147 = vrot.lane.b32.xlu1 %v1142_v56, %s3842_s30 }
 0x212   :  { %v1098_v32 = vpop.permute.xlu0 %1097 }
 0x213   :  { %v1103_v43 = vadd.f32 %v1098_v32, %v1083_v52 }
 0x215   :  { %3607 = vtanh.f32 %v1103_v43 }
 0x216   :  { %v1146_v48 = vpop.permute.xlu0 %1145  ;;  %v1100_v55 = vpop.permute.xlu1 %1099 }
 0x217   :  { %v1151_v49 = vadd.f32 %v1146_v48, %v1131_v45  ;;  %v1104_v58 = vadd.f32 %v1100_v55, %v1084_v46 }
 0x219   :  { %3609 = vtanh.f32 %v1151_v49 }
 0x21a   :  { %3611 = vtanh.f32 %v1104_v58  ;;  %v1148_v4 = vpop.permute.xlu1 %1147 }
 0x21b   :  { %v1152_v6 = vadd.f32 %v1148_v4, %v1132_v62 }
 0x21d   :  { %3613 = vtanh.f32 %v1152_v6 }
 0x21f   :  { %v3608_v10 = vpop.eup %3607 }
 0x220   :  { %1109 = vrot.lane.b32.xlu0 %v3608_v10, %s3841_s5 }
 0x223   :  { %v3610_v11 = vpop.eup %3609 }
 0x224   :  { %v3612_v14 = vpop.eup %3611  ;;  %1157 = vrot.lane.b32.xlu0 %v3610_v11, %s3841_s5 }
 0x225   :  { %1111 = vrot.lane.b32.xlu1 %v3612_v14, %s3841_s5 }
 0x227   :  { %v3614_v63 = vpop.eup %3613 }
 0x229   :  { %1159 = vrot.lane.b32.xlu1 %v3614_v63, %s3841_s5 }
 0x292   :  { %v1110_v20 = vpop.permute.xlu0 %1109 }
 0x293   :  { %v4220_v23 = vmul.f32 %v3600_v7, %v1110_v20 }
 0x296   :  { %v1158_v26 = vpop.permute.xlu0 %1157 }
 0x297   :  { %v1112_v22 = vpop.permute.xlu1 %1111  ;;  %v4226_v52 = vmul.f32 %v3602_v15, %v1158_v26 }
 0x298   :  { %v4222_v31 = vmul.f32 %v3604_v18, %v1112_v22 }
 0x29a   :  { %v1177_v56 = vpack.c.bf16 %v4222_v31, %v4220_v23 }
 0x29b   :  { %v1160_v51 = vpop.permute.xlu1 %1159 }
 0x29c   :  { %v4228_v32 = vmul.f32 %v3606_v27, %v1160_v51  ;;  %1180 = vrot.lane.b32.xlu0 %v1177_v56, %s3842_s30 }
 0x29e   :  { %v1178_v38 = vpack.c.bf16 %v4228_v32, %v4226_v52 }
 0x2a0   :  { %1167 = vrot.lane.b32.xlu0 %v1103_v43, %s3843_s9  ;;  %1183 = vrot.lane.b32.xlu1 %v1178_v38, %s3841_s5 }
 0x2a4   :  { %1169 = vrot.lane.b32.xlu1 %v1104_v58, %s3843_s9 }
 0x30e   :  { %v1181_v7 = vpop.permute.xlu0 %1180 }
 0x312   :  { %v1168_v18 = vpop.permute.xlu0 %1167  ;;  %v1184_v45 = vpop.permute.xlu1 %1183 }
 0x313   :  { %v1173_v15 = vsel %vm195_vm0, %v1168_v18, %v1151_v49  ;;  %v1187_v27 = vsel %vm195_vm0, %v1181_v7, %v1184_v45 }
 0x314   :  { %1175 = vst.msk [vmem:[#allocation5] sm:$0xff] %vm99_vm1, %v1173_v15  ;;  %1189 = vst.msk [vmem:[#allocation4] sm:$0xff] %vm99_vm1, %v1187_v27 }
 0x316   :  { %v1170_v46 = vpop.permute.xlu1 %1169 }
 0x317   :  { %v1174_v48 = vsel %vm195_vm0, %v1170_v46, %v1152_v6 }
 0x318   :  { %1176 = vst.msk [vmem:[#allocation5 + $0x8] sm:$0xff] %vm99_vm1, %v1174_v48 }
 0x31b   :  { %v1216_v43 = vld [vmem:[#allocation4] sm:$0xff] }
 0x31c   :  { %3193 = vmatmul.mubr.msk.bf16.vlgmr.msra.gmra.mrb[16].mxu1 %vm99_vm1, %v1216_v43 }
 0x31d   :  { %1793 = vmatpush1.bf16.msra.mxu1 %v3999_v30  ;;  %1824 = vmatprep.mubr.bf16.mxu1 %v3839_v1 }
 0x31e   :  { %1794 = vmatprep.subr.bf16.mxu1 %v4010_v33 }
 0x321   :  { %1795 = vmatpush1.bf16.msra.mxu1 %v4018_v34 }
 0x322   :  { %1796 = vmatprep.subr.bf16.mxu1 %v4028_v36 }
 0x325   :  { %1797 = vmatpush1.bf16.msra.mxu1 %v4046_v40 }
 0x326   :  { %1798 = vmatprep.subr.bf16.mxu1 %v4052_v41 }
 0x329   :  { %1799 = vmatpush1.bf16.msra.mxu1 %v4064_v42  ;;  %v1321_v42 = vld [vmem:[#allocation5] sm:$0xff] }
 0x3ef   :  { %v1302_v49 = vpop.f32.mrb[16].mxu1 }
 0x3f0   :  { %v1314_v55 = vadd.f32 %v1302_v49, %v4119_v54  ;;  %v1304_v58 = vpop.f32.mrb[17].mxu1 }
 0x3f1   :  { %v1319_v30 = vadd.f32 %v1304_v58, %v4191_v50  ;;  %v1306_v62 = vpop.f32.mrb[18].mxu1 }
 0x3f2   :  { %3615 = vtanh.f32 %v1314_v55  ;;  %v1315_v33 = vadd.f32 %v1306_v62, %v4128_v61  ;;  %v1308_v4 = vpop.f32.mrb[19].mxu1  ;;  %v1322_v61 = vld [vmem:[#allocation5 + $0x8] sm:$0xff]  ;;  %v3194_v50 = vmul.f32 -1.442695, %v1314_v55 }
 0x3f3   :  { %v1320_v34 = vadd.f32 %v1308_v4, %v4200_v2  ;;  %3617 = vtanh.f32 %v1319_v30  ;;  %v3196_v2 = vmul.f32 -1.442695, %v1319_v30 }
 0x3f4   :  { %3619 = vtanh.f32 %v1315_v33  ;;  %v3195_v6 = vmul.f32 -1.442695, %v1315_v33 }
 0x3f5   :  { %3621 = vtanh.f32 %v1320_v34  ;;  %v3197_v10 = vmul.f32 -1.442695, %v1320_v34 }
 0x3f6   :  { %3623 = vpow2.f32 %v3194_v50 }
 0x3f7   :  { %3625 = vpow2.f32 %v3196_v2 }
 0x3f8   :  { %3627 = vpow2.f32 %v3195_v6 }
 0x3f9   :  { %3629 = vpow2.f32 %v3197_v10 }
 0x3fc   :  { %v3616_v36 = vpop.eup %3615 }
 0x3fd   :  { %1349 = vrot.lane.b32.xlu0 %v3616_v36, %s3841_s5  ;;  %v3618_v40 = vpop.eup %3617 }
 0x3fe   :  { %v3620_v41 = vpop.eup %3619 }
 0x3ff   :  { %1351 = vrot.lane.b32.xlu1 %v3620_v41, %s3841_s5  ;;  %v3622_v54 = vpop.eup %3621 }
 0x400   :  { %v3624_v11 = vpop.eup %3623 }
 0x401   :  { %1397 = vrot.lane.b32.xlu0 %v3618_v40, %s3841_s5  ;;  %v1329_v14 = vadd.f32 1.0, %v3624_v11  ;;  %v3626_v63 = vpop.eup %3625 }
 0x402   :  { %v3628_v20 = vpop.eup %3627  ;;  %v1385_v22 = vadd.f32 1.0, %v3626_v63 }
 0x403   :  { %1399 = vrot.lane.b32.xlu1 %v3622_v54, %s3841_s5  ;;  %3631 = vrcp.f32 %v1329_v14  ;;  %v1330_v26 = vadd.f32 1.0, %v3628_v20  ;;  %v3630_v56 = vpop.eup %3629 }
 0x404   :  { %3633 = vrcp.f32 %v1385_v22  ;;  %v1386_v51 = vadd.f32 1.0, %v3630_v56 }
 0x405   :  { %1339 = vrot.lane.b32.xlu0 %v1321_v42, %s3842_s30  ;;  %3635 = vrcp.f32 %v1330_v26 }
 0x406   :  { %3637 = vrcp.f32 %v1386_v51 }
 0x407   :  { %1341 = vrot.lane.b32.xlu1 %v1322_v61, %s3842_s30 }
 0x40d   :  { %v3632_v38 = vpop.eup %3631 }
 0x40e   :  { %v3634_v45 = vpop.eup %3633 }
 0x40f   :  { %v3636_v27 = vpop.eup %3635  ;;  %v1393_v36 = vmul.f32 %v3634_v45, %v1321_v42 }
 0x410   :  { %v3638_v49 = vpop.eup %3637 }
 0x411   :  { %v1394_v6 = vmul.f32 %v3638_v49, %v1322_v61 }
 0x46f   :  { %v1350_v7 = vpop.permute.xlu0 %1349 }
 0x470   :  { %v1355_v18 = vmul.f32 %v3632_v38, %v1350_v7 }
 0x471   :  { %v1352_v46 = vpop.permute.xlu1 %1351 }
 0x472   :  { %1359 = vrot.lane.b32.xlu0 %v1355_v18, %s3842_s30  ;;  %v1356_v43 = vmul.f32 %v3636_v27, %v1352_v46 }
 0x473   :  { %v1398_v15 = vpop.permute.xlu0 %1397 }
 0x474   :  { %v1403_v48 = vmul.f32 %v3634_v45, %v1398_v15  ;;  %1361 = vrot.lane.b32.xlu1 %v1356_v43, %s3842_s30 }
 0x475   :  { %v1400_v55 = vpop.permute.xlu1 %1399 }
 0x476   :  { %1407 = vrot.lane.b32.xlu0 %v1403_v48, %s3842_s30  ;;  %v1404_v58 = vmul.f32 %v3638_v49, %v1400_v55 }
 0x477   :  { %v1340_v30 = vpop.permute.xlu0 %1339 }
 0x478   :  { %1409 = vrot.lane.b32.xlu1 %v1404_v58, %s3842_s30  ;;  %v1345_v62 = vmul.f32 %v3632_v38, %v1340_v30 }
 0x479   :  { %v1342_v4 = vpop.permute.xlu1 %1341 }
 0x47a   :  { %v1346_v40 = vmul.f32 %v3636_v27, %v1342_v4 }
 0x4e4   :  { %v1360_v33 = vpop.permute.xlu0 %1359 }
 0x4e5   :  { %v1365_v34 = vadd.f32 %v1360_v33, %v1345_v62 }
 0x4e6   :  { %v1362_v54 = vpop.permute.xlu1 %1361 }
 0x4e7   :  { %3639 = vtanh.f32 %v1365_v34  ;;  %v1366_v2 = vadd.f32 %v1362_v54, %v1346_v40 }
 0x4e8   :  { %v1408_v41 = vpop.permute.xlu0 %1407 }
 0x4e9   :  { %v1413_v50 = vadd.f32 %v1408_v41, %v1393_v36 }
 0x4ea   :  { %v1410_v10 = vpop.permute.xlu1 %1409 }
 0x4eb   :  { %3641 = vtanh.f32 %v1413_v50  ;;  %v1414_v11 = vadd.f32 %v1410_v10, %v1394_v6 }
 0x4ec   :  { %3643 = vtanh.f32 %v1366_v2 }
 0x4ed   :  { %3645 = vtanh.f32 %v1414_v11 }
 0x4f1   :  { %v3640_v14 = vpop.eup %3639 }
 0x4f2   :  { %1371 = vrot.lane.b32.xlu0 %v3640_v14, %s3841_s5 }
 0x4f5   :  { %v3642_v63 = vpop.eup %3641 }
 0x4f6   :  { %v3644_v20 = vpop.eup %3643  ;;  %1419 = vrot.lane.b32.xlu0 %v3642_v63, %s3841_s5 }
 0x4f7   :  { %1373 = vrot.lane.b32.xlu1 %v3644_v20, %s3841_s5  ;;  %v3646_v42 = vpop.eup %3645 }
 0x4fb   :  { %1421 = vrot.lane.b32.xlu1 %v3646_v42, %s3841_s5 }
 0x564   :  { %v1372_v22 = vpop.permute.xlu0 %1371 }
 0x565   :  { %v4269_v56 = vmul.f32 %v3632_v38, %v1372_v22 }
 0x568   :  { %v1420_v51 = vpop.permute.xlu0 %1419 }
 0x569   :  { %v1374_v26 = vpop.permute.xlu1 %1373  ;;  %v4275_v15 = vmul.f32 %v3634_v45, %v1420_v51 }
 0x56a   :  { %v4271_v61 = vmul.f32 %v3636_v27, %v1374_v26 }
 0x56c   :  { %v1439_v7 = vpack.c.bf16 %v4271_v61, %v4269_v56 }
 0x56d   :  { %v1422_v18 = vpop.permute.xlu1 %1421 }
 0x56e   :  { %v4277_v46 = vmul.f32 %v3638_v49, %v1422_v18  ;;  %1442 = vrot.lane.b32.xlu0 %v1439_v7, %s3842_s30 }
 0x570   :  { %v1440_v48 = vpack.c.bf16 %v4277_v46, %v4275_v15 }
 0x572   :  { %1429 = vrot.lane.b32.xlu0 %v1365_v34, %s3843_s9  ;;  %1445 = vrot.lane.b32.xlu1 %v1440_v48, %s3841_s5 }
 0x576   :  { %1431 = vrot.lane.b32.xlu1 %v1366_v2, %s3843_s9 }
 0x5e0   :  { %v1443_v38 = vpop.permute.xlu0 %1442 }
 0x5e4   :  { %v1430_v27 = vpop.permute.xlu0 %1429  ;;  %v1446_v43 = vpop.permute.xlu1 %1445 }
 0x5e5   :  { %v1435_v55 = vsel %vm195_vm0, %v1430_v27, %v1413_v50  ;;  %v1449_v45 = vsel %vm195_vm0, %v1443_v38, %v1446_v43 }
 0x5e6   :  { %1437 = vst.msk [vmem:[#allocation5] sm:$0xff] %vm99_vm1, %v1435_v55  ;;  %1451 = vst.msk [vmem:[#allocation4] sm:$0xff] %vm99_vm1, %v1449_v45 }
 0x5e8   :  { %v1432_v49 = vpop.permute.xlu1 %1431 }
 0x5e9   :  { %v1436_v58 = vsel %vm195_vm0, %v1432_v49, %v1414_v11 }
 0x5ea   :  { %1438 = vst.msk [vmem:[#allocation5 + $0x8] sm:$0xff] %vm99_vm1, %v1436_v58 }
 0x5ed   :  { %v1478_v30 = vld [vmem:[#allocation4] sm:$0xff] }
 0x5ee   :  { %3214 = vmatmul.mubr.msk.bf16.vlgmr.msra.gmra.mrb[20].mxu0 %vm99_vm1, %v1478_v30 }
 0x5ef   :  { %2086 = vmatprep.mubr.bf16.mxu0 %v3839_v1 }
 0x6c1   :  { %v1564_v62 = vpop.f32.mrb[20].mxu0 }
 0x6c2   :  { %v1576_v33 = vadd.f32 %v1564_v62, %v4143_v9  ;;  %v1566_v4 = vpop.f32.mrb[21].mxu0  ;;  %v1583_v9 = vld [vmem:[#allocation5] sm:$0xff] }
 0x6c3   :  { %v1581_v34 = vadd.f32 %v1566_v4, %v4164_v24  ;;  %v1568_v36 = vpop.f32.mrb[22].mxu0 }
 0x6c4   :  { %3647 = vtanh.f32 %v1576_v33  ;;  %v1577_v40 = vadd.f32 %v1568_v36, %v4155_v17  ;;  %v1570_v41 = vpop.f32.mrb[23].mxu0  ;;  %v1584_v17 = vld [vmem:[#allocation5 + $0x8] sm:$0xff] }
 0x6c5   :  { %v1582_v54 = vadd.f32 %v1570_v41, %v4176_v35  ;;  %3649 = vtanh.f32 %v1581_v34  ;;  %v3215_v35 = vmul.f32 -1.442695, %v1576_v33  ;;  %v3217_v10 = vmul.f32 -1.442695, %v1581_v34 }
 0x6c6   :  { %3651 = vtanh.f32 %v1577_v40  ;;  %v3216_v11 = vmul.f32 -1.442695, %v1577_v40 }
 0x6c7   :  { %3653 = vtanh.f32 %v1582_v54  ;;  %v3218_v14 = vmul.f32 -1.442695, %v1582_v54 }
 0x6c8   :  { %3655 = vpow2.f32 %v3215_v35 }
 0x6c9   :  { %3657 = vpow2.f32 %v3217_v10 }
 0x6ca   :  { %3659 = vpow2.f32 %v3216_v11 }
 0x6cb   :  { %3661 = vpow2.f32 %v3218_v14 }
 0x6ce   :  { %v3648_v50 = vpop.eup %3647 }
 0x6cf   :  { %1611 = vrot.lane.b32.xlu0 %v3648_v50, %s3841_s5  ;;  %v3650_v2 = vpop.eup %3649 }
 0x6d0   :  { %v3652_v6 = vpop.eup %3651 }
 0x6d1   :  { %1613 = vrot.lane.b32.xlu1 %v3652_v6, %s3841_s5  ;;  %v3654_v24 = vpop.eup %3653 }
 0x6d2   :  { %v3656_v63 = vpop.eup %3655 }
 0x6d3   :  { %1659 = vrot.lane.b32.xlu0 %v3650_v2, %s3841_s5  ;;  %v1591_v20 = vadd.f32 1.0, %v3656_v63  ;;  %v3658_v42 = vpop.eup %3657 }
 0x6d4   :  { %v3660_v22 = vpop.eup %3659  ;;  %v1647_v26 = vadd.f32 1.0, %v3658_v42 }
 0x6d5   :  { %1661 = vrot.lane.b32.xlu1 %v3654_v24, %s3841_s5  ;;  %3663 = vrcp.f32 %v1591_v20  ;;  %v1592_v51 = vadd.f32 1.0, %v3660_v22  ;;  %v3662_v7 = vpop.eup %3661 }
 0x6d6   :  { %3665 = vrcp.f32 %v1647_v26  ;;  %v1648_v18 = vadd.f32 1.0, %v3662_v7 }
 0x6d7   :  { %1601 = vrot.lane.b32.xlu0 %v1583_v9, %s3842_s30  ;;  %3667 = vrcp.f32 %v1592_v51 }
 0x6d8   :  { %3669 = vrcp.f32 %v1648_v18 }
 0x6d9   :  { %1603 = vrot.lane.b32.xlu1 %v1584_v17, %s3842_s30 }
 0x6df   :  { %v3664_v48 = vpop.eup %3663 }
 0x6e0   :  { %v3666_v43 = vpop.eup %3665 }
 0x6e1   :  { %v3668_v45 = vpop.eup %3667  ;;  %v1655_v50 = vmul.f32 %v3666_v43, %v1583_v9 }
 0x6e2   :  { %v3670_v62 = vpop.eup %3669 }
 0x6e3   :  { %v1656_v11 = vmul.f32 %v3670_v62, %v1584_v17 }
 0x741   :  { %v1612_v38 = vpop.permute.xlu0 %1611 }
 0x742   :  { %v1617_v27 = vmul.f32 %v3664_v48, %v1612_v38 }
 0x743   :  { %v1614_v49 = vpop.permute.xlu1 %1613 }
 0x744   :  { %1621 = vrot.lane.b32.xlu0 %v1617_v27, %s3842_s30  ;;  %v1618_v30 = vmul.f32 %v3668_v45, %v1614_v49 }
 0x745   :  { %v1660_v55 = vpop.permute.xlu0 %1659 }
 0x746   :  { %v1665_v58 = vmul.f32 %v3666_v43, %v1660_v55  ;;  %1623 = vrot.lane.b32.xlu1 %v1618_v30, %s3842_s30 }
 0x747   :  { %v1662_v33 = vpop.permute.xlu1 %1661 }
 0x748   :  { %1669 = vrot.lane.b32.xlu0 %v1665_v58, %s3842_s30  ;;  %v1666_v4 = vmul.f32 %v3670_v62, %v1662_v33 }
 0x749   :  { %v1602_v34 = vpop.permute.xlu0 %1601 }
 0x74a   :  { %1671 = vrot.lane.b32.xlu1 %v1666_v4, %s3842_s30  ;;  %v1607_v36 = vmul.f32 %v3664_v48, %v1602_v34 }
 0x74b   :  { %v1604_v41 = vpop.permute.xlu1 %1603 }
 0x74c   :  { %v1608_v2 = vmul.f32 %v3668_v45, %v1604_v41 }
 0x7b6   :  { %v1622_v40 = vpop.permute.xlu0 %1621 }
 0x7b7   :  { %v1627_v54 = vadd.f32 %v1622_v40, %v1607_v36 }
 0x7b8   :  { %v1624_v24 = vpop.permute.xlu1 %1623 }
 0x7b9   :  { %3671 = vtanh.f32 %v1627_v54  ;;  %v1628_v10 = vadd.f32 %v1624_v24, %v1608_v2 }
 0x7ba   :  { %v1670_v6 = vpop.permute.xlu0 %1669 }
 0x7bb   :  { %v1675_v35 = vadd.f32 %v1670_v6, %v1655_v50 }
 0x7bc   :  { %v1672_v14 = vpop.permute.xlu1 %1671 }
 0x7bd   :  { %3673 = vtanh.f32 %v1675_v35  ;;  %v1676_v63 = vadd.f32 %v1672_v14, %v1656_v11 }
 0x7be   :  { %3675 = vtanh.f32 %v1628_v10 }
 0x7bf   :  { %3677 = vtanh.f32 %v1676_v63 }
 0x7c3   :  { %v3672_v20 = vpop.eup %3671 }
 0x7c4   :  { %1633 = vrot.lane.b32.xlu0 %v3672_v20, %s3841_s5 }
 0x7c7   :  { %v3674_v42 = vpop.eup %3673 }
 0x7c8   :  { %v3676_v22 = vpop.eup %3675  ;;  %1681 = vrot.lane.b32.xlu0 %v3674_v42, %s3841_s5 }
 0x7c9   :  { %1635 = vrot.lane.b32.xlu1 %v3676_v22, %s3841_s5  ;;  %v3678_v9 = vpop.eup %3677 }
 0x7cd   :  { %1683 = vrot.lane.b32.xlu1 %v3678_v9, %s3841_s5 }
 0x836   :  { %v1634_v26 = vpop.permute.xlu0 %1633 }
 0x837   :  { %v4311_v7 = vmul.f32 %v3664_v48, %v1634_v26 }
 0x83a   :  { %v1682_v18 = vpop.permute.xlu0 %1681 }
 0x83b   :  { %v1636_v51 = vpop.permute.xlu1 %1635  ;;  %v4317_v55 = vmul.f32 %v3666_v43, %v1682_v18 }
 0x83c   :  { %v4313_v17 = vmul.f32 %v3668_v45, %v1636_v51 }
 0x83e   :  { %v1701_v38 = vpack.c.bf16 %v4313_v17, %v4311_v7 }
 0x83f   :  { %v1684_v27 = vpop.permute.xlu1 %1683 }
 0x840   :  { %v4319_v49 = vmul.f32 %v3670_v62, %v1684_v27  ;;  %1704 = vrot.lane.b32.xlu0 %v1701_v38, %s3842_s30 }
 0x842   :  { %v1702_v58 = vpack.c.bf16 %v4319_v49, %v4317_v55 }
 0x844   :  { %1691 = vrot.lane.b32.xlu0 %v1627_v54, %s3843_s9  ;;  %1707 = vrot.lane.b32.xlu1 %v1702_v58, %s3841_s5 }
 0x848   :  { %1693 = vrot.lane.b32.xlu1 %v1628_v10, %s3843_s9 }
 0x8b2   :  { %v1705_v48 = vpop.permute.xlu0 %1704 }
 0x8b6   :  { %v1692_v45 = vpop.permute.xlu0 %1691  ;;  %v1708_v30 = vpop.permute.xlu1 %1707 }
 0x8b7   :  { %v1697_v33 = vsel %vm195_vm0, %v1692_v45, %v1675_v35  ;;  %v1711_v43 = vsel %vm195_vm0, %v1705_v48, %v1708_v30 }
 0x8b8   :  { %1699 = vst.msk [vmem:[#allocation5] sm:$0xff] %vm99_vm1, %v1697_v33  ;;  %1713 = vst.msk [vmem:[#allocation4] sm:$0xff] %vm99_vm1, %v1711_v43 }
 0x8ba   :  { %v1694_v62 = vpop.permute.xlu1 %1693 }
 0x8bb   :  { %v1698_v4 = vsel %vm195_vm0, %v1694_v62, %v1676_v63 }
 0x8bc   :  { %1700 = vst.msk [vmem:[#allocation5 + $0x8] sm:$0xff] %vm99_vm1, %v1698_v4 }
 0x8bf   :  { %v1740_v34 = vld [vmem:[#allocation4] sm:$0xff] }
 0x8c0   :  { %3235 = vmatmul.mubr.msk.bf16.vlgmr.msra.gmra.mrb[20].mxu1 %vm99_vm1, %v1740_v34 }
 0x8c1   :  { %2348 = vmatprep.mubr.bf16.mxu1 %v3839_v1 }
 0x993   :  { %v1826_v36 = vpop.f32.mrb[20].mxu1 }
 0x994   :  { %v1838_v40 = vadd.f32 %v1826_v36, %v4137_v5  ;;  %v1828_v41 = vpop.f32.mrb[21].mxu1  ;;  %v1845_v5 = vld [vmem:[#allocation5] sm:$0xff] }
 0x995   :  { %v1843_v54 = vadd.f32 %v1828_v41, %v4170_v28  ;;  %v1830_v50 = vpop.f32.mrb[22].mxu1 }
 0x996   :  { %3679 = vtanh.f32 %v1838_v40  ;;  %v1839_v2 = vadd.f32 %v1830_v50, %v4149_v13  ;;  %v1832_v6 = vpop.f32.mrb[23].mxu1  ;;  %v1846_v13 = vld [vmem:[#allocation5 + $0x8] sm:$0xff] }
 0x997   :  { %v1844_v24 = vadd.f32 %v1832_v6, %v4182_v39  ;;  %3681 = vtanh.f32 %v1843_v54  ;;  %v3236_v39 = vmul.f32 -1.442695, %v1838_v40  ;;  %v3238_v14 = vmul.f32 -1.442695, %v1843_v54 }
 0x998   :  { %3683 = vtanh.f32 %v1839_v2  ;;  %v3237_v63 = vmul.f32 -1.442695, %v1839_v2 }
 0x999   :  { %3685 = vtanh.f32 %v1844_v24  ;;  %v3239_v20 = vmul.f32 -1.442695, %v1844_v24 }
 0x99a   :  { %3687 = vpow2.f32 %v3236_v39 }
 0x99b   :  { %3689 = vpow2.f32 %v3238_v14 }
 0x99c   :  { %3691 = vpow2.f32 %v3237_v63 }
 0x99d   :  { %3693 = vpow2.f32 %v3239_v20 }
 0x9a0   :  { %v3680_v35 = vpop.eup %3679 }
 0x9a1   :  { %1873 = vrot.lane.b32.xlu0 %v3680_v35, %s3841_s5  ;;  %v3682_v10 = vpop.eup %3681 }
 0x9a2   :  { %v3684_v11 = vpop.eup %3683 }
 0x9a3   :  { %1875 = vrot.lane.b32.xlu1 %v3684_v11, %s3841_s5  ;;  %v3686_v28 = vpop.eup %3685 }
 0x9a4   :  { %v3688_v42 = vpop.eup %3687 }
 0x9a5   :  { %1921 = vrot.lane.b32.xlu0 %v3682_v10, %s3841_s5  ;;  %v1853_v22 = vadd.f32 1.0, %v3688_v42  ;;  %v3690_v9 = vpop.eup %3689 }
 0x9a6   :  { %v3692_v26 = vpop.eup %3691  ;;  %v1909_v51 = vadd.f32 1.0, %v3690_v9 }
 0x9a7   :  { %1923 = vrot.lane.b32.xlu1 %v3686_v28, %s3841_s5  ;;  %3695 = vrcp.f32 %v1853_v22  ;;  %v1854_v18 = vadd.f32 1.0, %v3692_v26  ;;  %v3694_v38 = vpop.eup %3693 }
 0x9a8   :  { %3697 = vrcp.f32 %v1909_v51  ;;  %v1910_v27 = vadd.f32 1.0, %v3694_v38  ;;  %v3573_v51 = vld [vmem:[%s4859_s6 + $0x4] ss:$8 sps:$4 sm:$0xff]   ;;  %v4383_v38 = vld [vmem:[%s4859_s6 + $0x14] ss:$8 sps:$4 sm:$0xff]  }
 0x9a9   :  { %1863 = vrot.lane.b32.xlu0 %v1845_v5, %s3842_s30  ;;  %3699 = vrcp.f32 %v1854_v18  ;;  %2054 = vmatprep.subr.bf16.mxu0 %v3573_v51  ;;  %v4378_v18 = vld [vmem:[%s4859_s6 + $0x10] ss:$8 sps:$4 sm:$0xff]  }
 0x9aa   :  { %3701 = vrcp.f32 %v1910_v27  ;;  %2316 = vmatprep.subr.bf16.mxu1 %v3573_v51 }
 0x9ab   :  { %1865 = vrot.lane.b32.xlu1 %v1846_v13, %s3842_s30 }
 0x9b1   :  { %v4345_v58 = vpop.eup %3695 }
 0x9b2   :  { %v4349_v30 = vpop.eup %3697 }
 0x9b3   :  { %v3700_v43 = vpop.eup %3699  ;;  %v1917_v35 = vmul.f32 %v4349_v30, %v1845_v5  ;;  %v4366_v5 = vld [vmem:[%s4859_s6] ss:$8 sps:$4 sm:$0xff]  }
 0x9b4   :  { %v4354_v36 = vpop.eup %3701  ;;  %2055 = vmatpush1.bf16.msra.mxu0 %v4366_v5  ;;  %2317 = vmatpush1.bf16.msra.mxu1 %v4366_v5 }
 0x9b5   :  { %v1918_v63 = vmul.f32 %v4354_v36, %v1846_v13  ;;  %2056 = vmatprep.subr.bf16.mxu0 %v4383_v38  ;;  %2318 = vmatprep.subr.bf16.mxu1 %v4383_v38 }
 0x9b8   :  { %2057 = vmatpush1.bf16.msra.mxu0 %v4378_v18  ;;  %2319 = vmatpush1.bf16.msra.mxu1 %v4378_v18 }
 0xa13   :  { %v1874_v48 = vpop.permute.xlu0 %1873 }
 0xa14   :  { %v1879_v45 = vmul.f32 %v4345_v58, %v1874_v48  ;;  %v4392_v48 = vld [vmem:[%s4859_s6 + $0x24] ss:$8 sps:$4 sm:$0xff]  }
 0xa15   :  { %v1876_v62 = vpop.permute.xlu1 %1875  ;;  %2058 = vmatprep.subr.bf16.mxu0 %v4392_v48  ;;  %2320 = vmatprep.subr.bf16.mxu1 %v4392_v48 }
 0xa16   :  { %1883 = vrot.lane.b32.xlu0 %v1879_v45, %s3842_s30  ;;  %v1880_v34 = vmul.f32 %v3700_v43, %v1876_v62  ;;  %v4397_v45 = vld [vmem:[%s4859_s6 + $0x20] ss:$8 sps:$4 sm:$0xff]   ;;  %v4406_v62 = vld [vmem:[%s4859_s6 + $0x34] ss:$8 sps:$4 sm:$0xff]  }
 0xa17   :  { %v1922_v33 = vpop.permute.xlu0 %1921  ;;  %2059 = vmatpush1.bf16.msra.mxu0 %v4397_v45  ;;  %2321 = vmatpush1.bf16.msra.mxu1 %v4397_v45 }
 0xa18   :  { %v1927_v4 = vmul.f32 %v4349_v30, %v1922_v33  ;;  %1885 = vrot.lane.b32.xlu1 %v1880_v34, %s3842_s30  ;;  %2060 = vmatprep.subr.bf16.mxu0 %v4406_v62 }
 0xa19   :  { %v1924_v40 = vpop.permute.xlu1 %1923  ;;  %2322 = vmatprep.subr.bf16.mxu1 %v4406_v62 }
 0xa1a   :  { %1931 = vrot.lane.b32.xlu0 %v1927_v4, %s3842_s30  ;;  %v1928_v41 = vmul.f32 %v4354_v36, %v1924_v40  ;;  %v4416_v40 = vld [vmem:[%s4859_s6 + $0x30] ss:$8 sps:$4 sm:$0xff]  }
 0xa1b   :  { %v1864_v54 = vpop.permute.xlu0 %1863  ;;  %2061 = vmatpush1.bf16.msra.mxu0 %v4416_v40  ;;  %2323 = vmatpush1.bf16.msra.mxu1 %v4416_v40 }
 0xa1c   :  { %1933 = vrot.lane.b32.xlu1 %v1928_v41, %s3842_s30  ;;  %v1869_v50 = vmul.f32 %v4345_v58, %v1864_v54  ;;  %2578 = vmatprep.subr.bf16.mxu0 %v3573_v51 }
 0xa1d   :  { %v1866_v6 = vpop.permute.xlu1 %1865  ;;  %2840 = vmatprep.subr.bf16.mxu1 %v3573_v51 }
 0xa1e   :  { %v1870_v10 = vmul.f32 %v3700_v43, %v1866_v6 }
 0xa88   :  { %v1884_v2 = vpop.permute.xlu0 %1883 }
 0xa89   :  { %v1889_v24 = vadd.f32 %v1884_v2, %v1869_v50 }
 0xa8a   :  { %v1886_v28 = vpop.permute.xlu1 %1885 }
 0xa8b   :  { %3703 = vtanh.f32 %v1889_v24  ;;  %v1890_v14 = vadd.f32 %v1886_v28, %v1870_v10 }
 0xa8c   :  { %v1932_v11 = vpop.permute.xlu0 %1931 }
 0xa8d   :  { %v1937_v39 = vadd.f32 %v1932_v11, %v1917_v35 }
 0xa8e   :  { %v1934_v20 = vpop.permute.xlu1 %1933 }
 0xa8f   :  { %3705 = vtanh.f32 %v1937_v39  ;;  %v1938_v42 = vadd.f32 %v1934_v20, %v1918_v63 }
 0xa90   :  { %3707 = vtanh.f32 %v1890_v14 }
 0xa91   :  { %3709 = vtanh.f32 %v1938_v42 }
 0xa95   :  { %v3704_v22 = vpop.eup %3703 }
 0xa96   :  { %1895 = vrot.lane.b32.xlu0 %v3704_v22, %s3841_s5 }
 0xa99   :  { %v3706_v9 = vpop.eup %3705 }
 0xa9a   :  { %v3708_v26 = vpop.eup %3707  ;;  %1943 = vrot.lane.b32.xlu0 %v3706_v9, %s3841_s5 }
 0xa9b   :  { %1897 = vrot.lane.b32.xlu1 %v3708_v26, %s3841_s5  ;;  %v3710_v13 = vpop.eup %3709 }
 0xa9f   :  { %1945 = vrot.lane.b32.xlu1 %v3710_v13, %s3841_s5 }
 0xb08   :  { %v1896_v27 = vpop.permute.xlu0 %1895 }
 0xb09   :  { %v4409_v4 = vmul.f32 %v4345_v58, %v1896_v27 }
 0xb0c   :  { %v1944_v41 = vpop.permute.xlu0 %1943 }
 0xb0d   :  { %v1898_v33 = vpop.permute.xlu1 %1897 }
 0xb0e   :  { %v4411_v34 = vmul.f32 %v3700_v43, %v1898_v33  ;;  %v4425_v43 = vmul.f32 %v4349_v30, %v1944_v41 }
 0xb10   :  { %v1963_v54 = vpack.c.bf16 %v4411_v34, %v4409_v4 }
 0xb11   :  { %v1946_v58 = vpop.permute.xlu1 %1945 }
 0xb12   :  { %v4428_v50 = vmul.f32 %v4354_v36, %v1946_v58  ;;  %1966 = vrot.lane.b32.xlu0 %v1963_v54, %s3842_s30 }
 0xb14   :  { %v1964_v2 = vpack.c.bf16 %v4428_v50, %v4425_v43 }
 0xb16   :  { %1953 = vrot.lane.b32.xlu0 %v1889_v24, %s3843_s9  ;;  %1969 = vrot.lane.b32.xlu1 %v1964_v2, %s3841_s5 }
 0xb1a   :  { %1955 = vrot.lane.b32.xlu1 %v1890_v14, %s3843_s9 }
 0xb84   :  { %v1967_v6 = vpop.permute.xlu0 %1966 }
 0xb88   :  { %v1954_v35 = vpop.permute.xlu0 %1953  ;;  %v1970_v10 = vpop.permute.xlu1 %1969 }
 0xb89   :  { %v1959_v30 = vsel %vm195_vm0, %v1954_v35, %v1937_v39  ;;  %v1973_v11 = vsel %vm195_vm0, %v1967_v6, %v1970_v10 }
 0xb8a   :  { %1961 = vst.msk [vmem:[#allocation5] sm:$0xff] %vm99_vm1, %v1959_v30  ;;  %1975 = vst.msk [vmem:[#allocation4] sm:$0xff] %vm99_vm1, %v1973_v11 }
 0xb8c   :  { %v1956_v36 = vpop.permute.xlu1 %1955 }
 0xb8d   :  { %v1960_v28 = vsel %vm195_vm0, %v1956_v36, %v1938_v42 }
 0xb8e   :  { %1962 = vst.msk [vmem:[#allocation5 + $0x8] sm:$0xff] %vm99_vm1, %v1960_v28 }
 0xb91   :  { %v2002_v24 = vld [vmem:[#allocation4] sm:$0xff] }
 0xb92   :  { %3256 = vmatmul.mubr.msk.bf16.vlgmr.msra.gmra.mrb[24].mxu0 %vm99_vm1, %v2002_v24 }
 0xb93   :  { %2579 = vmatpush1.bf16.msra.mxu0 %v4366_v5  ;;  %2610 = vmatprep.mubr.bf16.mxu0 %v3839_v1 }
 0xb94   :  { %2580 = vmatprep.subr.bf16.mxu0 %v4383_v38 }
 0xb97   :  { %2581 = vmatpush1.bf16.msra.mxu0 %v4378_v18 }
 0xb98   :  { %2582 = vmatprep.subr.bf16.mxu0 %v4392_v48 }
 0xb9b   :  { %2583 = vmatpush1.bf16.msra.mxu0 %v4397_v45 }
 0xb9c   :  { %2584 = vmatprep.subr.bf16.mxu0 %v4406_v62 }
 0xb9f   :  { %2585 = vmatpush1.bf16.msra.mxu0 %v4416_v40 }
 0xc65   :  { %v2088_v39 = vpop.f32.mrb[24].mxu0 }
 0xc66   :  { %v2100_v14 = vadd.f32 %v2088_v39, %v4167_v25  ;;  %v2090_v63 = vpop.f32.mrb[25].mxu0 }
 0xc67   :  { %v2105_v20 = vadd.f32 %v2090_v63, %v4140_v8  ;;  %v2092_v42 = vpop.f32.mrb[26].mxu0  ;;  %v2107_v8 = vld [vmem:[#allocation5] sm:$0xff] }
 0xc68   :  { %3711 = vtanh.f32 %v2100_v14  ;;  %v2101_v22 = vadd.f32 %v2092_v42, %v4179_v37  ;;  %v2094_v9 = vpop.f32.mrb[27].mxu0  ;;  %v2108_v37 = vld [vmem:[#allocation5 + $0x8] sm:$0xff] }
 0xc69   :  { %v2106_v26 = vadd.f32 %v2094_v9, %v4152_v16  ;;  %3713 = vtanh.f32 %v2105_v20  ;;  %v3257_v16 = vmul.f32 -1.442695, %v2100_v14  ;;  %v3259_v33 = vmul.f32 -1.442695, %v2105_v20 }
 0xc6a   :  { %3715 = vtanh.f32 %v2101_v22  ;;  %v3258_v41 = vmul.f32 -1.442695, %v2101_v22 }
 0xc6b   :  { %3717 = vtanh.f32 %v2106_v26  ;;  %v3260_v54 = vmul.f32 -1.442695, %v2106_v26 }
 0xc6c   :  { %3719 = vpow2.f32 %v3257_v16 }
 0xc6d   :  { %3721 = vpow2.f32 %v3259_v33 }
 0xc6e   :  { %3723 = vpow2.f32 %v3258_v41 }
 0xc6f   :  { %3725 = vpow2.f32 %v3260_v54 }
 0xc72   :  { %v3712_v51 = vpop.eup %3711 }
 0xc73   :  { %2135 = vrot.lane.b32.xlu0 %v3712_v51, %s3841_s5  ;;  %v3714_v13 = vpop.eup %3713 }
 0xc74   :  { %v3716_v27 = vpop.eup %3715 }
 0xc75   :  { %2137 = vrot.lane.b32.xlu1 %v3716_v27, %s3841_s5  ;;  %v3718_v25 = vpop.eup %3717 }
 0xc76   :  { %v3720_v58 = vpop.eup %3719 }
 0xc77   :  { %2183 = vrot.lane.b32.xlu0 %v3714_v13, %s3841_s5  ;;  %v2115_v2 = vadd.f32 1.0, %v3720_v58  ;;  %v3722_v6 = vpop.eup %3721 }
 0xc78   :  { %v3724_v35 = vpop.eup %3723  ;;  %v2171_v10 = vadd.f32 1.0, %v3722_v6 }
 0xc79   :  { %2185 = vrot.lane.b32.xlu1 %v3718_v25, %s3841_s5  ;;  %3727 = vrcp.f32 %v2115_v2  ;;  %v2116_v30 = vadd.f32 1.0, %v3724_v35  ;;  %v3726_v11 = vpop.eup %3725 }
 0xc7a   :  { %3729 = vrcp.f32 %v2171_v10  ;;  %v2172_v36 = vadd.f32 1.0, %v3726_v11 }
 0xc7b   :  { %2125 = vrot.lane.b32.xlu0 %v2107_v8, %s3842_s30  ;;  %3731 = vrcp.f32 %v2116_v30 }
 0xc7c   :  { %3733 = vrcp.f32 %v2172_v36 }
 0xc7d   :  { %2127 = vrot.lane.b32.xlu1 %v2108_v37, %s3842_s30 }
 0xc83   :  { %v3728_v28 = vpop.eup %3727 }
 0xc84   :  { %v3730_v14 = vpop.eup %3729 }
 0xc85   :  { %v3732_v20 = vpop.eup %3731  ;;  %v2179_v54 = vmul.f32 %v3730_v14, %v2107_v8 }
 0xc86   :  { %v3734_v26 = vpop.eup %3733 }
 0xc87   :  { %v2180_v30 = vmul.f32 %v3734_v26, %v2108_v37 }
 0xce5   :  { %v2136_v24 = vpop.permute.xlu0 %2135 }
 0xce6   :  { %v2141_v39 = vmul.f32 %v3728_v28, %v2136_v24 }
 0xce7   :  { %v2138_v42 = vpop.permute.xlu1 %2137 }
 0xce8   :  { %2145 = vrot.lane.b32.xlu0 %v2141_v39, %s3842_s30  ;;  %v2142_v9 = vmul.f32 %v3732_v20, %v2138_v42 }
 0xce9   :  { %v2184_v63 = vpop.permute.xlu0 %2183 }
 0xcea   :  { %v2189_v22 = vmul.f32 %v3730_v14, %v2184_v63  ;;  %2147 = vrot.lane.b32.xlu1 %v2142_v9, %s3842_s30 }
 0xceb   :  { %v2186_v51 = vpop.permute.xlu1 %2185 }
 0xcec   :  { %2193 = vrot.lane.b32.xlu0 %v2189_v22, %s3842_s30  ;;  %v2190_v13 = vmul.f32 %v3734_v26, %v2186_v51 }
 0xced   :  { %v2126_v27 = vpop.permute.xlu0 %2125 }
 0xcee   :  { %2195 = vrot.lane.b32.xlu1 %v2190_v13, %s3842_s30  ;;  %v2131_v25 = vmul.f32 %v3728_v28, %v2126_v27 }
 0xcef   :  { %v2128_v33 = vpop.permute.xlu1 %2127 }
 0xcf0   :  { %v2132_v58 = vmul.f32 %v3732_v20, %v2128_v33 }
 0xd5a   :  { %v2146_v16 = vpop.permute.xlu0 %2145 }
 0xd5b   :  { %v2151_v41 = vadd.f32 %v2146_v16, %v2131_v25 }
 0xd5c   :  { %v2148_v6 = vpop.permute.xlu1 %2147 }
 0xd5d   :  { %3735 = vtanh.f32 %v2151_v41  ;;  %v2152_v10 = vadd.f32 %v2148_v6, %v2132_v58 }
 0xd5e   :  { %v2194_v2 = vpop.permute.xlu0 %2193 }
 0xd5f   :  { %v2199_v35 = vadd.f32 %v2194_v2, %v2179_v54 }
 0xd60   :  { %v2196_v11 = vpop.permute.xlu1 %2195 }
 0xd61   :  { %3737 = vtanh.f32 %v2199_v35  ;;  %v2200_v36 = vadd.f32 %v2196_v11, %v2180_v30 }
 0xd62   :  { %3739 = vtanh.f32 %v2152_v10 }
 0xd63   :  { %3741 = vtanh.f32 %v2200_v36 }
 0xd67   :  { %v3736_v24 = vpop.eup %3735 }
 0xd68   :  { %2157 = vrot.lane.b32.xlu0 %v3736_v24, %s3841_s5 }
 0xd6b   :  { %v3738_v39 = vpop.eup %3737 }
 0xd6c   :  { %v3740_v63 = vpop.eup %3739  ;;  %2205 = vrot.lane.b32.xlu0 %v3738_v39, %s3841_s5 }
 0xd6d   :  { %2159 = vrot.lane.b32.xlu1 %v3740_v63, %s3841_s5  ;;  %v3742_v8 = vpop.eup %3741 }
 0xd71   :  { %2207 = vrot.lane.b32.xlu1 %v3742_v8, %s3841_s5 }
 0xdda   :  { %v2158_v42 = vpop.permute.xlu0 %2157 }
 0xddb   :  { %v4469_v9 = vmul.f32 %v3728_v28, %v2158_v42 }
 0xdde   :  { %v2206_v51 = vpop.permute.xlu0 %2205 }
 0xddf   :  { %v2160_v22 = vpop.permute.xlu1 %2159  ;;  %v4475_v25 = vmul.f32 %v3730_v14, %v2206_v51 }
 0xde0   :  { %v4471_v37 = vmul.f32 %v3732_v20, %v2160_v22 }
 0xde2   :  { %v2225_v13 = vpack.c.bf16 %v4471_v37, %v4469_v9 }
 0xde3   :  { %v2208_v27 = vpop.permute.xlu1 %2207 }
 0xde4   :  { %v4477_v16 = vmul.f32 %v3734_v26, %v2208_v27  ;;  %2228 = vrot.lane.b32.xlu0 %v2225_v13, %s3842_s30 }
 0xde6   :  { %v2226_v33 = vpack.c.bf16 %v4477_v16, %v4475_v25 }
 0xde8   :  { %2215 = vrot.lane.b32.xlu0 %v2151_v41, %s3843_s9  ;;  %2231 = vrot.lane.b32.xlu1 %v2226_v33, %s3841_s5 }
 0xdec   :  { %2217 = vrot.lane.b32.xlu1 %v2152_v10, %s3843_s9 }
 0xe56   :  { %v2229_v28 = vpop.permute.xlu0 %2228 }
 0xe5a   :  { %v2216_v20 = vpop.permute.xlu0 %2215  ;;  %v2232_v54 = vpop.permute.xlu1 %2231 }
 0xe5b   :  { %v2221_v58 = vsel %vm195_vm0, %v2216_v20, %v2199_v35  ;;  %v2235_v14 = vsel %vm195_vm0, %v2229_v28, %v2232_v54 }
 0xe5c   :  { %2223 = vst.msk [vmem:[#allocation5] sm:$0xff] %vm99_vm1, %v2221_v58  ;;  %2237 = vst.msk [vmem:[#allocation4] sm:$0xff] %vm99_vm1, %v2235_v14 }
 0xe5e   :  { %v2218_v26 = vpop.permute.xlu1 %2217 }
 0xe5f   :  { %v2222_v2 = vsel %vm195_vm0, %v2218_v26, %v2200_v36 }
 0xe60   :  { %2224 = vst.msk [vmem:[#allocation5 + $0x8] sm:$0xff] %vm99_vm1, %v2222_v2 }
 0xe63   :  { %v2264_v41 = vld [vmem:[#allocation4] sm:$0xff] }
 0xe64   :  { %3277 = vmatmul.mubr.msk.bf16.vlgmr.msra.gmra.mrb[24].mxu1 %vm99_vm1, %v2264_v41 }
 0xe65   :  { %2841 = vmatpush1.bf16.msra.mxu1 %v4366_v5  ;;  %2872 = vmatprep.mubr.bf16.mxu1 %v3839_v1 }
 0xe66   :  { %2842 = vmatprep.subr.bf16.mxu1 %v4383_v38 }
 0xe69   :  { %2843 = vmatpush1.bf16.msra.mxu1 %v4378_v18 }
 0xe6a   :  { %2844 = vmatprep.subr.bf16.mxu1 %v4392_v48 }
 0xe6d   :  { %2845 = vmatpush1.bf16.msra.mxu1 %v4397_v45 }
 0xe6e   :  { %2846 = vmatprep.subr.bf16.mxu1 %v4406_v62 }
 0xe71   :  { %2847 = vmatpush1.bf16.msra.mxu1 %v4416_v40 }
 0xf37   :  { %v2350_v6 = vpop.f32.mrb[24].mxu1 }
 0xf38   :  { %v2362_v35 = vadd.f32 %v2350_v6, %v4161_v21  ;;  %v2352_v10 = vpop.f32.mrb[25].mxu1 }
 0xf39   :  { %v2367_v5 = vadd.f32 %v2352_v10, %v4146_v12  ;;  %v2354_v30 = vpop.f32.mrb[26].mxu1  ;;  %v2369_v12 = vld [vmem:[#allocation5] sm:$0xff] }
 0xf3a   :  { %3743 = vtanh.f32 %v2362_v35  ;;  %v2363_v1 = vadd.f32 %v2354_v30, %v4173_v29  ;;  %v2356_v38 = vpop.f32.mrb[27].mxu1  ;;  %v2370_v29 = vld [vmem:[#allocation5 + $0x8] sm:$0xff] }
 0xf3b   :  { %v2368_v18 = vadd.f32 %v2356_v38, %v4158_v19  ;;  %3745 = vtanh.f32 %v2367_v5  ;;  %v3278_v19 = vmul.f32 -1.442695, %v2362_v35  ;;  %v3280_v40 = vmul.f32 -1.442695, %v2367_v5 }
 0xf3c   :  { %3747 = vtanh.f32 %v2363_v1  ;;  %v3279_v11 = vmul.f32 -1.442695, %v2363_v1 }
 0xf3d   :  { %3749 = vtanh.f32 %v2368_v18  ;;  %v3281_v36 = vmul.f32 -1.442695, %v2368_v18 }
 0xf3e   :  { %3751 = vpow2.f32 %v3278_v19 }
 0xf3f   :  { %3753 = vpow2.f32 %v3280_v40 }
 0xf40   :  { %3755 = vpow2.f32 %v3279_v11 }
 0xf41   :  { %3757 = vpow2.f32 %v3281_v36 }
 0xf44   :  { %v3744_v48 = vpop.eup %3743 }
 0xf45   :  { %2397 = vrot.lane.b32.xlu0 %v3744_v48, %s3841_s5  ;;  %v3746_v45 = vpop.eup %3745 }
 0xf46   :  { %v3748_v62 = vpop.eup %3747 }
 0xf47   :  { %2399 = vrot.lane.b32.xlu1 %v3748_v62, %s3841_s5  ;;  %v3750_v21 = vpop.eup %3749 }
 0xf48   :  { %v3752_v24 = vpop.eup %3751 }
 0xf49   :  { %2445 = vrot.lane.b32.xlu0 %v3746_v45, %s3841_s5  ;;  %v2377_v39 = vadd.f32 1.0, %v3752_v24  ;;  %v3754_v63 = vpop.eup %3753 }
 0xf4a   :  { %v3756_v8 = vpop.eup %3755  ;;  %v2433_v42 = vadd.f32 1.0, %v3754_v63 }
 0xf4b   :  { %2447 = vrot.lane.b32.xlu1 %v3750_v21, %s3841_s5  ;;  %3759 = vrcp.f32 %v2377_v39  ;;  %v2378_v22 = vadd.f32 1.0, %v3756_v8  ;;  %v3758_v51 = vpop.eup %3757 }
 0xf4c   :  { %3761 = vrcp.f32 %v2433_v42  ;;  %v2434_v13 = vadd.f32 1.0, %v3758_v51 }
 0xf4d   :  { %2387 = vrot.lane.b32.xlu0 %v2369_v12, %s3842_s30  ;;  %3763 = vrcp.f32 %v2378_v22 }
 0xf4e   :  { %3765 = vrcp.f32 %v2434_v13 }
 0xf4f   :  { %2389 = vrot.lane.b32.xlu1 %v2370_v29, %s3842_s30 }
 0xf55   :  { %v3760_v27 = vpop.eup %3759 }
 0xf56   :  { %v3762_v20 = vpop.eup %3761 }
 0xf57   :  { %v3764_v58 = vpop.eup %3763  ;;  %v2441_v18 = vmul.f32 %v3762_v20, %v2369_v12 }
 0xf58   :  { %v3766_v41 = vpop.eup %3765 }
 0xf59   :  { %v2442_v40 = vmul.f32 %v3766_v41, %v2370_v29 }
 0xfb7   :  { %v2398_v33 = vpop.permute.xlu0 %2397 }
 0xfb8   :  { %v2403_v28 = vmul.f32 %v3760_v27, %v2398_v33 }
 0xfb9   :  { %v2400_v14 = vpop.permute.xlu1 %2399 }
 0xfba   :  { %2407 = vrot.lane.b32.xlu0 %v2403_v28, %s3842_s30  ;;  %v2404_v2 = vmul.f32 %v3764_v58, %v2400_v14 }
 0xfbb   :  { %v2446_v54 = vpop.permute.xlu0 %2445 }
 0xfbc   :  { %v2451_v26 = vmul.f32 %v3762_v20, %v2446_v54  ;;  %2409 = vrot.lane.b32.xlu1 %v2404_v2, %s3842_s30 }
 0xfbd   :  { %v2448_v6 = vpop.permute.xlu1 %2447 }
 0xfbe   :  { %2455 = vrot.lane.b32.xlu0 %v2451_v26, %s3842_s30  ;;  %v2452_v35 = vmul.f32 %v3766_v41, %v2448_v6 }
 0xfbf   :  { %v2388_v10 = vpop.permute.xlu0 %2387 }
 0xfc0   :  { %2457 = vrot.lane.b32.xlu1 %v2452_v35, %s3842_s30  ;;  %v2393_v5 = vmul.f32 %v3760_v27, %v2388_v10 }
 0xfc1   :  { %v2390_v1 = vpop.permute.xlu1 %2389 }
 0xfc2   :  { %v2394_v48 = vmul.f32 %v3764_v58, %v2390_v1 }
0x102c   :  { %v2408_v30 = vpop.permute.xlu0 %2407 }
0x102d   :  { %v2413_v38 = vadd.f32 %v2408_v30, %v2393_v5 }
0x102e   :  { %v2410_v62 = vpop.permute.xlu1 %2409 }
0x102f   :  { %3767 = vtanh.f32 %v2413_v38  ;;  %v2414_v19 = vadd.f32 %v2410_v62, %v2394_v48 }
0x1030   :  { %v2456_v45 = vpop.permute.xlu0 %2455 }
0x1031   :  { %v2461_v21 = vadd.f32 %v2456_v45, %v2441_v18 }
0x1032   :  { %v2458_v11 = vpop.permute.xlu1 %2457 }
0x1033   :  { %3769 = vtanh.f32 %v2461_v21  ;;  %v2462_v36 = vadd.f32 %v2458_v11, %v2442_v40 }
0x1034   :  { %3771 = vtanh.f32 %v2414_v19 }
0x1035   :  { %3773 = vtanh.f32 %v2462_v36 }
0x1039   :  { %v3768_v24 = vpop.eup %3767 }
0x103a   :  { %2419 = vrot.lane.b32.xlu0 %v3768_v24, %s3841_s5 }
0x103d   :  { %v3770_v39 = vpop.eup %3769 }
0x103e   :  { %v3772_v63 = vpop.eup %3771  ;;  %2467 = vrot.lane.b32.xlu0 %v3770_v39, %s3841_s5 }
0x103f   :  { %2421 = vrot.lane.b32.xlu1 %v3772_v63, %s3841_s5  ;;  %v3774_v12 = vpop.eup %3773 }
0x1043   :  { %2469 = vrot.lane.b32.xlu1 %v3774_v12, %s3841_s5 }
0x10ac   :  { %v2420_v8 = vpop.permute.xlu0 %2419 }
0x10ad   :  { %v4518_v22 = vmul.f32 %v3760_v27, %v2420_v8 }
0x10b0   :  { %v2468_v51 = vpop.permute.xlu0 %2467 }
0x10b1   :  { %v2422_v42 = vpop.permute.xlu1 %2421  ;;  %v4524_v28 = vmul.f32 %v3762_v20, %v2468_v51 }
0x10b2   :  { %v4520_v29 = vmul.f32 %v3764_v58, %v2422_v42 }
0x10b4   :  { %v2487_v13 = vpack.c.bf16 %v4520_v29, %v4518_v22 }
0x10b5   :  { %v2470_v33 = vpop.permute.xlu1 %2469 }
0x10b6   :  { %v4526_v54 = vmul.f32 %v3766_v41, %v2470_v33  ;;  %2490 = vrot.lane.b32.xlu0 %v2487_v13, %s3842_s30 }
0x10b8   :  { %v2488_v14 = vpack.c.bf16 %v4526_v54, %v4524_v28 }
0x10ba   :  { %2477 = vrot.lane.b32.xlu0 %v2413_v38, %s3843_s9  ;;  %2493 = vrot.lane.b32.xlu1 %v2488_v14, %s3841_s5 }
0x10be   :  { %2479 = vrot.lane.b32.xlu1 %v2414_v19, %s3843_s9 }
0x1128   :  { %v2491_v27 = vpop.permute.xlu0 %2490 }
0x112c   :  { %v2478_v58 = vpop.permute.xlu0 %2477  ;;  %v2494_v26 = vpop.permute.xlu1 %2493 }
0x112d   :  { %v2483_v2 = vsel %vm195_vm0, %v2478_v58, %v2461_v21  ;;  %v2497_v20 = vsel %vm195_vm0, %v2491_v27, %v2494_v26 }
0x112e   :  { %2485 = vst.msk [vmem:[#allocation5] sm:$0xff] %vm99_vm1, %v2483_v2  ;;  %2499 = vst.msk [vmem:[#allocation4] sm:$0xff] %vm99_vm1, %v2497_v20 }
0x1130   :  { %v2480_v41 = vpop.permute.xlu1 %2479 }
0x1131   :  { %v2484_v6 = vsel %vm195_vm0, %v2480_v41, %v2462_v36 }
0x1132   :  { %2486 = vst.msk [vmem:[#allocation5 + $0x8] sm:$0xff] %vm99_vm1, %v2484_v6 }
0x1135   :  { %v2526_v35 = vld [vmem:[#allocation4] sm:$0xff] }
0x1136   :  { %3298 = vmatmul.mubr.msk.bf16.vlgmr.msra.gmra.mrb[28].mxu0 %vm99_vm1, %v2526_v35 }
0x1209   :  { %v2612_v10 = vpop.f32.mrb[28].mxu0 }
0x120a   :  { %v2624_v5 = vadd.f32 %v2612_v10, %v4188_v47  ;;  %v2614_v30 = vpop.f32.mrb[29].mxu0 }
0x120b   :  { %v2629_v1 = vadd.f32 %v2614_v30, %v4122_v57  ;;  %v2616_v38 = vpop.f32.mrb[30].mxu0  ;;  %v2631_v57 = vld [vmem:[#allocation5] sm:$0xff] }
0x120c   :  { %3775 = vtanh.f32 %v2624_v5  ;;  %v2625_v18 = vadd.f32 %v2616_v38, %v4197_v59  ;;  %v2618_v48 = vpop.f32.mrb[31].mxu0  ;;  %v2632_v59 = vld [vmem:[#allocation5 + $0x8] sm:$0xff] }
0x120d   :  { %v2630_v45 = vadd.f32 %v2618_v48, %v4131_v0  ;;  %3777 = vtanh.f32 %v2629_v1  ;;  %v3299_v0 = vmul.f32 -1.442695, %v2624_v5  ;;  %v3301_v40 = vmul.f32 -1.442695, %v2629_v1 }
0x120e   :  { %3779 = vtanh.f32 %v2625_v18  ;;  %v3300_v11 = vmul.f32 -1.442695, %v2625_v18 }
0x120f   :  { %3781 = vtanh.f32 %v2630_v45  ;;  %v3302_v36 = vmul.f32 -1.442695, %v2630_v45 }
0x1210   :  { %3783 = vpow2.f32 %v3299_v0 }
0x1211   :  { %3785 = vpow2.f32 %v3301_v40 }
0x1212   :  { %3787 = vpow2.f32 %v3300_v11 }
0x1213   :  { %3789 = vpow2.f32 %v3302_v36 }
0x1216   :  { %v3776_v62 = vpop.eup %3775 }
0x1217   :  { %2659 = vrot.lane.b32.xlu0 %v3776_v62, %s3841_s5  ;;  %v3778_v21 = vpop.eup %3777 }
0x1218   :  { %v3780_v19 = vpop.eup %3779 }
0x1219   :  { %2661 = vrot.lane.b32.xlu1 %v3780_v19, %s3841_s5  ;;  %v3782_v47 = vpop.eup %3781 }
0x121a   :  { %v3784_v24 = vpop.eup %3783 }
0x121b   :  { %2707 = vrot.lane.b32.xlu0 %v3778_v21, %s3841_s5  ;;  %v2639_v39 = vadd.f32 1.0, %v3784_v24  ;;  %v3786_v63 = vpop.eup %3785 }
0x121c   :  { %v3788_v12 = vpop.eup %3787  ;;  %v2695_v8 = vadd.f32 1.0, %v3786_v63 }
0x121d   :  { %2709 = vrot.lane.b32.xlu1 %v3782_v47, %s3841_s5  ;;  %3791 = vrcp.f32 %v2639_v39  ;;  %v2640_v42 = vadd.f32 1.0, %v3788_v12  ;;  %v3790_v51 = vpop.eup %3789 }
0x121e   :  { %3793 = vrcp.f32 %v2695_v8  ;;  %v2696_v13 = vadd.f32 1.0, %v3790_v51 }
0x121f   :  { %2649 = vrot.lane.b32.xlu0 %v2631_v57, %s3842_s30  ;;  %3795 = vrcp.f32 %v2640_v42 }
0x1220   :  { %3797 = vrcp.f32 %v2696_v13 }
0x1221   :  { %2651 = vrot.lane.b32.xlu1 %v2632_v59, %s3842_s30 }
0x1227   :  { %v3792_v33 = vpop.eup %3791 }
0x1228   :  { %v3794_v58 = vpop.eup %3793 }
0x1229   :  { %v3796_v2 = vpop.eup %3795  ;;  %v2703_v45 = vmul.f32 %v3794_v58, %v2631_v57 }
0x122a   :  { %v3798_v35 = vpop.eup %3797 }
0x122b   :  { %v2704_v40 = vmul.f32 %v3798_v35, %v2632_v59 }
0x1289   :  { %v2660_v14 = vpop.permute.xlu0 %2659 }
0x128a   :  { %v2665_v27 = vmul.f32 %v3792_v33, %v2660_v14 }
0x128b   :  { %v2662_v20 = vpop.permute.xlu1 %2661 }
0x128c   :  { %2669 = vrot.lane.b32.xlu0 %v2665_v27, %s3842_s30  ;;  %v2666_v6 = vmul.f32 %v3796_v2, %v2662_v20 }
0x128d   :  { %v2708_v26 = vpop.permute.xlu0 %2707 }
0x128e   :  { %v2713_v41 = vmul.f32 %v3794_v58, %v2708_v26  ;;  %2671 = vrot.lane.b32.xlu1 %v2666_v6, %s3842_s30 }
0x128f   :  { %v2710_v10 = vpop.permute.xlu1 %2709 }
0x1290   :  { %2717 = vrot.lane.b32.xlu0 %v2713_v41, %s3842_s30  ;;  %v2714_v5 = vmul.f32 %v3798_v35, %v2710_v10 }
0x1291   :  { %v2650_v30 = vpop.permute.xlu0 %2649 }
0x1292   :  { %2719 = vrot.lane.b32.xlu1 %v2714_v5, %s3842_s30  ;;  %v2655_v1 = vmul.f32 %v3792_v33, %v2650_v30 }
0x1293   :  { %v2652_v18 = vpop.permute.xlu1 %2651 }
0x1294   :  { %v2656_v62 = vmul.f32 %v3796_v2, %v2652_v18 }
0x12fe   :  { %v2670_v38 = vpop.permute.xlu0 %2669 }
0x12ff   :  { %v2675_v48 = vadd.f32 %v2670_v38, %v2655_v1 }
0x1300   :  { %v2672_v19 = vpop.permute.xlu1 %2671 }
0x1301   :  { %3799 = vtanh.f32 %v2675_v48  ;;  %v2676_v0 = vadd.f32 %v2672_v19, %v2656_v62 }
0x1302   :  { %v2718_v21 = vpop.permute.xlu0 %2717 }
0x1303   :  { %v2723_v47 = vadd.f32 %v2718_v21, %v2703_v45 }
0x1304   :  { %v2720_v11 = vpop.permute.xlu1 %2719 }
0x1305   :  { %3801 = vtanh.f32 %v2723_v47  ;;  %v2724_v36 = vadd.f32 %v2720_v11, %v2704_v40 }
0x1306   :  { %3803 = vtanh.f32 %v2676_v0 }
0x1307   :  { %3805 = vtanh.f32 %v2724_v36 }
0x130b   :  { %v3800_v24 = vpop.eup %3799 }
0x130c   :  { %2681 = vrot.lane.b32.xlu0 %v3800_v24, %s3841_s5 }
0x130f   :  { %v3802_v39 = vpop.eup %3801 }
0x1310   :  { %v3804_v63 = vpop.eup %3803  ;;  %2729 = vrot.lane.b32.xlu0 %v3802_v39, %s3841_s5 }
0x1311   :  { %2683 = vrot.lane.b32.xlu1 %v3804_v63, %s3841_s5  ;;  %v3806_v57 = vpop.eup %3805 }
0x1315   :  { %2731 = vrot.lane.b32.xlu1 %v3806_v57, %s3841_s5 }
0x137e   :  { %v2682_v12 = vpop.permute.xlu0 %2681 }
0x137f   :  { %v4559_v42 = vmul.f32 %v3792_v33, %v2682_v12 }
0x1382   :  { %v2730_v51 = vpop.permute.xlu0 %2729 }
0x1383   :  { %v2684_v8 = vpop.permute.xlu1 %2683  ;;  %v4565_v27 = vmul.f32 %v3794_v58, %v2730_v51 }
0x1384   :  { %v4561_v59 = vmul.f32 %v3796_v2, %v2684_v8 }
0x1386   :  { %v2749_v13 = vpack.c.bf16 %v4561_v59, %v4559_v42 }
0x1387   :  { %v2732_v14 = vpop.permute.xlu1 %2731 }
0x1388   :  { %v4567_v26 = vmul.f32 %v3798_v35, %v2732_v14  ;;  %2752 = vrot.lane.b32.xlu0 %v2749_v13, %s3842_s30 }
0x138a   :  { %v2750_v20 = vpack.c.bf16 %v4567_v26, %v4565_v27 }
0x138c   :  { %2739 = vrot.lane.b32.xlu0 %v2675_v48, %s3843_s9  ;;  %2755 = vrot.lane.b32.xlu1 %v2750_v20, %s3841_s5 }
0x1390   :  { %2741 = vrot.lane.b32.xlu1 %v2676_v0, %s3843_s9 }
0x13fa   :  { %v2753_v33 = vpop.permute.xlu0 %2752 }
0x13fe   :  { %v2740_v2 = vpop.permute.xlu0 %2739  ;;  %v2756_v41 = vpop.permute.xlu1 %2755 }
0x13ff   :  { %v2745_v6 = vsel %vm195_vm0, %v2740_v2, %v2723_v47  ;;  %v2759_v58 = vsel %vm195_vm0, %v2753_v33, %v2756_v41 }
0x1400   :  { %2747 = vst.msk [vmem:[#allocation5] sm:$0xff] %vm99_vm1, %v2745_v6  ;;  %2761 = vst.msk [vmem:[#allocation4] sm:$0xff] %vm99_vm1, %v2759_v58 }
0x1402   :  { %v2742_v35 = vpop.permute.xlu1 %2741 }
0x1403   :  { %v2746_v10 = vsel %vm195_vm0, %v2742_v35, %v2724_v36 }
0x1404   :  { %2748 = vst.msk [vmem:[#allocation5 + $0x8] sm:$0xff] %vm99_vm1, %v2746_v10 }
0x1407   :  { %v2788_v5 = vld [vmem:[#allocation4] sm:$0xff] }
0x1408   :  { %3319 = vmatmul.mubr.msk.bf16.vlgmr.msra.gmra.mrb[28].mxu1 %vm99_vm1, %v2788_v5 }
0x14db   :  { %v2874_v30 = vpop.f32.mrb[28].mxu1 }
0x14dc   :  { %v2886_v1 = vadd.f32 %v2874_v30, %v4185_v44  ;;  %v2876_v38 = vpop.f32.mrb[29].mxu1  ;;  %v3330_v30 = vpack.c.bf16 %v4220_v23, %v4220_v23  ;;  %v3333_v23 = vpack.c.bf16 %v4228_v32, %v4228_v32 }
0x14dd   :  { %v2890_v18 = vadd.f32 %v2876_v38, %v4125_v60  ;;  %v2878_v48 = vpop.f32.mrb[30].mxu1  ;;  %v2892_v60 = vld [vmem:[#allocation5] sm:$0xff] }
0x14de   :  { %3807 = vtanh.f32 %v2886_v1  ;;  %v2887_v45 = vadd.f32 %v2878_v48, %v4194_v53  ;;  %v2880_v62 = vpop.f32.mrb[31].mxu1  ;;  %v2893_v53 = vld [vmem:[#allocation5 + $0x8] sm:$0xff]  ;;  %v3331_v48 = vpack.c.bf16 %v4222_v31, %v4222_v31 }
0x14df   :  { %v2891_v21 = vadd.f32 %v2880_v62, %v4134_v3  ;;  %3809 = vtanh.f32 %v2890_v18  ;;  %v3320_v3 = vmul.f32 -1.442695, %v2886_v1  ;;  %v3322_v40 = vmul.f32 -1.442695, %v2890_v18 }
0x14e0   :  { %3811 = vtanh.f32 %v2887_v45  ;;  %v3321_v11 = vmul.f32 -1.442695, %v2887_v45  ;;  %v3332_v18 = vpack.c.bf16 %v4226_v52, %v4226_v52 }
0x14e1   :  { %3813 = vtanh.f32 %v2891_v21  ;;  %v3323_v36 = vmul.f32 -1.442695, %v2891_v21 }
0x14e2   :  { %3815 = vpow2.f32 %v3320_v3 }
0x14e3   :  { %3817 = vpow2.f32 %v3322_v40 }
0x14e4   :  { %3819 = vpow2.f32 %v3321_v11 }
0x14e5   :  { %3821 = vpow2.f32 %v3323_v36 }
0x14e8   :  { %v3808_v19 = vpop.eup %3807 }
0x14e9   :  { %2920 = vrot.lane.b32.xlu0 %v3808_v19, %s3841_s5  ;;  %v3810_v47 = vpop.eup %3809 }
0x14ea   :  { %v3812_v0 = vpop.eup %3811 }
0x14eb   :  { %2922 = vrot.lane.b32.xlu1 %v3812_v0, %s3841_s5  ;;  %v3814_v44 = vpop.eup %3813 }
0x14ec   :  { %v3816_v24 = vpop.eup %3815 }
0x14ed   :  { %2968 = vrot.lane.b32.xlu0 %v3810_v47, %s3841_s5  ;;  %v2900_v39 = vadd.f32 1.0, %v3816_v24  ;;  %v3818_v63 = vpop.eup %3817 }
0x14ee   :  { %v3820_v57 = vpop.eup %3819  ;;  %v2956_v12 = vadd.f32 1.0, %v3818_v63 }
0x14ef   :  { %2970 = vrot.lane.b32.xlu1 %v3814_v44, %s3841_s5  ;;  %3823 = vrcp.f32 %v2900_v39  ;;  %v2901_v8 = vadd.f32 1.0, %v3820_v57  ;;  %v3822_v51 = vpop.eup %3821 }
0x14f0   :  { %3825 = vrcp.f32 %v2956_v12  ;;  %v2957_v13 = vadd.f32 1.0, %v3822_v51 }
0x14f1   :  { %2910 = vrot.lane.b32.xlu0 %v2892_v60, %s3842_s30  ;;  %3827 = vrcp.f32 %v2901_v8  ;;  %v3334_v8 = vpack.c.bf16 %v4269_v56, %v4269_v56  ;;  %v3338_v56 = vpack.c.bf16 %v4311_v7, %v4311_v7  ;;  %v3342_v7 = vpack.c.bf16 %v4409_v4, %v4409_v4 }
0x14f2   :  { %3829 = vrcp.f32 %v2957_v13  ;;  %v3336_v13 = vpack.c.bf16 %v4275_v15, %v4275_v15  ;;  %v3339_v15 = vpack.c.bf16 %v4313_v17, %v4313_v17  ;;  %v3343_v17 = vpack.c.bf16 %v4411_v34, %v4411_v34 }
0x14f3   :  { %2912 = vrot.lane.b32.xlu1 %v2893_v53, %s3842_s30  ;;  %v3346_v4 = vpack.c.bf16 %v4469_v9, %v4469_v9  ;;  %v3347_v34 = vpack.c.bf16 %v4471_v37, %v4471_v37  ;;  %v3350_v9 = vpack.c.bf16 %v4518_v22, %v4518_v22  ;;  %v3351_v37 = vpack.c.bf16 %v4520_v29, %v4520_v29 }
0x14f4   :  { %v3354_v22 = vpack.c.bf16 %v4559_v42, %v4559_v42  ;;  %v3355_v29 = vpack.c.bf16 %v4561_v59, %v4561_v59  ;;  %v3357_v42 = vpack.c.bf16 %v4567_v26, %v4567_v26 }
0x14f9   :  { %v4592_v14 = vpop.eup %3823 }
0x14fa   :  { %v4596_v2 = vpop.eup %3825 }
0x14fb   :  { %v4598_v6 = vpop.eup %3827  ;;  %v2964_v52 = vmul.f32 %v4596_v2, %v2892_v60 }
0x14fc   :  { %v4604_v5 = vpop.eup %3829 }
0x14fd   :  { %v2965_v32 = vmul.f32 %v4604_v5, %v2893_v53 }
0x155b   :  { %v2921_v20 = vpop.permute.xlu0 %2920 }
0x155c   :  { %v2926_v33 = vmul.f32 %v4592_v14, %v2921_v20  ;;  %v3335_v20 = vpack.c.bf16 %v4271_v61, %v4271_v61  ;;  %v3340_v61 = vpack.c.bf16 %v4317_v55, %v4317_v55  ;;  %v3344_v55 = vpack.c.bf16 %v4425_v43, %v4425_v43 }
0x155d   :  { %v2923_v58 = vpop.permute.xlu1 %2922  ;;  %v3348_v43 = vpack.c.bf16 %v4475_v25, %v4475_v25  ;;  %v3352_v25 = vpack.c.bf16 %v4524_v28, %v4524_v28  ;;  %v3356_v28 = vpack.c.bf16 %v4565_v27, %v4565_v27 }
0x155e   :  { %2930 = vrot.lane.b32.xlu0 %v2926_v33, %s3842_s30  ;;  %v2927_v10 = vmul.f32 %v4598_v6, %v2923_v58  ;;  %v3337_v33 = vpack.c.bf16 %v4277_v46, %v4277_v46  ;;  %v3341_v46 = vpack.c.bf16 %v4319_v49, %v4319_v49  ;;  %v3345_v49 = vpack.c.bf16 %v4428_v50, %v4428_v50 }
0x155f   :  { %v2969_v41 = vpop.permute.xlu0 %2968  ;;  %v3349_v50 = vpack.c.bf16 %v4477_v16, %v4477_v16  ;;  %v3353_v16 = vpack.c.bf16 %v4526_v54, %v4526_v54 }
0x1560   :  { %v2974_v35 = vmul.f32 %v4596_v2, %v2969_v41  ;;  %2932 = vrot.lane.b32.xlu1 %v2927_v10, %s3842_s30 }
0x1561   :  { %v2971_v1 = vpop.permute.xlu1 %2970 }
0x1562   :  { %2978 = vrot.lane.b32.xlu0 %v2974_v35, %s3842_s30  ;;  %v2975_v38 = vmul.f32 %v4604_v5, %v2971_v1 }
0x1563   :  { %v2911_v45 = vpop.permute.xlu0 %2910 }
0x1564   :  { %2980 = vrot.lane.b32.xlu1 %v2975_v38, %s3842_s30  ;;  %v2916_v62 = vmul.f32 %v4592_v14, %v2911_v45 }
0x1565   :  { %v2913_v19 = vpop.permute.xlu1 %2912 }
0x1566   :  { %1194 = vrot.lane.b32.xlu0 %v3330_v30, %s3842_s30  ;;  %v2917_v31 = vmul.f32 %v4598_v6, %v2913_v19 }
0x1568   :  { %1196 = vrot.lane.b32.xlu1 %v3331_v48, %s3842_s30 }
0x156a   :  { %1207 = vrot.lane.b32.xlu0 %v3332_v18, %s3842_s30 }
0x156c   :  { %1209 = vrot.lane.b32.xlu1 %v3333_v23, %s3842_s30 }
0x15d0   :  { %v2931_v21 = vpop.permute.xlu0 %2930 }
0x15d1   :  { %v2936_v47 = vadd.f32 %v2931_v21, %v2916_v62 }
0x15d2   :  { %v2933_v44 = vpop.permute.xlu1 %2932 }
0x15d3   :  { %3831 = vtanh.f32 %v2936_v47  ;;  %v2937_v40 = vadd.f32 %v2933_v44, %v2917_v31 }
0x15d4   :  { %v2979_v0 = vpop.permute.xlu0 %2978 }
0x15d5   :  { %v4623_v3 = vadd.f32 %v2979_v0, %v2964_v52 }
0x15d6   :  { %v2981_v36 = vpop.permute.xlu1 %2980 }
0x15d7   :  { %3833 = vtanh.f32 %v4623_v3  ;;  %v4631_v60 = vadd.f32 %v2981_v36, %v2965_v32 }
0x15d8   :  { %3835 = vtanh.f32 %v2937_v40  ;;  %v1195_v11 = vpop.permute.xlu0 %1194 }
0x15d9   :  { %1201 = vst.msk [vmem:[%s4861_s7] sm:$0xf] %vm1200_vm2, %v1195_v11  ;;  %3837 = vtanh.f32 %v4631_v60 }
0x15da   :  { %v1197_v63 = vpop.permute.xlu1 %1196 }
0x15db   :  { %1202 = vst.msk [vmem:[%s4861_s7 + $0x4] sm:$0xf] %vm1200_vm2, %v1197_v63 }
0x15dc   :  { %v1208_v24 = vpop.permute.xlu0 %1207 }
0x15dd   :  { %v3832_v39 = vpop.eup %3831  ;;  %3183 = vst.msk [vmem:[%s4862_s8 + $0x38] sm:$0xf] %vm1200_vm2, %v1208_v24 }
0x15de   :  { %2942 = vrot.lane.b32.xlu0 %v3832_v39, %s3841_s5  ;;  %v1210_v57 = vpop.permute.xlu1 %1209 }
0x15df   :  { %3184 = vst.msk [vmem:[%s4862_s8 + $0x3c] sm:$0xf] %vm1200_vm2, %v1210_v57 }
0x15e1   :  { %v3834_v53 = vpop.eup %3833 }
0x15e2   :  { %v3836_v12 = vpop.eup %3835  ;;  %2990 = vrot.lane.b32.xlu0 %v3834_v53, %s3841_s5 }
0x15e3   :  { %2944 = vrot.lane.b32.xlu1 %v3836_v12, %s3841_s5  ;;  %v3838_v51 = vpop.eup %3837 }
0x15e6   :  { %1456 = vrot.lane.b32.xlu0 %v3334_v8, %s3842_s30 }
0x15e7   :  { %2992 = vrot.lane.b32.xlu1 %v3838_v51, %s3841_s5 }
0x15ea   :  { %1469 = vrot.lane.b32.xlu0 %v3336_v13, %s3842_s30 }
0x15eb   :  { %1458 = vrot.lane.b32.xlu1 %v3335_v20, %s3842_s30 }
0x15ee   :  { %3002 = vrot.lane.b32.xlu0 %v2937_v40, %s3843_s9 }
0x15ef   :  { %3000 = vrot.lane.b32.xlu1 %v2936_v47, %s3843_s9 }
0x15f2   :  { %1718 = vrot.lane.b32.xlu0 %v3338_v56, %s3842_s30 }
0x15f3   :  { %1471 = vrot.lane.b32.xlu1 %v3337_v33, %s3842_s30 }
0x15f6   :  { %1731 = vrot.lane.b32.xlu0 %v3340_v61, %s3842_s30 }
0x15f7   :  { %1720 = vrot.lane.b32.xlu1 %v3339_v15, %s3842_s30 }
0x15fa   :  { %1980 = vrot.lane.b32.xlu0 %v3342_v7, %s3842_s30 }
0x15fb   :  { %1733 = vrot.lane.b32.xlu1 %v3341_v46, %s3842_s30 }
0x15fe   :  { %1993 = vrot.lane.b32.xlu0 %v3344_v55, %s3842_s30 }
0x15ff   :  { %1982 = vrot.lane.b32.xlu1 %v3343_v17, %s3842_s30 }
0x1602   :  { %2242 = vrot.lane.b32.xlu0 %v3346_v4, %s3842_s30 }
0x1603   :  { %1995 = vrot.lane.b32.xlu1 %v3345_v49, %s3842_s30 }
0x1606   :  { %2255 = vrot.lane.b32.xlu0 %v3348_v43, %s3842_s30 }
0x1607   :  { %2244 = vrot.lane.b32.xlu1 %v3347_v34, %s3842_s30 }
0x160a   :  { %2504 = vrot.lane.b32.xlu0 %v3350_v9, %s3842_s30 }
0x160b   :  { %2257 = vrot.lane.b32.xlu1 %v3349_v50, %s3842_s30 }
0x160e   :  { %2517 = vrot.lane.b32.xlu0 %v3352_v25, %s3842_s30 }
0x160f   :  { %2506 = vrot.lane.b32.xlu1 %v3351_v37, %s3842_s30 }
0x1612   :  { %2766 = vrot.lane.b32.xlu0 %v3354_v22, %s3842_s30 }
0x1613   :  { %2519 = vrot.lane.b32.xlu1 %v3353_v16, %s3842_s30 }
0x1616   :  { %2779 = vrot.lane.b32.xlu0 %v3356_v28, %s3842_s30 }
0x1617   :  { %2768 = vrot.lane.b32.xlu1 %v3355_v29, %s3842_s30 }
0x161b   :  { %2781 = vrot.lane.b32.xlu1 %v3357_v42, %s3842_s30 }
0x1650   :  { %v2943_v54 = vpop.permute.xlu0 %2942 }
0x1651   :  { %v2948_v41 = vmul.f32 %v4592_v14, %v2943_v54 }
0x1653   :  { %v3358_v58 = vpack.c.bf16 %v2948_v41, %v2948_v41 }
0x1654   :  { %v2991_v35 = vpop.permute.xlu0 %2990 }
0x1655   :  { %v2945_v10 = vpop.permute.xlu1 %2944  ;;  %3027 = vrot.lane.b32.xlu0 %v3358_v58, %s3842_s30  ;;  %v2996_v26 = vmul.f32 %v4596_v2, %v2991_v35 }
0x1656   :  { %v2949_v27 = vmul.f32 %v4598_v6, %v2945_v10 }
0x1657   :  { %v3360_v2 = vpack.c.bf16 %v2996_v26, %v2996_v26 }
0x1658   :  { %v3010_v59 = vpack.c.bf16 %v2949_v27, %v2948_v41  ;;  %v1457_v30 = vpop.permute.xlu0 %1456  ;;  %v3359_v14 = vpack.c.bf16 %v2949_v27, %v2949_v27 }
0x1659   :  { %v2993_v1 = vpop.permute.xlu1 %2992  ;;  %3200 = vst.msk [vmem:[%s4861_s7 + $0x8] sm:$0xf] %vm1200_vm2, %v1457_v30 }
0x165a   :  { %v2997_v38 = vmul.f32 %v4604_v5, %v2993_v1  ;;  %3013 = vrot.lane.b32.xlu1 %v3010_v59, %s3842_s30 }
0x165c   :  { %v3011_v18 = vpack.c.bf16 %v2997_v38, %v2996_v26  ;;  %v1470_v48 = vpop.permute.xlu0 %1469  ;;  %v3361_v6 = vpack.c.bf16 %v2997_v38, %v2997_v38 }
0x165d   :  { %v1459_v23 = vpop.permute.xlu1 %1458  ;;  %3204 = vst.msk [vmem:[%s4862_s8 + $0x30] sm:$0xf] %vm1200_vm2, %v1470_v48 }
0x165e   :  { %3201 = vst.msk [vmem:[%s4861_s7 + $0xc] sm:$0xf] %vm1200_vm2, %v1459_v23  ;;  %3029 = vrot.lane.b32.xlu1 %v3359_v14, %s3842_s30  ;;  %3016 = vrot.lane.b32.xlu0 %v3011_v18, %s3841_s5 }
0x1660   :  { %v3003_v5 = vpop.permute.xlu0 %3002 }
0x1661   :  { %v3001_v45 = vpop.permute.xlu1 %3000  ;;  %v3007_v62 = vsel %vm195_vm0, %v3003_v5, %v4631_v60 }
0x1662   :  { %v3006_v21 = vsel %vm195_vm0, %v3001_v45, %v4623_v3  ;;  %3042 = vrot.lane.b32.xlu1 %v3361_v6, %s3842_s30  ;;  %3040 = vrot.lane.b32.xlu0 %v3360_v2, %s3842_s30  ;;  %3009 = vst.msk [vmem:[#allocation5 + $0x8] sm:$0xff] %vm99_vm1, %v3007_v62 }
0x1663   :  { %3008 = vst.msk [vmem:[#allocation5] sm:$0xff] %vm99_vm1, %v3006_v21 }
0x1664   :  { %v1719_v19 = vpop.permute.xlu0 %1718 }
0x1665   :  { %v1472_v47 = vpop.permute.xlu1 %1471  ;;  %3221 = vst.msk [vmem:[%s4861_s7 + $0x10] sm:$0xf] %vm1200_vm2, %v1719_v19 }
0x1666   :  { %3205 = vst.msk [vmem:[%s4862_s8 + $0x34] sm:$0xf] %vm1200_vm2, %v1472_v47 }
0x1668   :  { %v1732_v52 = vpop.permute.xlu0 %1731 }
0x1669   :  { %v1721_v31 = vpop.permute.xlu1 %1720  ;;  %3225 = vst.msk [vmem:[%s4862_s8 + $0x28] sm:$0xf] %vm1200_vm2, %v1732_v52 }
0x166a   :  { %3222 = vst.msk [vmem:[%s4861_s7 + $0x14] sm:$0xf] %vm1200_vm2, %v1721_v31 }
0x166c   :  { %v1981_v0 = vpop.permute.xlu0 %1980 }
0x166d   :  { %v1734_v44 = vpop.permute.xlu1 %1733  ;;  %3242 = vst.msk [vmem:[%s4861_s7 + $0x18] sm:$0xf] %vm1200_vm2, %v1981_v0 }
0x166e   :  { %3226 = vst.msk [vmem:[%s4862_s8 + $0x2c] sm:$0xf] %vm1200_vm2, %v1734_v44 }
0x1670   :  { %v1994_v3 = vpop.permute.xlu0 %1993 }
0x1671   :  { %v1983_v40 = vpop.permute.xlu1 %1982  ;;  %3246 = vst.msk [vmem:[%s4862_s8 + $0x20] sm:$0xf] %vm1200_vm2, %v1994_v3 }
0x1672   :  { %3243 = vst.msk [vmem:[%s4861_s7 + $0x1c] sm:$0xf] %vm1200_vm2, %v1983_v40 }
0x1674   :  { %v2243_v32 = vpop.permute.xlu0 %2242 }
0x1675   :  { %v1996_v11 = vpop.permute.xlu1 %1995  ;;  %3263 = vst.msk [vmem:[%s4861_s7 + $0x20] sm:$0xf] %vm1200_vm2, %v2243_v32 }
0x1676   :  { %3247 = vst.msk [vmem:[%s4862_s8 + $0x24] sm:$0xf] %vm1200_vm2, %v1996_v11 }
0x1678   :  { %v2256_v36 = vpop.permute.xlu0 %2255 }
0x1679   :  { %v2245_v60 = vpop.permute.xlu1 %2244  ;;  %3267 = vst.msk [vmem:[%s4862_s8 + $0x18] sm:$0xf] %vm1200_vm2, %v2256_v36 }
0x167a   :  { %3264 = vst.msk [vmem:[%s4861_s7 + $0x24] sm:$0xf] %vm1200_vm2, %v2245_v60 }
0x167c   :  { %v2505_v24 = vpop.permute.xlu0 %2504 }
0x167d   :  { %v2258_v39 = vpop.permute.xlu1 %2257  ;;  %3284 = vst.msk [vmem:[%s4861_s7 + $0x28] sm:$0xf] %vm1200_vm2, %v2505_v24 }
0x167e   :  { %3268 = vst.msk [vmem:[%s4862_s8 + $0x1c] sm:$0xf] %vm1200_vm2, %v2258_v39 }
0x1680   :  { %v2518_v63 = vpop.permute.xlu0 %2517 }
0x1681   :  { %v2507_v53 = vpop.permute.xlu1 %2506  ;;  %3288 = vst.msk [vmem:[%s4862_s8 + $0x10] sm:$0xf] %vm1200_vm2, %v2518_v63 }
0x1682   :  { %3285 = vst.msk [vmem:[%s4861_s7 + $0x2c] sm:$0xf] %vm1200_vm2, %v2507_v53 }
0x1684   :  { %v2767_v57 = vpop.permute.xlu0 %2766 }
0x1685   :  { %v2520_v12 = vpop.permute.xlu1 %2519  ;;  %3305 = vst.msk [vmem:[%s4861_s7 + $0x30] sm:$0xf] %vm1200_vm2, %v2767_v57 }
0x1686   :  { %3289 = vst.msk [vmem:[%s4862_s8 + $0x14] sm:$0xf] %vm1200_vm2, %v2520_v12 }
0x1688   :  { %v2780_v8 = vpop.permute.xlu0 %2779 }
0x1689   :  { %v2769_v51 = vpop.permute.xlu1 %2768  ;;  %3309 = vst.msk [vmem:[%s4862_s8 + $0x8] sm:$0xf] %vm1200_vm2, %v2780_v8 }
0x168a   :  { %3306 = vst.msk [vmem:[%s4861_s7 + $0x34] sm:$0xf] %vm1200_vm2, %v2769_v51 }
0x168d   :  { %v2782_v13 = vpop.permute.xlu1 %2781 }
0x168e   :  { %3310 = vst.msk [vmem:[%s4862_s8 + $0xc] sm:$0xf] %vm1200_vm2, %v2782_v13 }
0x16c7   :  { %v3028_v20 = vpop.permute.xlu0 %3027 }
0x16c8   :  { %3326 = vst.msk [vmem:[%s4861_s7 + $0x38] sm:$0xf] %vm1200_vm2, %v3028_v20 }
0x16cc   :  { %v3014_v56 = vpop.permute.xlu1 %3013 }
0x16d0   :  { %v3017_v33 = vpop.permute.xlu0 %3016  ;;  %v3030_v61 = vpop.permute.xlu1 %3029 }
0x16d1   :  { %v3020_v15 = vsel %vm195_vm0, %v3014_v56, %v3017_v33  ;;  %3327 = vst.msk [vmem:[%s4861_s7 + $0x3c] sm:$0xf] %vm1200_vm2, %v3030_v61 }
0x16d2   :  { %3022 = vst.msk [vmem:[#allocation4] sm:$0xff] %vm99_vm1, %v3020_v15 }
0x16d4   :  { %v3041_v7 = vpop.permute.xlu0 %3040  ;;  %v3043_v46 = vpop.permute.xlu1 %3042 }
0x16d5   :  { %3046 = vst.msk [vmem:[%s4862_s8] sm:$0xf] %vm1200_vm2, %v3041_v7  ;;  %3047 = vst.msk [vmem:[%s4862_s8 + $0x4] sm:$0xf] %vm1200_vm2, %v3043_v46 }

</bundles_post_ra>
